<compile_context>
chip_gen: v6e
topology: v6e:2x2x1
jax: 0.10.0
libtpu: 0.0.40
codegen_flags: <defaults>
</compile_context>

<pallas_src>
import functools

import numpy as np
import jax
import jax.numpy as jnp
from jax.experimental import pallas as pl
from jax.experimental.pallas import tpu as pltpu

BN_EPS = 1e-5
# Left/right zero-column blocks in the padded conv scratch.  Using 8 keeps the big interior
# store sublane-aligned; only the single column adjacent to the interior acts as conv padding.
_PAD_COLS = 8


# ----------------------------------------------------------------------------
# Bilinear 2x interpolation matrix (align_corners=True), precomputed per shape.
# ----------------------------------------------------------------------------

def _bilinear_matrix_np(n_in, n_out):
    if n_out == 1:
        src = np.zeros((1,), np.float64)
    else:
        src = np.arange(n_out, dtype=np.float64) * (n_in - 1) / (n_out - 1)
    lo = np.clip(np.floor(src).astype(np.int64), 0, n_in - 1)
    hi = np.clip(lo + 1, 0, n_in - 1)
    frac = src - lo
    mat = np.zeros((n_out, n_in), np.float64)
    rows = np.arange(n_out)
    mat[rows, lo] += 1.0 - frac
    mat[rows, hi] += frac
    return mat


@functools.lru_cache(maxsize=None)
def _upsample2x_kron(h, w):
    # out[(Y*2w + X), (y*w + x)] = A_h[Y, y] * A_w[X, x]  -> one matmul does the 2D upsample.
    ah = _bilinear_matrix_np(h, 2 * h)
    aw = _bilinear_matrix_np(w, 2 * w)
    return np.kron(ah, aw).astype(np.float32)          # (4*h*w, h*w)


# ----------------------------------------------------------------------------
# Fused Up-block Pallas kernel (one batch element per grid step).
# ----------------------------------------------------------------------------

def _up_block_kernel(um_ref, x1_ref, x2_ref,
                     w1_ref, s1_ref, b1_ref,
                     w2_ref, s2_ref, b2_ref,
                     o_ref,
                     pad1_ref, pad2_ref, col1_ref, col2_ref):
    f32, bf16 = jnp.float32, jnp.bfloat16
    hp, wb, cin1 = pad1_ref.shape
    H = hp - 2
    W = wb - 2 * _PAD_COLS
    HW = H * W
    cmid = pad2_ref.shape[-1]
    c1 = x1_ref.shape[1]                     # upsampled-input channels
    c2 = x2_ref.shape[1]                     # skip-connection channels
    c0 = _PAD_COLS                           # column offset of the interior in the scratch

    # ---- bilinear 2x upsample (align_corners=True): one matmul with kron(A_h, A_w) ----
    x1n = jnp.transpose(x1_ref[0], (1, 0))                          # (h*w, C1)
    up = jnp.dot(um_ref[...], x1n, preferred_element_type=f32)      # (H*W, C1)

    # ---- zero-padded conv1 input; channel order = [x2 skip, upsampled x1] (torch.cat dim=1) ----
    pad1_ref[...] = jnp.zeros_like(pad1_ref)
    x2n = jnp.transpose(x2_ref[0], (1, 0))                          # (H*W, C2)
    pad1_ref[1:H + 1, c0:c0 + W, 0:c2] = x2n.reshape(H, W, c2)
    pad1_ref[1:H + 1, c0:c0 + W, c2:c2 + c1] = up.reshape(H, W, c1)

    # ---- conv1 3x3 (no bias) + folded BN + ReLU: single K-packed bf16 MXU matmul ----
    for k in range(9):
        dy, dx = k // 3, k % 3
        tap = pad1_ref[dy:dy + H, c0 - 1 + dx:c0 - 1 + dx + W, :]   # (H, W, cin1)
        col1_ref[:, k * cin1:(k + 1) * cin1] = tap.reshape(HW, cin1).astype(bf16)
    a1 = jnp.dot(col1_ref[...], w1_ref[...], preferred_element_type=f32)   # (HW, cmid)
    a1 = jnp.maximum(a1 * s1_ref[...] + b1_ref[...], 0.0)

    # ---- conv2 3x3 (no bias) + folded BN + ReLU ----
    pad2_ref[...] = jnp.zeros_like(pad2_ref)
    pad2_ref[1:H + 1, c0:c0 + W, :] = a1.reshape(H, W, cmid)
    for k in range(9):
        dy, dx = k // 3, k % 3
        tap = pad2_ref[dy:dy + H, c0 - 1 + dx:c0 - 1 + dx + W, :]   # (H, W, cmid)
        col2_ref[:, k * cmid:(k + 1) * cmid] = tap.reshape(HW, cmid).astype(bf16)
    a2 = jnp.dot(col2_ref[...], w2_ref[...], preferred_element_type=f32)   # (HW, cout)
    a2 = jnp.maximum(a2 * s2_ref[...] + b2_ref[...], 0.0)

    # ---- lane-dense NCHW store: (Cout, H*W), last dim is a multiple of 128 ----
    o_ref[0] = jnp.transpose(a2, (1, 0))


def up_forward(params, x1_nchw, x2_nchw):
    """Up(x1, x2): bilinear 2x upsample of x1, pad/concat with x2, DoubleConv. NCHW in/out."""
    n, c1, h, w = x1_nchw.shape
    n2, c2, H, W = x2_nchw.shape
    assert n == n2
    # TODO(synk): only the exact-2x case (diffY == diffX == 0) of Up.forward is implemented;
    #             the asymmetric-pad branch for odd skip sizes (and the bilinear=False
    #             ConvTranspose2d branch) are not handled.
    assert H == 2 * h and W == 2 * w, "skip must be exactly 2x the upsampled input"
    assert H % 8 == 0 and W % 8 == 0 and (H * W) % 128 == 0, "spatial dims must be TPU friendly"

    cin1 = c1 + c2
    cmid = params["w1"].shape[1]
    cout = params["w2"].shape[1]
    assert params["w1"].shape[0] == 9 * cin1 and params["w2"].shape[0] == 9 * cmid
    HW = H * W

    um = jnp.asarray(_upsample2x_kron(h, w))             # (HW, h*w) f32, compile-time constant
    x1f = x1_nchw.reshape(n, c1, h * w)                  # native NCHW, flattened (free)
    x2f = x2_nchw.reshape(n, c2, HW)

    out = pl.pallas_call(
        _up_block_kernel,
        out_shape=jax.ShapeDtypeStruct((n, cout, HW), jnp.float32),
        grid=(n,),
        in_specs=[
            pl.BlockSpec((HW, h * w), lambda b: (0, 0)),          # upsample matrix (resident)
            pl.BlockSpec((1, c1, h * w), lambda b: (b, 0, 0)),    # x1 (NCHW, flattened)
            pl.BlockSpec((1, c2, HW), lambda b: (b, 0, 0)),       # x2 (NCHW, flattened)
            pl.BlockSpec((9 * cin1, cmid), lambda b: (0, 0)),     # conv1 packed weights (bf16)
            pl.BlockSpec((1, cmid), lambda b: (0, 0)),            # conv1 folded BN scale
            pl.BlockSpec((1, cmid), lambda b: (0, 0)),            # conv1 folded BN bias
            pl.BlockSpec((9 * cmid, cout), lambda b: (0, 0)),     # conv2 packed weights (bf16)
            pl.BlockSpec((1, cout), lambda b: (0, 0)),            # conv2 folded BN scale
            pl.BlockSpec((1, cout), lambda b: (0, 0)),            # conv2 folded BN bias
        ],
        out_specs=pl.BlockSpec((1, cout, HW), lambda b: (b, 0, 0)),
        scratch_shapes=[
            pltpu.VMEM((H + 2, W + 2 * _PAD_COLS, cin1), jnp.float32),   # padded conv1 input
            pltpu.VMEM((H + 2, W + 2 * _PAD_COLS, cmid), jnp.float32),   # padded conv2 input
            pltpu.VMEM((HW, 9 * cin1), jnp.bfloat16),                    # K-packed im2col, conv1
            pltpu.VMEM((HW, 9 * cmid), jnp.bfloat16),                    # K-packed im2col, conv2
        ],
        compiler_params=pltpu.CompilerParams(dimension_semantics=("parallel",)),
    )(um, x1f, x2f,
      params["w1"], params["s1"], params["b1"],
      params["w2"], params["s2"], params["b2"])

    return out.reshape(n, cout, H, W)                    # already NCHW


# ----------------------------------------------------------------------------
# Parameters (deterministic synthetic init, eval-mode BN folded into scale/bias)
# ----------------------------------------------------------------------------

def _fold_bn(gamma, beta, mean, var):
    scale = gamma / jnp.sqrt(var + BN_EPS)
    bias = beta - mean * scale
    return scale, bias


def _init_conv_bn(key, cin, cout):
    k1, k2, k3, k4, k5 = jax.random.split(key, 5)
    # HWIO so that .reshape(9*cin, cout) matches the (dy, dx, cin)-ordered im2col packing.
    w = jax.random.normal(k1, (3, 3, cin, cout), jnp.float32) / jnp.sqrt(9.0 * cin)
    gamma = 1.0 + 0.1 * jax.random.normal(k2, (cout,), jnp.float32)
    beta = 0.1 * jax.random.normal(k3, (cout,), jnp.float32)
    mean = 0.1 * jax.random.normal(k4, (cout,), jnp.float32)
    var = 0.5 + jax.random.uniform(k5, (cout,), jnp.float32)
    scale, bias = _fold_bn(gamma, beta, mean, var)
    wp = w.reshape(9 * cin, cout).astype(jnp.bfloat16)        # packed + pre-cast to bf16
    return wp, scale.reshape(1, cout), bias.reshape(1, cout)


def init_up(key, in_channels, skip_channels, out_channels, bilinear=True):
    assert bilinear, "TODO(synk): bilinear=False (ConvTranspose2d) branch not implemented"
    conv_in = max(1, in_channels + skip_channels)
    out_channels = max(1, out_channels)
    mid = out_channels                                        # DoubleConv default: mid = out
    k1, k2 = jax.random.split(key)
    w1, s1, b1 = _init_conv_bn(k1, conv_in, mid)
    w2, s2, b2 = _init_conv_bn(k2, mid, out_channels)
    return {"w1": w1, "s1": s1, "b1": b1, "w2": w2, "s2": s2, "b2": b2}


# ----------------------------------------------------------------------------
# Pure-JAX reference (XLA ops) for a correctness cross-check
# ----------------------------------------------------------------------------

def up_forward_reference(params, x1, x2):
    n, c1, h, w = x1.shape
    _, c2, H, W = x2.shape
    um = jnp.asarray(_upsample2x_kron(h, w))
    x1up = jnp.einsum("pq,ncq->ncp", um, x1.reshape(n, c1, h * w)).reshape(n, c1, H, W)
    x = jnp.concatenate([x2, x1up], axis=1)                   # torch.cat([x2, x1], dim=1)
    x = jnp.transpose(x, (0, 2, 3, 1))                        # NHWC

    def conv_bn_relu(x, wp, s, b):
        cin, cout = x.shape[-1], wp.shape[-1]
        wf = wp.astype(jnp.float32).reshape(3, 3, cin, cout)
        y = jax.lax.conv_general_dilated(
            x, wf, window_strides=(1, 1), padding=((1, 1), (1, 1)),
            dimension_numbers=("NHWC", "HWIO", "NHWC"))
        return jnp.maximum(y * s.reshape(1, 1, 1, -1) + b.reshape(1, 1, 1, -1), 0.0)

    x = conv_bn_relu(x, params["w1"], params["s1"], params["b1"])
    x = conv_bn_relu(x, params["w2"], params["s2"], params["b2"])
    return jnp.transpose(x, (0, 3, 1, 2))                     # NCHW


if __name__ == "__main__":
    key = jax.random.PRNGKey(0)
    k1, k2, kp = jax.random.split(key, 3)

    # Up(in_channels=32, skip_channels=16, out_channels=16, bilinear=True)
    N, C1, h, w = 2, 32, 8, 8
    C2, H, W = 16, 16, 16
    COUT = 16
    x1 = jax.random.normal(k1, (N, C1, h, w), jnp.float32)
    x2 = jax.random.normal(k2, (N, C2, H, W), jnp.float32)
    params = init_up(kp, in_channels=C1, skip_channels=C2, out_channels=COUT)

    out = jax.jit(up_forward)(params, x1, x2)
    out = jax.block_until_ready(out)
    assert out.shape == (N, COUT, H, W), out.shape
    assert bool(jnp.all(jnp.isfinite(out)))

    ref = jax.block_until_ready(up_forward_reference(params, x1, x2))
    np.testing.assert_allclose(np.asarray(out), np.asarray(ref), rtol=0.1, atol=0.1)

    print("KERNEL_OK")
</pallas_src>

<mosaic_0001>
module attributes {stable_mosaic.version = 11 : i64} {
  func.func @_up_block_kernel(%arg0: i32, %arg1: memref<256x64xf32, #tpu.memory_space<vmem>>, %arg2: memref<1x32x64xf32, #tpu.memory_space<vmem>>, %arg3: memref<1x16x256xf32, #tpu.memory_space<vmem>>, %arg4: memref<432x16xbf16, #tpu.memory_space<vmem>>, %arg5: memref<1x16xf32, #tpu.memory_space<vmem>>, %arg6: memref<1x16xf32, #tpu.memory_space<vmem>>, %arg7: memref<144x16xbf16, #tpu.memory_space<vmem>>, %arg8: memref<1x16xf32, #tpu.memory_space<vmem>>, %arg9: memref<1x16xf32, #tpu.memory_space<vmem>>, %arg10: memref<1x16x256xf32, #tpu.memory_space<vmem>>, %arg11: memref<18x32x48xf32, #tpu.memory_space<vmem>>, %arg12: memref<18x32x16xf32, #tpu.memory_space<vmem>>, %arg13: memref<256x432xbf16, #tpu.memory_space<vmem>>, %arg14: memref<256x144xbf16, #tpu.memory_space<vmem>>) attributes {dimension_semantics = [#tpu.dimension_semantics<parallel>], iteration_bounds = array<i64: 2>, scalar_prefetch = 0 : i64, scratch_operands = 4 : i64, tpu.core_type = #tpu.core_type<tc>, window_params = [{pipeline_mode = #tpu.pipeline_mode<synchronous>, transform_indices = @transform_0, window_bounds = array<i64: 256, 64>}, {transform_indices = @transform_1, window_bounds = array<i64: 1, 32, 64>}, {transform_indices = @transform_2, window_bounds = array<i64: 1, 16, 256>}, {pipeline_mode = #tpu.pipeline_mode<synchronous>, transform_indices = @transform_3, window_bounds = array<i64: 432, 16>}, {pipeline_mode = #tpu.pipeline_mode<synchronous>, transform_indices = @transform_4, window_bounds = array<i64: 1, 16>}, {pipeline_mode = #tpu.pipeline_mode<synchronous>, transform_indices = @transform_5, window_bounds = array<i64: 1, 16>}, {pipeline_mode = #tpu.pipeline_mode<synchronous>, transform_indices = @transform_6, window_bounds = array<i64: 144, 16>}, {pipeline_mode = #tpu.pipeline_mode<synchronous>, transform_indices = @transform_7, window_bounds = array<i64: 1, 16>}, {pipeline_mode = #tpu.pipeline_mode<synchronous>, transform_indices = @transform_8, window_bounds = array<i64: 1, 16>}, {transform_indices = @transform_9, window_bounds = array<i64: 1, 16, 256>}]} {
    %c0 = arith.constant 0 : index
    %c0_0 = arith.constant 0 : index
    %c0_1 = arith.constant 0 : index
    %0 = vector.load %arg2[%c0, %c0_0, %c0_1] : memref<1x32x64xf32, #tpu.memory_space<vmem>>, vector<1x32x64xf32>
    %1 = vector.shape_cast %0 : vector<1x32x64xf32> to vector<32x64xf32>
    %2 = tpu.transpose %1, [1, 0] : vector<32x64xf32> -> vector<64x32xf32>
    %c0_2 = arith.constant 0 : index
    %c0_3 = arith.constant 0 : index
    %3 = vector.load %arg1[%c0_2, %c0_3] : memref<256x64xf32, #tpu.memory_space<vmem>>, vector<256x64xf32>
    %cst = arith.constant dense<0.000000e+00> : vector<256x32xf32>
    %4 = tpu.matmul %3, %2, %cst {dimension_numbers = #tpu.dot_dimension_numbers<[1], [0], [0], [1], [0, 0, 1, 1], [], []>} : vector<256x64xf32>, vector<64x32xf32>, vector<256x32xf32> -> vector<256x32xf32>
    %cst_4 = arith.constant 0.000000e+00 : f32
    %5 = vector.broadcast %cst_4 : f32 to vector<18x32x48xf32>
    %c0_5 = arith.constant 0 : index
    %c0_6 = arith.constant 0 : index
    %c0_7 = arith.constant 0 : index
    %6 = vector.load %arg11[%c0_5, %c0_6, %c0_7] : memref<18x32x48xf32, #tpu.memory_space<vmem>>, vector<18x32x48xf32>
    tpu.vector_store %arg11[%c0_5, %c0_6, %c0_7], %5 {strides = array<i32>} : memref<18x32x48xf32, #tpu.memory_space<vmem>>, vector<18x32x48xf32>,
    %c0_8 = arith.constant 0 : index
    %c0_9 = arith.constant 0 : index
    %c0_10 = arith.constant 0 : index
    %7 = vector.load %arg3[%c0_8, %c0_9, %c0_10] : memref<1x16x256xf32, #tpu.memory_space<vmem>>, vector<1x16x256xf32>
    %8 = vector.shape_cast %7 : vector<1x16x256xf32> to vector<16x256xf32>
    %9 = tpu.transpose %8, [1, 0] : vector<16x256xf32> -> vector<256x16xf32>
    %10 = vector.shape_cast %9 : vector<256x16xf32> to vector<16x16x16xf32>
    %c1 = arith.constant 1 : index
    %c8 = arith.constant 8 : index
    %c0_11 = arith.constant 0 : index
    %11 = vector.load %arg11[%c1, %c8, %c0_11] : memref<18x32x48xf32, #tpu.memory_space<vmem>>, vector<16x16x16xf32>
    tpu.vector_store %arg11[%c1, %c8, %c0_11], %10 {strides = array<i32>} : memref<18x32x48xf32, #tpu.memory_space<vmem>>, vector<16x16x16xf32>,
    %12 = vector.shape_cast %4 : vector<256x32xf32> to vector<16x16x32xf32>
    %c1_12 = arith.constant 1 : index
    %c8_13 = arith.constant 8 : index
    %c16 = arith.constant 16 : index
    %13 = vector.load %arg11[%c1_12, %c8_13, %c16] : memref<18x32x48xf32, #tpu.memory_space<vmem>>, vector<16x16x32xf32>
    tpu.vector_store %arg11[%c1_12, %c8_13, %c16], %12 {strides = array<i32>} : memref<18x32x48xf32, #tpu.memory_space<vmem>>, vector<16x16x32xf32>,
    %c0_14 = arith.constant 0 : index
    %c7 = arith.constant 7 : index
    %c0_15 = arith.constant 0 : index
    %14 = vector.load %arg11[%c0_14, %c7, %c0_15] : memref<18x32x48xf32, #tpu.memory_space<vmem>>, vector<16x16x48xf32>
    %15 = vector.shape_cast %14 : vector<16x16x48xf32> to vector<256x48xf32>
    %16 = arith.truncf %15 : vector<256x48xf32> to vector<256x48xbf16>
    %c0_16 = arith.constant 0 : index
    %c0_17 = arith.constant 0 : index
    %17 = vector.load %arg13[%c0_16, %c0_17] : memref<256x432xbf16, #tpu.memory_space<vmem>>, vector<256x48xbf16>
    tpu.vector_store %arg13[%c0_16, %c0_17], %16 {strides = array<i32>} : memref<256x432xbf16, #tpu.memory_space<vmem>>, vector<256x48xbf16>,
    %c0_18 = arith.constant 0 : index
    %c8_19 = arith.constant 8 : index
    %c0_20 = arith.constant 0 : index
    %18 = vector.load %arg11[%c0_18, %c8_19, %c0_20] : memref<18x32x48xf32, #tpu.memory_space<vmem>>, vector<16x16x48xf32>
    %19 = vector.shape_cast %18 : vector<16x16x48xf32> to vector<256x48xf32>
    %20 = arith.truncf %19 : vector<256x48xf32> to vector<256x48xbf16>
    %c0_21 = arith.constant 0 : index
    %c48 = arith.constant 48 : index
    %21 = vector.load %arg13[%c0_21, %c48] : memref<256x432xbf16, #tpu.memory_space<vmem>>, vector<256x48xbf16>
    tpu.vector_store %arg13[%c0_21, %c48], %20 {strides = array<i32>} : memref<256x432xbf16, #tpu.memory_space<vmem>>, vector<256x48xbf16>,
    %c0_22 = arith.constant 0 : index
    %c9 = arith.constant 9 : index
    %c0_23 = arith.constant 0 : index
    %22 = vector.load %arg11[%c0_22, %c9, %c0_23] : memref<18x32x48xf32, #tpu.memory_space<vmem>>, vector<16x16x48xf32>
    %23 = vector.shape_cast %22 : vector<16x16x48xf32> to vector<256x48xf32>
    %24 = arith.truncf %23 : vector<256x48xf32> to vector<256x48xbf16>
    %c0_24 = arith.constant 0 : index
    %c96 = arith.constant 96 : index
    %25 = vector.load %arg13[%c0_24, %c96] : memref<256x432xbf16, #tpu.memory_space<vmem>>, vector<256x48xbf16>
    tpu.vector_store %arg13[%c0_24, %c96], %24 {strides = array<i32>} : memref<256x432xbf16, #tpu.memory_space<vmem>>, vector<256x48xbf16>,
    %c1_25 = arith.constant 1 : index
    %c7_26 = arith.constant 7 : index
    %c0_27 = arith.constant 0 : index
    %26 = vector.load %arg11[%c1_25, %c7_26, %c0_27] : memref<18x32x48xf32, #tpu.memory_space<vmem>>, vector<16x16x48xf32>
    %27 = vector.shape_cast %26 : vector<16x16x48xf32> to vector<256x48xf32>
    %28 = arith.truncf %27 : vector<256x48xf32> to vector<256x48xbf16>
    %c0_28 = arith.constant 0 : index
    %c144 = arith.constant 144 : index
    %29 = vector.load %arg13[%c0_28, %c144] : memref<256x432xbf16, #tpu.memory_space<vmem>>, vector<256x48xbf16>
    tpu.vector_store %arg13[%c0_28, %c144], %28 {strides = array<i32>} : memref<256x432xbf16, #tpu.memory_space<vmem>>, vector<256x48xbf16>,
    %c1_29 = arith.constant 1 : index
    %c8_30 = arith.constant 8 : index
    %c0_31 = arith.constant 0 : index
    %30 = vector.load %arg11[%c1_29, %c8_30, %c0_31] : memref<18x32x48xf32, #tpu.memory_space<vmem>>, vector<16x16x48xf32>
    %31 = vector.shape_cast %30 : vector<16x16x48xf32> to vector<256x48xf32>
    %32 = arith.truncf %31 : vector<256x48xf32> to vector<256x48xbf16>
    %c0_32 = arith.constant 0 : index
    %c192 = arith.constant 192 : index
    %33 = vector.load %arg13[%c0_32, %c192] : memref<256x432xbf16, #tpu.memory_space<vmem>>, vector<256x48xbf16>
    tpu.vector_store %arg13[%c0_32, %c192], %32 {strides = array<i32>} : memref<256x432xbf16, #tpu.memory_space<vmem>>, vector<256x48xbf16>,
    %c1_33 = arith.constant 1 : index
    %c9_34 = arith.constant 9 : index
    %c0_35 = arith.constant 0 : index
    %34 = vector.load %arg11[%c1_33, %c9_34, %c0_35] : memref<18x32x48xf32, #tpu.memory_space<vmem>>, vector<16x16x48xf32>
    %35 = vector.shape_cast %34 : vector<16x16x48xf32> to vector<256x48xf32>
    %36 = arith.truncf %35 : vector<256x48xf32> to vector<256x48xbf16>
    %c0_36 = arith.constant 0 : index
    %c240 = arith.constant 240 : index
    %37 = vector.load %arg13[%c0_36, %c240] : memref<256x432xbf16, #tpu.memory_space<vmem>>, vector<256x48xbf16>
    tpu.vector_store %arg13[%c0_36, %c240], %36 {strides = array<i32>} : memref<256x432xbf16, #tpu.memory_space<vmem>>, vector<256x48xbf16>,
    %c2 = arith.constant 2 : index
    %c7_37 = arith.constant 7 : index
    %c0_38 = arith.constant 0 : index
    %38 = vector.load %arg11[%c2, %c7_37, %c0_38] : memref<18x32x48xf32, #tpu.memory_space<vmem>>, vector<16x16x48xf32>
    %39 = vector.shape_cast %38 : vector<16x16x48xf32> to vector<256x48xf32>
    %40 = arith.truncf %39 : vector<256x48xf32> to vector<256x48xbf16>
    %c0_39 = arith.constant 0 : index
    %c288 = arith.constant 288 : index
    %41 = vector.load %arg13[%c0_39, %c288] : memref<256x432xbf16, #tpu.memory_space<vmem>>, vector<256x48xbf16>
    tpu.vector_store %arg13[%c0_39, %c288], %40 {strides = array<i32>} : memref<256x432xbf16, #tpu.memory_space<vmem>>, vector<256x48xbf16>,
    %c2_40 = arith.constant 2 : index
    %c8_41 = arith.constant 8 : index
    %c0_42 = arith.constant 0 : index
    %42 = vector.load %arg11[%c2_40, %c8_41, %c0_42] : memref<18x32x48xf32, #tpu.memory_space<vmem>>, vector<16x16x48xf32>
    %43 = vector.shape_cast %42 : vector<16x16x48xf32> to vector<256x48xf32>
    %44 = arith.truncf %43 : vector<256x48xf32> to vector<256x48xbf16>
    %c0_43 = arith.constant 0 : index
    %c336 = arith.constant 336 : index
    %45 = vector.load %arg13[%c0_43, %c336] : memref<256x432xbf16, #tpu.memory_space<vmem>>, vector<256x48xbf16>
    tpu.vector_store %arg13[%c0_43, %c336], %44 {strides = array<i32>} : memref<256x432xbf16, #tpu.memory_space<vmem>>, vector<256x48xbf16>,
    %c2_44 = arith.constant 2 : index
    %c9_45 = arith.constant 9 : index
    %c0_46 = arith.constant 0 : index
    %46 = vector.load %arg11[%c2_44, %c9_45, %c0_46] : memref<18x32x48xf32, #tpu.memory_space<vmem>>, vector<16x16x48xf32>
    %47 = vector.shape_cast %46 : vector<16x16x48xf32> to vector<256x48xf32>
    %48 = arith.truncf %47 : vector<256x48xf32> to vector<256x48xbf16>
    %c0_47 = arith.constant 0 : index
    %c384 = arith.constant 384 : index
    %49 = vector.load %arg13[%c0_47, %c384] : memref<256x432xbf16, #tpu.memory_space<vmem>>, vector<256x48xbf16>
    tpu.vector_store %arg13[%c0_47, %c384], %48 {strides = array<i32>} : memref<256x432xbf16, #tpu.memory_space<vmem>>, vector<256x48xbf16>,
    %c0_48 = arith.constant 0 : index
    %c0_49 = arith.constant 0 : index
    %50 = vector.load %arg13[%c0_48, %c0_49] : memref<256x432xbf16, #tpu.memory_space<vmem>>, vector<256x432xbf16>
    %c0_50 = arith.constant 0 : index
    %c0_51 = arith.constant 0 : index
    %51 = vector.load %arg4[%c0_50, %c0_51] : memref<432x16xbf16, #tpu.memory_space<vmem>>, vector<432x16xbf16>
    %cst_52 = arith.constant dense<0.000000e+00> : vector<256x16xf32>
    %52 = tpu.matmul %50, %51, %cst_52 {dimension_numbers = #tpu.dot_dimension_numbers<[1], [0], [0], [1], [0, 0, 1, 1], [], []>} : vector<256x432xbf16>, vector<432x16xbf16>, vector<256x16xf32> -> vector<256x16xf32>
    %c0_53 = arith.constant 0 : index
    %c0_54 = arith.constant 0 : index
    %53 = vector.load %arg5[%c0_53, %c0_54] : memref<1x16xf32, #tpu.memory_space<vmem>>, vector<1x16xf32>
    %54 = vector.broadcast %53 : vector<1x16xf32> to vector<256x16xf32>
    %55 = arith.mulf %52, %54 : vector<256x16xf32>
    %c0_55 = arith.constant 0 : index
    %c0_56 = arith.constant 0 : index
    %56 = vector.load %arg6[%c0_55, %c0_56] : memref<1x16xf32, #tpu.memory_space<vmem>>, vector<1x16xf32>
    %57 = vector.broadcast %56 : vector<1x16xf32> to vector<256x16xf32>
    %58 = arith.addf %55, %57 : vector<256x16xf32>
    %cst_57 = arith.constant 0.000000e+00 : f32
    %59 = vector.broadcast %cst_57 : f32 to vector<256x16xf32>
    %60 = arith.maximumf %58, %59 : vector<256x16xf32>
    %cst_58 = arith.constant 0.000000e+00 : f32
    %61 = vector.broadcast %cst_58 : f32 to vector<18x32x16xf32>
    %c0_59 = arith.constant 0 : index
    %c0_60 = arith.constant 0 : index
    %c0_61 = arith.constant 0 : index
    %62 = vector.load %arg12[%c0_59, %c0_60, %c0_61] : memref<18x32x16xf32, #tpu.memory_space<vmem>>, vector<18x32x16xf32>
    tpu.vector_store %arg12[%c0_59, %c0_60, %c0_61], %61 {strides = array<i32>} : memref<18x32x16xf32, #tpu.memory_space<vmem>>, vector<18x32x16xf32>,
    %63 = vector.shape_cast %60 : vector<256x16xf32> to vector<16x16x16xf32>
    %c1_62 = arith.constant 1 : index
    %c8_63 = arith.constant 8 : index
    %c0_64 = arith.constant 0 : index
    %64 = vector.load %arg12[%c1_62, %c8_63, %c0_64] : memref<18x32x16xf32, #tpu.memory_space<vmem>>, vector<16x16x16xf32>
    tpu.vector_store %arg12[%c1_62, %c8_63, %c0_64], %63 {strides = array<i32>} : memref<18x32x16xf32, #tpu.memory_space<vmem>>, vector<16x16x16xf32>,
    %c0_65 = arith.constant 0 : index
    %c7_66 = arith.constant 7 : index
    %c0_67 = arith.constant 0 : index
    %65 = vector.load %arg12[%c0_65, %c7_66, %c0_67] : memref<18x32x16xf32, #tpu.memory_space<vmem>>, vector<16x16x16xf32>
    %66 = vector.shape_cast %65 : vector<16x16x16xf32> to vector<256x16xf32>
    %67 = arith.truncf %66 : vector<256x16xf32> to vector<256x16xbf16>
    %c0_68 = arith.constant 0 : index
    %c0_69 = arith.constant 0 : index
    %68 = vector.load %arg14[%c0_68, %c0_69] : memref<256x144xbf16, #tpu.memory_space<vmem>>, vector<256x16xbf16>
    tpu.vector_store %arg14[%c0_68, %c0_69], %67 {strides = array<i32>} : memref<256x144xbf16, #tpu.memory_space<vmem>>, vector<256x16xbf16>,
    %c0_70 = arith.constant 0 : index
    %c8_71 = arith.constant 8 : index
    %c0_72 = arith.constant 0 : index
    %69 = vector.load %arg12[%c0_70, %c8_71, %c0_72] : memref<18x32x16xf32, #tpu.memory_space<vmem>>, vector<16x16x16xf32>
    %70 = vector.shape_cast %69 : vector<16x16x16xf32> to vector<256x16xf32>
    %71 = arith.truncf %70 : vector<256x16xf32> to vector<256x16xbf16>
    %c0_73 = arith.constant 0 : index
    %c16_74 = arith.constant 16 : index
    %72 = vector.load %arg14[%c0_73, %c16_74] : memref<256x144xbf16, #tpu.memory_space<vmem>>, vector<256x16xbf16>
    tpu.vector_store %arg14[%c0_73, %c16_74], %71 {strides = array<i32>} : memref<256x144xbf16, #tpu.memory_space<vmem>>, vector<256x16xbf16>,
    %c0_75 = arith.constant 0 : index
    %c9_76 = arith.constant 9 : index
    %c0_77 = arith.constant 0 : index
    %73 = vector.load %arg12[%c0_75, %c9_76, %c0_77] : memref<18x32x16xf32, #tpu.memory_space<vmem>>, vector<16x16x16xf32>
    %74 = vector.shape_cast %73 : vector<16x16x16xf32> to vector<256x16xf32>
    %75 = arith.truncf %74 : vector<256x16xf32> to vector<256x16xbf16>
    %c0_78 = arith.constant 0 : index
    %c32 = arith.constant 32 : index
    %76 = vector.load %arg14[%c0_78, %c32] : memref<256x144xbf16, #tpu.memory_space<vmem>>, vector<256x16xbf16>
    tpu.vector_store %arg14[%c0_78, %c32], %75 {strides = array<i32>} : memref<256x144xbf16, #tpu.memory_space<vmem>>, vector<256x16xbf16>,
    %c1_79 = arith.constant 1 : index
    %c7_80 = arith.constant 7 : index
    %c0_81 = arith.constant 0 : index
    %77 = vector.load %arg12[%c1_79, %c7_80, %c0_81] : memref<18x32x16xf32, #tpu.memory_space<vmem>>, vector<16x16x16xf32>
    %78 = vector.shape_cast %77 : vector<16x16x16xf32> to vector<256x16xf32>
    %79 = arith.truncf %78 : vector<256x16xf32> to vector<256x16xbf16>
    %c0_82 = arith.constant 0 : index
    %c48_83 = arith.constant 48 : index
    %80 = vector.load %arg14[%c0_82, %c48_83] : memref<256x144xbf16, #tpu.memory_space<vmem>>, vector<256x16xbf16>
    tpu.vector_store %arg14[%c0_82, %c48_83], %79 {strides = array<i32>} : memref<256x144xbf16, #tpu.memory_space<vmem>>, vector<256x16xbf16>,
    %c1_84 = arith.constant 1 : index
    %c8_85 = arith.constant 8 : index
    %c0_86 = arith.constant 0 : index
    %81 = vector.load %arg12[%c1_84, %c8_85, %c0_86] : memref<18x32x16xf32, #tpu.memory_space<vmem>>, vector<16x16x16xf32>
    %82 = vector.shape_cast %81 : vector<16x16x16xf32> to vector<256x16xf32>
    %83 = arith.truncf %82 : vector<256x16xf32> to vector<256x16xbf16>
    %c0_87 = arith.constant 0 : index
    %c64 = arith.constant 64 : index
    %84 = vector.load %arg14[%c0_87, %c64] : memref<256x144xbf16, #tpu.memory_space<vmem>>, vector<256x16xbf16>
    tpu.vector_store %arg14[%c0_87, %c64], %83 {strides = array<i32>} : memref<256x144xbf16, #tpu.memory_space<vmem>>, vector<256x16xbf16>,
    %c1_88 = arith.constant 1 : index
    %c9_89 = arith.constant 9 : index
    %c0_90 = arith.constant 0 : index
    %85 = vector.load %arg12[%c1_88, %c9_89, %c0_90] : memref<18x32x16xf32, #tpu.memory_space<vmem>>, vector<16x16x16xf32>
    %86 = vector.shape_cast %85 : vector<16x16x16xf32> to vector<256x16xf32>
    %87 = arith.truncf %86 : vector<256x16xf32> to vector<256x16xbf16>
    %c0_91 = arith.constant 0 : index
    %c80 = arith.constant 80 : index
    %88 = vector.load %arg14[%c0_91, %c80] : memref<256x144xbf16, #tpu.memory_space<vmem>>, vector<256x16xbf16>
    tpu.vector_store %arg14[%c0_91, %c80], %87 {strides = array<i32>} : memref<256x144xbf16, #tpu.memory_space<vmem>>, vector<256x16xbf16>,
    %c2_92 = arith.constant 2 : index
    %c7_93 = arith.constant 7 : index
    %c0_94 = arith.constant 0 : index
    %89 = vector.load %arg12[%c2_92, %c7_93, %c0_94] : memref<18x32x16xf32, #tpu.memory_space<vmem>>, vector<16x16x16xf32>
    %90 = vector.shape_cast %89 : vector<16x16x16xf32> to vector<256x16xf32>
    %91 = arith.truncf %90 : vector<256x16xf32> to vector<256x16xbf16>
    %c0_95 = arith.constant 0 : index
    %c96_96 = arith.constant 96 : index
    %92 = vector.load %arg14[%c0_95, %c96_96] : memref<256x144xbf16, #tpu.memory_space<vmem>>, vector<256x16xbf16>
    tpu.vector_store %arg14[%c0_95, %c96_96], %91 {strides = array<i32>} : memref<256x144xbf16, #tpu.memory_space<vmem>>, vector<256x16xbf16>,
    %c2_97 = arith.constant 2 : index
    %c8_98 = arith.constant 8 : index
    %c0_99 = arith.constant 0 : index
    %93 = vector.load %arg12[%c2_97, %c8_98, %c0_99] : memref<18x32x16xf32, #tpu.memory_space<vmem>>, vector<16x16x16xf32>
    %94 = vector.shape_cast %93 : vector<16x16x16xf32> to vector<256x16xf32>
    %95 = arith.truncf %94 : vector<256x16xf32> to vector<256x16xbf16>
    %c0_100 = arith.constant 0 : index
    %c112 = arith.constant 112 : index
    %96 = vector.load %arg14[%c0_100, %c112] : memref<256x144xbf16, #tpu.memory_space<vmem>>, vector<256x16xbf16>
    tpu.vector_store %arg14[%c0_100, %c112], %95 {strides = array<i32>} : memref<256x144xbf16, #tpu.memory_space<vmem>>, vector<256x16xbf16>,
    %c2_101 = arith.constant 2 : index
    %c9_102 = arith.constant 9 : index
    %c0_103 = arith.constant 0 : index
    %97 = vector.load %arg12[%c2_101, %c9_102, %c0_103] : memref<18x32x16xf32, #tpu.memory_space<vmem>>, vector<16x16x16xf32>
    %98 = vector.shape_cast %97 : vector<16x16x16xf32> to vector<256x16xf32>
    %99 = arith.truncf %98 : vector<256x16xf32> to vector<256x16xbf16>
    %c0_104 = arith.constant 0 : index
    %c128 = arith.constant 128 : index
    %100 = vector.load %arg14[%c0_104, %c128] : memref<256x144xbf16, #tpu.memory_space<vmem>>, vector<256x16xbf16>
    tpu.vector_store %arg14[%c0_104, %c128], %99 {strides = array<i32>} : memref<256x144xbf16, #tpu.memory_space<vmem>>, vector<256x16xbf16>,
    %c0_105 = arith.constant 0 : index
    %c0_106 = arith.constant 0 : index
    %101 = vector.load %arg14[%c0_105, %c0_106] : memref<256x144xbf16, #tpu.memory_space<vmem>>, vector<256x144xbf16>
    %c0_107 = arith.constant 0 : index
    %c0_108 = arith.constant 0 : index
    %102 = vector.load %arg7[%c0_107, %c0_108] : memref<144x16xbf16, #tpu.memory_space<vmem>>, vector<144x16xbf16>
    %cst_109 = arith.constant dense<0.000000e+00> : vector<256x16xf32>
    %103 = tpu.matmul %101, %102, %cst_109 {dimension_numbers = #tpu.dot_dimension_numbers<[1], [0], [0], [1], [0, 0, 1, 1], [], []>} : vector<256x144xbf16>, vector<144x16xbf16>, vector<256x16xf32> -> vector<256x16xf32>
    %c0_110 = arith.constant 0 : index
    %c0_111 = arith.constant 0 : index
    %104 = vector.load %arg8[%c0_110, %c0_111] : memref<1x16xf32, #tpu.memory_space<vmem>>, vector<1x16xf32>
    %105 = vector.broadcast %104 : vector<1x16xf32> to vector<256x16xf32>
    %106 = arith.mulf %103, %105 : vector<256x16xf32>
    %c0_112 = arith.constant 0 : index
    %c0_113 = arith.constant 0 : index
    %107 = vector.load %arg9[%c0_112, %c0_113] : memref<1x16xf32, #tpu.memory_space<vmem>>, vector<1x16xf32>
    %108 = vector.broadcast %107 : vector<1x16xf32> to vector<256x16xf32>
    %109 = arith.addf %106, %108 : vector<256x16xf32>
    %cst_114 = arith.constant 0.000000e+00 : f32
    %110 = vector.broadcast %cst_114 : f32 to vector<256x16xf32>
    %111 = arith.maximumf %109, %110 : vector<256x16xf32>
    %112 = tpu.transpose %111, [1, 0] : vector<256x16xf32> -> vector<16x256xf32>
    %c0_115 = arith.constant 0 : index
    %c0_116 = arith.constant 0 : index
    %c0_117 = arith.constant 0 : index
    %113 = vector.load %arg10[%c0_115, %c0_116, %c0_117] : memref<1x16x256xf32, #tpu.memory_space<vmem>>, vector<1x16x256xf32>
    %114 = vector.shape_cast %113 : vector<1x16x256xf32> to vector<16x256xf32>
    %115 = vector.shape_cast %112 : vector<16x256xf32> to vector<1x16x256xf32>
    tpu.vector_store %arg10[%c0_115, %c0_116, %c0_117], %115 {strides = array<i32>} : memref<1x16x256xf32, #tpu.memory_space<vmem>>, vector<1x16x256xf32>,
    return
  }
  func.func @transform_0(%arg0: i32) -> (i32, i32) {
    %c0_i32 = arith.constant 0 : i32
    %c0_i32_0 = arith.constant 0 : i32
    %c0_i32_1 = arith.constant 0 : i32
    return %c0_i32, %c0_i32_0 : i32, i32
  }
  func.func @transform_1(%arg0: i32) -> (i32, i32, i32) {
    %c0_i32 = arith.constant 0 : i32
    %c0_i32_0 = arith.constant 0 : i32
    %c0_i32_1 = arith.constant 0 : i32
    return %arg0, %c0_i32, %c0_i32_0 : i32, i32, i32
  }
  func.func @transform_2(%arg0: i32) -> (i32, i32, i32) {
    %c0_i32 = arith.constant 0 : i32
    %c0_i32_0 = arith.constant 0 : i32
    %c0_i32_1 = arith.constant 0 : i32
    return %arg0, %c0_i32, %c0_i32_0 : i32, i32, i32
  }
  func.func @transform_3(%arg0: i32) -> (i32, i32) {
    %c0_i32 = arith.constant 0 : i32
    %c0_i32_0 = arith.constant 0 : i32
    %c0_i32_1 = arith.constant 0 : i32
    return %c0_i32, %c0_i32_0 : i32, i32
  }
  func.func @transform_4(%arg0: i32) -> (i32, i32) {
    %c0_i32 = arith.constant 0 : i32
    %c0_i32_0 = arith.constant 0 : i32
    %c0_i32_1 = arith.constant 0 : i32
    return %c0_i32, %c0_i32_0 : i32, i32
  }
  func.func @transform_5(%arg0: i32) -> (i32, i32) {
    %c0_i32 = arith.constant 0 : i32
    %c0_i32_0 = arith.constant 0 : i32
    %c0_i32_1 = arith.constant 0 : i32
    return %c0_i32, %c0_i32_0 : i32, i32
  }
  func.func @transform_6(%arg0: i32) -> (i32, i32) {
    %c0_i32 = arith.constant 0 : i32
    %c0_i32_0 = arith.constant 0 : i32
    %c0_i32_1 = arith.constant 0 : i32
    return %c0_i32, %c0_i32_0 : i32, i32
  }
  func.func @transform_7(%arg0: i32) -> (i32, i32) {
    %c0_i32 = arith.constant 0 : i32
    %c0_i32_0 = arith.constant 0 : i32
    %c0_i32_1 = arith.constant 0 : i32
    return %c0_i32, %c0_i32_0 : i32, i32
  }
  func.func @transform_8(%arg0: i32) -> (i32, i32) {
    %c0_i32 = arith.constant 0 : i32
    %c0_i32_0 = arith.constant 0 : i32
    %c0_i32_1 = arith.constant 0 : i32
    return %c0_i32, %c0_i32_0 : i32, i32
  }
  func.func @transform_9(%arg0: i32) -> (i32, i32, i32) {
    %c0_i32 = arith.constant 0 : i32
    %c0_i32_0 = arith.constant 0 : i32
    %c0_i32_1 = arith.constant 0 : i32
    return %arg0, %c0_i32, %c0_i32_0 : i32, i32, i32
  }
}

</mosaic_0001>

<bundles_post_ra>
// kernel: up_forward.1
= control target key start
LH: loop header
LB: loop body
LE: loop exit
PB: predicated region body
PF: predicated region fallthrough
CT: control target
= control target key end

     0   :  { %s9280_s30 = smov 0   ;;  %s11847_s0 = inlined_call_operand.vmem [shape: f32[256,64], index: 0, kind: input, shape index: {}]   ;;  %s11848_s1 = inlined_call_operand.vmem [shape: f32[2,32,64], index: 1, kind: input, shape index: {}]   ;;  %s11849_s2 = inlined_call_operand.vmem [shape: f32[2,16,256], index: 2, kind: input, shape index: {}]   ;;  %s11850_s3 = inlined_call_operand.vmem [shape: bf16[432,16], index: 3, kind: input, shape index: {}]   ;;  %s11851_s4 = inlined_call_operand.vmem [shape: f32[1,16], index: 4, kind: input, shape index: {}]   ;;  %s11852_s5 = inlined_call_operand.vmem [shape: f32[1,16], index: 5, kind: input, shape index: {}]   ;;  %s11853_s6 = inlined_call_operand.vmem [shape: bf16[144,16], index: 6, kind: input, shape index: {}]   ;;  %s11854_s7 = inlined_call_operand.vmem [shape: f32[1,16], index: 7, kind: input, shape index: {}]   ;;  %s11855_s8 = inlined_call_operand.vmem [shape: f32[1,16], index: 8, kind: input, shape index: {}]   ;;  %s11856_s9 = inlined_call_operand.vmem [shape: f32[2,16,256], index: 9, kind: output, shape index: {}]  }
   0x1 LB: > { %s7434_s10 = sadd.s32 4294967295, %s9219_s30   ;;  %p7438_p0 = scmp.ge.s32.totalorder %s9219_s30, 1  ;;  %s9219_s30 = sphi %s9280_s30, %s19_s30  }
   0x2   : > { %p297_p1 = scmp.lt.s32.totalorder %s9219_s30, 3 }
   0x4   : > { %p298_p2 = pnand %p7438_p0, %p297_p1 }
   0x5   : > { %p338_p3 = scmp.lt.s32.totalorder (!%p298_p2), %s7434_s10, 1  ;;  %s9222_s25 = smov (!%p298_p2), 48  }
   0x6   : > { %301 = sbr.rel (%p298_p2) target bundleno = 1783 (0x6f7), region = 56  ;;  %s9223_s26 = smov (!%p298_p2), 96  }
   0x7   : > { %s9224_s27 = smov (!%p298_p2), 16   ;;  %s9225_s28 = smov (!%p298_p2), 64  }
   0x8   : > { %s9228_s20 = smov (!%p298_p2), 32   ;;  %s9229_s21 = smov (!%p298_p2), 80  }
   0xb   : > { %vm390_vm0 = vcmask 523264   ;;  %v358_v0 = vld [vmem:[%s11847_s0] sm:$0xff]  ;;  %vm724_vm1 = vcmask 392192   ;;  %s11862_s10 = smov (!%p338_p3, %s7434_s10), 1  ;;  %v9221_v1 = vmov 0.0   ;;  %v359_v10 = vld [vmem:[%s11847_s0 + $0x8] sm:$0xff] }
   0xc   : > { %8962 = vmatprep.mubr.msk.f32.mxu0 %vm390_vm0, %v358_v0  ;;  %726 = vst.msk [vmem:[#allocation2 + $0x8] sm:$0xff] %vm724_vm1, %v9221_v1  ;;  %725 = vst.msk [vmem:[#allocation2] sm:$0xff] %vm724_vm1, %v9221_v1  ;;  %s9439_s13 = sshll.u32 %s11862_s10, 5  ;;  %v360_v11 = vld [vmem:[%s11847_s0 + $0x10] sm:$0xff]  ;;  %v361_v12 = vld [vmem:[%s11847_s0 + $0x18] sm:$0xff]  ;;  %vm866_vm2 = vcmask 130048  }
   0xd   : > { %727 = vst.msk [vmem:[#allocation2 + $0x10] sm:$0xff] %vm724_vm1, %v9221_v1  ;;  %728 = vst.msk [vmem:[#allocation2 + $0x18] sm:$0xff] %vm724_vm1, %v9221_v1  ;;  %s342_s16 = scalar_lea.vmem %s11848_s1, %s9439_s13  ;;  %s347_s19 = scalar_lea.vmem %s11849_s2, %s9439_s13  ;;  %v362_v13 = vld [vmem:[%s11847_s0 + $0x20] sm:$0xff]  ;;  %v363_v14 = vld [vmem:[%s11847_s0 + $0x28] sm:$0xff]  ;;  %vm1220_vm3 = vcmask 388096   ;;  %vm1477_vm4 = vcmask 781696  }
   0xe   : > { %729 = vst.msk [vmem:[#allocation2 + $0x20] sm:$0xff] %vm724_vm1, %v9221_v1  ;;  %730 = vst.msk [vmem:[#allocation2 + $0x28] sm:$0xff] %vm724_vm1, %v9221_v1  ;;  %v357_v2 = vld [vmem:[%s342_s16 + $0x18] sm:$0xff]  ;;  %v356_v3 = vld [vmem:[%s342_s16 + $0x10] sm:$0xff]  ;;  %vm1799_vm5 = vcmask 1044224   ;;  %vm1800_vm6 = vcmask 130052  }
   0xf   : > { %731 = vst.msk [vmem:[#allocation2 + $0x30] sm:$0xff] %vm724_vm1, %v9221_v1  ;;  %732 = vst.msk [vmem:[#allocation2 + $0x38] sm:$0xff] %vm724_vm1, %v9221_v1  ;;  %8954 = vmatprep.subr.msk.mxu0 %vm390_vm0, %v357_v2  ;;  %v797_v4 = vld [vmem:[%s347_s19] sm:$0xff]  ;;  %v798_v5 = vld [vmem:[%s347_s19 + $0x8] sm:$0xff]  ;;  %vm1734_vm7 = vcmask 785408   ;;  %vm1027_vm9 = vcmask 392320  }
  0x10   : > { %733 = vst.msk [vmem:[#allocation2 + $0x40] sm:$0xff] %vm724_vm1, %v9221_v1  ;;  %734 = vst.msk [vmem:[#allocation2 + $0x48] sm:$0xff] %vm724_vm1, %v9221_v1  ;;  %8955 = vmatpush3.xpose.msk.msra.mxu0 %vm390_vm0, %v357_v2  ;;  %801 = vxpose.xlu0.b32.start [1/2] (short) %v797_v4, 128  ;;  %v799_v6 = vld [vmem:[%s347_s19 + $0x10] sm:$0xff]  ;;  %v355_v7 = vld [vmem:[%s342_s16 + $0x8] sm:$0xff]  ;;  %vm2058_vm10 = vcmask 519296   ;;  %vm2315_vm11 = vcmask 912896  }
  0x11   : > { %735 = vst.msk [vmem:[#allocation2 + $0x50] sm:$0xff] %vm724_vm1, %v9221_v1  ;;  %736 = vst.msk [vmem:[#allocation2 + $0x58] sm:$0xff] %vm724_vm1, %v9221_v1  ;;  %8956 = vmatprep.subr.msk.mxu0 %vm390_vm0, %v356_v3  ;;  %833 = vxpose.xlu1.b32.start [1/2] (short) %v798_v5, 128  ;;  %v800_v8 = vld [vmem:[%s347_s19 + $0x18] sm:$0xff]  ;;  %v354_v9 = vld [vmem:[%s342_s16] sm:$0xff]  ;;  %s9227_s10 = smov 112   ;;  %vm2637_vm12 = vcmask 1044352  }
  0x12   : > { %737 = vst.msk [vmem:[#allocation2 + $0x60] sm:$0xff] %vm724_vm1, %v9221_v1  ;;  %738 = vst.msk [vmem:[#allocation2 + $0x68] sm:$0xff] %vm724_vm1, %v9221_v1  ;;  %v364_v15 = vld [vmem:[%s11847_s0 + $0x30] sm:$0xff]  ;;  %v365_v16 = vld [vmem:[%s11847_s0 + $0x38] sm:$0xff]  ;;  %vm2638_vm13 = vcmask 261124   ;;  %vm2572_vm14 = vcmask 916480  }
  0x13   : > { %739 = vst.msk [vmem:[#allocation2 + $0x70] sm:$0xff] %vm724_vm1, %v9221_v1  ;;  %740 = vst.msk [vmem:[#allocation2 + $0x78] sm:$0xff] %vm724_vm1, %v9221_v1  ;;  %v366_v17 = vld [vmem:[%s11847_s0 + $0x40] sm:$0xff]  ;;  %v367_v18 = vld [vmem:[%s11847_s0 + $0x48] sm:$0xff] }
  0x14   : > { %741 = vst.msk [vmem:[#allocation2 + $0x80] sm:$0xff] %vm724_vm1, %v9221_v1  ;;  %742 = vst.msk [vmem:[#allocation2 + $0x88] sm:$0xff] %vm724_vm1, %v9221_v1  ;;  %8957 = vmatpush3.xpose.msk.msra.mxu0 %vm390_vm0, %v356_v3  ;;  %802 = vxpose.xlu0.b32.end [2/2] (short) %v799_v6, 128  ;;  %v368_v19 = vld [vmem:[%s11847_s0 + $0x50] sm:$0xff]  ;;  %v369_v20 = vld [vmem:[%s11847_s0 + $0x58] sm:$0xff] }
  0x15   : > { %743 = vst.msk [vmem:[#allocation2 + $0x90] sm:$0xff] %vm724_vm1, %v9221_v1  ;;  %744 = vst.msk [vmem:[#allocation2 + $0x98] sm:$0xff] %vm724_vm1, %v9221_v1  ;;  %8958 = vmatprep.subr.msk.mxu0 %vm390_vm0, %v355_v7  ;;  %834 = vxpose.xlu1.b32.end [2/2] (short) %v800_v8, 128  ;;  %v370_v21 = vld [vmem:[%s11847_s0 + $0x60] sm:$0xff]  ;;  %v371_v22 = vld [vmem:[%s11847_s0 + $0x68] sm:$0xff] }
  0x16   : > { %745 = vst.msk [vmem:[#allocation2 + $0xa0] sm:$0xff] %vm724_vm1, %v9221_v1  ;;  %746 = vst.msk [vmem:[#allocation2 + $0xa8] sm:$0xff] %vm724_vm1, %v9221_v1  ;;  %v372_v23 = vld [vmem:[%s11847_s0 + $0x70] sm:$0xff]  ;;  %v373_v24 = vld [vmem:[%s11847_s0 + $0x78] sm:$0xff] }
  0x17   : > { %747 = vst.msk [vmem:[#allocation2 + $0xb0] sm:$0xff] %vm724_vm1, %v9221_v1  ;;  %748 = vst.msk [vmem:[#allocation2 + $0xb8] sm:$0xff] %vm724_vm1, %v9221_v1  ;;  %v374_v25 = vld [vmem:[%s11847_s0 + $0x80] sm:$0xff]  ;;  %v375_v26 = vld [vmem:[%s11847_s0 + $0x88] sm:$0xff] }
  0x18   : > { %749 = vst.msk [vmem:[#allocation2 + $0xc0] sm:$0xff] %vm724_vm1, %v9221_v1  ;;  %750 = vst.msk [vmem:[#allocation2 + $0xc8] sm:$0xff] %vm724_vm1, %v9221_v1  ;;  %8959 = vmatpush3.xpose.msk.msra.mxu0 %vm390_vm0, %v355_v7  ;;  %v376_v27 = vld [vmem:[%s11847_s0 + $0x90] sm:$0xff]  ;;  %v377_v28 = vld [vmem:[%s11847_s0 + $0x98] sm:$0xff] }
  0x19   : > { %751 = vst.msk [vmem:[#allocation2 + $0xd0] sm:$0xff] %vm724_vm1, %v9221_v1  ;;  %752 = vst.msk [vmem:[#allocation2 + $0xd8] sm:$0xff] %vm724_vm1, %v9221_v1  ;;  %8960 = vmatprep.subr.msk.mxu0 %vm390_vm0, %v354_v9  ;;  %v378_v29 = vld [vmem:[%s11847_s0 + $0xa0] sm:$0xff]  ;;  %v379_v30 = vld [vmem:[%s11847_s0 + $0xa8] sm:$0xff] }
  0x1a   : > { %753 = vst.msk [vmem:[#allocation2 + $0xe0] sm:$0xff] %vm724_vm1, %v9221_v1  ;;  %754 = vst.msk [vmem:[#allocation2 + $0xe8] sm:$0xff] %vm724_vm1, %v9221_v1  ;;  %v380_v31 = vld [vmem:[%s11847_s0 + $0xb0] sm:$0xff]  ;;  %v381_v32 = vld [vmem:[%s11847_s0 + $0xb8] sm:$0xff] }
  0x1b   : > { %755 = vst.msk [vmem:[#allocation2 + $0xf0] sm:$0xff] %vm724_vm1, %v9221_v1  ;;  %756 = vst.msk [vmem:[#allocation2 + $0xf8] sm:$0xff] %vm724_vm1, %v9221_v1  ;;  %v382_v33 = vld [vmem:[%s11847_s0 + $0xc0] sm:$0xff]  ;;  %v383_v34 = vld [vmem:[%s11847_s0 + $0xc8] sm:$0xff] }
  0x1c   : > { %757 = vst.msk [vmem:[#allocation2 + $0x100] sm:$0xff] %vm724_vm1, %v9221_v1  ;;  %758 = vst.msk [vmem:[#allocation2 + $0x108] sm:$0xff] %vm724_vm1, %v9221_v1  ;;  %8961 = vmatpush3.xpose.msk.msra.mxu0 %vm390_vm0, %v354_v9  ;;  %v384_v35 = vld [vmem:[%s11847_s0 + $0xd0] sm:$0xff]  ;;  %v385_v36 = vld [vmem:[%s11847_s0 + $0xd8] sm:$0xff] }
  0x1d   : > { %759 = vst.msk [vmem:[#allocation2 + $0x110] sm:$0xff] %vm724_vm1, %v9221_v1  ;;  %760 = vst.msk [vmem:[#allocation2 + $0x118] sm:$0xff] %vm724_vm1, %v9221_v1  ;;  %v386_v37 = vld [vmem:[%s11847_s0 + $0xe0] sm:$0xff]  ;;  %v387_v38 = vld [vmem:[%s11847_s0 + $0xe8] sm:$0xff] }
  0x1e   : > { %761 = vst.msk [vmem:[#allocation2 + $0x120] sm:$0xff] %vm724_vm1, %v9221_v1  ;;  %762 = vst.msk [vmem:[#allocation2 + $0x128] sm:$0xff] %vm724_vm1, %v9221_v1  ;;  %v388_v39 = vld [vmem:[%s11847_s0 + $0xf0] sm:$0xff]  ;;  %v389_v40 = vld [vmem:[%s11847_s0 + $0xf8] sm:$0xff] }
  0x1f   : > { %763 = vst.msk [vmem:[#allocation2 + $0x130] sm:$0xff] %vm724_vm1, %v9221_v1  ;;  %764 = vst.msk [vmem:[#allocation2 + $0x138] sm:$0xff] %vm724_vm1, %v9221_v1  ;;  %8963 = vmatmul.mubr.msk.f32.vlgmr.msra.gmra.mxu0 %vm390_vm0, %v359_v10  ;;  %v1253_v41 = vld [vmem:[#allocation2 + $0x8] sm:$0xff]  ;;  %v1254_v45 = vld [vmem:[#allocation2 + $0x10] sm:$0xff] }
  0x20   : > { %765 = vst.msk [vmem:[#allocation2 + $0x140] sm:$0xff] %vm724_vm1, %v9221_v1  ;;  %766 = vst.msk [vmem:[#allocation2 + $0x148] sm:$0xff] %vm724_vm1, %v9221_v1  ;;  %8965 = vmatprep.mubr.msk.f32.mxu0 %vm390_vm0, %v360_v11  ;;  %v8262_v42 = vpack.c.bf16 %v1253_v41, %v1253_v41  ;;  %v9581_v43 = vld [vmem:[#allocation2 + $0x9] sm:$0xff]  ;;  %v8263_v46 = vpack.c.bf16 %v1254_v45, %v1254_v45  ;;  %v1511_v47 = vld [vmem:[#allocation2 + $0x11] sm:$0xff] }
  0x21   : > { %767 = vst.msk [vmem:[#allocation2 + $0x150] sm:$0xff] %vm724_vm1, %v9221_v1  ;;  %768 = vst.msk [vmem:[#allocation2 + $0x158] sm:$0xff] %vm724_vm1, %v9221_v1  ;;  %v8294_v44 = vpack.c.bf16 %v9581_v43, %v9581_v43  ;;  %v8295_v48 = vpack.c.bf16 %v1511_v47, %v1511_v47  ;;  %v1060_v52 = vld [vmem:[#allocation2 + $0x7] sm:$0xff]  ;;  %v1061_v53 = vld [vmem:[#allocation2 + $0xf] sm:$0xff] }
  0x22   : > { %769 = vst.msk [vmem:[#allocation2 + $0x160] sm:$0xff] %vm724_vm1, %v9221_v1  ;;  %770 = vst.msk [vmem:[#allocation2 + $0x168] sm:$0xff] %vm724_vm1, %v9221_v1  ;;  %v8230_v55 = vpack.c.bf16 %v1060_v52, %v1060_v52  ;;  %v8231_v56 = vpack.c.bf16 %v1061_v53, %v1061_v53 }
  0x23   : > { %771 = vst.msk [vmem:[#allocation2 + $0x170] sm:$0xff] %vm724_vm1, %v9221_v1  ;;  %772 = vst.msk [vmem:[#allocation2 + $0x178] sm:$0xff] %vm724_vm1, %v9221_v1  ;;  %8966 = vmatmul.mubr.msk.f32.gmra.mxu0 %vm390_vm0, %v361_v12 }
  0x24   : > { %773 = vst.msk [vmem:[#allocation2 + $0x180] sm:$0xff] %vm724_vm1, %v9221_v1  ;;  %774 = vst.msk [vmem:[#allocation2 + $0x188] sm:$0xff] %vm724_vm1, %v9221_v1  ;;  %8968 = vmatprep.mubr.msk.f32.mxu0 %vm390_vm0, %v362_v13 }
  0x25   : > { %775 = vst.msk [vmem:[#allocation2 + $0x190] sm:$0xff] %vm724_vm1, %v9221_v1  ;;  %776 = vst.msk [vmem:[#allocation2 + $0x198] sm:$0xff] %vm724_vm1, %v9221_v1 }
  0x26   : > { %777 = vst.msk [vmem:[#allocation2 + $0x1a0] sm:$0xff] %vm724_vm1, %v9221_v1  ;;  %778 = vst.msk [vmem:[#allocation2 + $0x1a8] sm:$0xff] %vm724_vm1, %v9221_v1 }
  0x27   : > { %779 = vst.msk [vmem:[#allocation2 + $0x1b0] sm:$0xff] %vm724_vm1, %v9221_v1  ;;  %780 = vst.msk [vmem:[#allocation2 + $0x1b8] sm:$0xff] %vm724_vm1, %v9221_v1  ;;  %8969 = vmatmul.mubr.msk.f32.gmra.mxu0 %vm390_vm0, %v363_v14 }
  0x28   : > { %781 = vst.msk [vmem:[#allocation2 + $0x1c0] sm:$0xff] %vm724_vm1, %v9221_v1  ;;  %782 = vst.msk [vmem:[#allocation2 + $0x1c8] sm:$0xff] %vm724_vm1, %v9221_v1  ;;  %8971 = vmatprep.mubr.msk.f32.mxu0 %vm390_vm0, %v364_v15 }
  0x29   : > { %783 = vst.msk [vmem:[#allocation2 + $0x1d0] sm:$0xff] %vm724_vm1, %v9221_v1  ;;  %784 = vst.msk [vmem:[#allocation2 + $0x1d8] sm:$0xff] %vm724_vm1, %v9221_v1 }
  0x2a   : > { %785 = vst.msk [vmem:[#allocation2 + $0x1e0] sm:$0xff] %vm724_vm1, %v9221_v1  ;;  %786 = vst.msk [vmem:[#allocation2 + $0x1e8] sm:$0xff] %vm724_vm1, %v9221_v1 }
  0x2b   : > { %787 = vst.msk [vmem:[#allocation2 + $0x1f0] sm:$0xff] %vm724_vm1, %v9221_v1  ;;  %788 = vst.msk [vmem:[#allocation2 + $0x1f8] sm:$0xff] %vm724_vm1, %v9221_v1  ;;  %8972 = vmatmul.mubr.msk.f32.gmra.mxu0 %vm390_vm0, %v365_v16 }
  0x2c   : > { %789 = vst.msk [vmem:[#allocation2 + $0x200] sm:$0xff] %vm724_vm1, %v9221_v1  ;;  %790 = vst.msk [vmem:[#allocation2 + $0x208] sm:$0xff] %vm724_vm1, %v9221_v1  ;;  %8974 = vmatprep.mubr.msk.f32.mxu0 %vm390_vm0, %v366_v17 }
  0x2d   : > { %791 = vst.msk [vmem:[#allocation2 + $0x210] sm:$0xff] %vm724_vm1, %v9221_v1  ;;  %792 = vst.msk [vmem:[#allocation2 + $0x218] sm:$0xff] %vm724_vm1, %v9221_v1 }
  0x2e   : > { %793 = vst.msk [vmem:[#allocation2 + $0x220] sm:$0xff] %vm724_vm1, %v9221_v1  ;;  %794 = vst.msk [vmem:[#allocation2 + $0x228] sm:$0xff] %vm724_vm1, %v9221_v1 }
  0x2f   : > { %795 = vst.msk [vmem:[#allocation2 + $0x230] sm:$0xff] %vm724_vm1, %v9221_v1  ;;  %796 = vst.msk [vmem:[#allocation2 + $0x238] sm:$0xff] %vm724_vm1, %v9221_v1  ;;  %8975 = vmatmul.mubr.msk.f32.gmra.mxu0 %vm390_vm0, %v367_v18 }
  0x30   : > { %8977 = vmatprep.mubr.msk.f32.mxu0 %vm390_vm0, %v368_v19  ;;  %4443 = vst.msk [vmem:[#allocation3] sm:$0xff] %vm866_vm2, %v9221_v1  ;;  %4444 = vst.msk [vmem:[#allocation3 + $0x8] sm:$0xff] %vm866_vm2, %v9221_v1 }
  0x31   : > { %4445 = vst.msk [vmem:[#allocation3 + $0x10] sm:$0xff] %vm866_vm2, %v9221_v1  ;;  %4446 = vst.msk [vmem:[#allocation3 + $0x18] sm:$0xff] %vm866_vm2, %v9221_v1 }
  0x32   : > { %4447 = vst.msk [vmem:[#allocation3 + $0x20] sm:$0xff] %vm866_vm2, %v9221_v1  ;;  %4448 = vst.msk [vmem:[#allocation3 + $0x28] sm:$0xff] %vm866_vm2, %v9221_v1 }
  0x33   : > { %8978 = vmatmul.mubr.msk.f32.gmra.mxu0 %vm390_vm0, %v369_v20  ;;  %4449 = vst.msk [vmem:[#allocation3 + $0x30] sm:$0xff] %vm866_vm2, %v9221_v1  ;;  %4450 = vst.msk [vmem:[#allocation3 + $0x38] sm:$0xff] %vm866_vm2, %v9221_v1 }
  0x34   : > { %8980 = vmatprep.mubr.msk.f32.mxu0 %vm390_vm0, %v370_v21  ;;  %4451 = vst.msk [vmem:[#allocation3 + $0x40] sm:$0xff] %vm866_vm2, %v9221_v1  ;;  %4452 = vst.msk [vmem:[#allocation3 + $0x48] sm:$0xff] %vm866_vm2, %v9221_v1 }
  0x35   : > { %4453 = vst.msk [vmem:[#allocation3 + $0x50] sm:$0xff] %vm866_vm2, %v9221_v1  ;;  %4454 = vst.msk [vmem:[#allocation3 + $0x58] sm:$0xff] %vm866_vm2, %v9221_v1 }
  0x36   : > { %4455 = vst.msk [vmem:[#allocation3 + $0x60] sm:$0xff] %vm866_vm2, %v9221_v1  ;;  %4456 = vst.msk [vmem:[#allocation3 + $0x68] sm:$0xff] %vm866_vm2, %v9221_v1 }
  0x37   : > { %8981 = vmatmul.mubr.msk.f32.gmra.mxu0 %vm390_vm0, %v371_v22  ;;  %4457 = vst.msk [vmem:[#allocation3 + $0x70] sm:$0xff] %vm866_vm2, %v9221_v1  ;;  %4458 = vst.msk [vmem:[#allocation3 + $0x78] sm:$0xff] %vm866_vm2, %v9221_v1 }
  0x38   : > { %8983 = vmatprep.mubr.msk.f32.mxu0 %vm390_vm0, %v372_v23  ;;  %4459 = vst.msk [vmem:[#allocation3 + $0x80] sm:$0xff] %vm866_vm2, %v9221_v1  ;;  %4460 = vst.msk [vmem:[#allocation3 + $0x88] sm:$0xff] %vm866_vm2, %v9221_v1 }
  0x39   : > { %4461 = vst.msk [vmem:[#allocation3 + $0x90] sm:$0xff] %vm866_vm2, %v9221_v1  ;;  %4462 = vst.msk [vmem:[#allocation3 + $0x98] sm:$0xff] %vm866_vm2, %v9221_v1 }
  0x3a   : > { %4463 = vst.msk [vmem:[#allocation3 + $0xa0] sm:$0xff] %vm866_vm2, %v9221_v1  ;;  %4464 = vst.msk [vmem:[#allocation3 + $0xa8] sm:$0xff] %vm866_vm2, %v9221_v1 }
  0x3b   : > { %8984 = vmatmul.mubr.msk.f32.gmra.mxu0 %vm390_vm0, %v373_v24  ;;  %4465 = vst.msk [vmem:[#allocation3 + $0xb0] sm:$0xff] %vm866_vm2, %v9221_v1  ;;  %4466 = vst.msk [vmem:[#allocation3 + $0xb8] sm:$0xff] %vm866_vm2, %v9221_v1 }
  0x3c   : > { %8986 = vmatprep.mubr.msk.f32.mxu0 %vm390_vm0, %v374_v25  ;;  %4467 = vst.msk [vmem:[#allocation3 + $0xc0] sm:$0xff] %vm866_vm2, %v9221_v1  ;;  %4468 = vst.msk [vmem:[#allocation3 + $0xc8] sm:$0xff] %vm866_vm2, %v9221_v1 }
  0x3d   : > { %4469 = vst.msk [vmem:[#allocation3 + $0xd0] sm:$0xff] %vm866_vm2, %v9221_v1  ;;  %4470 = vst.msk [vmem:[#allocation3 + $0xd8] sm:$0xff] %vm866_vm2, %v9221_v1 }
  0x3e   : > { %4471 = vst.msk [vmem:[#allocation3 + $0xe0] sm:$0xff] %vm866_vm2, %v9221_v1  ;;  %4472 = vst.msk [vmem:[#allocation3 + $0xe8] sm:$0xff] %vm866_vm2, %v9221_v1 }
  0x3f   : > { %8987 = vmatmul.mubr.msk.f32.gmra.mxu0 %vm390_vm0, %v375_v26  ;;  %4473 = vst.msk [vmem:[#allocation3 + $0xf0] sm:$0xff] %vm866_vm2, %v9221_v1  ;;  %4474 = vst.msk [vmem:[#allocation3 + $0xf8] sm:$0xff] %vm866_vm2, %v9221_v1 }
  0x40   : > { %8989 = vmatprep.mubr.msk.f32.mxu0 %vm390_vm0, %v376_v27  ;;  %4475 = vst.msk [vmem:[#allocation3 + $0x100] sm:$0xff] %vm866_vm2, %v9221_v1  ;;  %4476 = vst.msk [vmem:[#allocation3 + $0x108] sm:$0xff] %vm866_vm2, %v9221_v1 }
  0x41   : > { %4477 = vst.msk [vmem:[#allocation3 + $0x110] sm:$0xff] %vm866_vm2, %v9221_v1  ;;  %4478 = vst.msk [vmem:[#allocation3 + $0x118] sm:$0xff] %vm866_vm2, %v9221_v1 }
  0x42   : > { %4479 = vst.msk [vmem:[#allocation3 + $0x120] sm:$0xff] %vm866_vm2, %v9221_v1  ;;  %4480 = vst.msk [vmem:[#allocation3 + $0x128] sm:$0xff] %vm866_vm2, %v9221_v1 }
  0x43   : > { %8990 = vmatmul.mubr.msk.f32.gmra.mxu0 %vm390_vm0, %v377_v28  ;;  %4481 = vst.msk [vmem:[#allocation3 + $0x130] sm:$0xff] %vm866_vm2, %v9221_v1  ;;  %4482 = vst.msk [vmem:[#allocation3 + $0x138] sm:$0xff] %vm866_vm2, %v9221_v1 }
  0x44   : > { %8992 = vmatprep.mubr.msk.f32.mxu0 %vm390_vm0, %v378_v29  ;;  %4483 = vst.msk [vmem:[#allocation3 + $0x140] sm:$0xff] %vm866_vm2, %v9221_v1  ;;  %4484 = vst.msk [vmem:[#allocation3 + $0x148] sm:$0xff] %vm866_vm2, %v9221_v1 }
  0x45   : > { %4485 = vst.msk [vmem:[#allocation3 + $0x150] sm:$0xff] %vm866_vm2, %v9221_v1  ;;  %4486 = vst.msk [vmem:[#allocation3 + $0x158] sm:$0xff] %vm866_vm2, %v9221_v1 }
  0x46   : > { %4487 = vst.msk [vmem:[#allocation3 + $0x160] sm:$0xff] %vm866_vm2, %v9221_v1  ;;  %4488 = vst.msk [vmem:[#allocation3 + $0x168] sm:$0xff] %vm866_vm2, %v9221_v1 }
  0x47   : > { %8993 = vmatmul.mubr.msk.f32.gmra.mxu0 %vm390_vm0, %v379_v30  ;;  %4489 = vst.msk [vmem:[#allocation3 + $0x170] sm:$0xff] %vm866_vm2, %v9221_v1  ;;  %4490 = vst.msk [vmem:[#allocation3 + $0x178] sm:$0xff] %vm866_vm2, %v9221_v1 }
  0x48   : > { %8995 = vmatprep.mubr.msk.f32.mxu0 %vm390_vm0, %v380_v31  ;;  %4491 = vst.msk [vmem:[#allocation3 + $0x180] sm:$0xff] %vm866_vm2, %v9221_v1  ;;  %4492 = vst.msk [vmem:[#allocation3 + $0x188] sm:$0xff] %vm866_vm2, %v9221_v1 }
  0x49   : > { %4493 = vst.msk [vmem:[#allocation3 + $0x190] sm:$0xff] %vm866_vm2, %v9221_v1  ;;  %4494 = vst.msk [vmem:[#allocation3 + $0x198] sm:$0xff] %vm866_vm2, %v9221_v1 }
  0x4a   : > { %4495 = vst.msk [vmem:[#allocation3 + $0x1a0] sm:$0xff] %vm866_vm2, %v9221_v1  ;;  %4496 = vst.msk [vmem:[#allocation3 + $0x1a8] sm:$0xff] %vm866_vm2, %v9221_v1 }
  0x4b   : > { %8996 = vmatmul.mubr.msk.f32.gmra.mxu0 %vm390_vm0, %v381_v32  ;;  %4497 = vst.msk [vmem:[#allocation3 + $0x1b0] sm:$0xff] %vm866_vm2, %v9221_v1  ;;  %4498 = vst.msk [vmem:[#allocation3 + $0x1b8] sm:$0xff] %vm866_vm2, %v9221_v1 }
  0x4c   : > { %8998 = vmatprep.mubr.msk.f32.mxu0 %vm390_vm0, %v382_v33  ;;  %4499 = vst.msk [vmem:[#allocation3 + $0x1c0] sm:$0xff] %vm866_vm2, %v9221_v1  ;;  %4500 = vst.msk [vmem:[#allocation3 + $0x1c8] sm:$0xff] %vm866_vm2, %v9221_v1 }
  0x4d   : > { %4501 = vst.msk [vmem:[#allocation3 + $0x1d0] sm:$0xff] %vm866_vm2, %v9221_v1  ;;  %4502 = vst.msk [vmem:[#allocation3 + $0x1d8] sm:$0xff] %vm866_vm2, %v9221_v1 }
  0x4e   : > { %4503 = vst.msk [vmem:[#allocation3 + $0x1e0] sm:$0xff] %vm866_vm2, %v9221_v1  ;;  %4504 = vst.msk [vmem:[#allocation3 + $0x1e8] sm:$0xff] %vm866_vm2, %v9221_v1 }
  0x4f   : > { %8999 = vmatmul.mubr.msk.f32.gmra.mxu0 %vm390_vm0, %v383_v34  ;;  %4505 = vst.msk [vmem:[#allocation3 + $0x1f0] sm:$0xff] %vm866_vm2, %v9221_v1  ;;  %4506 = vst.msk [vmem:[#allocation3 + $0x1f8] sm:$0xff] %vm866_vm2, %v9221_v1 }
  0x50   : > { %9001 = vmatprep.mubr.msk.f32.mxu0 %vm390_vm0, %v384_v35  ;;  %4507 = vst.msk [vmem:[#allocation3 + $0x200] sm:$0xff] %vm866_vm2, %v9221_v1  ;;  %4508 = vst.msk [vmem:[#allocation3 + $0x208] sm:$0xff] %vm866_vm2, %v9221_v1 }
  0x51   : > { %4509 = vst.msk [vmem:[#allocation3 + $0x210] sm:$0xff] %vm866_vm2, %v9221_v1  ;;  %4510 = vst.msk [vmem:[#allocation3 + $0x218] sm:$0xff] %vm866_vm2, %v9221_v1 }
  0x52   : > { %4511 = vst.msk [vmem:[#allocation3 + $0x220] sm:$0xff] %vm866_vm2, %v9221_v1  ;;  %4512 = vst.msk [vmem:[#allocation3 + $0x228] sm:$0xff] %vm866_vm2, %v9221_v1 }
  0x53   : > { %9002 = vmatmul.mubr.msk.f32.gmra.mxu0 %vm390_vm0, %v385_v36  ;;  %4513 = vst.msk [vmem:[#allocation3 + $0x230] sm:$0xff] %vm866_vm2, %v9221_v1  ;;  %4514 = vst.msk [vmem:[#allocation3 + $0x238] sm:$0xff] %vm866_vm2, %v9221_v1 }
  0x54   : > { %9004 = vmatprep.mubr.msk.f32.mxu0 %vm390_vm0, %v386_v37  ;;  %1221 = vst.msk [vmem:[#allocation4] sm:$0xf] %vm1220_vm3, %v8230_v55  ;;  %1222 = vst.msk [vmem:[#allocation4 + $0x10] sm:$0xf] %vm1220_vm3, %v8231_v56 }
  0x55   : > { %vm9773_vm8 = vmor %vm1800_vm6, %vm1799_vm5  ;;  %vm5222_vm5 = vcmask 388352   ;;  %vm5479_vm6 = vcmask 519552  }
  0x56   : > { %vm10591_vm15 = vmor %vm2638_vm13, %vm2637_vm12 }
  0x57   : > { %9005 = vmatmul.mubr.msk.f32.gmra.mxu0 %vm390_vm0, %v387_v38 }
  0x58   : > { %9007 = vmatprep.mubr.msk.f32.mxu0 %vm390_vm0, %v388_v39 }
  0x5b   : > { %9008 = vmatmul.mubr.msk.f32.gmra.mxu0 %vm390_vm0, %v389_v40  ;;  %vm2897_vm0 = vcmask 650496  }
  0x6b   : > { %1381 = vrot.lane.b32.xlu1 %v8262_v42, %s9222_s25 }
  0x6f   : > { %1638 = vrot.lane.b32.xlu1 %v8294_v44, %s9223_s26 }
  0x75   : > { %1383 = vrot.lane.b32.xlu0 %v8263_v46, %s9222_s25 }
  0x79   : > { %1640 = vrot.lane.b32.xlu0 %v8295_v48, %s9223_s26 }
  0x8c   : > { %v817_v49 = vpop.trf.xlu0 }
  0x8d   : > { %v849_v50 = vpop.trf.xlu1  ;;  %867 = vst.msk [vmem:[#allocation2 + $0x28] sm:$0xff] %vm866_vm2, %v817_v49 }
  0x8e   : > { %883 = vst.msk [vmem:[#allocation2 + $0x128] sm:$0xff] %vm866_vm2, %v849_v50 }
  0x90   : > { %v818_v51 = vpop.trf.xlu0 }
  0x91   : > { %v850_v54 = vpop.trf.xlu1  ;;  %868 = vst.msk [vmem:[#allocation2 + $0x30] sm:$0xff] %vm866_vm2, %v818_v51 }
  0x92   : > { %884 = vst.msk [vmem:[#allocation2 + $0x130] sm:$0xff] %vm866_vm2, %v850_v54 }
  0x94   : > { %v819_v57 = vpop.trf.xlu0 }
  0x95   : > { %v851_v58 = vpop.trf.xlu1  ;;  %869 = vst.msk [vmem:[#allocation2 + $0x48] sm:$0xff] %vm866_vm2, %v819_v57 }
  0x96   : > { %885 = vst.msk [vmem:[#allocation2 + $0x148] sm:$0xff] %vm866_vm2, %v851_v58 }
  0x98   : > { %v820_v59 = vpop.trf.xlu0 }
  0x99   : > { %v852_v60 = vpop.trf.xlu1  ;;  %870 = vst.msk [vmem:[#allocation2 + $0x50] sm:$0xff] %vm866_vm2, %v820_v59 }
  0x9a   : > { %886 = vst.msk [vmem:[#allocation2 + $0x150] sm:$0xff] %vm866_vm2, %v852_v60 }
  0x9c   : > { %v821_v61 = vpop.trf.xlu0 }
  0x9d   : > { %v853_v62 = vpop.trf.xlu1  ;;  %871 = vst.msk [vmem:[#allocation2 + $0x68] sm:$0xff] %vm866_vm2, %v821_v61 }
  0x9e   : > { %887 = vst.msk [vmem:[#allocation2 + $0x168] sm:$0xff] %vm866_vm2, %v853_v62 }
  0xa0   : > { %v822_v63 = vpop.trf.xlu0 }
  0xa1   : > { %v854_v0 = vpop.trf.xlu1  ;;  %872 = vst.msk [vmem:[#allocation2 + $0x70] sm:$0xff] %vm866_vm2, %v822_v63 }
  0xa2   : > { %888 = vst.msk [vmem:[#allocation2 + $0x170] sm:$0xff] %vm866_vm2, %v854_v0 }
  0xa4   : > { %v823_v1 = vpop.trf.xlu0 }
  0xa5   : > { %v855_v2 = vpop.trf.xlu1  ;;  %873 = vst.msk [vmem:[#allocation2 + $0x88] sm:$0xff] %vm866_vm2, %v823_v1 }
  0xa6   : > { %889 = vst.msk [vmem:[#allocation2 + $0x188] sm:$0xff] %vm866_vm2, %v855_v2 }
  0xa8   : > { %v824_v3 = vpop.trf.xlu0 }
  0xa9   : > { %v856_v4 = vpop.trf.xlu1  ;;  %874 = vst.msk [vmem:[#allocation2 + $0x90] sm:$0xff] %vm866_vm2, %v824_v3 }
  0xaa   : > { %890 = vst.msk [vmem:[#allocation2 + $0x190] sm:$0xff] %vm866_vm2, %v856_v4 }
  0xac   : > { %v825_v5 = vpop.trf.xlu0 }
  0xad   : > { %v857_v6 = vpop.trf.xlu1  ;;  %875 = vst.msk [vmem:[#allocation2 + $0xa8] sm:$0xff] %vm866_vm2, %v825_v5 }
  0xae   : > { %891 = vst.msk [vmem:[#allocation2 + $0x1a8] sm:$0xff] %vm866_vm2, %v857_v6 }
  0xb0   : > { %v826_v7 = vpop.trf.xlu0 }
  0xb1   : > { %v858_v8 = vpop.trf.xlu1  ;;  %876 = vst.msk [vmem:[#allocation2 + $0xb0] sm:$0xff] %vm866_vm2, %v826_v7 }
  0xb2   : > { %892 = vst.msk [vmem:[#allocation2 + $0x1b0] sm:$0xff] %vm866_vm2, %v858_v8 }
  0xb4   : > { %v827_v9 = vpop.trf.xlu0 }
  0xb5   : > { %v859_v10 = vpop.trf.xlu1  ;;  %877 = vst.msk [vmem:[#allocation2 + $0xc8] sm:$0xff] %vm866_vm2, %v827_v9 }
  0xb6   : > { %893 = vst.msk [vmem:[#allocation2 + $0x1c8] sm:$0xff] %vm866_vm2, %v859_v10 }
  0xb8   : > { %v828_v11 = vpop.trf.xlu0 }
  0xb9   : > { %v860_v12 = vpop.trf.xlu1  ;;  %878 = vst.msk [vmem:[#allocation2 + $0xd0] sm:$0xff] %vm866_vm2, %v828_v11 }
  0xba   : > { %894 = vst.msk [vmem:[#allocation2 + $0x1d0] sm:$0xff] %vm866_vm2, %v860_v12 }
  0xbc   : > { %v829_v13 = vpop.trf.xlu0 }
  0xbd   : > { %v861_v14 = vpop.trf.xlu1  ;;  %879 = vst.msk [vmem:[#allocation2 + $0xe8] sm:$0xff] %vm866_vm2, %v829_v13 }
  0xbe   : > { %895 = vst.msk [vmem:[#allocation2 + $0x1e8] sm:$0xff] %vm866_vm2, %v861_v14 }
  0xc0   : > { %v830_v15 = vpop.trf.xlu0 }
  0xc1   : > { %v862_v16 = vpop.trf.xlu1  ;;  %880 = vst.msk [vmem:[#allocation2 + $0xf0] sm:$0xff] %vm866_vm2, %v830_v15 }
  0xc2   : > { %896 = vst.msk [vmem:[#allocation2 + $0x1f0] sm:$0xff] %vm866_vm2, %v862_v16 }
  0xc4   : > { %v831_v17 = vpop.trf.xlu0 }
  0xc5   : > { %v863_v18 = vpop.trf.xlu1  ;;  %881 = vst.msk [vmem:[#allocation2 + $0x108] sm:$0xff] %vm866_vm2, %v831_v17 }
  0xc6   : > { %897 = vst.msk [vmem:[#allocation2 + $0x208] sm:$0xff] %vm866_vm2, %v863_v18 }
  0xc8   : > { %v832_v19 = vpop.trf.xlu0 }
  0xc9   : > { %v864_v20 = vpop.trf.xlu1  ;;  %882 = vst.msk [vmem:[#allocation2 + $0x110] sm:$0xff] %vm866_vm2, %v832_v19 }
  0xca   : > { %898 = vst.msk [vmem:[#allocation2 + $0x210] sm:$0xff] %vm866_vm2, %v864_v20 }
  0xdd   : > { %v1382_v21 = vpop.permute.xlu1 %1381 }
  0xde   : > { %1478 = vst.msk [vmem:[#allocation4] sm:$0xf] %vm1477_vm4, %v1382_v21 }
  0xdf   : > { %v8964_v22 = vpop.f32.mrf.mxu0 }
  0xe0   : > { %933 = vrot.lane.b32.xlu1 %v8964_v22, %s9224_s27 }
  0xe1   : > { %v565_v23 = vpop.f32.mrf.mxu0  ;;  %v1639_v24 = vpop.permute.xlu1 %1638 }
  0xe2   : > { %931 = vrot.lane.b32.xlu0 %v565_v23, %s9224_s27  ;;  %v1702_v25 = vrot.slane %v1639_v24, 4 }
  0xe3   : > { %v8967_v27 = vpop.f32.mrf.mxu0 }
  0xe4   : > { %937 = vrot.lane.b32.xlu1 %v8967_v27, %s9224_s27  ;;  %v1735_v28 = vsel %vm1734_vm7, %v1702_v25, %v1639_v24 }
  0xe5   : > { %v575_v29 = vpop.f32.mrf.mxu0  ;;  %1802 = vst.msk [vmem:[#allocation4] sm:$0xff] %vm9773_vm8, %v1735_v28 }
  0xe7   : > { %v8970_v30 = vpop.f32.mrf.mxu0  ;;  %v1384_v31 = vpop.permute.xlu0 %1383 }
  0xe8   : > { %935 = vrot.lane.b32.xlu1 %v575_v29, %s9224_s27  ;;  %941 = vrot.lane.b32.xlu0 %v8970_v30, %s9224_s27  ;;  %1479 = vst.msk [vmem:[#allocation4 + $0x10] sm:$0xf] %vm1477_vm4, %v1384_v31 }
  0xe9   : > { %v585_v32 = vpop.f32.mrf.mxu0 }
  0xeb   : > { %v8973_v33 = vpop.f32.mrf.mxu0  ;;  %v1641_v34 = vpop.permute.xlu0 %1640 }
  0xec   : > { %939 = vrot.lane.b32.xlu1 %v585_v32, %s9224_s27  ;;  %945 = vrot.lane.b32.xlu0 %v8973_v33, %s9224_s27  ;;  %v1703_v35 = vrot.slane %v1641_v34, 4 }
  0xed   : > { %v595_v36 = vpop.f32.mrf.mxu0 }
  0xee   : > { %v1736_v37 = vsel %vm1734_vm7, %v1703_v35, %v1641_v34 }
  0xef   : > { %v8976_v38 = vpop.f32.mrf.mxu0  ;;  %1803 = vst.msk [vmem:[#allocation4 + $0x10] sm:$0xff] %vm9773_vm8, %v1736_v37 }
  0xf0   : > { %943 = vrot.lane.b32.xlu1 %v595_v36, %s9224_s27  ;;  %949 = vrot.lane.b32.xlu0 %v8976_v38, %s9224_s27 }
  0xf1   : > { %v605_v39 = vpop.f32.mrf.mxu0 }
  0xf3   : > { %v8979_v40 = vpop.f32.mrf.mxu0 }
  0xf4   : > { %947 = vrot.lane.b32.xlu1 %v605_v39, %s9224_s27  ;;  %953 = vrot.lane.b32.xlu0 %v8979_v40, %s9224_s27 }
  0xf5   : > { %v615_v41 = vpop.f32.mrf.mxu0 }
  0xf7   : > { %v8982_v42 = vpop.f32.mrf.mxu0 }
  0xf8   : > { %951 = vrot.lane.b32.xlu1 %v615_v41, %s9224_s27  ;;  %957 = vrot.lane.b32.xlu0 %v8982_v42, %s9224_s27 }
  0xf9   : > { %v625_v43 = vpop.f32.mrf.mxu0 }
  0xfb   : > { %v8985_v44 = vpop.f32.mrf.mxu0 }
  0xfc   : > { %955 = vrot.lane.b32.xlu1 %v625_v43, %s9224_s27  ;;  %961 = vrot.lane.b32.xlu0 %v8985_v44, %s9224_s27 }
  0xfd   : > { %v635_v45 = vpop.f32.mrf.mxu0 }
  0xff   : > { %v8988_v46 = vpop.f32.mrf.mxu0 }
 0x100   : > { %959 = vrot.lane.b32.xlu1 %v635_v45, %s9224_s27  ;;  %965 = vrot.lane.b32.xlu0 %v8988_v46, %s9224_s27 }
 0x101   : > { %v645_v47 = vpop.f32.mrf.mxu0 }
 0x103   : > { %v8991_v48 = vpop.f32.mrf.mxu0 }
 0x104   : > { %963 = vrot.lane.b32.xlu1 %v645_v47, %s9224_s27  ;;  %969 = vrot.lane.b32.xlu0 %v8991_v48, %s9224_s27 }
 0x105   : > { %v655_v49 = vpop.f32.mrf.mxu0 }
 0x107   : > { %v8994_v50 = vpop.f32.mrf.mxu0 }
 0x108   : > { %967 = vrot.lane.b32.xlu1 %v655_v49, %s9224_s27  ;;  %973 = vrot.lane.b32.xlu0 %v8994_v50, %s9224_s27 }
 0x109   : > { %v665_v51 = vpop.f32.mrf.mxu0 }
 0x10b   : > { %v8997_v52 = vpop.f32.mrf.mxu0 }
 0x10c   : > { %971 = vrot.lane.b32.xlu1 %v665_v51, %s9224_s27  ;;  %977 = vrot.lane.b32.xlu0 %v8997_v52, %s9224_s27 }
 0x10d   : > { %v675_v53 = vpop.f32.mrf.mxu0 }
 0x10f   : > { %v9000_v54 = vpop.f32.mrf.mxu0 }
 0x110   : > { %975 = vrot.lane.b32.xlu1 %v675_v53, %s9224_s27  ;;  %981 = vrot.lane.b32.xlu0 %v9000_v54, %s9224_s27 }
 0x111   : > { %v685_v55 = vpop.f32.mrf.mxu0 }
 0x113   : > { %v9003_v56 = vpop.f32.mrf.mxu0 }
 0x114   : > { %979 = vrot.lane.b32.xlu1 %v685_v55, %s9224_s27  ;;  %985 = vrot.lane.b32.xlu0 %v9003_v56, %s9224_s27 }
 0x115   : > { %v695_v57 = vpop.f32.mrf.mxu0 }
 0x117   : > { %v9006_v58 = vpop.f32.mrf.mxu0 }
 0x118   : > { %983 = vrot.lane.b32.xlu1 %v695_v57, %s9224_s27  ;;  %989 = vrot.lane.b32.xlu0 %v9006_v58, %s9224_s27 }
 0x119   : > { %v705_v59 = vpop.f32.mrf.mxu0 }
 0x11b   : > { %v9009_v60 = vpop.f32.mrf.mxu0 }
 0x11c   : > { %987 = vrot.lane.b32.xlu1 %v705_v59, %s9224_s27  ;;  %993 = vrot.lane.b32.xlu0 %v9009_v60, %s9224_s27 }
 0x11d   : > { %v715_v61 = vpop.f32.mrf.mxu0 }
 0x120   : > { %991 = vrot.lane.b32.xlu1 %v715_v61, %s9224_s27 }
 0x152   : > { %v934_v62 = vpop.permute.xlu1 %933 }
 0x153   : > { %1029 = vst.msk [vmem:[#allocation2 + $0x30] sm:$0xff] %vm1027_vm9, %v934_v62 }
 0x154   : > { %v932_v63 = vpop.permute.xlu0 %931 }
 0x155   : > { %1028 = vst.msk [vmem:[#allocation2 + $0x28] sm:$0xff] %vm1027_vm9, %v932_v63 }
 0x156   : > { %v938_v0 = vpop.permute.xlu1 %937 }
 0x157   : > { %1031 = vst.msk [vmem:[#allocation2 + $0x50] sm:$0xff] %vm1027_vm9, %v938_v0 }
 0x15a   : > { %v1256_v1 = vld [vmem:[#allocation2 + $0x30] sm:$0xff]  ;;  %v936_v2 = vpop.permute.xlu1 %935  ;;  %v942_v3 = vpop.permute.xlu0 %941 }
 0x15b   : > { %v8265_v4 = vpack.c.bf16 %v1256_v1, %v1256_v1  ;;  %1030 = vst.msk [vmem:[#allocation2 + $0x48] sm:$0xff] %vm1027_vm9, %v936_v2  ;;  %1033 = vst.msk [vmem:[#allocation2 + $0x70] sm:$0xff] %vm1027_vm9, %v942_v3  ;;  %v1513_v6 = vld [vmem:[#allocation2 + $0x31] sm:$0xff] }
 0x15c   : > { %v1255_v5 = vld [vmem:[#allocation2 + $0x28] sm:$0xff]  ;;  %v8297_v17 = vpack.c.bf16 %v1513_v6, %v1513_v6 }
 0x15d   : > { %v1834_v7 = vld [vmem:[#allocation2 + $0x27] sm:$0xff]  ;;  %1387 = vrot.lane.b32.xlu0 %v8265_v4, %s9222_s25  ;;  %v8264_v8 = vpack.c.bf16 %v1255_v5, %v1255_v5  ;;  %v1835_v10 = vld [vmem:[#allocation2 + $0x2f] sm:$0xff] }
 0x15e   : > { %v8326_v9 = vpack.c.bf16 %v1834_v7, %v1834_v7  ;;  %v3188_v11 = vld [vmem:[#allocation2 + $0x51] sm:$0xff]  ;;  %v1512_v12 = vld [vmem:[#allocation2 + $0x29] sm:$0xff]  ;;  %v8327_v13 = vpack.c.bf16 %v1835_v10, %v1835_v10  ;;  %v940_v14 = vpop.permute.xlu1 %939  ;;  %v946_v15 = vpop.permute.xlu0 %945 }
 0x15f   : > { %v9820_v16 = vpack.c.bf16 %v3188_v11, %v3188_v11  ;;  %1385 = vrot.lane.b32.xlu1 %v8264_v8, %s9222_s25  ;;  %1032 = vst.msk [vmem:[#allocation2 + $0x68] sm:$0xff] %vm1027_vm9, %v940_v14  ;;  %1035 = vst.msk [vmem:[#allocation2 + $0x90] sm:$0xff] %vm1027_vm9, %v946_v15  ;;  %v8296_v18 = vpack.c.bf16 %v1512_v12, %v1512_v12  ;;  %v1258_v38 = vld [vmem:[#allocation2 + $0x50] sm:$0xff] }
 0x160   : > { %1223 = vst.msk [vmem:[#allocation4 + $0x20] sm:$0xf] %vm1220_vm3, %v8326_v9  ;;  %1224 = vst.msk [vmem:[#allocation4 + $0x30] sm:$0xf] %vm1220_vm3, %v8327_v13  ;;  %v8267_v46 = vpack.c.bf16 %v1258_v38, %v1258_v38 }
 0x161   : > { %3348 = vst.msk [vmem:[#allocation4 + $0x1c] sm:$0xf] %vm1220_vm3, %v9820_v16  ;;  %1644 = vrot.lane.b32.xlu0 %v8297_v17, %s9223_s26 }
 0x162   : > { %v3187_v19 = vld [vmem:[#allocation2 + $0x49] sm:$0xff]  ;;  %v3190_v20 = vld [vmem:[#allocation2 + $0x71] sm:$0xff]  ;;  %v944_v21 = vpop.permute.xlu1 %943  ;;  %v950_v22 = vpop.permute.xlu0 %949 }
 0x163   : > { %v9830_v23 = vpack.c.bf16 %v3187_v19, %v3187_v19  ;;  %1642 = vrot.lane.b32.xlu1 %v8296_v18, %s9223_s26  ;;  %v9833_v24 = vpack.c.bf16 %v3190_v20, %v3190_v20  ;;  %v1836_v25 = vld [vmem:[#allocation2 + $0x47] sm:$0xff]  ;;  %v1837_v27 = vld [vmem:[#allocation2 + $0x4f] sm:$0xff]  ;;  %1034 = vst.msk [vmem:[#allocation2 + $0x88] sm:$0xff] %vm1027_vm9, %v944_v21  ;;  %1037 = vst.msk [vmem:[#allocation2 + $0xb0] sm:$0xff] %vm1027_vm9, %v950_v22 }
 0x164   : > { %v9837_v28 = vpack.c.bf16 %v1836_v25, %v1836_v25  ;;  %v9839_v29 = vpack.c.bf16 %v1837_v27, %v1837_v27  ;;  %v1257_v41 = vld [vmem:[#allocation2 + $0x48] sm:$0xff]  ;;  %v1260_v10 = vld [vmem:[#allocation2 + $0x70] sm:$0xff] }
 0x165   : > { %3347 = vst.msk [vmem:[#allocation4 + $0xc] sm:$0xf] %vm1220_vm3, %v9830_v23  ;;  %2221 = vrot.lane.b32.xlu0 %v8265_v4, %s9225_s28  ;;  %3350 = vst.msk [vmem:[#allocation4 + $0x3c] sm:$0xf] %vm1220_vm3, %v9833_v24  ;;  %v9882_v53 = vpack.c.bf16 %v1257_v41, %v1257_v41  ;;  %v8269_v21 = vpack.c.bf16 %v1260_v10, %v1260_v10 }
 0x166   : > { %v3189_v30 = vld [vmem:[#allocation2 + $0x69] sm:$0xff]  ;;  %v3192_v31 = vld [vmem:[#allocation2 + $0x91] sm:$0xff]  ;;  %v948_v32 = vpop.permute.xlu1 %947  ;;  %v954_v33 = vpop.permute.xlu0 %953  ;;  %1226 = vst.msk [vmem:[#allocation4 + $0x50] sm:$0xf] %vm1220_vm3, %v9839_v29  ;;  %1225 = vst.msk [vmem:[#allocation4 + $0x40] sm:$0xf] %vm1220_vm3, %v9837_v28 }
 0x167   : > { %1962 = vrot.lane.b32.xlu1 %v8326_v9, %s9224_s27  ;;  %v9851_v34 = vpack.c.bf16 %v3189_v30, %v3189_v30  ;;  %v9853_v35 = vpack.c.bf16 %v3192_v31, %v3192_v31  ;;  %v1838_v36 = vld [vmem:[#allocation2 + $0x67] sm:$0xff]  ;;  %v1839_v37 = vld [vmem:[#allocation2 + $0x6f] sm:$0xff]  ;;  %1036 = vst.msk [vmem:[#allocation2 + $0xa8] sm:$0xff] %vm1027_vm9, %v948_v32  ;;  %1039 = vst.msk [vmem:[#allocation2 + $0xd0] sm:$0xff] %vm1027_vm9, %v954_v33 }
 0x168   : > { %v9857_v39 = vpack.c.bf16 %v1838_v36, %v1838_v36  ;;  %v9859_v40 = vpack.c.bf16 %v1839_v37, %v1839_v37  ;;  %v1259_v22 = vld [vmem:[#allocation2 + $0x68] sm:$0xff] }
 0x169   : > { %1964 = vrot.lane.b32.xlu0 %v8327_v13, %s9224_s27  ;;  %3349 = vst.msk [vmem:[#allocation4 + $0x2c] sm:$0xf] %vm1220_vm3, %v9851_v34  ;;  %3352 = vst.msk [vmem:[#allocation4 + $0x5c] sm:$0xf] %vm1220_vm3, %v9853_v35  ;;  %v9970_v37 = vpack.c.bf16 %v1259_v22, %v1259_v22 }
 0x16a   : > { %v3191_v42 = vld [vmem:[#allocation2 + $0x89] sm:$0xff]  ;;  %v3194_v43 = vld [vmem:[#allocation2 + $0xb1] sm:$0xff]  ;;  %v952_v44 = vpop.permute.xlu1 %951  ;;  %v958_v45 = vpop.permute.xlu0 %957  ;;  %1228 = vst.msk [vmem:[#allocation4 + $0x70] sm:$0xf] %vm1220_vm3, %v9859_v40  ;;  %1227 = vst.msk [vmem:[#allocation4 + $0x60] sm:$0xf] %vm1220_vm3, %v9857_v39 }
 0x16b   : > { %2219 = vrot.lane.b32.xlu1 %v8264_v8, %s9225_s28  ;;  %v9871_v47 = vpack.c.bf16 %v3191_v42, %v3191_v42  ;;  %v9873_v48 = vpack.c.bf16 %v3194_v43, %v3194_v43  ;;  %v1840_v49 = vld [vmem:[#allocation2 + $0x87] sm:$0xff]  ;;  %v1841_v50 = vld [vmem:[#allocation2 + $0x8f] sm:$0xff]  ;;  %1038 = vst.msk [vmem:[#allocation2 + $0xc8] sm:$0xff] %vm1027_vm9, %v952_v44  ;;  %1041 = vst.msk [vmem:[#allocation2 + $0xf0] sm:$0xff] %vm1027_vm9, %v958_v45 }
 0x16c   : > { %v9877_v51 = vpack.c.bf16 %v1840_v49, %v1840_v49  ;;  %v9879_v52 = vpack.c.bf16 %v1841_v50, %v1841_v50 }
 0x16d   : > { %1391 = vrot.lane.b32.xlu0 %v8267_v46, %s9222_s25  ;;  %3351 = vst.msk [vmem:[#allocation4 + $0x4c] sm:$0xf] %vm1220_vm3, %v9871_v47  ;;  %3354 = vst.msk [vmem:[#allocation4 + $0x7c] sm:$0xf] %vm1220_vm3, %v9873_v48 }
 0x16e   : > { %v3193_v54 = vld [vmem:[#allocation2 + $0xa9] sm:$0xff]  ;;  %v3196_v55 = vld [vmem:[#allocation2 + $0xd1] sm:$0xff]  ;;  %v956_v56 = vpop.permute.xlu1 %955  ;;  %v962_v57 = vpop.permute.xlu0 %961  ;;  %1230 = vst.msk [vmem:[#allocation4 + $0x90] sm:$0xf] %vm1220_vm3, %v9879_v52  ;;  %1229 = vst.msk [vmem:[#allocation4 + $0x80] sm:$0xf] %vm1220_vm3, %v9877_v51 }
 0x16f   : > { %1389 = vrot.lane.b32.xlu1 %v9882_v53, %s9222_s25  ;;  %v9894_v58 = vpack.c.bf16 %v3193_v54, %v3193_v54  ;;  %v9896_v59 = vpack.c.bf16 %v3196_v55, %v3196_v55  ;;  %1040 = vst.msk [vmem:[#allocation2 + $0xe8] sm:$0xff] %vm1027_vm9, %v956_v56  ;;  %v1842_v60 = vld [vmem:[#allocation2 + $0xa7] sm:$0xff]  ;;  %v1843_v61 = vld [vmem:[#allocation2 + $0xaf] sm:$0xff]  ;;  %1043 = vst.msk [vmem:[#allocation2 + $0x110] sm:$0xff] %vm1027_vm9, %v962_v57 }
 0x170   : > { %v9900_v62 = vpack.c.bf16 %v1842_v60, %v1842_v60  ;;  %v9902_v63 = vpack.c.bf16 %v1843_v61, %v1843_v61 }
 0x171   : > { %1648 = vrot.lane.b32.xlu0 %v9820_v16, %s9223_s26  ;;  %3353 = vst.msk [vmem:[#allocation4 + $0x6c] sm:$0xf] %vm1220_vm3, %v9894_v58  ;;  %3356 = vst.msk [vmem:[#allocation4 + $0x9c] sm:$0xf] %vm1220_vm3, %v9896_v59 }
 0x172   : > { %v3195_v0 = vld [vmem:[#allocation2 + $0xc9] sm:$0xff]  ;;  %v3198_v1 = vld [vmem:[#allocation2 + $0xf1] sm:$0xff]  ;;  %v960_v2 = vpop.permute.xlu1 %959  ;;  %v966_v3 = vpop.permute.xlu0 %965  ;;  %1232 = vst.msk [vmem:[#allocation4 + $0xb0] sm:$0xf] %vm1220_vm3, %v9902_v63  ;;  %1231 = vst.msk [vmem:[#allocation4 + $0xa0] sm:$0xf] %vm1220_vm3, %v9900_v62 }
 0x173   : > { %1646 = vrot.lane.b32.xlu1 %v9830_v23, %s9223_s26  ;;  %v9916_v4 = vpack.c.bf16 %v3195_v0, %v3195_v0  ;;  %v9918_v5 = vpack.c.bf16 %v3198_v1, %v3198_v1  ;;  %1042 = vst.msk [vmem:[#allocation2 + $0x108] sm:$0xff] %vm1027_vm9, %v960_v2  ;;  %1045 = vst.msk [vmem:[#allocation2 + $0x130] sm:$0xff] %vm1027_vm9, %v966_v3  ;;  %v1844_v6 = vld [vmem:[#allocation2 + $0xc7] sm:$0xff]  ;;  %v1845_v7 = vld [vmem:[#allocation2 + $0xcf] sm:$0xff] }
 0x174   : > { %v9922_v8 = vpack.c.bf16 %v1844_v6, %v1844_v6  ;;  %v9924_v9 = vpack.c.bf16 %v1845_v7, %v1845_v7 }
 0x175   : > { %2225 = vrot.lane.b32.xlu0 %v8267_v46, %s9225_s28  ;;  %3355 = vst.msk [vmem:[#allocation4 + $0x8c] sm:$0xf] %vm1220_vm3, %v9916_v4  ;;  %3358 = vst.msk [vmem:[#allocation4 + $0xbc] sm:$0xf] %vm1220_vm3, %v9918_v5 }
 0x176   : > { %v3197_v11 = vld [vmem:[#allocation2 + $0xe9] sm:$0xff]  ;;  %v3200_v12 = vld [vmem:[#allocation2 + $0x111] sm:$0xff]  ;;  %v964_v13 = vpop.permute.xlu1 %963  ;;  %v970_v14 = vpop.permute.xlu0 %969  ;;  %1234 = vst.msk [vmem:[#allocation4 + $0xd0] sm:$0xf] %vm1220_vm3, %v9924_v9  ;;  %1233 = vst.msk [vmem:[#allocation4 + $0xc0] sm:$0xf] %vm1220_vm3, %v9922_v8 }
 0x177   : > { %1966 = vrot.lane.b32.xlu1 %v9837_v28, %s9224_s27  ;;  %v9937_v15 = vpack.c.bf16 %v3197_v11, %v3197_v11  ;;  %v9939_v16 = vpack.c.bf16 %v3200_v12, %v3200_v12  ;;  %1044 = vst.msk [vmem:[#allocation2 + $0x128] sm:$0xff] %vm1027_vm9, %v964_v13  ;;  %1047 = vst.msk [vmem:[#allocation2 + $0x150] sm:$0xff] %vm1027_vm9, %v970_v14  ;;  %v1846_v17 = vld [vmem:[#allocation2 + $0xe7] sm:$0xff]  ;;  %v1847_v18 = vld [vmem:[#allocation2 + $0xef] sm:$0xff] }
 0x178   : > { %v9943_v19 = vpack.c.bf16 %v1846_v17, %v1846_v17  ;;  %v9945_v20 = vpack.c.bf16 %v1847_v18, %v1847_v18 }
 0x179   : > { %1968 = vrot.lane.b32.xlu0 %v9839_v29, %s9224_s27  ;;  %3357 = vst.msk [vmem:[#allocation4 + $0xac] sm:$0xf] %vm1220_vm3, %v9937_v15  ;;  %3360 = vst.msk [vmem:[#allocation4 + $0xdc] sm:$0xf] %vm1220_vm3, %v9939_v16 }
 0x17a   : > { %v3199_v23 = vld [vmem:[#allocation2 + $0x109] sm:$0xff]  ;;  %v3202_v25 = vld [vmem:[#allocation2 + $0x131] sm:$0xff]  ;;  %v968_v27 = vpop.permute.xlu1 %967  ;;  %v974_v28 = vpop.permute.xlu0 %973  ;;  %1236 = vst.msk [vmem:[#allocation4 + $0xf0] sm:$0xf] %vm1220_vm3, %v9945_v20  ;;  %1235 = vst.msk [vmem:[#allocation4 + $0xe0] sm:$0xf] %vm1220_vm3, %v9943_v19 }
 0x17b   : > { %2223 = vrot.lane.b32.xlu1 %v9882_v53, %s9225_s28  ;;  %v9959_v29 = vpack.c.bf16 %v3199_v23, %v3199_v23  ;;  %v9961_v30 = vpack.c.bf16 %v3202_v25, %v3202_v25  ;;  %1046 = vst.msk [vmem:[#allocation2 + $0x148] sm:$0xff] %vm1027_vm9, %v968_v27  ;;  %1049 = vst.msk [vmem:[#allocation2 + $0x170] sm:$0xff] %vm1027_vm9, %v974_v28  ;;  %v1848_v31 = vld [vmem:[#allocation2 + $0x107] sm:$0xff]  ;;  %v1849_v32 = vld [vmem:[#allocation2 + $0x10f] sm:$0xff] }
 0x17c   : > { %v9965_v33 = vpack.c.bf16 %v1848_v31, %v1848_v31  ;;  %v9967_v36 = vpack.c.bf16 %v1849_v32, %v1849_v32 }
 0x17d   : > { %1395 = vrot.lane.b32.xlu0 %v8269_v21, %s9222_s25  ;;  %3359 = vst.msk [vmem:[#allocation4 + $0xcc] sm:$0xf] %vm1220_vm3, %v9959_v29  ;;  %3362 = vst.msk [vmem:[#allocation4 + $0xfc] sm:$0xf] %vm1220_vm3, %v9961_v30 }
 0x17e   : > { %v3201_v38 = vld [vmem:[#allocation2 + $0x129] sm:$0xff]  ;;  %v3204_v41 = vld [vmem:[#allocation2 + $0x151] sm:$0xff]  ;;  %v972_v42 = vpop.permute.xlu1 %971  ;;  %v978_v43 = vpop.permute.xlu0 %977  ;;  %1238 = vst.msk [vmem:[#allocation4 + $0x110] sm:$0xf] %vm1220_vm3, %v9967_v36  ;;  %1237 = vst.msk [vmem:[#allocation4 + $0x100] sm:$0xf] %vm1220_vm3, %v9965_v33 }
 0x17f   : > { %1393 = vrot.lane.b32.xlu1 %v9970_v37, %s9222_s25  ;;  %v9982_v44 = vpack.c.bf16 %v3201_v38, %v3201_v38  ;;  %v9984_v45 = vpack.c.bf16 %v3204_v41, %v3204_v41  ;;  %1048 = vst.msk [vmem:[#allocation2 + $0x168] sm:$0xff] %vm1027_vm9, %v972_v42  ;;  %1051 = vst.msk [vmem:[#allocation2 + $0x190] sm:$0xff] %vm1027_vm9, %v978_v43  ;;  %v1850_v46 = vld [vmem:[#allocation2 + $0x127] sm:$0xff]  ;;  %v1851_v49 = vld [vmem:[#allocation2 + $0x12f] sm:$0xff] }
 0x180   : > { %v9988_v50 = vpack.c.bf16 %v1850_v46, %v1850_v46  ;;  %v9990_v53 = vpack.c.bf16 %v1851_v49, %v1851_v49 }
 0x181   : > { %1652 = vrot.lane.b32.xlu0 %v9833_v24, %s9223_s26  ;;  %3361 = vst.msk [vmem:[#allocation4 + $0xec] sm:$0xf] %vm1220_vm3, %v9982_v44  ;;  %3364 = vst.msk [vmem:[#allocation4 + $0x11c] sm:$0xf] %vm1220_vm3, %v9984_v45 }
 0x182   : > { %v3203_v54 = vld [vmem:[#allocation2 + $0x149] sm:$0xff]  ;;  %v3206_v55 = vld [vmem:[#allocation2 + $0x171] sm:$0xff]  ;;  %v976_v56 = vpop.permute.xlu1 %975  ;;  %v982_v57 = vpop.permute.xlu0 %981  ;;  %1240 = vst.msk [vmem:[#allocation4 + $0x130] sm:$0xf] %vm1220_vm3, %v9990_v53  ;;  %1239 = vst.msk [vmem:[#allocation4 + $0x120] sm:$0xf] %vm1220_vm3, %v9988_v50 }
 0x183   : > { %1650 = vrot.lane.b32.xlu1 %v9851_v34, %s9223_s26  ;;  %v10004_v24 = vpack.c.bf16 %v3203_v54, %v3203_v54  ;;  %v10006_v60 = vpack.c.bf16 %v3206_v55, %v3206_v55  ;;  %1050 = vst.msk [vmem:[#allocation2 + $0x188] sm:$0xff] %vm1027_vm9, %v976_v56  ;;  %1053 = vst.msk [vmem:[#allocation2 + $0x1b0] sm:$0xff] %vm1027_vm9, %v982_v57  ;;  %v1852_v61 = vld [vmem:[#allocation2 + $0x147] sm:$0xff]  ;;  %v1853_v0 = vld [vmem:[#allocation2 + $0x14f] sm:$0xff] }
 0x184   : > { %v10010_v1 = vpack.c.bf16 %v1852_v61, %v1852_v61  ;;  %v10012_v2 = vpack.c.bf16 %v1853_v0, %v1853_v0  ;;  %v1262_v34 = vld [vmem:[#allocation2 + $0x90] sm:$0xff] }
 0x185   : > { %2229 = vrot.lane.b32.xlu0 %v8269_v21, %s9225_s28  ;;  %3363 = vst.msk [vmem:[#allocation4 + $0x10c] sm:$0xf] %vm1220_vm3, %v10004_v24  ;;  %3366 = vst.msk [vmem:[#allocation4 + $0x13c] sm:$0xf] %vm1220_vm3, %v10006_v60  ;;  %v8271_v21 = vpack.c.bf16 %v1262_v34, %v1262_v34 }
 0x186   : > { %v3205_v3 = vld [vmem:[#allocation2 + $0x169] sm:$0xff]  ;;  %v3208_v6 = vld [vmem:[#allocation2 + $0x191] sm:$0xff]  ;;  %v980_v7 = vpop.permute.xlu1 %979  ;;  %v986_v10 = vpop.permute.xlu0 %985  ;;  %1242 = vst.msk [vmem:[#allocation4 + $0x150] sm:$0xf] %vm1220_vm3, %v10012_v2  ;;  %1241 = vst.msk [vmem:[#allocation4 + $0x140] sm:$0xf] %vm1220_vm3, %v10010_v1 }
 0x187   : > { %1970 = vrot.lane.b32.xlu1 %v9857_v39, %s9224_s27  ;;  %v10025_v11 = vpack.c.bf16 %v3205_v3, %v3205_v3  ;;  %v10027_v12 = vpack.c.bf16 %v3208_v6, %v3208_v6  ;;  %1052 = vst.msk [vmem:[#allocation2 + $0x1a8] sm:$0xff] %vm1027_vm9, %v980_v7  ;;  %1055 = vst.msk [vmem:[#allocation2 + $0x1d0] sm:$0xff] %vm1027_vm9, %v986_v10  ;;  %v1854_v13 = vld [vmem:[#allocation2 + $0x167] sm:$0xff]  ;;  %v1855_v14 = vld [vmem:[#allocation2 + $0x16f] sm:$0xff] }
 0x188   : > { %v10031_v17 = vpack.c.bf16 %v1854_v13, %v1854_v13  ;;  %v10033_v18 = vpack.c.bf16 %v1855_v14, %v1855_v14  ;;  %v1261_v39 = vld [vmem:[#allocation2 + $0x88] sm:$0xff] }
 0x189   : > { %1972 = vrot.lane.b32.xlu0 %v9859_v40, %s9224_s27  ;;  %3365 = vst.msk [vmem:[#allocation4 + $0x12c] sm:$0xf] %vm1220_vm3, %v10025_v11  ;;  %3368 = vst.msk [vmem:[#allocation4 + $0x15c] sm:$0xf] %vm1220_vm3, %v10027_v12  ;;  %v8270_v42 = vpack.c.bf16 %v1261_v39, %v1261_v39 }
 0x18a   : > { %v3207_v22 = vld [vmem:[#allocation2 + $0x189] sm:$0xff]  ;;  %v3210_v23 = vld [vmem:[#allocation2 + $0x1b1] sm:$0xff]  ;;  %v984_v25 = vpop.permute.xlu1 %983  ;;  %v990_v27 = vpop.permute.xlu0 %989  ;;  %1244 = vst.msk [vmem:[#allocation4 + $0x170] sm:$0xf] %vm1220_vm3, %v10033_v18  ;;  %1243 = vst.msk [vmem:[#allocation4 + $0x160] sm:$0xf] %vm1220_vm3, %v10031_v17 }
 0x18b   : > { %2227 = vrot.lane.b32.xlu1 %v9970_v37, %s9225_s28  ;;  %v10047_v40 = vpack.c.bf16 %v3207_v22, %v3207_v22  ;;  %v10049_v28 = vpack.c.bf16 %v3210_v23, %v3210_v23  ;;  %1054 = vst.msk [vmem:[#allocation2 + $0x1c8] sm:$0xff] %vm1027_vm9, %v984_v25  ;;  %1057 = vst.msk [vmem:[#allocation2 + $0x1f0] sm:$0xff] %vm1027_vm9, %v990_v27  ;;  %v1856_v31 = vld [vmem:[#allocation2 + $0x187] sm:$0xff]  ;;  %v1857_v32 = vld [vmem:[#allocation2 + $0x18f] sm:$0xff] }
 0x18c   : > { %v10053_v38 = vpack.c.bf16 %v1856_v31, %v1856_v31  ;;  %v10055_v41 = vpack.c.bf16 %v1857_v32, %v1857_v32 }
 0x18d   : > { %1399 = vrot.lane.b32.xlu0 %v8271_v21, %s9222_s25  ;;  %3367 = vst.msk [vmem:[#allocation4 + $0x14c] sm:$0xf] %vm1220_vm3, %v10047_v40  ;;  %3370 = vst.msk [vmem:[#allocation4 + $0x17c] sm:$0xf] %vm1220_vm3, %v10049_v28 }
 0x18e   : > { %v3209_v37 = vld [vmem:[#allocation2 + $0x1a9] sm:$0xff]  ;;  %v3212_v43 = vld [vmem:[#allocation2 + $0x1d1] sm:$0xff]  ;;  %v988_v46 = vpop.permute.xlu1 %987  ;;  %v994_v49 = vpop.permute.xlu0 %993  ;;  %1246 = vst.msk [vmem:[#allocation4 + $0x190] sm:$0xf] %vm1220_vm3, %v10055_v41  ;;  %1245 = vst.msk [vmem:[#allocation4 + $0x180] sm:$0xf] %vm1220_vm3, %v10053_v38 }
 0x18f   : > { %1397 = vrot.lane.b32.xlu1 %v8270_v42, %s9222_s25  ;;  %v10067_v54 = vpack.c.bf16 %v3209_v37, %v3209_v37  ;;  %v10069_v55 = vpack.c.bf16 %v3212_v43, %v3212_v43  ;;  %1056 = vst.msk [vmem:[#allocation2 + $0x1e8] sm:$0xff] %vm1027_vm9, %v988_v46  ;;  %1059 = vst.msk [vmem:[#allocation2 + $0x210] sm:$0xff] %vm1027_vm9, %v994_v49  ;;  %v1858_v56 = vld [vmem:[#allocation2 + $0x1a7] sm:$0xff]  ;;  %v1859_v57 = vld [vmem:[#allocation2 + $0x1af] sm:$0xff] }
 0x190   : > { %v10073_v61 = vpack.c.bf16 %v1858_v56, %v1858_v56  ;;  %v10075_v0 = vpack.c.bf16 %v1859_v57, %v1859_v57  ;;  %v1263_v46 = vld [vmem:[#allocation2 + $0xa8] sm:$0xff]  ;;  %v1266_v56 = vld [vmem:[#allocation2 + $0xd0] sm:$0xff] }
 0x191   : > { %1656 = vrot.lane.b32.xlu0 %v9853_v35, %s9223_s26  ;;  %3369 = vst.msk [vmem:[#allocation4 + $0x16c] sm:$0xf] %vm1220_vm3, %v10067_v54  ;;  %3372 = vst.msk [vmem:[#allocation4 + $0x19c] sm:$0xf] %vm1220_vm3, %v10069_v55  ;;  %v1265_v57 = vld [vmem:[#allocation2 + $0xc8] sm:$0xff] }
 0x192   : > { %v3211_v34 = vld [vmem:[#allocation2 + $0x1c9] sm:$0xff]  ;;  %v3214_v3 = vld [vmem:[#allocation2 + $0x1f1] sm:$0xff]  ;;  %v992_v6 = vpop.permute.xlu1 %991  ;;  %1248 = vst.msk [vmem:[#allocation4 + $0x1b0] sm:$0xf] %vm1220_vm3, %v10075_v0  ;;  %1247 = vst.msk [vmem:[#allocation4 + $0x1a0] sm:$0xf] %vm1220_vm3, %v10073_v61 }
 0x193   : > { %1654 = vrot.lane.b32.xlu1 %v9871_v47, %s9223_s26  ;;  %v10089_v7 = vpack.c.bf16 %v3211_v34, %v3211_v34  ;;  %v10091_v35 = vpack.c.bf16 %v3214_v3, %v3214_v3  ;;  %1058 = vst.msk [vmem:[#allocation2 + $0x208] sm:$0xff] %vm1027_vm9, %v992_v6  ;;  %v1861_v10 = vld [vmem:[#allocation2 + $0x1cf] sm:$0xff]  ;;  %v1860_v13 = vld [vmem:[#allocation2 + $0x1c7] sm:$0xff]  ;;  %v8274_v34 = vpack.c.bf16 %v1265_v57, %v1265_v57  ;;  %vm6251_vm9 = vcmask 913152  }
 0x194   : > { %v10094_v14 = vpack.c.bf16 %v1861_v10, %v1861_v10  ;;  %v10096_v39 = vpack.c.bf16 %v1860_v13, %v1860_v13  ;;  %v1264_v47 = vld [vmem:[#allocation2 + $0xb0] sm:$0xff]  ;;  %v1273_v57 = vld [vmem:[#allocation2 + $0x148] sm:$0xff] }
 0x195   : > { %2233 = vrot.lane.b32.xlu0 %v8271_v21, %s9225_s28  ;;  %3371 = vst.msk [vmem:[#allocation4 + $0x18c] sm:$0xf] %vm1220_vm3, %v10089_v7  ;;  %3374 = vst.msk [vmem:[#allocation4 + $0x1bc] sm:$0xf] %vm1220_vm3, %v10091_v35  ;;  %v8273_v43 = vpack.c.bf16 %v1264_v47, %v1264_v47  ;;  %v1272_v47 = vld [vmem:[#allocation2 + $0x130] sm:$0xff] }
 0x196   : > { %v3213_v22 = vld [vmem:[#allocation2 + $0x1e9] sm:$0xff]  ;;  %v3216_v23 = vld [vmem:[#allocation2 + $0x211] sm:$0xff]  ;;  %1250 = vst.msk [vmem:[#allocation4 + $0x1d0] sm:$0xf] %vm1220_vm3, %v10094_v14  ;;  %1249 = vst.msk [vmem:[#allocation4 + $0x1c0] sm:$0xf] %vm1220_vm3, %v10096_v39 }
 0x197   : > { %1974 = vrot.lane.b32.xlu1 %v9877_v51, %s9224_s27  ;;  %v10109_v25 = vpack.c.bf16 %v3213_v22, %v3213_v22  ;;  %v8515_v21 = vpack.c.bf16 %v3216_v23, %v3216_v23  ;;  %v1863_v27 = vld [vmem:[#allocation2 + $0x1ef] sm:$0xff]  ;;  %v1862_v31 = vld [vmem:[#allocation2 + $0x1e7] sm:$0xff] }
 0x198   : > { %v10111_v32 = vpack.c.bf16 %v1863_v27, %v1863_v27  ;;  %v10113_v37 = vpack.c.bf16 %v1862_v31, %v1862_v31  ;;  %v1271_v22 = vld [vmem:[#allocation2 + $0x128] sm:$0xff] }
 0x199   : > { %1976 = vrot.lane.b32.xlu0 %v9879_v52, %s9224_s27  ;;  %3373 = vst.msk [vmem:[#allocation4 + $0x1ac] sm:$0xf] %vm1220_vm3, %v10109_v25  ;;  %3376 = vst.msk [vmem:[#allocation4 + $0x1dc] sm:$0xf] %vm1220_vm3, %v8515_v21  ;;  %v8272_v52 = vpack.c.bf16 %v1263_v46, %v1263_v46 }
 0x19a   : > { %v3215_v51 = vld [vmem:[#allocation2 + $0x209] sm:$0xff]  ;;  %1252 = vst.msk [vmem:[#allocation4 + $0x1f0] sm:$0xf] %vm1220_vm3, %v10111_v32  ;;  %1251 = vst.msk [vmem:[#allocation4 + $0x1e0] sm:$0xf] %vm1220_vm3, %v10113_v37 }
 0x19b   : > { %2231 = vrot.lane.b32.xlu1 %v8270_v42, %s9225_s28  ;;  %v8514_v49 = vpack.c.bf16 %v3215_v51, %v3215_v51  ;;  %v8275_v42 = vpack.c.bf16 %v1266_v56, %v1266_v56 }
 0x19d   : > { %1403 = vrot.lane.b32.xlu0 %v8273_v43, %s9222_s25  ;;  %3375 = vst.msk [vmem:[#allocation4 + $0x1cc] sm:$0xf] %vm1220_vm3, %v8514_v49 }
 0x19f   : > { %1401 = vrot.lane.b32.xlu1 %v8272_v52, %s9222_s25 }
 0x1a1   : > { %1660 = vrot.lane.b32.xlu0 %v9873_v48, %s9223_s26  ;;  %v1268_v48 = vld [vmem:[#allocation2 + $0xf0] sm:$0xff] }
 0x1a3   : > { %1658 = vrot.lane.b32.xlu1 %v9894_v58, %s9223_s26  ;;  %v1267_v58 = vld [vmem:[#allocation2 + $0xe8] sm:$0xff] }
 0x1a5   : > { %2237 = vrot.lane.b32.xlu0 %v8273_v43, %s9225_s28 }
 0x1a7   : > { %1978 = vrot.lane.b32.xlu1 %v9900_v62, %s9224_s27  ;;  %v8277_v62 = vpack.c.bf16 %v1268_v48, %v1268_v48 }
 0x1a9   : > { %1980 = vrot.lane.b32.xlu0 %v9902_v63, %s9224_s27  ;;  %v8276_v63 = vpack.c.bf16 %v1267_v58, %v1267_v58  ;;  %v8282_v58 = vpack.c.bf16 %v1273_v57, %v1273_v57 }
 0x1ab   : > { %2235 = vrot.lane.b32.xlu1 %v8272_v52, %s9225_s28 }
 0x1ad   : > { %1407 = vrot.lane.b32.xlu0 %v8275_v42, %s9222_s25 }
 0x1af   : > { %1405 = vrot.lane.b32.xlu1 %v8274_v34, %s9222_s25 }
 0x1b1   : > { %1664 = vrot.lane.b32.xlu0 %v9896_v59, %s9223_s26  ;;  %v1270_v59 = vld [vmem:[#allocation2 + $0x110] sm:$0xff] }
 0x1b3   : > { %1662 = vrot.lane.b32.xlu1 %v9916_v4, %s9223_s26  ;;  %v1269_v4 = vld [vmem:[#allocation2 + $0x108] sm:$0xff] }
 0x1b5   : > { %2241 = vrot.lane.b32.xlu0 %v8275_v42, %s9225_s28  ;;  %v1274_v42 = vld [vmem:[#allocation2 + $0x150] sm:$0xff] }
 0x1b6   : > { %v8283_v48 = vpack.c.bf16 %v1274_v42, %v1274_v42  ;;  %v1280_v42 = vld [vmem:[#allocation2 + $0x1b0] sm:$0xff] }
 0x1b7   : > { %1982 = vrot.lane.b32.xlu1 %v9922_v8, %s9224_s27  ;;  %v8279_v8 = vpack.c.bf16 %v1270_v59, %v1270_v59 }
 0x1b9   : > { %1984 = vrot.lane.b32.xlu0 %v9924_v9, %s9224_s27  ;;  %v8278_v9 = vpack.c.bf16 %v1269_v4, %v1269_v4 }
 0x1bb   : > { %2239 = vrot.lane.b32.xlu1 %v8274_v34, %s9225_s28 }
 0x1bd   : > { %1411 = vrot.lane.b32.xlu0 %v8277_v62, %s9222_s25 }
 0x1bf   : > { %1409 = vrot.lane.b32.xlu1 %v8276_v63, %s9222_s25 }
 0x1c1   : > { %1668 = vrot.lane.b32.xlu0 %v9918_v5, %s9223_s26 }
 0x1c3   : > { %1666 = vrot.lane.b32.xlu1 %v9937_v15, %s9223_s26 }
 0x1c5   : > { %2245 = vrot.lane.b32.xlu0 %v8277_v62, %s9225_s28 }
 0x1c7   : > { %1986 = vrot.lane.b32.xlu1 %v9943_v19, %s9224_s27 }
 0x1c9   : > { %1988 = vrot.lane.b32.xlu0 %v9945_v20, %s9224_s27 }
 0x1cb   : > { %2243 = vrot.lane.b32.xlu1 %v8276_v63, %s9225_s28 }
 0x1cd   : > { %1415 = vrot.lane.b32.xlu0 %v8279_v8, %s9222_s25 }
 0x1cf   : > { %v1388_v5 = vpop.permute.xlu0 %1387  ;;  %1413 = vrot.lane.b32.xlu1 %v8278_v9, %s9222_s25 }
 0x1d0   : > { %1481 = vst.msk [vmem:[#allocation4 + $0x30] sm:$0xf] %vm1477_vm4, %v1388_v5 }
 0x1d1   : > { %1672 = vrot.lane.b32.xlu0 %v9939_v16, %s9223_s26  ;;  %v1386_v15 = vpop.permute.xlu1 %1385 }
 0x1d2   : > { %1480 = vst.msk [vmem:[#allocation4 + $0x20] sm:$0xf] %vm1477_vm4, %v1386_v15  ;;  %v1276_v15 = vld [vmem:[#allocation2 + $0x170] sm:$0xff] }
 0x1d3   : > { %v1645_v19 = vpop.permute.xlu0 %1644  ;;  %1670 = vrot.lane.b32.xlu1 %v9959_v29, %s9223_s26 }
 0x1d4   : > { %v1705_v20 = vrot.slane %v1645_v19, 4 }
 0x1d5   : > { %2249 = vrot.lane.b32.xlu0 %v8279_v8, %s9225_s28  ;;  %v1643_v3 = vpop.permute.xlu1 %1642 }
 0x1d6   : > { %v1738_v6 = vsel %vm1734_vm7, %v1705_v20, %v1645_v19  ;;  %v1704_v10 = vrot.slane %v1643_v3, 4  ;;  %v1275_v19 = vld [vmem:[#allocation2 + $0x168] sm:$0xff] }
 0x1d7   : > { %v2222_v13 = vpop.permute.xlu0 %2221  ;;  %1990 = vrot.lane.b32.xlu1 %v9965_v33, %s9224_s27  ;;  %1805 = vst.msk [vmem:[#allocation4 + $0x30] sm:$0xff] %vm9773_vm8, %v1738_v6  ;;  %v8281_v33 = vpack.c.bf16 %v1272_v47, %v1272_v47  ;;  %v8284_v6 = vpack.c.bf16 %v1275_v19, %v1275_v19 }
 0x1d8   : > { %v1737_v16 = vsel %vm1734_vm7, %v1704_v10, %v1643_v3  ;;  %v8285_v3 = vpack.c.bf16 %v1276_v15, %v1276_v15  ;;  %v1281_v15 = vld [vmem:[#allocation2 + $0x1c8] sm:$0xff] }
 0x1d9   : > { %1992 = vrot.lane.b32.xlu0 %v9967_v36, %s9224_s27  ;;  %v1963_v29 = vpop.permute.xlu1 %1962  ;;  %1804 = vst.msk [vmem:[#allocation4 + $0x20] sm:$0xff] %vm9773_vm8, %v1737_v16  ;;  %v8280_v36 = vpack.c.bf16 %v1271_v22, %v1271_v22 }
 0x1da   : > { %2059 = vst.msk [vmem:[#allocation4 + $0x4] sm:$0xf] %vm2058_vm10, %v1963_v29 }
 0x1db   : > { %v1965_v23 = vpop.permute.xlu0 %1964  ;;  %2247 = vrot.lane.b32.xlu1 %v8278_v9, %s9225_s28 }
 0x1dc   : > { %2060 = vst.msk [vmem:[#allocation4 + $0x14] sm:$0xf] %vm2058_vm10, %v1965_v23 }
 0x1dd   : > { %2317 = vst.msk [vmem:[#allocation4 + $0x14] sm:$0xf] %vm2315_vm11, %v2222_v13  ;;  %1419 = vrot.lane.b32.xlu0 %v8281_v33, %s9222_s25  ;;  %v2220_v21 = vpop.permute.xlu1 %2219 }
 0x1de   : > { %2316 = vst.msk [vmem:[#allocation4 + $0x4] sm:$0xf] %vm2315_vm11, %v2220_v21  ;;  %v1277_v21 = vld [vmem:[#allocation2 + $0x188] sm:$0xff] }
 0x1df   : > { %v1392_v27 = vpop.permute.xlu0 %1391  ;;  %1417 = vrot.lane.b32.xlu1 %v8280_v36, %s9222_s25 }
 0x1e0   : > { %1483 = vst.msk [vmem:[#allocation4 + $0x50] sm:$0xf] %vm1477_vm4, %v1392_v27 }
 0x1e1   : > { %1676 = vrot.lane.b32.xlu0 %v9961_v30, %s9223_s26  ;;  %v1390_v31 = vpop.permute.xlu1 %1389 }
 0x1e2   : > { %1482 = vst.msk [vmem:[#allocation4 + $0x40] sm:$0xf] %vm1477_vm4, %v1390_v31  ;;  %v8286_v31 = vpack.c.bf16 %v1277_v21, %v1277_v21 }
 0x1e3   : > { %v1649_v43 = vpop.permute.xlu0 %1648  ;;  %1674 = vrot.lane.b32.xlu1 %v9982_v44, %s9223_s26 }
 0x1e4   : > { %v1707_v46 = vrot.slane %v1649_v43, 4 }
 0x1e5   : > { %2253 = vrot.lane.b32.xlu0 %v8281_v33, %s9225_s28  ;;  %v1647_v51 = vpop.permute.xlu1 %1646  ;;  %v1278_v33 = vld [vmem:[#allocation2 + $0x190] sm:$0xff] }
 0x1e6   : > { %v1740_v49 = vsel %vm1734_vm7, %v1707_v46, %v1649_v43  ;;  %v1706_v52 = vrot.slane %v1647_v51, 4  ;;  %v8287_v27 = vpack.c.bf16 %v1278_v33, %v1278_v33 }
 0x1e7   : > { %1807 = vst.msk [vmem:[#allocation4 + $0x50] sm:$0xff] %vm9773_vm8, %v1740_v49  ;;  %v2226_v56 = vpop.permute.xlu0 %2225  ;;  %1994 = vrot.lane.b32.xlu1 %v9988_v50, %s9224_s27 }
 0x1e8   : > { %v1739_v30 = vsel %vm1734_vm7, %v1706_v52, %v1647_v51 }
 0x1e9   : > { %1806 = vst.msk [vmem:[#allocation4 + $0x40] sm:$0xff] %vm9773_vm8, %v1739_v30  ;;  %1996 = vrot.lane.b32.xlu0 %v9990_v53, %s9224_s27  ;;  %v1967_v44 = vpop.permute.xlu1 %1966 }
 0x1ea   : > { %2061 = vst.msk [vmem:[#allocation4 + $0x24] sm:$0xf] %vm2058_vm10, %v1967_v44  ;;  %v1279_v44 = vld [vmem:[#allocation2 + $0x1a8] sm:$0xff] }
 0x1eb   : > { %v1969_v34 = vpop.permute.xlu0 %1968  ;;  %2251 = vrot.lane.b32.xlu1 %v8280_v36, %s9225_s28 }
 0x1ec   : > { %2062 = vst.msk [vmem:[#allocation4 + $0x34] sm:$0xf] %vm2058_vm10, %v1969_v34  ;;  %v8289_v34 = vpack.c.bf16 %v1280_v42, %v1280_v42  ;;  %v9062_v42 = vld [vmem:[%s11850_s3 + $0x50] sm:$0xff]  }
 0x1ed   : > { %2319 = vst.msk [vmem:[#allocation4 + $0x34] sm:$0xf] %vm2315_vm11, %v2226_v56  ;;  %1423 = vrot.lane.b32.xlu0 %v8283_v48, %s9222_s25  ;;  %v2224_v50 = vpop.permute.xlu1 %2223 }
 0x1ee   : > { %2318 = vst.msk [vmem:[#allocation4 + $0x24] sm:$0xf] %vm2315_vm11, %v2224_v50 }
 0x1ef   : > { %v1396_v62 = vpop.permute.xlu0 %1395  ;;  %1421 = vrot.lane.b32.xlu1 %v8282_v58, %s9222_s25 }
 0x1f0   : > { %1485 = vst.msk [vmem:[#allocation4 + $0x70] sm:$0xf] %vm1477_vm4, %v1396_v62  ;;  %v9226_v62 = vmov 0  }
 0x1f1   : > { %1680 = vrot.lane.b32.xlu0 %v9984_v45, %s9223_s26  ;;  %v1394_v53 = vpop.permute.xlu1 %1393  ;;  %4172 = vmatprep.subr.bf16.mxu0 %v9226_v62 }
 0x1f2   : > { %1484 = vst.msk [vmem:[#allocation4 + $0x60] sm:$0xf] %vm1477_vm4, %v1394_v53 }
 0x1f3   : > { %v1653_v63 = vpop.permute.xlu0 %1652  ;;  %1678 = vrot.lane.b32.xlu1 %v10004_v24, %s9223_s26 }
 0x1f4   : > { %v1709_v59 = vrot.slane %v1653_v63, 4 }
 0x1f5   : > { %2257 = vrot.lane.b32.xlu0 %v8283_v48, %s9225_s28  ;;  %v1651_v4 = vpop.permute.xlu1 %1650  ;;  %v8288_v48 = vpack.c.bf16 %v1279_v44, %v1279_v44 }
 0x1f6   : > { %v1742_v8 = vsel %vm1734_vm7, %v1709_v59, %v1653_v63  ;;  %v1708_v9 = vrot.slane %v1651_v4, 4 }
 0x1f7   : > { %1809 = vst.msk [vmem:[#allocation4 + $0x70] sm:$0xff] %vm9773_vm8, %v1742_v8  ;;  %v2230_v5 = vpop.permute.xlu0 %2229  ;;  %1998 = vrot.lane.b32.xlu1 %v10010_v1, %s9224_s27 }
 0x1f8   : > { %v1741_v45 = vsel %vm1734_vm7, %v1708_v9, %v1651_v4 }
 0x1f9   : > { %1808 = vst.msk [vmem:[#allocation4 + $0x60] sm:$0xff] %vm9773_vm8, %v1741_v45  ;;  %2000 = vrot.lane.b32.xlu0 %v10012_v2, %s9224_s27  ;;  %v1971_v24 = vpop.permute.xlu1 %1970  ;;  %v9046_v45 = vld [vmem:[%s11850_s3 + $0xb0] sm:$0xff]  }
 0x1fa   : > { %2063 = vst.msk [vmem:[#allocation4 + $0x44] sm:$0xf] %vm2058_vm10, %v1971_v24 }
 0x1fb   : > { %v1973_v20 = vpop.permute.xlu0 %1972  ;;  %2255 = vrot.lane.b32.xlu1 %v8282_v58, %s9225_s28 }
 0x1fc   : > { %2064 = vst.msk [vmem:[#allocation4 + $0x54] sm:$0xf] %vm2058_vm10, %v1973_v20  ;;  %v8290_v20 = vpack.c.bf16 %v1281_v15, %v1281_v15  ;;  %v2674_v15 = vld [vmem:[#allocation2 + $0x4f] sm:$0xff] }
 0x1fd   : > { %2321 = vst.msk [vmem:[#allocation4 + $0x54] sm:$0xf] %vm2315_vm11, %v2230_v5  ;;  %1427 = vrot.lane.b32.xlu0 %v8285_v3, %s9222_s25  ;;  %v2228_v1 = vpop.permute.xlu1 %2227  ;;  %v1282_v5 = vld [vmem:[#allocation2 + $0x1d0] sm:$0xff] }
 0x1fe   : > { %2320 = vst.msk [vmem:[#allocation4 + $0x44] sm:$0xf] %vm2315_vm11, %v2228_v1 }
 0x1ff   : > { %v1400_v10 = vpop.permute.xlu0 %1399  ;;  %1425 = vrot.lane.b32.xlu1 %v8284_v6, %s9222_s25 }
 0x200   : > { %1487 = vst.msk [vmem:[#allocation4 + $0x90] sm:$0xf] %vm1477_vm4, %v1400_v10 }
 0x201   : > { %1684 = vrot.lane.b32.xlu0 %v10006_v60, %s9223_s26  ;;  %v1398_v2 = vpop.permute.xlu1 %1397 }
 0x202   : > { %1486 = vst.msk [vmem:[#allocation4 + $0x80] sm:$0xf] %vm1477_vm4, %v1398_v2  ;;  %v9051_v2 = vld [vmem:[%s11850_s3 + $0x70] sm:$0xff]  }
 0x203   : > { %v1657_v13 = vpop.permute.xlu0 %1656  ;;  %1682 = vrot.lane.b32.xlu1 %v10025_v11, %s9223_s26 }
 0x204   : > { %v1711_v16 = vrot.slane %v1657_v13, 4 }
 0x205   : > { %2261 = vrot.lane.b32.xlu0 %v8285_v3, %s9225_s28  ;;  %v1655_v47 = vpop.permute.xlu1 %1654  ;;  %v9048_v3 = vld [vmem:[%s11850_s3 + $0x78] sm:$0xff]  }
 0x206   : > { %v1744_v29 = vsel %vm1734_vm7, %v1711_v16, %v1657_v13  ;;  %v1710_v22 = vrot.slane %v1655_v47, 4  ;;  %8842 = vmatprep.subr.bf16.mxu1 %v9048_v3  ;;  %v9050_v16 = vld [vmem:[%s11850_s3 + $0xa0] sm:$0xff]  }
 0x207   : > { %1811 = vst.msk [vmem:[#allocation4 + $0x90] sm:$0xff] %vm9773_vm8, %v1744_v29  ;;  %v2234_v23 = vpop.permute.xlu0 %2233  ;;  %2002 = vrot.lane.b32.xlu1 %v10031_v17, %s9224_s27  ;;  %v1284_v29 = vld [vmem:[#allocation2 + $0x1f0] sm:$0xff] }
 0x208   : > { %v1743_v60 = vsel %vm1734_vm7, %v1710_v22, %v1655_v47 }
 0x209   : > { %1810 = vst.msk [vmem:[#allocation4 + $0x80] sm:$0xff] %vm9773_vm8, %v1743_v60  ;;  %2004 = vrot.lane.b32.xlu0 %v10033_v18, %s9224_s27  ;;  %v1975_v11 = vpop.permute.xlu1 %1974 }
 0x20a   : > { %2065 = vst.msk [vmem:[#allocation4 + $0x64] sm:$0xf] %vm2058_vm10, %v1975_v11  ;;  %v9054_v11 = vld [vmem:[%s11850_s3 + $0x28] sm:$0xff]  }
 0x20b   : > { %v1977_v36 = vpop.permute.xlu0 %1976  ;;  %2259 = vrot.lane.b32.xlu1 %v8284_v6, %s9225_s28  ;;  %v9049_v6 = vld [vmem:[%s11850_s3 + $0x38] sm:$0xff]  }
 0x20c   : > { %2066 = vst.msk [vmem:[#allocation4 + $0x74] sm:$0xf] %vm2058_vm10, %v1977_v36  ;;  %8843 = vmatpush3.bf16.msra.mxu1 %v9049_v6  ;;  %v9055_v36 = vld [vmem:[%s11850_s3 + $0x98] sm:$0xff]   ;;  %v2931_v6 = vld [vmem:[#allocation2 + $0x50] sm:$0xff] }
 0x20d   : > { %2323 = vst.msk [vmem:[#allocation4 + $0x74] sm:$0xf] %vm2315_vm11, %v2234_v23  ;;  %1431 = vrot.lane.b32.xlu0 %v8287_v27, %s9222_s25  ;;  %v2232_v17 = vpop.permute.xlu1 %2231  ;;  %8844 = vmatprep.subr.bf16.mxu1 %v9051_v2 }
 0x20e   : > { %2322 = vst.msk [vmem:[#allocation4 + $0x64] sm:$0xf] %vm2315_vm11, %v2232_v17  ;;  %v9056_v17 = vld [vmem:[%s11850_s3 + $0x60] sm:$0xff]  }
 0x20f   : > { %v1404_v43 = vpop.permute.xlu0 %1403  ;;  %1429 = vrot.lane.b32.xlu1 %v8286_v31, %s9222_s25 }
 0x210   : > { %1489 = vst.msk [vmem:[#allocation4 + $0xb0] sm:$0xf] %vm1477_vm4, %v1404_v43  ;;  %v9057_v43 = vld [vmem:[%s11850_s3 + $0x20] sm:$0xff]  }
 0x211   : > { %1688 = vrot.lane.b32.xlu0 %v10027_v12, %s9223_s26  ;;  %v1402_v18 = vpop.permute.xlu1 %1401 }
 0x212   : > { %1488 = vst.msk [vmem:[#allocation4 + $0xa0] sm:$0xf] %vm1477_vm4, %v1402_v18  ;;  %v9058_v18 = vld [vmem:[%s11850_s3 + $0x90] sm:$0xff]  }
 0x213   : > { %v1661_v46 = vpop.permute.xlu0 %1660  ;;  %1686 = vrot.lane.b32.xlu1 %v10047_v40, %s9223_s26 }
 0x214   : > { %v1713_v51 = vrot.slane %v1661_v46, 4 }
 0x215   : > { %2265 = vrot.lane.b32.xlu0 %v8287_v27, %s9225_s28  ;;  %v1659_v49 = vpop.permute.xlu1 %1658 }
 0x216   : > { %v1746_v52 = vsel %vm1734_vm7, %v1713_v51, %v1661_v46  ;;  %v1712_v56 = vrot.slane %v1659_v49, 4 }
 0x217   : > { %1813 = vst.msk [vmem:[#allocation4 + $0xb0] sm:$0xff] %vm9773_vm8, %v1746_v52  ;;  %v2238_v30 = vpop.permute.xlu0 %2237  ;;  %2006 = vrot.lane.b32.xlu1 %v10053_v38, %s9224_s27 }
 0x218   : > { %v1745_v12 = vsel %vm1734_vm7, %v1712_v56, %v1659_v49  ;;  %v9059_v49 = vld [vmem:[%s11850_s3 + $0x58] sm:$0xff]  }
 0x219   : > { %1812 = vst.msk [vmem:[#allocation4 + $0xa0] sm:$0xff] %vm9773_vm8, %v1745_v12  ;;  %2008 = vrot.lane.b32.xlu0 %v10055_v41, %s9224_s27  ;;  %v1979_v40 = vpop.permute.xlu1 %1978  ;;  %v9045_v41 = vld [vmem:[%s11850_s3 + $0xb8] sm:$0xff]  }
 0x21a   : > { %2067 = vst.msk [vmem:[#allocation4 + $0x84] sm:$0xf] %vm2058_vm10, %v1979_v40  ;;  %4173 = vmatpush1.bf16.msra.mxu0 %v9045_v41  ;;  %v9060_v56 = vld [vmem:[%s11850_s3 + $0x18] sm:$0xff]   ;;  %v1864_v41 = vld [vmem:[#allocation2 + $0x207] sm:$0xff] }
 0x21b   : > { %v1981_v57 = vpop.permute.xlu0 %1980  ;;  %2263 = vrot.lane.b32.xlu1 %v8286_v31, %s9225_s28  ;;  %4174 = vmatprep.subr.bf16.mxu0 %v9226_v62 }
 0x21c   : > { %2068 = vst.msk [vmem:[#allocation4 + $0x94] sm:$0xf] %vm2058_vm10, %v1981_v57  ;;  %v9063_v57 = vld [vmem:[%s11850_s3 + $0x10] sm:$0xff]  }
 0x21d   : > { %2325 = vst.msk [vmem:[#allocation4 + $0x94] sm:$0xf] %vm2315_vm11, %v2238_v30  ;;  %1435 = vrot.lane.b32.xlu0 %v8289_v34, %s9222_s25  ;;  %v2236_v38 = vpop.permute.xlu1 %2235  ;;  %v9061_v30 = vld [vmem:[%s11850_s3 + $0x88] sm:$0xff]  }
 0x21e   : > { %2324 = vst.msk [vmem:[#allocation4 + $0x84] sm:$0xf] %vm2315_vm11, %v2236_v38  ;;  %4175 = vmatpush1.bf16.msra.mxu0 %v9046_v45  ;;  %v9064_v38 = vld [vmem:[%s11850_s3 + $0x80] sm:$0xff]  }
 0x21f   : > { %v1408_v50 = vpop.permute.xlu0 %1407  ;;  %1433 = vrot.lane.b32.xlu1 %v8288_v48, %s9222_s25  ;;  %4176 = vmatprep.subr.bf16.mxu0 %v9226_v62  ;;  %v9069_v45 = vld [vmem:[%s11850_s3] sm:$0xff]  }
 0x220   : > { %1491 = vst.msk [vmem:[#allocation4 + $0xd0] sm:$0xf] %vm1477_vm4, %v1408_v50 }
 0x221   : > { %1692 = vrot.lane.b32.xlu0 %v10049_v28, %s9223_s26  ;;  %v1406_v58 = vpop.permute.xlu1 %1405 }
 0x222   : > { %1490 = vst.msk [vmem:[#allocation4 + $0xc0] sm:$0xf] %vm1477_vm4, %v1406_v58  ;;  %v9065_v58 = vld [vmem:[%s11850_s3 + $0x48] sm:$0xff]  }
 0x223   : > { %v1665_v53 = vpop.permute.xlu0 %1664  ;;  %1690 = vrot.lane.b32.xlu1 %v10067_v54, %s9223_s26 }
 0x224   : > { %v1715_v63 = vrot.slane %v1665_v53, 4 }
 0x225   : > { %2269 = vrot.lane.b32.xlu0 %v8289_v34, %s9225_s28  ;;  %v1663_v59 = vpop.permute.xlu1 %1662  ;;  %v2348_v34 = vld [vmem:[#allocation2 + $0x29] sm:$0xff] }
 0x226   : > { %v1748_v4 = vsel %vm1734_vm7, %v1715_v63, %v1665_v53  ;;  %v1714_v28 = vrot.slane %v1663_v59, 4  ;;  %v8390_v63 = vpack.c.bf16 %v2348_v34, %v2348_v34 }
 0x227   : > { %1815 = vst.msk [vmem:[#allocation4 + $0xd0] sm:$0xff] %vm9773_vm8, %v1748_v4  ;;  %v2242_v8 = vpop.permute.xlu0 %2241  ;;  %2010 = vrot.lane.b32.xlu1 %v10073_v61, %s9224_s27  ;;  %v10311_v61 = vpack.c.bf16 %v1282_v5, %v1282_v5  ;;  %v9068_v5 = vld [vmem:[%s11850_s3 + $0x40] sm:$0xff]  }
 0x228   : > { %v1747_v9 = vsel %vm1734_vm7, %v1714_v28, %v1663_v59  ;;  %v9066_v59 = vld [vmem:[%s11850_s3 + $0x8] sm:$0xff]   ;;  %v9067_v28 = vld [vmem:[%s11850_s3 + $0xd0] sm:$0xff]  }
 0x229   : > { %1814 = vst.msk [vmem:[#allocation4 + $0xc0] sm:$0xff] %vm9773_vm8, %v1747_v9  ;;  %2012 = vrot.lane.b32.xlu0 %v10075_v0, %s9224_s27  ;;  %v1983_v54 = vpop.permute.xlu1 %1982  ;;  %v9047_v0 = vld [vmem:[%s11850_s3 + $0xa8] sm:$0xff]   ;;  %v2349_v9 = vld [vmem:[#allocation2 + $0x31] sm:$0xff] }
 0x22a   : > { %2069 = vst.msk [vmem:[#allocation4 + $0xa4] sm:$0xf] %vm2058_vm10, %v1983_v54  ;;  %4177 = vmatpush1.bf16.msra.mxu0 %v9047_v0 }
 0x22b   : > { %v1985_v24 = vpop.permute.xlu0 %1984  ;;  %2267 = vrot.lane.b32.xlu1 %v8288_v48, %s9225_s28  ;;  %4178 = vmatprep.subr.bf16.mxu0 %v9226_v62 }
 0x22c   : > { %2070 = vst.msk [vmem:[#allocation4 + $0xb4] sm:$0xf] %vm2058_vm10, %v1985_v24  ;;  %v9070_v24 = vld [vmem:[%s11850_s3 + $0xc8] sm:$0xff]  }
 0x22d   : > { %2327 = vst.msk [vmem:[#allocation4 + $0xb4] sm:$0xf] %vm2315_vm11, %v2242_v8  ;;  %1439 = vrot.lane.b32.xlu0 %v10311_v61, %s9222_s25  ;;  %v2240_v19 = vpop.permute.xlu1 %2239  ;;  %v8356_v8 = vpack.c.bf16 %v1864_v41, %v1864_v41 }
 0x22e   : > { %2326 = vst.msk [vmem:[#allocation4 + $0xa4] sm:$0xf] %vm2315_vm11, %v2240_v19  ;;  %4179 = vmatpush1.bf16.msra.mxu0 %v9050_v16  ;;  %v8391_v19 = vpack.c.bf16 %v2349_v9, %v2349_v9  ;;  %v2355_v9 = vld [vmem:[#allocation2 + $0x91] sm:$0xff] }
 0x22f   : > { %v1412_v1 = vpop.permute.xlu0 %1411  ;;  %1437 = vrot.lane.b32.xlu1 %v8290_v20, %s9222_s25  ;;  %4180 = vmatprep.subr.bf16.mxu0 %v9226_v62 }
 0x230   : > { %1493 = vst.msk [vmem:[#allocation4 + $0xf0] sm:$0xf] %vm1477_vm4, %v1412_v1  ;;  %v8423_v1 = vpack.c.bf16 %v2674_v15, %v2674_v15 }
 0x231   : > { %1696 = vrot.lane.b32.xlu0 %v10069_v55, %s9223_s26  ;;  %v1410_v10 = vpop.permute.xlu1 %1409  ;;  %v9052_v55 = vld [vmem:[%s11850_s3 + $0x30] sm:$0xff]  }
 0x232   : > { %1492 = vst.msk [vmem:[#allocation4 + $0xe0] sm:$0xf] %vm1477_vm4, %v1410_v10  ;;  %8845 = vmatpush3.bf16.msra.mxu1 %v9052_v55  ;;  %4181 = vmatpush1.bf16.msra.mxu0 %v9055_v36  ;;  %v8455_v55 = vpack.c.bf16 %v2931_v6, %v2931_v6  ;;  %v2676_v36 = vld [vmem:[#allocation2 + $0x6f] sm:$0xff] }
 0x233   : > { %v1669_v13 = vpop.permute.xlu0 %1668  ;;  %1694 = vrot.lane.b32.xlu1 %v10089_v7, %s9223_s26  ;;  %v9053_v7 = vld [vmem:[%s11850_s3 + $0x68] sm:$0xff]   ;;  %4182 = vmatprep.subr.bf16.mxu0 %v9226_v62 }
 0x234   : > { %v1717_v47 = vrot.slane %v1669_v13, 4  ;;  %8846 = vmatprep.subr.bf16.mxu1 %v9053_v7 }
 0x235   : > { %2016 = vrot.lane.b32.xlu0 %v10094_v14, %s9224_s27  ;;  %v1667_v22 = vpop.permute.xlu1 %1666  ;;  %v8293_v14 = vpack.c.bf16 %v1284_v29, %v1284_v29  ;;  %v2351_v29 = vld [vmem:[#allocation2 + $0x51] sm:$0xff] }
 0x236   : > { %v1750_v23 = vsel %vm1734_vm7, %v1717_v47, %v1669_v13  ;;  %v1716_v60 = vrot.slane %v1667_v22, 4  ;;  %8847 = vmatpush3.bf16.msra.mxu1 %v9054_v11  ;;  %4183 = vmatpush1.bf16.msra.mxu0 %v9058_v18  ;;  %v2930_v13 = vld [vmem:[#allocation2 + $0x48] sm:$0xff]  ;;  %v8393_v11 = vpack.c.bf16 %v2351_v29, %v2351_v29  ;;  %v2933_v18 = vld [vmem:[#allocation2 + $0x70] sm:$0xff] }
 0x237   : > { %1817 = vst.msk [vmem:[#allocation4 + $0xf0] sm:$0xff] %vm9773_vm8, %v1750_v23  ;;  %v2246_v33 = vpop.permute.xlu0 %2245  ;;  %2014 = vrot.lane.b32.xlu1 %v10096_v39, %s9224_s27  ;;  %v1283_v39 = vld [vmem:[#allocation2 + $0x1e8] sm:$0xff]  ;;  %8848 = vmatprep.subr.bf16.mxu1 %v9056_v17  ;;  %v8454_v23 = vpack.c.bf16 %v2930_v13, %v2930_v13 }
 0x238   : > { %v1749_v21 = vsel %vm1734_vm7, %v1716_v60, %v1667_v22  ;;  %v8292_v51 = vpack.c.bf16 %v1283_v39, %v1283_v39  ;;  %4184 = vmatprep.subr.bf16.mxu0 %v9226_v62  ;;  %v2675_v17 = vld [vmem:[#allocation2 + $0x67] sm:$0xff] }
 0x239   : > { %1816 = vst.msk [vmem:[#allocation4 + $0xe0] sm:$0xff] %vm9773_vm8, %v1749_v21  ;;  %1443 = vrot.lane.b32.xlu0 %v8293_v14, %s9222_s25  ;;  %v1987_v27 = vpop.permute.xlu1 %1986 }
 0x23a   : > { %2071 = vst.msk [vmem:[#allocation4 + $0xc4] sm:$0xf] %vm2058_vm10, %v1987_v27  ;;  %8849 = vmatpush3.bf16.msra.mxu1 %v9057_v43  ;;  %4185 = vmatpush1.bf16.msra.mxu0 %v9061_v30  ;;  %v8425_v43 = vpack.c.bf16 %v2676_v36, %v2676_v36  ;;  %v2682_v36 = vld [vmem:[#allocation2 + $0xcf] sm:$0xff] }
 0x23b   : > { %v1989_v31 = vpop.permute.xlu0 %1988  ;;  %2271 = vrot.lane.b32.xlu1 %v8290_v20, %s9225_s28  ;;  %8850 = vmatprep.subr.bf16.mxu1 %v9059_v49  ;;  %v2673_v20 = vld [vmem:[#allocation2 + $0x47] sm:$0xff] }
 0x23c   : > { %2072 = vst.msk [vmem:[#allocation4 + $0xd4] sm:$0xf] %vm2058_vm10, %v1989_v31  ;;  %4186 = vmatprep.subr.bf16.mxu0 %v9226_v62  ;;  %v8422_v2 = vpack.c.bf16 %v2673_v20, %v2673_v20  ;;  %v2932_v49 = vld [vmem:[#allocation2 + $0x68] sm:$0xff] }
 0x23d   : > { %2329 = vst.msk [vmem:[#allocation4 + $0xd4] sm:$0xf] %vm2315_vm11, %v2246_v33  ;;  %1700 = vrot.lane.b32.xlu0 %v10091_v35, %s9223_s26  ;;  %v2244_v46 = vpop.permute.xlu1 %2243  ;;  %v1865_v35 = vld [vmem:[#allocation2 + $0x20f] sm:$0xff] }
 0x23e   : > { %2328 = vst.msk [vmem:[#allocation4 + $0xc4] sm:$0xf] %vm2315_vm11, %v2244_v46  ;;  %8851 = vmatpush3.bf16.msra.mxu1 %v9060_v56  ;;  %v8357_v44 = vpack.c.bf16 %v1865_v35, %v1865_v35  ;;  %4187 = vmatpush1.bf16.msra.mxu0 %v9064_v38  ;;  %v2350_v33 = vld [vmem:[#allocation2 + $0x49] sm:$0xff]  ;;  %v8457_v56 = vpack.c.bf16 %v2933_v18, %v2933_v18  ;;  %v2353_v35 = vld [vmem:[#allocation2 + $0x71] sm:$0xff] }
 0x23f   : > { %v1416_v52 = vpop.permute.xlu0 %1415  ;;  %1441 = vrot.lane.b32.xlu1 %v8292_v51, %s9222_s25  ;;  %8852 = vmatprep.subr.bf16.mxu1 %v9062_v42  ;;  %v8392_v39 = vpack.c.bf16 %v2350_v33, %v2350_v33  ;;  %v8424_v51 = vpack.c.bf16 %v2675_v17, %v2675_v17  ;;  %v2352_v42 = vld [vmem:[#allocation2 + $0x69] sm:$0xff] }
 0x240   : > { %1495 = vst.msk [vmem:[#allocation4 + $0x110] sm:$0xf] %vm1477_vm4, %v1416_v52  ;;  %4198 = vmatprep.subr.bf16.mxu0 %v9226_v62  ;;  %v8394_v38 = vpack.c.bf16 %v2352_v42, %v2352_v42  ;;  %v2681_v17 = vld [vmem:[#allocation2 + $0xc7] sm:$0xff]  ;;  %v2939_v18 = vld [vmem:[#allocation2 + $0xd0] sm:$0xff] }
 0x241   : > { %2020 = vrot.lane.b32.xlu0 %v10111_v32, %s9224_s27  ;;  %v1414_v12 = vpop.permute.xlu1 %1413 }
 0x242   : > { %1494 = vst.msk [vmem:[#allocation4 + $0x100] sm:$0xf] %vm1477_vm4, %v1414_v12  ;;  %8853 = vmatpush3.bf16.msra.mxu1 %v9063_v57  ;;  %4199 = vmatpush2.bf16.msra.mxu0 %v9067_v28  ;;  %v8456_v12 = vpack.c.bf16 %v2932_v49, %v2932_v49  ;;  %v2934_v28 = vld [vmem:[#allocation2 + $0x88] sm:$0xff] }
 0x243   : > { %v1673_v40 = vpop.permute.xlu0 %1672  ;;  %1698 = vrot.lane.b32.xlu1 %v10109_v25, %s9223_s26  ;;  %8854 = vmatprep.subr.bf16.mxu1 %v9065_v58  ;;  %v2938_v49 = vld [vmem:[#allocation2 + $0xc8] sm:$0xff] }
 0x244   : > { %v1719_v32 = vrot.slane %v1673_v40, 4  ;;  %4200 = vmatprep.subr.bf16.mxu0 %v9226_v62  ;;  %v8462_v42 = vpack.c.bf16 %v2938_v49, %v2938_v49 }
 0x245   : > { %2024 = vrot.lane.b32.xlu0 %v8357_v44, %s9224_s27  ;;  %v1671_v48 = vpop.permute.xlu1 %1670  ;;  %v8395_v44 = vpack.c.bf16 %v2353_v35, %v2353_v35 }
 0x246   : > { %v1752_v50 = vsel %vm1734_vm7, %v1719_v32, %v1673_v40  ;;  %v1718_v25 = vrot.slane %v1671_v48, 4  ;;  %8855 = vmatpush3.bf16.msra.mxu1 %v9066_v59  ;;  %4201 = vmatpush2.bf16.msra.mxu0 %v9070_v24  ;;  %v2678_v32 = vld [vmem:[#allocation2 + $0x8f] sm:$0xff]  ;;  %v8397_v24 = vpack.c.bf16 %v2355_v9, %v2355_v9 }
 0x247   : > { %1819 = vst.msk [vmem:[#allocation4 + $0x110] sm:$0xff] %vm9773_vm8, %v1752_v50  ;;  %v2250_v53 = vpop.permute.xlu0 %2249  ;;  %2018 = vrot.lane.b32.xlu1 %v10113_v37, %s9224_s27  ;;  %8856 = vmatprep.subr.bf16.mxu1 %v9068_v5  ;;  %v8427_v58 = vpack.c.bf16 %v2678_v32, %v2678_v32  ;;  %v2361_v9 = vld [vmem:[#allocation2 + $0xf1] sm:$0xff] }
 0x248   : > { %v1751_v4 = vsel %vm1734_vm7, %v1718_v25, %v1671_v48  ;;  %4202 = vmatprep.subr.bf16.mxu0 %v9226_v62  ;;  %v2677_v25 = vld [vmem:[#allocation2 + $0x87] sm:$0xff] }
 0x249   : > { %1818 = vst.msk [vmem:[#allocation4 + $0x100] sm:$0xff] %vm9773_vm8, %v1751_v4  ;;  %2476 = vrot.lane.b32.xlu0 %v8390_v63, %s9227_s10  ;;  %v1991_v37 = vpop.permute.xlu1 %1990  ;;  %v2935_v63 = vld [vmem:[#allocation2 + $0x90] sm:$0xff]  ;;  %v8426_v4 = vpack.c.bf16 %v2677_v25, %v2677_v25 }
 0x24a   : > { %2073 = vst.msk [vmem:[#allocation4 + $0xe4] sm:$0xf] %vm2058_vm10, %v1991_v37  ;;  %8857 = vmatpush3.bf16.msra.mxu1 %v9069_v45  ;;  %v2354_v45 = vld [vmem:[#allocation2 + $0x89] sm:$0xff] }
 0x24b   : > { %v1993_v54 = vpop.permute.xlu0 %1992  ;;  %2022 = vrot.lane.b32.xlu1 %v8356_v8, %s9224_s27  ;;  %9010 = vmatprep.subr.bf16.mxu1 %v9226_v62  ;;  %v8459_v8 = vpack.c.bf16 %v2935_v63, %v2935_v63  ;;  %v8396_v20 = vpack.c.bf16 %v2354_v45, %v2354_v45  ;;  %v2941_v63 = vld [vmem:[#allocation2 + $0xf0] sm:$0xff] }
 0x24c   : > { %2074 = vst.msk [vmem:[#allocation4 + $0xf4] sm:$0xf] %vm2058_vm10, %v1993_v54  ;;  %v8458_v54 = vpack.c.bf16 %v2934_v28, %v2934_v28  ;;  %v2940_v28 = vld [vmem:[#allocation2 + $0xe8] sm:$0xff] }
 0x24d   : > { %2331 = vst.msk [vmem:[#allocation4 + $0xf4] sm:$0xf] %vm2315_vm11, %v2250_v53  ;;  %2273 = vrot.lane.b32.xlu0 %v10311_v61, %s9225_s28  ;;  %v2248_v0 = vpop.permute.xlu1 %2247  ;;  %v9074_v61 = vld [vmem:[%s11850_s3 + $0xc0] sm:$0xff]   ;;  %v2360_v45 = vld [vmem:[#allocation2 + $0xe9] sm:$0xff] }
 0x24e   : > { %2330 = vst.msk [vmem:[#allocation4 + $0xe4] sm:$0xf] %vm2315_vm11, %v2248_v0  ;;  %4203 = vmatpush2.bf16.msra.mxu0 %v9074_v61  ;;  %v2680_v0 = vld [vmem:[#allocation2 + $0xaf] sm:$0xff] }
 0x24f   : > { %v1420_v3 = vpop.permute.xlu0 %1419  ;;  %2478 = vrot.lane.b32.xlu1 %v8391_v19, %s9227_s10  ;;  %7028 = vmatprep.subr.bf16.mxu0 %v9226_v62  ;;  %v8429_v6 = vpack.c.bf16 %v2680_v0, %v2680_v0 }
 0x250   : > { %1497 = vst.msk [vmem:[#allocation4 + $0x130] sm:$0xf] %vm1477_vm4, %v1420_v3  ;;  %v2679_v3 = vld [vmem:[#allocation2 + $0xa7] sm:$0xff] }
 0x251   : > { %2803 = vrot.lane.b32.xlu0 %v8423_v1, %s9228_s20  ;;  %v1418_v10 = vpop.permute.xlu1 %1417  ;;  %v8428_v13 = vpack.c.bf16 %v2679_v3, %v2679_v3  ;;  %v8402_v3 = vpack.c.bf16 %v2360_v45, %v2360_v45 }
 0x252   : > { %1496 = vst.msk [vmem:[#allocation4 + $0x120] sm:$0xf] %vm1477_vm4, %v1418_v10  ;;  %v2937_v10 = vld [vmem:[#allocation2 + $0xb0] sm:$0xff] }
 0x253   : > { %v1677_v16 = vpop.permute.xlu0 %1676  ;;  %2801 = vrot.lane.b32.xlu1 %v8422_v2, %s9228_s20 }
 0x254   : > { %v1721_v47 = vrot.slane %v1677_v16, 4 }
 0x255   : > { %3060 = vrot.lane.b32.xlu0 %v8455_v55, %s9229_s21  ;;  %v1675_v22 = vpop.permute.xlu1 %1674 }
 0x256   : > { %v1754_v60 = vsel %vm1734_vm7, %v1721_v47, %v1677_v16  ;;  %v1720_v7 = vrot.slane %v1675_v22, 4  ;;  %v2936_v47 = vld [vmem:[#allocation2 + $0xa8] sm:$0xff] }
 0x257   : > { %1821 = vst.msk [vmem:[#allocation4 + $0x130] sm:$0xff] %vm9773_vm8, %v1754_v60  ;;  %v2254_v14 = vpop.permute.xlu0 %2253  ;;  %3058 = vrot.lane.b32.xlu1 %v8454_v23, %s9229_s21  ;;  %v2357_v60 = vld [vmem:[#allocation2 + $0xb1] sm:$0xff]  ;;  %v8460_v33 = vpack.c.bf16 %v2936_v47, %v2936_v47 }
 0x258   : > { %v1753_v21 = vsel %vm1734_vm7, %v1720_v7, %v1675_v22  ;;  %v8461_v22 = vpack.c.bf16 %v2937_v10, %v2937_v10 }
 0x259   : > { %1820 = vst.msk [vmem:[#allocation4 + $0x120] sm:$0xff] %vm9773_vm8, %v1753_v21  ;;  %2482 = vrot.lane.b32.xlu0 %v8393_v11, %s9227_s10  ;;  %v1995_v27 = vpop.permute.xlu1 %1994  ;;  %v8399_v21 = vpack.c.bf16 %v2357_v60, %v2357_v60  ;;  %v2363_v60 = vld [vmem:[#allocation2 + $0x111] sm:$0xff] }
 0x25a   : > { %2075 = vst.msk [vmem:[#allocation4 + $0x104] sm:$0xf] %vm2058_vm10, %v1995_v27 }
 0x25b   : > { %v1997_v31 = vpop.permute.xlu0 %1996  ;;  %2480 = vrot.lane.b32.xlu1 %v8392_v39, %s9227_s10 }
 0x25c   : > { %2076 = vst.msk [vmem:[#allocation4 + $0x114] sm:$0xf] %vm2058_vm10, %v1997_v31 }
 0x25d   : > { %2333 = vst.msk [vmem:[#allocation4 + $0x114] sm:$0xf] %vm2315_vm11, %v2254_v14  ;;  %2807 = vrot.lane.b32.xlu0 %v8425_v43, %s9228_s20  ;;  %v2252_v46 = vpop.permute.xlu1 %2251  ;;  %v2356_v14 = vld [vmem:[#allocation2 + $0xa9] sm:$0xff]  ;;  %v8431_v43 = vpack.c.bf16 %v2682_v36, %v2682_v36 }
 0x25e   : > { %2332 = vst.msk [vmem:[#allocation4 + $0x104] sm:$0xf] %vm2315_vm11, %v2252_v46  ;;  %v8398_v39 = vpack.c.bf16 %v2356_v14, %v2356_v14  ;;  %v2362_v14 = vld [vmem:[#allocation2 + $0x109] sm:$0xff] }
 0x25f   : > { %v1424_v52 = vpop.permute.xlu0 %1423  ;;  %2805 = vrot.lane.b32.xlu1 %v8424_v51, %s9228_s20  ;;  %v8430_v51 = vpack.c.bf16 %v2681_v17, %v2681_v17  ;;  %v2688_v36 = vld [vmem:[#allocation2 + $0x12f] sm:$0xff]  ;;  %v2687_v17 = vld [vmem:[#allocation2 + $0x127] sm:$0xff] }
 0x260   : > { %1499 = vst.msk [vmem:[#allocation4 + $0x150] sm:$0xf] %vm1477_vm4, %v1424_v52  ;;  %v8436_v49 = vpack.c.bf16 %v2687_v17, %v2687_v17 }
 0x261   : > { %3064 = vrot.lane.b32.xlu0 %v8457_v56, %s9229_s21  ;;  %v1422_v30 = vpop.permute.xlu1 %1421  ;;  %v8463_v56 = vpack.c.bf16 %v2939_v18, %v2939_v18 }
 0x262   : > { %1498 = vst.msk [vmem:[#allocation4 + $0x140] sm:$0xf] %vm1477_vm4, %v1422_v30  ;;  %v2359_v30 = vld [vmem:[#allocation2 + $0xd1] sm:$0xff] }
 0x263   : > { %v1681_v40 = vpop.permute.xlu0 %1680  ;;  %3062 = vrot.lane.b32.xlu1 %v8456_v12, %s9229_s21 }
 0x264   : > { %v1723_v57 = vrot.slane %v1681_v40, 4 }
 0x265   : > { %2486 = vrot.lane.b32.xlu0 %v8395_v44, %s9227_s10  ;;  %v1679_v34 = vpop.permute.xlu1 %1678 }
 0x266   : > { %v1756_v48 = vsel %vm1734_vm7, %v1723_v57, %v1681_v40  ;;  %v1722_v50 = vrot.slane %v1679_v34, 4  ;;  %v2358_v57 = vld [vmem:[#allocation2 + $0xc9] sm:$0xff] }
 0x267   : > { %1823 = vst.msk [vmem:[#allocation4 + $0x150] sm:$0xff] %vm9773_vm8, %v1756_v48  ;;  %v2258_v41 = vpop.permute.xlu0 %2257  ;;  %2484 = vrot.lane.b32.xlu1 %v8394_v38, %s9227_s10  ;;  %v2684_v48 = vld [vmem:[#allocation2 + $0xef] sm:$0xff]  ;;  %v8400_v25 = vpack.c.bf16 %v2358_v57, %v2358_v57 }
 0x268   : > { %v1755_v53 = vsel %vm1734_vm7, %v1722_v50, %v1679_v34  ;;  %v8401_v34 = vpack.c.bf16 %v2359_v30, %v2359_v30 }
 0x269   : > { %1822 = vst.msk [vmem:[#allocation4 + $0x140] sm:$0xff] %vm9773_vm8, %v1755_v53  ;;  %2811 = vrot.lane.b32.xlu0 %v8427_v58, %s9228_s20  ;;  %v1999_v59 = vpop.permute.xlu1 %1998  ;;  %v8433_v53 = vpack.c.bf16 %v2684_v48, %v2684_v48  ;;  %v2690_v48 = vld [vmem:[#allocation2 + $0x14f] sm:$0xff] }
 0x26a   : > { %2077 = vst.msk [vmem:[#allocation4 + $0x124] sm:$0xf] %vm2058_vm10, %v1999_v59 }
 0x26b   : > { %v2001_v37 = vpop.permute.xlu0 %2000  ;;  %2809 = vrot.lane.b32.xlu1 %v8426_v4, %s9228_s20 }
 0x26c   : > { %2078 = vst.msk [vmem:[#allocation4 + $0x134] sm:$0xf] %vm2058_vm10, %v2001_v37 }
 0x26d   : > { %2335 = vst.msk [vmem:[#allocation4 + $0x134] sm:$0xf] %vm2315_vm11, %v2258_v41  ;;  %3068 = vrot.lane.b32.xlu0 %v8459_v8, %s9229_s21  ;;  %v2256_v5 = vpop.permute.xlu1 %2255  ;;  %v2683_v41 = vld [vmem:[#allocation2 + $0xe7] sm:$0xff]  ;;  %v8465_v8 = vpack.c.bf16 %v2941_v63, %v2941_v63 }
 0x26e   : > { %2334 = vst.msk [vmem:[#allocation4 + $0x124] sm:$0xf] %vm2315_vm11, %v2256_v5  ;;  %v8432_v4 = vpack.c.bf16 %v2683_v41, %v2683_v41  ;;  %v2689_v41 = vld [vmem:[#allocation2 + $0x147] sm:$0xff] }
 0x26f   : > { %v1428_v15 = vpop.permute.xlu0 %1427  ;;  %3066 = vrot.lane.b32.xlu1 %v8458_v54, %s9229_s21  ;;  %v8464_v54 = vpack.c.bf16 %v2940_v28, %v2940_v28  ;;  %v8438_v28 = vpack.c.bf16 %v2689_v41, %v2689_v41 }
 0x270   : > { %1501 = vst.msk [vmem:[#allocation4 + $0x170] sm:$0xf] %vm1477_vm4, %v1428_v15 }
 0x271   : > { %2490 = vrot.lane.b32.xlu0 %v8397_v24, %s9227_s10  ;;  %v1426_v19 = vpop.permute.xlu1 %1425  ;;  %v8403_v24 = vpack.c.bf16 %v2361_v9, %v2361_v9 }
 0x272   : > { %1500 = vst.msk [vmem:[#allocation4 + $0x160] sm:$0xf] %vm1477_vm4, %v1426_v19  ;;  %v2686_v19 = vld [vmem:[#allocation2 + $0x10f] sm:$0xff] }
 0x273   : > { %v1685_v1 = vpop.permute.xlu0 %1684  ;;  %2488 = vrot.lane.b32.xlu1 %v8396_v20, %s9227_s10 }
 0x274   : > { %v1725_v61 = vrot.slane %v1685_v1, 4 }
 0x275   : > { %2815 = vrot.lane.b32.xlu0 %v8429_v6, %s9228_s20  ;;  %v1683_v2 = vpop.permute.xlu1 %1682 }
 0x276   : > { %v1758_v16 = vsel %vm1734_vm7, %v1725_v61, %v1685_v1  ;;  %v1724_v55 = vrot.slane %v1683_v2, 4  ;;  %v2685_v61 = vld [vmem:[#allocation2 + $0x107] sm:$0xff] }
 0x277   : > { %1825 = vst.msk [vmem:[#allocation4 + $0x170] sm:$0xff] %vm9773_vm8, %v1758_v16  ;;  %v2262_v29 = vpop.permute.xlu0 %2261  ;;  %2813 = vrot.lane.b32.xlu1 %v8428_v13, %s9228_s20  ;;  %v2943_v16 = vld [vmem:[#allocation2 + $0x110] sm:$0xff]  ;;  %v8434_v47 = vpack.c.bf16 %v2685_v61, %v2685_v61 }
 0x278   : > { %v1757_v23 = vsel %vm1734_vm7, %v1724_v55, %v1683_v2  ;;  %v8435_v2 = vpack.c.bf16 %v2686_v19, %v2686_v19 }
 0x279   : > { %1824 = vst.msk [vmem:[#allocation4 + $0x160] sm:$0xff] %vm9773_vm8, %v1757_v23  ;;  %3072 = vrot.lane.b32.xlu0 %v8461_v22, %s9229_s21  ;;  %v2003_v7 = vpop.permute.xlu1 %2002  ;;  %v8467_v23 = vpack.c.bf16 %v2943_v16, %v2943_v16 }
 0x27a   : > { %2079 = vst.msk [vmem:[#allocation4 + $0x144] sm:$0xf] %vm2058_vm10, %v2003_v7 }
 0x27b   : > { %v2005_v11 = vpop.permute.xlu0 %2004  ;;  %3070 = vrot.lane.b32.xlu1 %v8460_v33, %s9229_s21 }
 0x27c   : > { %2080 = vst.msk [vmem:[#allocation4 + $0x154] sm:$0xf] %vm2058_vm10, %v2005_v11 }
 0x27d   : > { %2337 = vst.msk [vmem:[#allocation4 + $0x154] sm:$0xf] %vm2315_vm11, %v2262_v29  ;;  %2494 = vrot.lane.b32.xlu0 %v8399_v21, %s9227_s10  ;;  %v2260_v27 = vpop.permute.xlu1 %2259  ;;  %v2942_v29 = vld [vmem:[#allocation2 + $0x108] sm:$0xff]  ;;  %v8405_v21 = vpack.c.bf16 %v2363_v60, %v2363_v60 }
 0x27e   : > { %2336 = vst.msk [vmem:[#allocation4 + $0x144] sm:$0xf] %vm2315_vm11, %v2260_v27  ;;  %v8466_v33 = vpack.c.bf16 %v2942_v29, %v2942_v29 }
 0x27f   : > { %v1432_v31 = vpop.permute.xlu0 %1431  ;;  %2492 = vrot.lane.b32.xlu1 %v8398_v39, %s9227_s10  ;;  %v8404_v39 = vpack.c.bf16 %v2362_v14, %v2362_v14 }
 0x280   : > { %1503 = vst.msk [vmem:[#allocation4 + $0x190] sm:$0xf] %vm1477_vm4, %v1432_v31 }
 0x281   : > { %2819 = vrot.lane.b32.xlu0 %v8431_v43, %s9228_s20  ;;  %v1430_v46 = vpop.permute.xlu1 %1429  ;;  %v8437_v43 = vpack.c.bf16 %v2688_v36, %v2688_v36  ;;  %v2368_v36 = vld [vmem:[#allocation2 + $0x169] sm:$0xff] }
 0x282   : > { %1502 = vst.msk [vmem:[#allocation4 + $0x180] sm:$0xf] %vm1477_vm4, %v1430_v46  ;;  %v2945_v46 = vld [vmem:[#allocation2 + $0x130] sm:$0xff] }
 0x283   : > { %v1689_v52 = vpop.permute.xlu0 %1688  ;;  %2817 = vrot.lane.b32.xlu1 %v8430_v51, %s9228_s20 }
 0x284   : > { %v1727_v35 = vrot.slane %v1689_v52, 4 }
 0x285   : > { %3076 = vrot.lane.b32.xlu0 %v8463_v56, %s9229_s21  ;;  %v1687_v12 = vpop.permute.xlu1 %1686 }
 0x286   : > { %v1760_v40 = vsel %vm1734_vm7, %v1727_v35, %v1689_v52  ;;  %v1726_v44 = vrot.slane %v1687_v12, 4  ;;  %v2944_v35 = vld [vmem:[#allocation2 + $0x128] sm:$0xff] }
 0x287   : > { %1827 = vst.msk [vmem:[#allocation4 + $0x190] sm:$0xff] %vm9773_vm8, %v1760_v40  ;;  %v2266_v32 = vpop.permute.xlu0 %2265  ;;  %3074 = vrot.lane.b32.xlu1 %v8462_v42, %s9229_s21  ;;  %v2365_v40 = vld [vmem:[#allocation2 + $0x131] sm:$0xff]  ;;  %v8468_v57 = vpack.c.bf16 %v2944_v35, %v2944_v35 }
 0x288   : > { %v1759_v38 = vsel %vm1734_vm7, %v1726_v44, %v1687_v12  ;;  %v8469_v12 = vpack.c.bf16 %v2945_v46, %v2945_v46  ;;  %v2693_v46 = vld [vmem:[#allocation2 + $0x187] sm:$0xff] }
 0x289   : > { %1826 = vst.msk [vmem:[#allocation4 + $0x180] sm:$0xff] %vm9773_vm8, %v1759_v38  ;;  %2498 = vrot.lane.b32.xlu0 %v8401_v34, %s9227_s10  ;;  %v2007_v50 = vpop.permute.xlu1 %2006  ;;  %v8407_v38 = vpack.c.bf16 %v2365_v40, %v2365_v40  ;;  %v8442_v35 = vpack.c.bf16 %v2693_v46, %v2693_v46  ;;  %v2371_v40 = vld [vmem:[#allocation2 + $0x191] sm:$0xff] }
 0x28a   : > { %2081 = vst.msk [vmem:[#allocation4 + $0x164] sm:$0xf] %vm2058_vm10, %v2007_v50 }
 0x28b   : > { %v2009_v58 = vpop.permute.xlu0 %2008  ;;  %2496 = vrot.lane.b32.xlu1 %v8400_v25, %s9227_s10 }
 0x28c   : > { %2082 = vst.msk [vmem:[#allocation4 + $0x174] sm:$0xf] %vm2058_vm10, %v2009_v58 }
 0x28d   : > { %2339 = vst.msk [vmem:[#allocation4 + $0x174] sm:$0xf] %vm2315_vm11, %v2266_v32  ;;  %2823 = vrot.lane.b32.xlu0 %v8433_v53, %s9228_s20  ;;  %v2264_v59 = vpop.permute.xlu1 %2263  ;;  %v2364_v32 = vld [vmem:[#allocation2 + $0x129] sm:$0xff]  ;;  %v8439_v53 = vpack.c.bf16 %v2690_v48, %v2690_v48 }
 0x28e   : > { %2338 = vst.msk [vmem:[#allocation4 + $0x164] sm:$0xf] %vm2315_vm11, %v2264_v59  ;;  %v8406_v25 = vpack.c.bf16 %v2364_v32, %v2364_v32  ;;  %v2947_v59 = vld [vmem:[#allocation2 + $0x150] sm:$0xff] }
 0x28f   : > { %v1436_v37 = vpop.permute.xlu0 %1435  ;;  %2821 = vrot.lane.b32.xlu1 %v8432_v4, %s9228_s20 }
 0x290   : > { %1505 = vst.msk [vmem:[#allocation4 + $0x1b0] sm:$0xf] %vm1477_vm4, %v1436_v37 }
 0x291   : > { %3080 = vrot.lane.b32.xlu0 %v8465_v8, %s9229_s21  ;;  %v1434_v5 = vpop.permute.xlu1 %1433  ;;  %v2946_v8 = vld [vmem:[#allocation2 + $0x148] sm:$0xff] }
 0x292   : > { %1504 = vst.msk [vmem:[#allocation4 + $0x1a0] sm:$0xf] %vm1477_vm4, %v1434_v5  ;;  %v8471_v5 = vpack.c.bf16 %v2947_v59, %v2947_v59 }
 0x293   : > { %v1693_v15 = vpop.permute.xlu0 %1692  ;;  %3078 = vrot.lane.b32.xlu1 %v8464_v54, %s9229_s21  ;;  %v2367_v54 = vld [vmem:[#allocation2 + $0x151] sm:$0xff] }
 0x294   : > { %v1729_v0 = vrot.slane %v1693_v15, 4 }
 0x295   : > { %2502 = vrot.lane.b32.xlu0 %v8403_v24, %s9227_s10  ;;  %v1691_v20 = vpop.permute.xlu1 %1690 }
 0x296   : > { %v1762_v1 = vsel %vm1734_vm7, %v1729_v0, %v1693_v15  ;;  %v1728_v6 = vrot.slane %v1691_v20, 4  ;;  %v8470_v15 = vpack.c.bf16 %v2946_v8, %v2946_v8  ;;  %v2366_v0 = vld [vmem:[#allocation2 + $0x149] sm:$0xff] }
 0x297   : > { %1829 = vst.msk [vmem:[#allocation4 + $0x1b0] sm:$0xff] %vm9773_vm8, %v1762_v1  ;;  %v2270_v10 = vpop.permute.xlu0 %2269  ;;  %2500 = vrot.lane.b32.xlu1 %v8402_v3, %s9227_s10  ;;  %v2692_v1 = vld [vmem:[#allocation2 + $0x16f] sm:$0xff]  ;;  %v8408_v61 = vpack.c.bf16 %v2366_v0, %v2366_v0  ;;  %v2695_v8 = vld [vmem:[#allocation2 + $0x1a7] sm:$0xff] }
 0x298   : > { %v1761_v13 = vsel %vm1734_vm7, %v1728_v6, %v1691_v20  ;;  %v8409_v20 = vpack.c.bf16 %v2367_v54, %v2367_v54  ;;  %v2953_v54 = vld [vmem:[#allocation2 + $0x1b0] sm:$0xff] }
 0x299   : > { %1828 = vst.msk [vmem:[#allocation4 + $0x1a0] sm:$0xff] %vm9773_vm8, %v1761_v13  ;;  %2827 = vrot.lane.b32.xlu0 %v8435_v2, %s9228_s20  ;;  %v2011_v55 = vpop.permute.xlu1 %2010  ;;  %v8441_v13 = vpack.c.bf16 %v2692_v1, %v2692_v1 }
 0x29a   : > { %2083 = vst.msk [vmem:[#allocation4 + $0x184] sm:$0xf] %vm2058_vm10, %v2011_v55  ;;  %v2949_v55 = vld [vmem:[#allocation2 + $0x170] sm:$0xff] }
 0x29b   : > { %v2013_v22 = vpop.permute.xlu0 %2012  ;;  %2825 = vrot.lane.b32.xlu1 %v8434_v47, %s9228_s20 }
 0x29c   : > { %2084 = vst.msk [vmem:[#allocation4 + $0x194] sm:$0xf] %vm2058_vm10, %v2013_v22 }
 0x29d   : > { %2341 = vst.msk [vmem:[#allocation4 + $0x194] sm:$0xf] %vm2315_vm11, %v2270_v10  ;;  %3084 = vrot.lane.b32.xlu0 %v8467_v23, %s9229_s21  ;;  %v2268_v7 = vpop.permute.xlu1 %2267  ;;  %v2691_v10 = vld [vmem:[#allocation2 + $0x167] sm:$0xff] }
 0x29e   : > { %2340 = vst.msk [vmem:[#allocation4 + $0x184] sm:$0xf] %vm2315_vm11, %v2268_v7  ;;  %v8440_v29 = vpack.c.bf16 %v2691_v10, %v2691_v10  ;;  %v2948_v23 = vld [vmem:[#allocation2 + $0x168] sm:$0xff]  ;;  %v8473_v7 = vpack.c.bf16 %v2949_v55, %v2949_v55 }
 0x29f   : > { %v1440_v11 = vpop.permute.xlu0 %1439  ;;  %3082 = vrot.lane.b32.xlu1 %v8466_v33, %s9229_s21  ;;  %v2369_v33 = vld [vmem:[#allocation2 + $0x171] sm:$0xff] }
 0x2a0   : > { %1507 = vst.msk [vmem:[#allocation4 + $0x1d0] sm:$0xf] %vm1477_vm4, %v1440_v11  ;;  %v8472_v11 = vpack.c.bf16 %v2948_v23, %v2948_v23 }
 0x2a1   : > { %2506 = vrot.lane.b32.xlu0 %v8405_v21, %s9227_s10  ;;  %v1438_v27 = vpop.permute.xlu1 %1437 }
 0x2a2   : > { %1506 = vst.msk [vmem:[#allocation4 + $0x1c0] sm:$0xf] %vm1477_vm4, %v1438_v27 }
 0x2a3   : > { %v1697_v31 = vpop.permute.xlu0 %1696  ;;  %2504 = vrot.lane.b32.xlu1 %v8404_v39, %s9227_s10  ;;  %v8411_v39 = vpack.c.bf16 %v2369_v33, %v2369_v33 }
 0x2a4   : > { %v1731_v18 = vrot.slane %v1697_v31, 4 }
 0x2a5   : > { %2831 = vrot.lane.b32.xlu0 %v8437_v43, %s9228_s20  ;;  %v1695_v51 = vpop.permute.xlu1 %1694 }
 0x2a6   : > { %v1764_v52 = vsel %vm1734_vm7, %v1731_v18, %v1697_v31  ;;  %v1730_v56 = vrot.slane %v1695_v51, 4  ;;  %v2694_v31 = vld [vmem:[#allocation2 + $0x18f] sm:$0xff]  ;;  %v8410_v18 = vpack.c.bf16 %v2368_v36, %v2368_v36 }
 0x2a7   : > { %1831 = vst.msk [vmem:[#allocation4 + $0x1d0] sm:$0xff] %vm9773_vm8, %v1764_v52  ;;  %v2017_v30 = vpop.permute.xlu0 %2016  ;;  %2829 = vrot.lane.b32.xlu1 %v8436_v49, %s9228_s20  ;;  %v8443_v49 = vpack.c.bf16 %v2694_v31, %v2694_v31  ;;  %v2951_v52 = vld [vmem:[#allocation2 + $0x190] sm:$0xff] }
 0x2a8   : > { %v1763_v42 = vsel %vm1734_vm7, %v1730_v56, %v1695_v51  ;;  %2086 = vst.msk [vmem:[#allocation4 + $0x1b4] sm:$0xf] %vm2058_vm10, %v2017_v30  ;;  %v2950_v30 = vld [vmem:[#allocation2 + $0x188] sm:$0xff]  ;;  %v2955_v36 = vld [vmem:[#allocation2 + $0x1d0] sm:$0xff] }
 0x2a9   : > { %1830 = vst.msk [vmem:[#allocation4 + $0x1c0] sm:$0xff] %vm9773_vm8, %v1763_v42  ;;  %3088 = vrot.lane.b32.xlu0 %v8469_v12, %s9229_s21  ;;  %v2015_v44 = vpop.permute.xlu1 %2014  ;;  %v8475_v42 = vpack.c.bf16 %v2951_v52, %v2951_v52 }
 0x2aa   : > { %2085 = vst.msk [vmem:[#allocation4 + $0x1a4] sm:$0xf] %vm2058_vm10, %v2015_v44 }
 0x2ab   : > { %v1444_v34 = vpop.permute.xlu0 %1443  ;;  %3086 = vrot.lane.b32.xlu1 %v8468_v57, %s9229_s21  ;;  %v9071_v57 = vld [vmem:[#allocation4] ss:$16 sps:$4 sm:$0xff]  }
 0x2ac   : > { %1509 = vst.msk [vmem:[#allocation4 + $0x1f0] sm:$0xf] %vm1477_vm4, %v1444_v34 }
 0x2ad   : > { %2510 = vrot.lane.b32.xlu0 %v8407_v38, %s9227_s10  ;;  %v2272_v50 = vpop.permute.xlu1 %2271  ;;  %v8474_v38 = vpack.c.bf16 %v2950_v30, %v2950_v30 }
 0x2ae   : > { %2342 = vst.msk [vmem:[#allocation4 + $0x1a4] sm:$0xf] %vm2315_vm11, %v2272_v50 }
 0x2af   : > { %v1701_v58 = vpop.permute.xlu0 %1700  ;;  %2508 = vrot.lane.b32.xlu1 %v8406_v25, %s9227_s10  ;;  %v2370_v25 = vld [vmem:[#allocation2 + $0x189] sm:$0xff] }
 0x2b0   : > { %v1733_v63 = vrot.slane %v1701_v58, 4 }
 0x2b1   : > { %2835 = vrot.lane.b32.xlu0 %v8439_v53, %s9228_s20  ;;  %v1442_v4 = vpop.permute.xlu1 %1441 }
 0x2b2   : > { %v1766_v37 = vsel %vm1734_vm7, %v1733_v63, %v1701_v58  ;;  %1508 = vst.msk [vmem:[#allocation4 + $0x1e0] sm:$0xf] %vm1477_vm4, %v1442_v4  ;;  %vm3154_vm4 = vcmask 1044096   ;;  %v8413_v58 = vpack.c.bf16 %v2371_v40, %v2371_v40  ;;  %v2696_v63 = vld [vmem:[#allocation2 + $0x1af] sm:$0xff]  ;;  %v8412_v4 = vpack.c.bf16 %v2370_v25, %v2370_v25 }
 0x2b3   : > { %1833 = vst.msk [vmem:[#allocation4 + $0x1f0] sm:$0xff] %vm9773_vm8, %v1766_v37  ;;  %v2021_v9 = vpop.permute.xlu0 %2020  ;;  %2833 = vrot.lane.b32.xlu1 %v8438_v28, %s9228_s20  ;;  %v9077_v37 = vld [vmem:[#allocation4 + $0xc] ss:$16 sps:$4 sm:$0xff]  }
 0x2b4   : > { %2088 = vst.msk [vmem:[#allocation4 + $0x1d4] sm:$0xf] %vm2058_vm10, %v2021_v9  ;;  %7860 = vmatprep.mubr.msk.bf16.mxu0 %vm724_vm1, %v9077_v37  ;;  %v2377_v37 = vld [vmem:[#allocation2 + $0x1f1] sm:$0xff] }
 0x2b5   : > { %3092 = vrot.lane.b32.xlu0 %v8471_v5, %s9229_s21  ;;  %v1699_v45 = vpop.permute.xlu1 %1698  ;;  %v8445_v5 = vpack.c.bf16 %v2696_v63, %v2696_v63 }
 0x2b6   : > { %v1732_v24 = vrot.slane %v1699_v45, 4 }
 0x2b7   : > { %v2025_v19 = vpop.permute.xlu0 %2024  ;;  %3090 = vrot.lane.b32.xlu1 %v8470_v15, %s9229_s21  ;;  %v8444_v15 = vpack.c.bf16 %v2695_v8, %v2695_v8 }
 0x2b8   : > { %v1765_v3 = vsel %vm1734_vm7, %v1732_v24, %v1699_v45  ;;  %2090 = vst.msk [vmem:[#allocation4 + $0x1f4] sm:$0xf] %vm2058_vm10, %v2025_v19  ;;  %v2952_v24 = vld [vmem:[#allocation2 + $0x1a8] sm:$0xff]  ;;  %v8477_v19 = vpack.c.bf16 %v2953_v54, %v2953_v54  ;;  %vm5736_vm7 = vcmask 650752  }
 0x2b9   : > { %1832 = vst.msk [vmem:[#allocation4 + $0x1e0] sm:$0xff] %vm9773_vm8, %v1765_v3  ;;  %2514 = vrot.lane.b32.xlu0 %v8409_v20, %s9227_s10  ;;  %v2019_v6 = vpop.permute.xlu1 %2018  ;;  %v2373_v20 = vld [vmem:[#allocation2 + $0x1b1] sm:$0xff]  ;;  %v8476_v10 = vpack.c.bf16 %v2952_v24, %v2952_v24  ;;  %vm5993_vm8 = vcmask 781952  }
 0x2ba   : > { %2087 = vst.msk [vmem:[#allocation4 + $0x1c4] sm:$0xf] %vm2058_vm10, %v2019_v6  ;;  %v9080_v6 = vld [vmem:[#allocation4 + $0x20] ss:$16 sps:$4 sm:$0xff]  }
 0x2bb   : > { %v2477_v2 = vpop.permute.xlu0 %2476  ;;  %2512 = vrot.lane.b32.xlu1 %v8408_v61, %s9227_s10 }
 0x2bc   : > { %v2540_v16 = vrot.slane %v2477_v2, 4 }
 0x2bd   : > { %2839 = vrot.lane.b32.xlu0 %v8441_v13, %s9228_s20  ;;  %v2023_v47 = vpop.permute.xlu1 %2022 }
 0x2be   : > { %v2573_v22 = vsel %vm2572_vm14, %v2540_v16, %v2477_v2  ;;  %2089 = vst.msk [vmem:[#allocation4 + $0x1e4] sm:$0xf] %vm2058_vm10, %v2023_v47  ;;  %v2372_v16 = vld [vmem:[#allocation2 + $0x1a9] sm:$0xff]  ;;  %v8415_v47 = vpack.c.bf16 %v2373_v20, %v2373_v20  ;;  %v8419_v20 = vpack.c.bf16 %v2377_v37, %v2377_v37 }
 0x2bf   : > { %v2274_v60 = vpop.permute.xlu0 %2273  ;;  %2837 = vrot.lane.b32.xlu1 %v8440_v29, %s9228_s20  ;;  %2640 = vst.msk [vmem:[#allocation4 + $0x4] sm:$0xff] %vm10591_vm15, %v2573_v22  ;;  %v2698_v22 = vld [vmem:[#allocation2 + $0x1cf] sm:$0xff] }
 0x2c0   : > { %2343 = vst.msk [vmem:[#allocation4 + $0x1b4] sm:$0xf] %vm2315_vm11, %v2274_v60  ;;  %v8414_v60 = vpack.c.bf16 %v2372_v16, %v2372_v16  ;;  %v2960_v37 = vld [vmem:[#allocation2 + $0x228] sm:$0xff] }
 0x2c1   : > { %3096 = vrot.lane.b32.xlu0 %v8473_v7, %s9229_s21  ;;  %v2479_v14 = vpop.permute.xlu1 %2478  ;;  %v9081_v7 = vld [vmem:[#allocation4 + $0x2c] ss:$16 sps:$4 sm:$0xff]  }
 0x2c2   : > { %v2541_v21 = vrot.slane %v2479_v14, 4 }
 0x2c3   : > { %v2804_v27 = vpop.permute.xlu0 %2803  ;;  %3094 = vrot.lane.b32.xlu1 %v8472_v11, %s9229_s21 }
 0x2c4   : > { %v2574_v17 = vsel %vm2572_vm14, %v2541_v21, %v2479_v14  ;;  %v2697_v14 = vld [vmem:[#allocation2 + $0x1c7] sm:$0xff]  ;;  %v8447_v21 = vpack.c.bf16 %v2698_v22, %v2698_v22  ;;  %v2959_v22 = vld [vmem:[#allocation2 + $0x210] sm:$0xff] }
 0x2c5   : > { %2641 = vst.msk [vmem:[#allocation4 + $0x14] sm:$0xff] %vm10591_vm15, %v2574_v17  ;;  %2518 = vrot.lane.b32.xlu0 %v8411_v39, %s9227_s10  ;;  %v2802_v43 = vpop.permute.xlu1 %2801  ;;  %v8446_v39 = vpack.c.bf16 %v2697_v14, %v2697_v14  ;;  %v2954_v17 = vld [vmem:[#allocation2 + $0x1c8] sm:$0xff] }
 0x2c6   : > { %2899 = vst.msk [vmem:[#allocation4 + $0x18] sm:$0xf] %vm2897_vm0, %v2804_v27  ;;  %2898 = vst.msk [vmem:[#allocation4 + $0x8] sm:$0xf] %vm2897_vm0, %v2802_v43  ;;  %v8479_v43 = vpack.c.bf16 %v2955_v36, %v2955_v36  ;;  %v2958_v36 = vld [vmem:[#allocation2 + $0x208] sm:$0xff] }
 0x2c7   : > { %v3061_v51 = vpop.permute.xlu0 %3060  ;;  %2516 = vrot.lane.b32.xlu1 %v8410_v18, %s9227_s10  ;;  %v2375_v18 = vld [vmem:[#allocation2 + $0x1d1] sm:$0xff] }
 0x2c8   : > { %3156 = vst.msk [vmem:[#allocation4 + $0x18] sm:$0xf] %vm3154_vm4, %v3061_v51  ;;  %v8417_v40 = vpack.c.bf16 %v2375_v18, %v2375_v18  ;;  %v8482_v18 = vpack.c.bf16 %v2958_v36, %v2958_v36  ;;  %v4998_v36 = vld [vmem:[#allocation3 + $0x9] sm:$0xff] }
 0x2c9   : > { %2843 = vrot.lane.b32.xlu0 %v8443_v49, %s9228_s20  ;;  %v3059_v56 = vpop.permute.xlu1 %3058  ;;  %v9086_v49 = vld [vmem:[#allocation4 + $0x40] ss:$16 sps:$4 sm:$0xff]  }
 0x2ca   : > { %3155 = vst.msk [vmem:[#allocation4 + $0x8] sm:$0xf] %vm3154_vm4, %v3059_v56  ;;  %v8478_v56 = vpack.c.bf16 %v2954_v17, %v2954_v17 }
 0x2cb   : > { %v2483_v12 = vpop.permute.xlu0 %2482  ;;  %2841 = vrot.lane.b32.xlu1 %v8442_v35, %s9228_s20 }
 0x2cc   : > { %v2543_v44 = vrot.slane %v2483_v12, 4  ;;  %v9073_v32 = vld [vmem:[#allocation4 + $0x4] ss:$16 sps:$4 sm:$0xff]  }
 0x2cd   : > { %3100 = vrot.lane.b32.xlu0 %v8475_v42, %s9229_s21  ;;  %v2481_v34 = vpop.permute.xlu1 %2480  ;;  %4043 = vmatprep.mubr.bf16.mxu1 %v9073_v32 }
 0x2ce   : > { %v2576_v48 = vsel %vm2572_vm14, %v2543_v44, %v2483_v12  ;;  %v2542_v50 = vrot.slane %v2481_v34, 4  ;;  %4044 = vmatmul.mubr.bf16.vlgmr.msra.gmra.mxu1 %v9071_v57  ;;  %v2374_v12 = vld [vmem:[#allocation2 + $0x1c9] sm:$0xff] }
 0x2cf   : > { %2643 = vst.msk [vmem:[#allocation4 + $0x34] sm:$0xff] %vm10591_vm15, %v2576_v48  ;;  %v2808_v41 = vpop.permute.xlu0 %2807  ;;  %3098 = vrot.lane.b32.xlu1 %v8474_v38, %s9229_s21  ;;  %v2700_v57 = vld [vmem:[#allocation2 + $0x1ef] sm:$0xff] }
 0x2d0   : > { %v2575_v53 = vsel %vm2572_vm14, %v2542_v50, %v2481_v34  ;;  %2901 = vst.msk [vmem:[#allocation4 + $0x38] sm:$0xf] %vm2897_vm0, %v2808_v41  ;;  %v8416_v34 = vpack.c.bf16 %v2374_v12, %v2374_v12  ;;  %v9087_v38 = vld [vmem:[#allocation4 + $0x4c] ss:$16 sps:$4 sm:$0xff]   ;;  %v8449_v41 = vpack.c.bf16 %v2700_v57, %v2700_v57 }
 0x2d1   : > { %2642 = vst.msk [vmem:[#allocation4 + $0x24] sm:$0xff] %vm10591_vm15, %v2575_v53  ;;  %2522 = vrot.lane.b32.xlu0 %v8413_v58, %s9227_s10  ;;  %v2806_v59 = vpop.permute.xlu1 %2805  ;;  %v9075_v28 = vld [vmem:[#allocation4 + $0x8] ss:$16 sps:$4 sm:$0xff]   ;;  %v2957_v58 = vld [vmem:[#allocation2 + $0x1f0] sm:$0xff] }
 0x2d2   : > { %2900 = vst.msk [vmem:[#allocation4 + $0x28] sm:$0xf] %vm2897_vm0, %v2806_v59  ;;  %4205 = vmatmul.mubr.bf16.vlgmr.msra.gmra.mxu0 %v9075_v28  ;;  %v2699_v50 = vld [vmem:[#allocation2 + $0x1e7] sm:$0xff]  ;;  %v8481_v28 = vpack.c.bf16 %v2957_v58, %v2957_v58  ;;  %v2704_v57 = vld [vmem:[#allocation2 + $0x22f] sm:$0xff] }
 0x2d3   : > { %v3065_v9 = vpop.permute.xlu0 %3064  ;;  %2520 = vrot.lane.b32.xlu1 %v8412_v4, %s9227_s10  ;;  %7861 = vmatprep.mubr.msk.bf16.mxu0 %vm724_vm1, %v9081_v7  ;;  %v8448_v63 = vpack.c.bf16 %v2699_v50, %v2699_v50  ;;  %v2956_v59 = vld [vmem:[#allocation2 + $0x1e8] sm:$0xff]  ;;  %v9098_v7 = vld [vmem:[#allocation4 + $0x80] ss:$16 sps:$4 sm:$0xff]  }
 0x2d4   : > { %3158 = vst.msk [vmem:[#allocation4 + $0x38] sm:$0xf] %vm3154_vm4, %v3065_v9  ;;  %v9104_v50 = vld [vmem:[#allocation4 + $0xa0] ss:$16 sps:$4 sm:$0xff]  }
 0x2d5   : > { %2847 = vrot.lane.b32.xlu0 %v8445_v5, %s9228_s20  ;;  %v3063_v45 = vpop.permute.xlu1 %3062  ;;  %v9092_v5 = vld [vmem:[#allocation4 + $0x60] ss:$16 sps:$4 sm:$0xff]  }
 0x2d6   : > { %3157 = vst.msk [vmem:[#allocation4 + $0x28] sm:$0xf] %vm3154_vm4, %v3063_v45  ;;  %v8480_v45 = vpack.c.bf16 %v2956_v59, %v2956_v59 }
 0x2d7   : > { %v2487_v0 = vpop.permute.xlu0 %2486  ;;  %2845 = vrot.lane.b32.xlu1 %v8444_v15, %s9228_s20 }
 0x2d8   : > { %v2545_v3 = vrot.slane %v2487_v0, 4  ;;  %v9078_v1 = vld [vmem:[#allocation4 + $0x24] ss:$16 sps:$4 sm:$0xff]  }
 0x2d9   : > { %3104 = vrot.lane.b32.xlu0 %v8477_v19, %s9229_s21  ;;  %v2485_v61 = vpop.permute.xlu1 %2484  ;;  %4051 = vmatprep.mubr.bf16.mxu1 %v9078_v1 }
 0x2da   : > { %v2578_v2 = vsel %vm2572_vm14, %v2545_v3, %v2487_v0  ;;  %v2544_v13 = vrot.slane %v2485_v61, 4  ;;  %4052 = vmatmul.mubr.bf16.gmra.mxu1 %v9080_v6  ;;  %v2376_v0 = vld [vmem:[#allocation2 + $0x1e9] sm:$0xff] }
 0x2db   : > { %2645 = vst.msk [vmem:[#allocation4 + $0x54] sm:$0xff] %vm10591_vm15, %v2578_v2  ;;  %v2812_v55 = vpop.permute.xlu0 %2811  ;;  %3102 = vrot.lane.b32.xlu1 %v8476_v10, %s9229_s21  ;;  %v8418_v6 = vpack.c.bf16 %v2376_v0, %v2376_v0 }
 0x2dc   : > { %v2577_v29 = vsel %vm2572_vm14, %v2544_v13, %v2485_v61  ;;  %2903 = vst.msk [vmem:[#allocation4 + $0x58] sm:$0xf] %vm2897_vm0, %v2812_v55  ;;  %v9093_v61 = vld [vmem:[#allocation4 + $0x6c] ss:$16 sps:$4 sm:$0xff]  }
 0x2dd   : > { %2644 = vst.msk [vmem:[#allocation4 + $0x44] sm:$0xff] %vm10591_vm15, %v2577_v29  ;;  %2526 = vrot.lane.b32.xlu0 %v8415_v47, %s9227_s10  ;;  %v2810_v23 = vpop.permute.xlu1 %2809  ;;  %v9083_v33 = vld [vmem:[#allocation4 + $0x28] ss:$16 sps:$4 sm:$0xff]   ;;  %v2702_v13 = vld [vmem:[#allocation2 + $0x20f] sm:$0xff] }
 0x2de   : > { %2902 = vst.msk [vmem:[#allocation4 + $0x48] sm:$0xf] %vm2897_vm0, %v2810_v23  ;;  %4213 = vmatmul.mubr.bf16.gmra.mxu0 %v9083_v33  ;;  %v2701_v55 = vld [vmem:[#allocation2 + $0x207] sm:$0xff]  ;;  %v8451_v29 = vpack.c.bf16 %v2702_v13, %v2702_v13 }
 0x2df   : > { %v3069_v11 = vpop.permute.xlu0 %3068  ;;  %2524 = vrot.lane.b32.xlu1 %v8414_v60, %s9227_s10  ;;  %7862 = vmatprep.mubr.msk.bf16.mxu0 %vm724_vm1, %v9087_v38  ;;  %v8450_v14 = vpack.c.bf16 %v2701_v55, %v2701_v55 }
 0x2e0   : > { %3160 = vst.msk [vmem:[#allocation4 + $0x58] sm:$0xf] %vm3154_vm4, %v3069_v11 }
 0x2e1   : > { %2851 = vrot.lane.b32.xlu0 %v8447_v21, %s9228_s20  ;;  %v3067_v27 = vpop.permute.xlu1 %3066 }
 0x2e2   : > { %3159 = vst.msk [vmem:[#allocation4 + $0x48] sm:$0xf] %vm3154_vm4, %v3067_v27 }
 0x2e3   : > { %v2491_v31 = vpop.permute.xlu0 %2490  ;;  %2849 = vrot.lane.b32.xlu1 %v8446_v39, %s9228_s20  ;;  %v8483_v39 = vpack.c.bf16 %v2959_v22, %v2959_v22  ;;  %v4741_v22 = vld [vmem:[#allocation3 + $0x8] sm:$0xff] }
 0x2e4   : > { %v2547_v46 = vrot.slane %v2491_v31, 4  ;;  %v9084_v51 = vld [vmem:[#allocation4 + $0x44] ss:$16 sps:$4 sm:$0xff]  }
 0x2e5   : > { %3108 = vrot.lane.b32.xlu0 %v8479_v43, %s9229_s21  ;;  %v2489_v52 = vpop.permute.xlu1 %2488  ;;  %4059 = vmatprep.mubr.bf16.mxu1 %v9084_v51 }
 0x2e6   : > { %v2580_v35 = vsel %vm2572_vm14, %v2547_v46, %v2491_v31  ;;  %v2546_v30 = vrot.slane %v2489_v52, 4  ;;  %4060 = vmatmul.mubr.bf16.gmra.mxu1 %v9086_v49  ;;  %v2379_v31 = vld [vmem:[#allocation2 + $0x211] sm:$0xff]  ;;  %v9099_v46 = vld [vmem:[#allocation4 + $0x8c] ss:$16 sps:$4 sm:$0xff]  }
 0x2e7   : > { %2647 = vst.msk [vmem:[#allocation4 + $0x74] sm:$0xff] %vm10591_vm15, %v2580_v35  ;;  %v2816_v42 = vpop.permute.xlu0 %2815  ;;  %3106 = vrot.lane.b32.xlu1 %v8478_v56, %s9229_s21  ;;  %v2378_v49 = vld [vmem:[#allocation2 + $0x209] sm:$0xff]  ;;  %v8421_v56 = vpack.c.bf16 %v2379_v31, %v2379_v31  ;;  %v8582_v31 = vpack.c.bf16 %v4998_v36, %v4998_v36 }
 0x2e8   : > { %v2579_v44 = vsel %vm2572_vm14, %v2546_v30, %v2489_v52  ;;  %2905 = vst.msk [vmem:[#allocation4 + $0x78] sm:$0xf] %vm2897_vm0, %v2816_v42  ;;  %v3217_v35 = vld [vmem:[#allocation2 + $0x229] sm:$0xff]  ;;  %v3218_v30 = vld [vmem:[#allocation2 + $0x231] sm:$0xff]  ;;  %v8420_v42 = vpack.c.bf16 %v2378_v49, %v2378_v49 }
 0x2e9   : > { %2646 = vst.msk [vmem:[#allocation4 + $0x64] sm:$0xff] %vm10591_vm15, %v2579_v44  ;;  %2530 = vrot.lane.b32.xlu0 %v8417_v40, %s9227_s10  ;;  %v2814_v32 = vpop.permute.xlu1 %2813  ;;  %v9089_v48 = vld [vmem:[#allocation4 + $0x48] ss:$16 sps:$4 sm:$0xff]   ;;  %v8516_v40 = vpack.c.bf16 %v3217_v35, %v3217_v35  ;;  %v8517_v44 = vpack.c.bf16 %v3218_v30, %v3218_v30 }
 0x2ea   : > { %2904 = vst.msk [vmem:[#allocation4 + $0x68] sm:$0xf] %vm2897_vm0, %v2814_v32  ;;  %4221 = vmatmul.mubr.bf16.gmra.mxu0 %v9089_v48 }
 0x2eb   : > { %v3073_v25 = vpop.permute.xlu0 %3072  ;;  %2528 = vrot.lane.b32.xlu1 %v8416_v34, %s9227_s10  ;;  %7863 = vmatprep.mubr.msk.bf16.mxu0 %vm724_vm1, %v9093_v61  ;;  %v2703_v34 = vld [vmem:[#allocation2 + $0x227] sm:$0xff]  ;;  %3377 = vst.msk [vmem:[#allocation4 + $0x1ec] sm:$0xf] %vm1220_vm3, %v8516_v40  ;;  %3378 = vst.msk [vmem:[#allocation4 + $0x1fc] sm:$0xf] %vm1220_vm3, %v8517_v44  ;;  %vm4965_vm3 = vcmask 257152  }
 0x2ec   : > { %3162 = vst.msk [vmem:[#allocation4 + $0x78] sm:$0xf] %vm3154_vm4, %v3073_v25  ;;  %v9122_v44 = vld [vmem:[#allocation4 + $0x100] ss:$16 sps:$4 sm:$0xff]  }
 0x2ed   : > { %2855 = vrot.lane.b32.xlu0 %v8449_v41, %s9228_s20  ;;  %v3071_v53 = vpop.permute.xlu1 %3070  ;;  %v8453_v41 = vpack.c.bf16 %v2704_v57, %v2704_v57 }
 0x2ee   : > { %3161 = vst.msk [vmem:[#allocation4 + $0x68] sm:$0xf] %vm3154_vm4, %v3071_v53 }
 0x2ef   : > { %v2495_v4 = vpop.permute.xlu0 %2494  ;;  %2853 = vrot.lane.b32.xlu1 %v8448_v63, %s9228_s20  ;;  %v2961_v63 = vld [vmem:[#allocation2 + $0x230] sm:$0xff] }
 0x2f0   : > { %v2549_v8 = vrot.slane %v2495_v4, 4  ;;  %v9090_v9 = vld [vmem:[#allocation4 + $0x64] ss:$16 sps:$4 sm:$0xff]  }
 0x2f1   : > { %3112 = vrot.lane.b32.xlu0 %v8481_v28, %s9229_s21  ;;  %v2493_v54 = vpop.permute.xlu1 %2492  ;;  %4067 = vmatprep.mubr.bf16.mxu1 %v9090_v9  ;;  %v9105_v9 = vld [vmem:[#allocation4 + $0xac] ss:$16 sps:$4 sm:$0xff]  }
 0x2f2   : > { %v2582_v15 = vsel %vm2572_vm14, %v2549_v8, %v2495_v4  ;;  %v2548_v24 = vrot.slane %v2493_v54, 4  ;;  %4068 = vmatmul.mubr.bf16.gmra.mxu1 %v9092_v5  ;;  %v8452_v4 = vpack.c.bf16 %v2703_v34, %v2703_v34  ;;  %v9164_v26 = vld [vmem:[#allocation4 + $0x1ec] ss:$16 sps:$4 sm:$0xff]  }
 0x2f3   : > { %2649 = vst.msk [vmem:[#allocation4 + $0x94] sm:$0xff] %vm10591_vm15, %v2582_v15  ;;  %v2820_v19 = vpop.permute.xlu0 %2819  ;;  %3110 = vrot.lane.b32.xlu1 %v8480_v45, %s9229_s21  ;;  %v8484_v15 = vpack.c.bf16 %v2960_v37, %v2960_v37 }
 0x2f4   : > { %v2581_v3 = vsel %vm2572_vm14, %v2548_v24, %v2493_v54  ;;  %2907 = vst.msk [vmem:[#allocation4 + $0x98] sm:$0xf] %vm2897_vm0, %v2820_v19  ;;  %v8485_v54 = vpack.c.bf16 %v2961_v63, %v2961_v63 }
 0x2f5   : > { %2648 = vst.msk [vmem:[#allocation4 + $0x84] sm:$0xff] %vm10591_vm15, %v2581_v3  ;;  %2534 = vrot.lane.b32.xlu0 %v8419_v20, %s9227_s10  ;;  %v2818_v1 = vpop.permute.xlu1 %2817  ;;  %v9095_v10 = vld [vmem:[#allocation4 + $0x68] ss:$16 sps:$4 sm:$0xff]   ;;  %v9110_v3 = vld [vmem:[#allocation4 + $0xc0] ss:$16 sps:$4 sm:$0xff]  }
 0x2f6   : > { %2906 = vst.msk [vmem:[#allocation4 + $0x88] sm:$0xf] %vm2897_vm0, %v2818_v1  ;;  %4229 = vmatmul.mubr.bf16.gmra.mxu0 %v9095_v10 }
 0x2f7   : > { %v3077_v2 = vpop.permute.xlu0 %3076  ;;  %2532 = vrot.lane.b32.xlu1 %v8418_v6, %s9227_s10  ;;  %7864 = vmatprep.mubr.msk.bf16.mxu0 %vm724_vm1, %v9099_v46 }
 0x2f8   : > { %3164 = vst.msk [vmem:[#allocation4 + $0x98] sm:$0xf] %vm3154_vm4, %v3077_v2 }
 0x2f9   : > { %2277 = vrot.lane.b32.xlu0 %v8481_v28, %s9225_s28  ;;  %v3075_v16 = vpop.permute.xlu1 %3074 }
 0x2fa   : > { %3163 = vst.msk [vmem:[#allocation4 + $0x88] sm:$0xf] %vm3154_vm4, %v3075_v16  ;;  %v9111_v16 = vld [vmem:[#allocation4 + $0xcc] ss:$16 sps:$4 sm:$0xff]  }
 0x2fb   : > { %v2499_v47 = vpop.permute.xlu0 %2498  ;;  %2275 = vrot.lane.b32.xlu1 %v8480_v45, %s9225_s28 }
 0x2fc   : > { %v2551_v23 = vrot.slane %v2499_v47, 4  ;;  %v9096_v60 = vld [vmem:[#allocation4 + $0x84] ss:$16 sps:$4 sm:$0xff]  }
 0x2fd   : > { %2859 = vrot.lane.b32.xlu0 %v8451_v29, %s9228_s20  ;;  %v2497_v33 = vpop.permute.xlu1 %2496  ;;  %4075 = vmatprep.mubr.bf16.mxu1 %v9096_v60 }
 0x2fe   : > { %v2584_v11 = vsel %vm2572_vm14, %v2551_v23, %v2499_v47  ;;  %v2550_v21 = vrot.slane %v2497_v33, 4  ;;  %4076 = vmatmul.mubr.bf16.gmra.mxu1 %v9098_v7  ;;  %v8550_v23 = vpack.c.bf16 %v4741_v22, %v4741_v22 }
 0x2ff   : > { %2651 = vst.msk [vmem:[#allocation4 + $0xb4] sm:$0xff] %vm10591_vm15, %v2584_v11  ;;  %v2824_v27 = vpop.permute.xlu0 %2823  ;;  %2857 = vrot.lane.b32.xlu1 %v8450_v14, %s9228_s20  ;;  %v9116_v14 = vld [vmem:[#allocation4 + $0xe0] ss:$16 sps:$4 sm:$0xff]  }
 0x300   : > { %v2583_v17 = vsel %vm2572_vm14, %v2550_v21, %v2497_v33  ;;  %2909 = vst.msk [vmem:[#allocation4 + $0xb8] sm:$0xf] %vm2897_vm0, %v2824_v27  ;;  %v4742_v21 = vld [vmem:[#allocation3 + $0x10] sm:$0xff] }
 0x301   : > { %2650 = vst.msk [vmem:[#allocation4 + $0xa4] sm:$0xff] %vm10591_vm15, %v2583_v17  ;;  %3116 = vrot.lane.b32.xlu0 %v8483_v39, %s9229_s21  ;;  %v2822_v43 = vpop.permute.xlu1 %2821  ;;  %v9101_v51 = vld [vmem:[#allocation4 + $0x88] ss:$16 sps:$4 sm:$0xff]   ;;  %v8551_v17 = vpack.c.bf16 %v4742_v21, %v4742_v21 }
 0x302   : > { %2908 = vst.msk [vmem:[#allocation4 + $0xa8] sm:$0xf] %vm2897_vm0, %v2822_v43  ;;  %4237 = vmatmul.mubr.bf16.gmra.mxu0 %v9101_v51  ;;  %v9117_v51 = vld [vmem:[#allocation4 + $0xec] ss:$16 sps:$4 sm:$0xff]  }
 0x303   : > { %v3081_v52 = vpop.permute.xlu0 %3080  ;;  %3114 = vrot.lane.b32.xlu1 %v8482_v18, %s9229_s21  ;;  %7865 = vmatprep.mubr.msk.bf16.mxu0 %vm724_vm1, %v9105_v9 }
 0x304   : > { %3166 = vst.msk [vmem:[#allocation4 + $0xb8] sm:$0xf] %vm3154_vm4, %v3081_v52  ;;  %v4999_v52 = vld [vmem:[#allocation3 + $0x11] sm:$0xff] }
 0x305   : > { %2538 = vrot.lane.b32.xlu0 %v8421_v56, %s9227_s10  ;;  %v3079_v12 = vpop.permute.xlu1 %3078  ;;  %v8583_v35 = vpack.c.bf16 %v4999_v52, %v4999_v52 }
 0x306   : > { %3165 = vst.msk [vmem:[#allocation4 + $0xa8] sm:$0xf] %vm3154_vm4, %v3079_v12 }
 0x307   : > { %v2503_v32 = vpop.permute.xlu0 %2502  ;;  %2536 = vrot.lane.b32.xlu1 %v8420_v42, %s9227_s10 }
 0x308   : > { %v2553_v38 = vrot.slane %v2503_v32, 4  ;;  %v9102_v48 = vld [vmem:[#allocation4 + $0xa4] ss:$16 sps:$4 sm:$0xff]  }
 0x309   : > { %2281 = vrot.lane.b32.xlu0 %v8483_v39, %s9225_s28  ;;  %v2501_v25 = vpop.permute.xlu1 %2500  ;;  %4083 = vmatprep.mubr.bf16.mxu1 %v9102_v48 }
 0x30a   : > { %v2586_v58 = vsel %vm2572_vm14, %v2553_v38, %v2503_v32  ;;  %v2552_v53 = vrot.slane %v2501_v25, 4  ;;  %4084 = vmatmul.mubr.bf16.gmra.mxu1 %v9104_v50 }
 0x30b   : > { %2653 = vst.msk [vmem:[#allocation4 + $0xd4] sm:$0xff] %vm10591_vm15, %v2586_v58  ;;  %v2828_v59 = vpop.permute.xlu0 %2827  ;;  %2279 = vrot.lane.b32.xlu1 %v8482_v18, %s9225_s28 }
 0x30c   : > { %v2585_v28 = vsel %vm2572_vm14, %v2552_v53, %v2501_v25  ;;  %2911 = vst.msk [vmem:[#allocation4 + $0xd8] sm:$0xf] %vm2897_vm0, %v2828_v59  ;;  %v9123_v25 = vld [vmem:[#allocation4 + $0x10c] ss:$16 sps:$4 sm:$0xff]  }
 0x30d   : > { %2652 = vst.msk [vmem:[#allocation4 + $0xc4] sm:$0xff] %vm10591_vm15, %v2585_v28  ;;  %v2826_v8 = vpop.permute.xlu1 %2825  ;;  %2863 = vrot.lane.b32.xlu0 %v8453_v41, %s9228_s20  ;;  %v9107_v5 = vld [vmem:[#allocation4 + $0xa8] ss:$16 sps:$4 sm:$0xff]   ;;  %v9128_v28 = vld [vmem:[#allocation4 + $0x120] ss:$16 sps:$4 sm:$0xff]  }
 0x30e   : > { %2910 = vst.msk [vmem:[#allocation4 + $0xc8] sm:$0xf] %vm2897_vm0, %v2826_v8  ;;  %4245 = vmatmul.mubr.bf16.gmra.mxu0 %v9107_v5 }
 0x30f   : > { %v3085_v45 = vpop.permute.xlu0 %3084  ;;  %2861 = vrot.lane.b32.xlu1 %v8452_v4, %s9228_s20  ;;  %7866 = vmatprep.mubr.msk.bf16.mxu0 %vm724_vm1, %v9111_v16 }
 0x310   : > { %3168 = vst.msk [vmem:[#allocation4 + $0xd8] sm:$0xf] %vm3154_vm4, %v3085_v45 }
 0x311   : > { %v3083_v24 = vpop.permute.xlu1 %3082  ;;  %3120 = vrot.lane.b32.xlu0 %v8485_v54, %s9229_s21 }
 0x312   : > { %3167 = vst.msk [vmem:[#allocation4 + $0xc8] sm:$0xf] %vm3154_vm4, %v3083_v24 }
 0x313   : > { %v2507_v0 = vpop.permute.xlu0 %2506  ;;  %3118 = vrot.lane.b32.xlu1 %v8484_v15, %s9229_s21  ;;  %v9129_v15 = vld [vmem:[#allocation4 + $0x12c] ss:$16 sps:$4 sm:$0xff]  }
 0x314   : > { %v2555_v19 = vrot.slane %v2507_v0, 4  ;;  %v9108_v20 = vld [vmem:[#allocation4 + $0xc4] ss:$16 sps:$4 sm:$0xff]  }
 0x315   : > { %v2505_v1 = vpop.permute.xlu1 %2504  ;;  %4091 = vmatprep.mubr.bf16.mxu1 %v9108_v20  ;;  %4871 = vrot.lane.b32.xlu0 %v8551_v17, %s9224_s27 }
 0x316   : > { %v2588_v6 = vsel %vm2572_vm14, %v2555_v19, %v2507_v0  ;;  %v2554_v61 = vrot.slane %v2505_v1, 4  ;;  %4092 = vmatmul.mubr.bf16.gmra.mxu1 %v9110_v3 }
 0x317   : > { %2655 = vst.msk [vmem:[#allocation4 + $0xf4] sm:$0xff] %vm10591_vm15, %v2588_v6  ;;  %v2832_v10 = vpop.permute.xlu0 %2831  ;;  %4869 = vrot.lane.b32.xlu1 %v8550_v23, %s9224_s27  ;;  %v9134_v6 = vld [vmem:[#allocation4 + $0x140] ss:$16 sps:$4 sm:$0xff]  }
 0x318   : > { %v2587_v2 = vsel %vm2572_vm14, %v2554_v61, %v2505_v1  ;;  %2913 = vst.msk [vmem:[#allocation4 + $0xf8] sm:$0xf] %vm2897_vm0, %v2832_v10 }
 0x319   : > { %2654 = vst.msk [vmem:[#allocation4 + $0xe4] sm:$0xff] %vm10591_vm15, %v2587_v2  ;;  %v2830_v13 = vpop.permute.xlu1 %2829  ;;  %v9113_v55 = vld [vmem:[#allocation4 + $0xc8] ss:$16 sps:$4 sm:$0xff]   ;;  %5128 = vrot.lane.b32.xlu0 %v8583_v35, %s9228_s20 }
 0x31a   : > { %2912 = vst.msk [vmem:[#allocation4 + $0xe8] sm:$0xf] %vm2897_vm0, %v2830_v13  ;;  %4253 = vmatmul.mubr.bf16.gmra.mxu0 %v9113_v55 }
 0x31b   : > { %v3089_v47 = vpop.permute.xlu0 %3088  ;;  %5126 = vrot.lane.b32.xlu1 %v8582_v31, %s9228_s20  ;;  %7867 = vmatprep.mubr.msk.bf16.mxu0 %vm724_vm1, %v9117_v51  ;;  %v9141_v31 = vld [vmem:[#allocation4 + $0x16c] ss:$16 sps:$4 sm:$0xff]  }
 0x31c   : > { %3170 = vst.msk [vmem:[#allocation4 + $0xf8] sm:$0xf] %vm3154_vm4, %v3089_v47  ;;  %v9135_v47 = vld [vmem:[#allocation4 + $0x14c] ss:$16 sps:$4 sm:$0xff]  }
 0x31d   : > { %v3087_v29 = vpop.permute.xlu1 %3086 }
 0x31e   : > { %3169 = vst.msk [vmem:[#allocation4 + $0xe8] sm:$0xf] %vm3154_vm4, %v3087_v29 }
 0x31f   : > { %v2511_v60 = vpop.permute.xlu0 %2510 }
 0x320   : > { %v2557_v7 = vrot.slane %v2511_v60, 4  ;;  %v9114_v33 = vld [vmem:[#allocation4 + $0xe4] ss:$16 sps:$4 sm:$0xff]  }
 0x321   : > { %v2509_v11 = vpop.permute.xlu1 %2508  ;;  %4099 = vmatprep.mubr.bf16.mxu1 %v9114_v33 }
 0x322   : > { %v2590_v27 = vsel %vm2572_vm14, %v2557_v7, %v2511_v60  ;;  %v2556_v39 = vrot.slane %v2509_v11, 4  ;;  %4100 = vmatmul.mubr.bf16.gmra.mxu1 %v9116_v14  ;;  %v9140_v14 = vld [vmem:[#allocation4 + $0x160] ss:$16 sps:$4 sm:$0xff]  }
 0x323   : > { %2657 = vst.msk [vmem:[#allocation4 + $0x114] sm:$0xff] %vm10591_vm15, %v2590_v27  ;;  %v2836_v43 = vpop.permute.xlu0 %2835 }
 0x324   : > { %v2589_v18 = vsel %vm2572_vm14, %v2556_v39, %v2509_v11  ;;  %2915 = vst.msk [vmem:[#allocation4 + $0x118] sm:$0xf] %vm2897_vm0, %v2836_v43 }
 0x325   : > { %2656 = vst.msk [vmem:[#allocation4 + $0x104] sm:$0xff] %vm10591_vm15, %v2589_v18  ;;  %v2834_v46 = vpop.permute.xlu1 %2833  ;;  %v9119_v49 = vld [vmem:[#allocation4 + $0xe8] ss:$16 sps:$4 sm:$0xff]  }
 0x326   : > { %2914 = vst.msk [vmem:[#allocation4 + $0x108] sm:$0xf] %vm2897_vm0, %v2834_v46  ;;  %4261 = vmatmul.mubr.bf16.gmra.mxu0 %v9119_v49 }
 0x327   : > { %v3093_v56 = vpop.permute.xlu0 %3092  ;;  %7868 = vmatprep.mubr.msk.bf16.mxu0 %vm724_vm1, %v9123_v25 }
 0x328   : > { %3172 = vst.msk [vmem:[#allocation4 + $0x118] sm:$0xf] %vm3154_vm4, %v3093_v56  ;;  %v9146_v56 = vld [vmem:[#allocation4 + $0x180] ss:$16 sps:$4 sm:$0xff]  }
 0x329   : > { %v3091_v30 = vpop.permute.xlu1 %3090 }
 0x32a   : > { %3171 = vst.msk [vmem:[#allocation4 + $0x108] sm:$0xf] %vm3154_vm4, %v3091_v30 }
 0x32b   : > { %v2515_v12 = vpop.permute.xlu0 %2514 }
 0x32c   : > { %v2559_v42 = vrot.slane %v2515_v12, 4  ;;  %v9120_v40 = vld [vmem:[#allocation4 + $0x104] ss:$16 sps:$4 sm:$0xff]  }
 0x32d   : > { %v2513_v57 = vpop.permute.xlu1 %2512  ;;  %4107 = vmatprep.mubr.bf16.mxu1 %v9120_v40 }
 0x32e   : > { %v2592_v32 = vsel %vm2572_vm14, %v2559_v42, %v2515_v12  ;;  %v2558_v34 = vrot.slane %v2513_v57, 4  ;;  %4108 = vmatmul.mubr.bf16.gmra.mxu1 %v9122_v44 }
 0x32f   : > { %2659 = vst.msk [vmem:[#allocation4 + $0x134] sm:$0xff] %vm10591_vm15, %v2592_v32  ;;  %v2840_v38 = vpop.permute.xlu0 %2839 }
 0x330   : > { %v2591_v48 = vsel %vm2572_vm14, %v2558_v34, %v2513_v57  ;;  %2917 = vst.msk [vmem:[#allocation4 + $0x138] sm:$0xf] %vm2897_vm0, %v2840_v38  ;;  %v9147_v57 = vld [vmem:[#allocation4 + $0x18c] ss:$16 sps:$4 sm:$0xff]  }
 0x331   : > { %2658 = vst.msk [vmem:[#allocation4 + $0x124] sm:$0xff] %vm10591_vm15, %v2591_v48  ;;  %v2838_v50 = vpop.permute.xlu1 %2837  ;;  %v9125_v41 = vld [vmem:[#allocation4 + $0x108] ss:$16 sps:$4 sm:$0xff]  }
 0x332   : > { %2916 = vst.msk [vmem:[#allocation4 + $0x128] sm:$0xf] %vm2897_vm0, %v2838_v50  ;;  %4269 = vmatmul.mubr.bf16.gmra.mxu0 %v9125_v41  ;;  %v9152_v41 = vld [vmem:[#allocation4 + $0x1a0] ss:$16 sps:$4 sm:$0xff]  }
 0x333   : > { %v3097_v58 = vpop.permute.xlu0 %3096  ;;  %7869 = vmatprep.mubr.msk.bf16.mxu0 %vm724_vm1, %v9129_v15 }
 0x334   : > { %3174 = vst.msk [vmem:[#allocation4 + $0x138] sm:$0xf] %vm3154_vm4, %v3097_v58 }
 0x335   : > { %v3095_v53 = vpop.permute.xlu1 %3094 }
 0x336   : > { %3173 = vst.msk [vmem:[#allocation4 + $0x128] sm:$0xf] %vm3154_vm4, %v3095_v53 }
 0x337   : > { %v2519_v63 = vpop.permute.xlu0 %2518 }
 0x338   : > { %v2561_v59 = vrot.slane %v2519_v63, 4  ;;  %v9126_v4 = vld [vmem:[#allocation4 + $0x124] ss:$16 sps:$4 sm:$0xff]  }
 0x339   : > { %v2517_v37 = vpop.permute.xlu1 %2516  ;;  %4115 = vmatprep.mubr.bf16.mxu1 %v9126_v4 }
 0x33a   : > { %v2594_v8 = vsel %vm2572_vm14, %v2561_v59, %v2519_v63  ;;  %v2560_v9 = vrot.slane %v2517_v37, 4  ;;  %4116 = vmatmul.mubr.bf16.gmra.mxu1 %v9128_v28  ;;  %v9153_v28 = vld [vmem:[#allocation4 + $0x1ac] ss:$16 sps:$4 sm:$0xff]  }
 0x33b   : > { %2661 = vst.msk [vmem:[#allocation4 + $0x154] sm:$0xff] %vm10591_vm15, %v2594_v8  ;;  %v2844_v5 = vpop.permute.xlu0 %2843 }
 0x33c   : > { %v2593_v54 = vsel %vm2572_vm14, %v2560_v9, %v2517_v37  ;;  %2919 = vst.msk [vmem:[#allocation4 + $0x158] sm:$0xf] %vm2897_vm0, %v2844_v5 }
 0x33d   : > { %2660 = vst.msk [vmem:[#allocation4 + $0x144] sm:$0xff] %vm10591_vm15, %v2593_v54  ;;  %v2842_v45 = vpop.permute.xlu1 %2841  ;;  %v9131_v24 = vld [vmem:[#allocation4 + $0x128] ss:$16 sps:$4 sm:$0xff]  }
 0x33e   : > { %2918 = vst.msk [vmem:[#allocation4 + $0x148] sm:$0xf] %vm2897_vm0, %v2842_v45  ;;  %4277 = vmatmul.mubr.bf16.gmra.mxu0 %v9131_v24  ;;  %v9158_v24 = vld [vmem:[#allocation4 + $0x1c0] ss:$16 sps:$4 sm:$0xff]  }
 0x33f   : > { %v3101_v0 = vpop.permute.xlu0 %3100  ;;  %7870 = vmatprep.mubr.msk.bf16.mxu0 %vm724_vm1, %v9135_v47 }
 0x340   : > { %3176 = vst.msk [vmem:[#allocation4 + $0x158] sm:$0xf] %vm3154_vm4, %v3101_v0 }
 0x341   : > { %v3099_v19 = vpop.permute.xlu1 %3098 }
 0x342   : > { %3175 = vst.msk [vmem:[#allocation4 + $0x148] sm:$0xf] %vm3154_vm4, %v3099_v19 }
 0x343   : > { %v2523_v20 = vpop.permute.xlu0 %2522 }
 0x344   : > { %v2563_v3 = vrot.slane %v2523_v20, 4  ;;  %v9132_v1 = vld [vmem:[#allocation4 + $0x144] ss:$16 sps:$4 sm:$0xff]  }
 0x345   : > { %v2521_v61 = vpop.permute.xlu1 %2520  ;;  %4123 = vmatprep.mubr.bf16.mxu1 %v9132_v1 }
 0x346   : > { %v2596_v10 = vsel %vm2572_vm14, %v2563_v3, %v2523_v20  ;;  %v2562_v2 = vrot.slane %v2521_v61, 4  ;;  %4124 = vmatmul.mubr.bf16.gmra.mxu1 %v9134_v6 }
 0x347   : > { %2663 = vst.msk [vmem:[#allocation4 + $0x174] sm:$0xff] %vm10591_vm15, %v2596_v10  ;;  %v2848_v13 = vpop.permute.xlu0 %2847 }
 0x348   : > { %v2595_v16 = vsel %vm2572_vm14, %v2562_v2, %v2521_v61  ;;  %2921 = vst.msk [vmem:[#allocation4 + $0x178] sm:$0xf] %vm2897_vm0, %v2848_v13  ;;  %v9159_v13 = vld [vmem:[#allocation4 + $0x1cc] ss:$16 sps:$4 sm:$0xff]  }
 0x349   : > { %2662 = vst.msk [vmem:[#allocation4 + $0x164] sm:$0xff] %vm10591_vm15, %v2595_v16  ;;  %v2846_v55 = vpop.permute.xlu1 %2845  ;;  %v9137_v29 = vld [vmem:[#allocation4 + $0x148] ss:$16 sps:$4 sm:$0xff]  }
 0x34a   : > { %2920 = vst.msk [vmem:[#allocation4 + $0x168] sm:$0xf] %vm2897_vm0, %v2846_v55  ;;  %4285 = vmatmul.mubr.bf16.gmra.mxu0 %v9137_v29 }
 0x34b   : > { %v3105_v22 = vpop.permute.xlu0 %3104  ;;  %7871 = vmatprep.mubr.msk.bf16.mxu0 %vm724_vm1, %v9141_v31 }
 0x34c   : > { %3178 = vst.msk [vmem:[#allocation4 + $0x178] sm:$0xf] %vm3154_vm4, %v3105_v22 }
 0x34d   : > { %v3103_v23 = vpop.permute.xlu1 %3102 }
 0x34e   : > { %3177 = vst.msk [vmem:[#allocation4 + $0x168] sm:$0xf] %vm3154_vm4, %v3103_v23 }
 0x34f   : > { %v2527_v60 = vpop.permute.xlu0 %2526 }
 0x350   : > { %v2565_v7 = vrot.slane %v2527_v60, 4  ;;  %v9138_v33 = vld [vmem:[#allocation4 + $0x164] ss:$16 sps:$4 sm:$0xff]  }
 0x351   : > { %v2525_v11 = vpop.permute.xlu1 %2524  ;;  %4131 = vmatprep.mubr.bf16.mxu1 %v9138_v33 }
 0x352   : > { %v2598_v21 = vsel %vm2572_vm14, %v2565_v7, %v2527_v60  ;;  %v2564_v36 = vrot.slane %v2525_v11, 4  ;;  %4132 = vmatmul.mubr.bf16.gmra.mxu1 %v9140_v14  ;;  %v9163_v7 = vld [vmem:[#allocation4 + $0x1e0] ss:$16 sps:$4 sm:$0xff]  }
 0x353   : > { %2665 = vst.msk [vmem:[#allocation4 + $0x194] sm:$0xff] %vm10591_vm15, %v2598_v21  ;;  %v2852_v27 = vpop.permute.xlu0 %2851 }
 0x354   : > { %v2597_v39 = vsel %vm2572_vm14, %v2564_v36, %v2525_v11  ;;  %2923 = vst.msk [vmem:[#allocation4 + $0x198] sm:$0xf] %vm2897_vm0, %v2852_v27 }
 0x355   : > { %2664 = vst.msk [vmem:[#allocation4 + $0x184] sm:$0xff] %vm10591_vm15, %v2597_v39  ;;  %v2850_v17 = vpop.permute.xlu1 %2849  ;;  %v9143_v43 = vld [vmem:[#allocation4 + $0x168] ss:$16 sps:$4 sm:$0xff]   ;;  %v10830_v39 = vld [vmem:[%s11851_s4] ss:$0 sm:$0xff] }
 0x356   : > { %2922 = vst.msk [vmem:[#allocation4 + $0x188] sm:$0xf] %vm2897_vm0, %v2850_v17  ;;  %4293 = vmatmul.mubr.bf16.gmra.mxu0 %v9143_v43  ;;  %v10835_v43 = vld [vmem:[%s11852_s5] ss:$0 sm:$0xff] }
 0x357   : > { %v3109_v18 = vpop.permute.xlu0 %3108  ;;  %7872 = vmatprep.mubr.msk.bf16.mxu0 %vm724_vm1, %v9147_v57 }
 0x358   : > { %3180 = vst.msk [vmem:[#allocation4 + $0x198] sm:$0xf] %vm3154_vm4, %v3109_v18 }
 0x359   : > { %v3107_v46 = vpop.permute.xlu1 %3106 }
 0x35a   : > { %3179 = vst.msk [vmem:[#allocation4 + $0x188] sm:$0xf] %vm3154_vm4, %v3107_v46 }
 0x35b   : > { %v2531_v51 = vpop.permute.xlu0 %2530 }
 0x35c   : > { %v2567_v49 = vrot.slane %v2531_v51, 4  ;;  %v9144_v52 = vld [vmem:[#allocation4 + $0x184] ss:$16 sps:$4 sm:$0xff]  }
 0x35d   : > { %v2529_v35 = vpop.permute.xlu1 %2528  ;;  %4139 = vmatprep.mubr.bf16.mxu1 %v9144_v52 }
 0x35e   : > { %v2600_v30 = vsel %vm2572_vm14, %v2567_v49, %v2531_v51  ;;  %v2566_v12 = vrot.slane %v2529_v35, 4  ;;  %4140 = vmatmul.mubr.bf16.gmra.mxu1 %v9146_v56 }
 0x35f   : > { %2667 = vst.msk [vmem:[#allocation4 + $0x1b4] sm:$0xff] %vm10591_vm15, %v2600_v30  ;;  %v2856_v42 = vpop.permute.xlu0 %2855  ;;  %v4548_v30 = vld [vmem:[#allocation3 + $0x7] sm:$0xff] }
 0x360   : > { %v2599_v40 = vsel %vm2572_vm14, %v2566_v12, %v2529_v35  ;;  %2925 = vst.msk [vmem:[#allocation4 + $0x1b8] sm:$0xf] %vm2897_vm0, %v2856_v42  ;;  %v8518_v42 = vpack.c.bf16 %v4548_v30, %v4548_v30 }
 0x361   : > { %2666 = vst.msk [vmem:[#allocation4 + $0x1a4] sm:$0xff] %vm10591_vm15, %v2599_v40  ;;  %v2854_v44 = vpop.permute.xlu1 %2853  ;;  %v9149_v32 = vld [vmem:[#allocation4 + $0x188] ss:$16 sps:$4 sm:$0xff]  }
 0x362   : > { %2924 = vst.msk [vmem:[#allocation4 + $0x1a8] sm:$0xf] %vm2897_vm0, %v2854_v44  ;;  %4301 = vmatmul.mubr.bf16.gmra.mxu0 %v9149_v32 }
 0x363   : > { %v3113_v34 = vpop.permute.xlu0 %3112  ;;  %7873 = vmatprep.mubr.msk.bf16.mxu0 %vm724_vm1, %v9153_v28 }
 0x364   : > { %3182 = vst.msk [vmem:[#allocation4 + $0x1b8] sm:$0xf] %vm3154_vm4, %v3113_v34 }
 0x365   : > { %v3111_v38 = vpop.permute.xlu1 %3110 }
 0x366   : > { %3181 = vst.msk [vmem:[#allocation4 + $0x1a8] sm:$0xf] %vm3154_vm4, %v3111_v38 }
 0x367   : > { %v2535_v48 = vpop.permute.xlu0 %2534 }
 0x368   : > { %v2569_v50 = vrot.slane %v2535_v48, 4  ;;  %v9150_v25 = vld [vmem:[#allocation4 + $0x1a4] ss:$16 sps:$4 sm:$0xff]  }
 0x369   : > { %v2533_v58 = vpop.permute.xlu1 %2532  ;;  %4147 = vmatprep.mubr.bf16.mxu1 %v9150_v25 }
 0x36a   : > { %v2568_v53 = vrot.slane %v2533_v58, 4  ;;  %4148 = vmatmul.mubr.bf16.gmra.mxu1 %v9152_v41  ;;  %v2602_v59 = vsel %vm2572_vm14, %v2569_v50, %v2535_v48 }
 0x36b   : > { %v2278_v63 = vpop.permute.xlu0 %2277 }
 0x36c   : > { %2345 = vst.msk [vmem:[#allocation4 + $0x1d4] sm:$0xf] %vm2315_vm11, %v2278_v63  ;;  %v2601_v8 = vsel %vm2572_vm14, %v2568_v53, %v2533_v58  ;;  %v4549_v58 = vld [vmem:[#allocation3 + $0xf] sm:$0xff] }
 0x36d   : > { %2669 = vst.msk [vmem:[#allocation4 + $0x1d4] sm:$0xff] %vm10591_vm15, %v2602_v59  ;;  %v2276_v4 = vpop.permute.xlu1 %2275  ;;  %v9155_v37 = vld [vmem:[#allocation4 + $0x1a8] ss:$16 sps:$4 sm:$0xff]   ;;  %v8519_v63 = vpack.c.bf16 %v4549_v58, %v4549_v58 }
 0x36e   : > { %2344 = vst.msk [vmem:[#allocation4 + $0x1c4] sm:$0xf] %vm2315_vm11, %v2276_v4  ;;  %4309 = vmatmul.mubr.bf16.gmra.mxu0 %v9155_v37 }
 0x36f   : > { %2668 = vst.msk [vmem:[#allocation4 + $0x1c4] sm:$0xff] %vm10591_vm15, %v2601_v8  ;;  %v2860_v9 = vpop.permute.xlu0 %2859  ;;  %7874 = vmatprep.mubr.msk.bf16.mxu0 %vm724_vm1, %v9159_v13 }
 0x370   : > { %2927 = vst.msk [vmem:[#allocation4 + $0x1d8] sm:$0xf] %vm2897_vm0, %v2860_v9 }
 0x371   : > { %v2858_v5 = vpop.permute.xlu1 %2857 }
 0x372   : > { %2926 = vst.msk [vmem:[#allocation4 + $0x1c8] sm:$0xf] %vm2897_vm0, %v2858_v5 }
 0x373   : > { %v3117_v54 = vpop.permute.xlu0 %3116 }
 0x374   : > { %3184 = vst.msk [vmem:[#allocation4 + $0x1d8] sm:$0xf] %vm3154_vm4, %v3117_v54 }
 0x375   : > { %v3115_v45 = vpop.permute.xlu1 %3114 }
 0x376   : > { %3183 = vst.msk [vmem:[#allocation4 + $0x1c8] sm:$0xf] %vm3154_vm4, %v3115_v45  ;;  %v9156_v15 = vld [vmem:[#allocation4 + $0x1c4] ss:$16 sps:$4 sm:$0xff]  }
 0x377   : > { %v2539_v0 = vpop.permute.xlu0 %2538  ;;  %4155 = vmatprep.mubr.bf16.mxu1 %v9156_v15 }
 0x378   : > { %v2571_v19 = vrot.slane %v2539_v0, 4  ;;  %4156 = vmatmul.mubr.bf16.gmra.mxu1 %v9158_v24 }
 0x379   : > { %v2537_v20 = vpop.permute.xlu1 %2536 }
 0x37a   : > { %v2570_v3 = vrot.slane %v2537_v20, 4  ;;  %v2604_v6 = vsel %vm2572_vm14, %v2571_v19, %v2539_v0 }
 0x37b   : > { %v2282_v1 = vpop.permute.xlu0 %2281  ;;  %v3438_v2 = vld [vmem:[#allocation4 + $0x1d8] sm:$0xff] }
 0x37c   : > { %2347 = vst.msk [vmem:[#allocation4 + $0x1f4] sm:$0xf] %vm2315_vm11, %v2282_v1  ;;  %v2603_v16 = vsel %vm2572_vm14, %v2570_v3, %v2537_v20 }
 0x37d   : > { %2671 = vst.msk [vmem:[#allocation4 + $0x1f4] sm:$0xff] %vm10591_vm15, %v2604_v6  ;;  %v2280_v61 = vpop.permute.xlu1 %2279  ;;  %v3436_v10 = vld [vmem:[#allocation4 + $0x1c8] sm:$0xff] }
 0x37e   : > { %2346 = vst.msk [vmem:[#allocation4 + $0x1e4] sm:$0xf] %vm2315_vm11, %v2280_v61  ;;  %v7827_v55 = vcombine.low %v3436_v10, %v3438_v2 }
 0x37f   : > { %2670 = vst.msk [vmem:[#allocation4 + $0x1e4] sm:$0xff] %vm10591_vm15, %v2603_v16  ;;  %v2864_v47 = vpop.permute.xlu0 %2863 }
 0x380   : > { %2929 = vst.msk [vmem:[#allocation4 + $0x1f8] sm:$0xf] %vm2897_vm0, %v2864_v47  ;;  %4317 = vmatmul.mubr.bf16.gmra.mxu0 %v7827_v55 }
 0x381   : > { %v2862_v29 = vpop.permute.xlu1 %2861  ;;  %7875 = vmatprep.mubr.msk.bf16.mxu0 %vm724_vm1, %v9164_v26  ;;  %vm4708_vm1 = vcmask 125952  }
 0x382   : > { %2928 = vst.msk [vmem:[#allocation4 + $0x1e8] sm:$0xf] %vm2897_vm0, %v2862_v29 }
 0x383   : > { %v3121_v22 = vpop.permute.xlu0 %3120  ;;  %4709 = vst.msk [vmem:[#allocation5] sm:$0xf] %vm4708_vm1, %v8518_v42  ;;  %4710 = vst.msk [vmem:[#allocation5 + $0x8] sm:$0xf] %vm4708_vm1, %v8519_v63 }
 0x384   : > { %3186 = vst.msk [vmem:[#allocation4 + $0x1f8] sm:$0xf] %vm3154_vm4, %v3121_v22 }
 0x385   : > { %v3119_v23 = vpop.permute.xlu1 %3118 }
 0x386   : > { %3185 = vst.msk [vmem:[#allocation4 + $0x1e8] sm:$0xf] %vm3154_vm4, %v3119_v23  ;;  %v9161_v60 = vld [vmem:[#allocation4 + $0x1e4] ss:$16 sps:$4 sm:$0xff]  }
 0x387   : > { %4163 = vmatprep.mubr.bf16.mxu1 %v9161_v60  ;;  %v4872_v32 = vpop.permute.xlu0 %4871 }
 0x388   : > { %4164 = vmatmul.mubr.bf16.gmra.mxu1 %v9163_v7  ;;  %4967 = vst.msk [vmem:[#allocation5 + $0x8] sm:$0xf] %vm4965_vm3, %v4872_v32 }
 0x389   : > { %v4870_v49 = vpop.permute.xlu1 %4869 }
 0x38a   : > { %4966 = vst.msk [vmem:[#allocation5] sm:$0xf] %vm4965_vm3, %v4870_v49 }
 0x38b   : > { %v5129_v9 = vpop.permute.xlu0 %5128 }
 0x38c   : > { %5224 = vst.msk [vmem:[#allocation5 + $0x8] sm:$0xf] %vm5222_vm5, %v5129_v9 }
 0x38d   : > { %v9166_v33 = vld [vmem:[#allocation4 + $0x1e8] ss:$16 sps:$4 sm:$0xff]   ;;  %v5127_v48 = vpop.permute.xlu1 %5126 }
 0x38e   : > { %v8858_v14 = vpop.f32.mrf.mxu1  ;;  %4325 = vmatmul.mubr.bf16.gmra.mxu0 %v9166_v33  ;;  %5223 = vst.msk [vmem:[#allocation5] sm:$0xf] %vm5222_vm5, %v5127_v48 }
 0x390   : > { %v8859_v11 = vpop.f32.mrf.mxu1 }
 0x391   : > { %v8860_v21 = vadd.f32 %v8859_v11, %v8858_v14 }
 0x392   : > { %v8861_v36 = vpop.f32.mrf.mxu1  ;;  %v4206_v27 = vpop.f32.mrf.mxu0 }
 0x393   : > { %v4207_v17 = vadd.f32 %v8860_v21, %v4206_v27 }
 0x394   : > { %v8862_v31 = vpop.f32.mrf.mxu1  ;;  %v4208_v46 = vpop.f32.mrf.mxu0 }
 0x395   : > { %v8863_v18 = vadd.f32 %v8862_v31, %v8861_v36  ;;  %v4340_v51 = vmul.f32 %v10830_v39, %v4207_v17 }
 0x396   : > { %v4209_v52 = vpop.f32.mrf.mxu0 }
 0x397   : > { %v4379_v56 = vadd.f32 %v10835_v43, %v4340_v51  ;;  %v4210_v35 = vadd.f32 %v8863_v18, %v4209_v52 }
 0x398   : > { %v4211_v12 = vpop.f32.mrf.mxu0 }
 0x399   : > { %v4411_v40 = vmax.f32 %v4379_v56, 0.0  ;;  %v4341_v44 = vmul.f32 %v10830_v39, %v4210_v35 }
 0x39a   : > { %v8864_v57 = vpop.f32.mrf.mxu1 }
 0x39b   : > { %4516 = vst.msk [vmem:[#allocation3 + $0x28] sm:$0xff] %vm866_vm2, %v4411_v40  ;;  %v4380_v34 = vadd.f32 %v10835_v43, %v4341_v44 }
 0x39c   : > { %v8865_v38 = vpop.f32.mrf.mxu1 }
 0x39d   : > { %v8866_v50 = vadd.f32 %v8865_v38, %v8864_v57  ;;  %v4412_v25 = vmax.f32 %v4380_v34, 0.0 }
 0x39e   : > { %v8867_v41 = vpop.f32.mrf.mxu1  ;;  %v4214_v53 = vpop.f32.mrf.mxu0 }
 0x39f   : > { %4517 = vst.msk [vmem:[#allocation3 + $0x30] sm:$0xff] %vm866_vm2, %v4412_v25  ;;  %v4215_v59 = vadd.f32 %v8866_v50, %v4214_v53 }
 0x3a0   : > { %v8868_v4 = vpop.f32.mrf.mxu1  ;;  %v4216_v37 = vpop.f32.mrf.mxu0 }
 0x3a1   : > { %v8869_v28 = vadd.f32 %v8868_v4, %v8867_v41  ;;  %v4342_v8 = vmul.f32 %v10830_v39, %v4215_v59 }
 0x3a2   : > { %v4217_v5 = vpop.f32.mrf.mxu0  ;;  %v4743_v54 = vld [vmem:[#allocation3 + $0x28] sm:$0xff] }
 0x3a3   : > { %v5255_v45 = vld [vmem:[#allocation3 + $0x27] sm:$0xff]  ;;  %v4381_v15 = vadd.f32 %v10835_v43, %v4342_v8  ;;  %v4218_v24 = vadd.f32 %v8869_v28, %v4217_v5  ;;  %v8552_v0 = vpack.c.bf16 %v4743_v54, %v4743_v54 }
 0x3a4   : > { %v8614_v19 = vpack.c.bf16 %v5255_v45, %v5255_v45  ;;  %v4219_v20 = vpop.f32.mrf.mxu0 }
 0x3a5   : > { %v4413_v3 = vmax.f32 %v4381_v15, 0.0  ;;  %v4343_v1 = vmul.f32 %v10830_v39, %v4218_v24  ;;  %4873 = vrot.lane.b32.xlu1 %v8552_v0, %s9224_s27 }
 0x3a6   : > { %v8870_v6 = vpop.f32.mrf.mxu1  ;;  %4711 = vst.msk [vmem:[#allocation5 + $0x10] sm:$0xf] %vm4708_vm1, %v8614_v19  ;;  %v4744_v61 = vld [vmem:[#allocation3 + $0x30] sm:$0xff] }
 0x3a7   : > { %4518 = vst.msk [vmem:[#allocation3 + $0x48] sm:$0xff] %vm866_vm2, %v4413_v3  ;;  %v4382_v10 = vadd.f32 %v10835_v43, %v4343_v1  ;;  %v8553_v13 = vpack.c.bf16 %v4744_v61, %v4744_v61  ;;  %v5256_v16 = vld [vmem:[#allocation3 + $0x2f] sm:$0xff] }
 0x3a8   : > { %v8871_v2 = vpop.f32.mrf.mxu1  ;;  %v5001_v47 = vld [vmem:[#allocation3 + $0x31] sm:$0xff]  ;;  %v5000_v29 = vld [vmem:[#allocation3 + $0x29] sm:$0xff]  ;;  %v8615_v22 = vpack.c.bf16 %v5256_v16, %v5256_v16 }
 0x3a9   : > { %v8872_v55 = vadd.f32 %v8871_v2, %v8870_v6  ;;  %v4414_v23 = vmax.f32 %v4382_v10, 0.0  ;;  %4875 = vrot.lane.b32.xlu0 %v8553_v13, %s9224_s27  ;;  %5383 = vrot.lane.b32.xlu1 %v8614_v19, %s9222_s25  ;;  %v8585_v14 = vpack.c.bf16 %v5001_v47, %v5001_v47  ;;  %v8584_v11 = vpack.c.bf16 %v5000_v29, %v5000_v29 }
 0x3aa   : > { %v8873_v60 = vpop.f32.mrf.mxu1  ;;  %v4222_v7 = vpop.f32.mrf.mxu0  ;;  %4712 = vst.msk [vmem:[#allocation5 + $0x18] sm:$0xf] %vm4708_vm1, %v8615_v22 }
 0x3ab   : > { %4519 = vst.msk [vmem:[#allocation3 + $0x50] sm:$0xff] %vm866_vm2, %v4414_v23  ;;  %v4223_v26 = vadd.f32 %v8872_v55, %v4222_v7 }
 0x3ac   : > { %v8874_v33 = vpop.f32.mrf.mxu1  ;;  %v4224_v36 = vpop.f32.mrf.mxu0 }
 0x3ad   : > { %v8875_v21 = vadd.f32 %v8874_v33, %v8873_v60  ;;  %v4344_v27 = vmul.f32 %v10830_v39, %v4223_v26  ;;  %5132 = vrot.lane.b32.xlu0 %v8585_v14, %s9228_s20  ;;  %5130 = vrot.lane.b32.xlu1 %v8584_v11, %s9228_s20 }
 0x3ae   : > { %v4225_v17 = vpop.f32.mrf.mxu0  ;;  %v4745_v31 = vld [vmem:[#allocation3 + $0x48] sm:$0xff] }
 0x3af   : > { %v5257_v18 = vld [vmem:[#allocation3 + $0x47] sm:$0xff]  ;;  %v4383_v46 = vadd.f32 %v10835_v43, %v4344_v27  ;;  %v4226_v51 = vadd.f32 %v8875_v21, %v4225_v17  ;;  %v8554_v49 = vpack.c.bf16 %v4745_v31, %v4745_v31 }
 0x3b0   : > { %v8616_v52 = vpack.c.bf16 %v5257_v18, %v5257_v18  ;;  %v4227_v56 = vpop.f32.mrf.mxu0 }
 0x3b1   : > { %v4415_v35 = vmax.f32 %v4383_v46, 0.0  ;;  %v4345_v30 = vmul.f32 %v10830_v39, %v4226_v51  ;;  %5385 = vrot.lane.b32.xlu0 %v8615_v22, %s9222_s25  ;;  %4877 = vrot.lane.b32.xlu1 %v8554_v49, %s9224_s27 }
 0x3b2   : > { %v8876_v12 = vpop.f32.mrf.mxu1  ;;  %4713 = vst.msk [vmem:[#allocation5 + $0x20] sm:$0xf] %vm4708_vm1, %v8616_v52  ;;  %v6540_v42 = vld [vmem:[#allocation3 + $0x49] sm:$0xff]  ;;  %v5003_v50 = vld [vmem:[#allocation3 + $0x51] sm:$0xff] }
 0x3b3   : > { %v4746_v40 = vld [vmem:[#allocation3 + $0x50] sm:$0xff]  ;;  %v8774_v44 = vpack.c.bf16 %v6540_v42, %v6540_v42  ;;  %4520 = vst.msk [vmem:[#allocation3 + $0x68] sm:$0xff] %vm866_vm2, %v4415_v35  ;;  %v4384_v57 = vadd.f32 %v10835_v43, %v4345_v30  ;;  %v8587_v37 = vpack.c.bf16 %v5003_v50, %v5003_v50 }
 0x3b4   : > { %v8877_v32 = vpop.f32.mrf.mxu1  ;;  %v8555_v34 = vpack.c.bf16 %v4746_v40, %v4746_v40  ;;  %v4553_v38 = vld [vmem:[#allocation3 + $0x4f] sm:$0xff] }
 0x3b5   : > { %v8878_v48 = vadd.f32 %v8877_v32, %v8876_v12  ;;  %v10870_v25 = vpack.c.bf16 %v4553_v38, %v4553_v38  ;;  %v5772_v41 = vld [vmem:[#allocation3 + $0x51] sm:$0xff]  ;;  %v4416_v58 = vmax.f32 %v4384_v57, 0.0  ;;  %5387 = vrot.lane.b32.xlu1 %v8616_v52, %s9222_s25  ;;  %6700 = vst.msk [vmem:[#allocation5 + $0x4] sm:$0xf] %vm4708_vm1, %v8774_v44 }
 0x3b6   : > { %4879 = vrot.lane.b32.xlu0 %v8555_v34, %s9224_s27  ;;  %v8879_v53 = vpop.f32.mrf.mxu1  ;;  %v10875_v63 = vpack.c.bf16 %v5772_v41, %v5772_v41  ;;  %v4230_v59 = vpop.f32.mrf.mxu0 }
 0x3b7   : > { %4714 = vst.msk [vmem:[#allocation5 + $0x28] sm:$0xf] %vm4708_vm1, %v10870_v25  ;;  %v4231_v4 = vadd.f32 %v8878_v48, %v4230_v59 }
 0x3b8   : > { %4521 = vst.msk [vmem:[#allocation3 + $0x70] sm:$0xff] %vm866_vm2, %v4416_v58  ;;  %v8880_v28 = vpop.f32.mrf.mxu1  ;;  %v4232_v9 = vpop.f32.mrf.mxu0 }
 0x3b9   : > { %6701 = vst.msk [vmem:[#allocation5 + $0xc] sm:$0xf] %vm4708_vm1, %v10875_v63  ;;  %v8881_v8 = vadd.f32 %v8880_v28, %v8879_v53  ;;  %v4346_v5 = vmul.f32 %v10830_v39, %v4231_v4  ;;  %5134 = vrot.lane.b32.xlu1 %v8774_v44, %s9228_s20 }
 0x3ba   : > { %5136 = vrot.lane.b32.xlu0 %v8587_v37, %s9228_s20  ;;  %v4233_v54 = vpop.f32.mrf.mxu0  ;;  %v4747_v45 = vld [vmem:[#allocation3 + $0x68] sm:$0xff] }
 0x3bb   : > { %v4554_v15 = vld [vmem:[#allocation3 + $0x67] sm:$0xff]  ;;  %v4385_v24 = vadd.f32 %v10835_v43, %v4346_v5  ;;  %v4234_v0 = vadd.f32 %v8881_v8, %v4233_v54  ;;  %v8556_v19 = vpack.c.bf16 %v4747_v45, %v4747_v45 }
 0x3bc   : > { %v8524_v20 = vpack.c.bf16 %v4554_v15, %v4554_v15  ;;  %v4235_v3 = vpop.f32.mrf.mxu0 }
 0x3bd   : > { %v4417_v1 = vmax.f32 %v4385_v24, 0.0  ;;  %v4347_v6 = vmul.f32 %v10830_v39, %v4234_v0  ;;  %4881 = vrot.lane.b32.xlu1 %v8556_v19, %s9224_s27 }
 0x3be   : > { %v8882_v61 = vpop.f32.mrf.mxu1  ;;  %4715 = vst.msk [vmem:[#allocation5 + $0x30] sm:$0xf] %vm4708_vm1, %v8524_v20 }
 0x3bf   : > { %v6542_v10 = vld [vmem:[#allocation3 + $0x69] sm:$0xff]  ;;  %4522 = vst.msk [vmem:[#allocation3 + $0x88] sm:$0xff] %vm866_vm2, %v4417_v1  ;;  %v4386_v16 = vadd.f32 %v10835_v43, %v4347_v6  ;;  %v5005_v23 = vld [vmem:[#allocation3 + $0x71] sm:$0xff] }
 0x3c0   : > { %v4748_v2 = vld [vmem:[#allocation3 + $0x70] sm:$0xff]  ;;  %v8776_v13 = vpack.c.bf16 %v6542_v10, %v6542_v10  ;;  %v8883_v55 = vpop.f32.mrf.mxu1  ;;  %v8589_v27 = vpack.c.bf16 %v5005_v23, %v5005_v23 }
 0x3c1   : > { %v8557_v47 = vpack.c.bf16 %v4748_v2, %v4748_v2  ;;  %v4555_v29 = vld [vmem:[#allocation3 + $0x6f] sm:$0xff]  ;;  %v8884_v22 = vadd.f32 %v8883_v55, %v8882_v61  ;;  %v4418_v26 = vmax.f32 %v4386_v16, 0.0 }
 0x3c2   : > { %v8525_v60 = vpack.c.bf16 %v4555_v29, %v4555_v29  ;;  %v5774_v7 = vld [vmem:[#allocation3 + $0x71] sm:$0xff]  ;;  %5138 = vrot.lane.b32.xlu1 %v8776_v13, %s9228_s20  ;;  %v8885_v33 = vpop.f32.mrf.mxu1  ;;  %6702 = vst.msk [vmem:[#allocation5 + $0x14] sm:$0xf] %vm4708_vm1, %v8776_v13  ;;  %v4238_v11 = vpop.f32.mrf.mxu0 }
 0x3c3   : > { %4883 = vrot.lane.b32.xlu0 %v8557_v47, %s9224_s27  ;;  %v10894_v14 = vpack.c.bf16 %v5774_v7, %v5774_v7  ;;  %4523 = vst.msk [vmem:[#allocation3 + $0x90] sm:$0xff] %vm866_vm2, %v4418_v26  ;;  %v4239_v21 = vadd.f32 %v8884_v22, %v4238_v11 }
 0x3c4   : > { %4716 = vst.msk [vmem:[#allocation5 + $0x38] sm:$0xf] %vm4708_vm1, %v8525_v60  ;;  %v8886_v36 = vpop.f32.mrf.mxu1  ;;  %v4240_v31 = vpop.f32.mrf.mxu0 }
 0x3c5   : > { %6703 = vst.msk [vmem:[#allocation5 + $0x1c] sm:$0xf] %vm4708_vm1, %v10894_v14  ;;  %v8887_v17 = vadd.f32 %v8886_v36, %v8885_v33  ;;  %v4348_v18 = vmul.f32 %v10830_v39, %v4239_v21 }
 0x3c6   : > { %v4241_v46 = vpop.f32.mrf.mxu0  ;;  %v4749_v51 = vld [vmem:[#allocation3 + $0x88] sm:$0xff] }
 0x3c7   : > { %5140 = vrot.lane.b32.xlu0 %v8589_v27, %s9228_s20  ;;  %v4556_v49 = vld [vmem:[#allocation3 + $0x87] sm:$0xff]  ;;  %v4387_v52 = vadd.f32 %v10835_v43, %v4348_v18  ;;  %v4242_v56 = vadd.f32 %v8887_v17, %v4241_v46  ;;  %v8558_v35 = vpack.c.bf16 %v4749_v51, %v4749_v51  ;;  %v9167_v46 = vld [vmem:[%s11853_s6 + $0x38] sm:$0xff]  }
 0x3c8   : > { %v8526_v30 = vpack.c.bf16 %v4556_v49, %v4556_v49  ;;  %v4243_v12 = vpop.f32.mrf.mxu0  ;;  %9019 = vmatpush1.bf16.msra.mxu1 %v9167_v46  ;;  %7029 = vmatpush1.bf16.msra.mxu0 %v9167_v46  ;;  %v9172_v46 = vld [vmem:[%s11853_s6 + $0x10] sm:$0xff]  }
 0x3c9   : > { %v4419_v42 = vmax.f32 %v4387_v52, 0.0  ;;  %v4349_v40 = vmul.f32 %v10830_v39, %v4242_v56  ;;  %4885 = vrot.lane.b32.xlu1 %v8558_v35, %s9224_s27  ;;  %9011 = vmatprep.subr.bf16.mxu1 %v9226_v62 }
 0x3ca   : > { %v8888_v44 = vpop.f32.mrf.mxu1  ;;  %4717 = vst.msk [vmem:[#allocation5 + $0x40] sm:$0xf] %vm4708_vm1, %v8526_v30  ;;  %v6544_v57 = vld [vmem:[#allocation3 + $0x89] sm:$0xff]  ;;  %v5007_v53 = vld [vmem:[#allocation3 + $0x91] sm:$0xff]  ;;  %7030 = vmatprep.subr.bf16.mxu0 %v9226_v62 }
 0x3cb   : > { %v4750_v32 = vld [vmem:[#allocation3 + $0x90] sm:$0xff]  ;;  %v8778_v34 = vpack.c.bf16 %v6544_v57, %v6544_v57  ;;  %4524 = vst.msk [vmem:[#allocation3 + $0xa8] sm:$0xff] %vm866_vm2, %v4419_v42  ;;  %v4388_v38 = vadd.f32 %v10835_v43, %v4349_v40  ;;  %v8591_v45 = vpack.c.bf16 %v5007_v53, %v5007_v53 }
 0x3cc   : > { %v8889_v48 = vpop.f32.mrf.mxu1  ;;  %v8559_v50 = vpack.c.bf16 %v4750_v32, %v4750_v32  ;;  %v4557_v41 = vld [vmem:[#allocation3 + $0x8f] sm:$0xff] }
 0x3cd   : > { %v8890_v58 = vadd.f32 %v8889_v48, %v8888_v44  ;;  %v8527_v59 = vpack.c.bf16 %v4557_v41, %v4557_v41  ;;  %v5776_v4 = vld [vmem:[#allocation3 + $0x91] sm:$0xff]  ;;  %v4420_v28 = vmax.f32 %v4388_v38, 0.0  ;;  %5142 = vrot.lane.b32.xlu1 %v8778_v34, %s9228_s20  ;;  %6704 = vst.msk [vmem:[#allocation5 + $0x24] sm:$0xf] %vm4708_vm1, %v8778_v34 }
 0x3ce   : > { %4887 = vrot.lane.b32.xlu0 %v8559_v50, %s9224_s27  ;;  %v8891_v37 = vpop.f32.mrf.mxu1  ;;  %v10911_v8 = vpack.c.bf16 %v5776_v4, %v5776_v4  ;;  %v4246_v9 = vpop.f32.mrf.mxu0  ;;  %v9168_v44 = vld [vmem:[%s11853_s6 + $0x30] sm:$0xff]  }
 0x3cf   : > { %4718 = vst.msk [vmem:[#allocation5 + $0x48] sm:$0xf] %vm4708_vm1, %v8527_v59  ;;  %v4247_v5 = vadd.f32 %v8890_v58, %v4246_v9  ;;  %9020 = vmatpush1.bf16.msra.mxu1 %v9168_v44  ;;  %7031 = vmatpush1.bf16.msra.mxu0 %v9168_v44  ;;  %v9173_v44 = vld [vmem:[%s11853_s6 + $0x8] sm:$0xff]  }
 0x3d0   : > { %4525 = vst.msk [vmem:[#allocation3 + $0xb0] sm:$0xff] %vm866_vm2, %v4420_v28  ;;  %v8892_v54 = vpop.f32.mrf.mxu1  ;;  %v4248_v24 = vpop.f32.mrf.mxu0  ;;  %9012 = vmatprep.subr.bf16.mxu1 %v9226_v62  ;;  %7032 = vmatprep.subr.bf16.mxu0 %v9226_v62 }
 0x3d1   : > { %6705 = vst.msk [vmem:[#allocation5 + $0x2c] sm:$0xf] %vm4708_vm1, %v10911_v8  ;;  %v8893_v15 = vadd.f32 %v8892_v54, %v8891_v37  ;;  %v4350_v0 = vmul.f32 %v10830_v39, %v4247_v5  ;;  %v9169_v5 = vld [vmem:[%s11853_s6 + $0x28] sm:$0xff]  }
 0x3d2   : > { %5144 = vrot.lane.b32.xlu0 %v8591_v45, %s9228_s20  ;;  %v4249_v19 = vpop.f32.mrf.mxu0  ;;  %v4751_v20 = vld [vmem:[#allocation3 + $0xa8] sm:$0xff] }
 0x3d3   : > { %v4558_v3 = vld [vmem:[#allocation3 + $0xa7] sm:$0xff]  ;;  %v4389_v1 = vadd.f32 %v10835_v43, %v4350_v0  ;;  %v4250_v6 = vadd.f32 %v8893_v15, %v4249_v19  ;;  %v8560_v61 = vpack.c.bf16 %v4751_v20, %v4751_v20  ;;  %9021 = vmatpush1.bf16.msra.mxu1 %v9169_v5  ;;  %7033 = vmatpush1.bf16.msra.mxu0 %v9169_v5 }
 0x3d4   : > { %v8528_v10 = vpack.c.bf16 %v4558_v3, %v4558_v3  ;;  %v4251_v2 = vpop.f32.mrf.mxu0  ;;  %v9170_v3 = vld [vmem:[%s11853_s6 + $0x20] sm:$0xff]   ;;  %9013 = vmatprep.subr.bf16.mxu1 %v9226_v62  ;;  %7034 = vmatprep.subr.bf16.mxu0 %v9226_v62 }
 0x3d5   : > { %v4421_v13 = vmax.f32 %v4389_v1, 0.0  ;;  %v4351_v16 = vmul.f32 %v10830_v39, %v4250_v6  ;;  %4889 = vrot.lane.b32.xlu1 %v8560_v61, %s9224_s27 }
 0x3d6   : > { %v8894_v55 = vpop.f32.mrf.mxu1  ;;  %4719 = vst.msk [vmem:[#allocation5 + $0x50] sm:$0xf] %vm4708_vm1, %v8528_v10 }
 0x3d7   : > { %v6546_v47 = vld [vmem:[#allocation3 + $0xa9] sm:$0xff]  ;;  %4526 = vst.msk [vmem:[#allocation3 + $0xc8] sm:$0xff] %vm866_vm2, %v4421_v13  ;;  %v4390_v23 = vadd.f32 %v10835_v43, %v4351_v16  ;;  %v5009_v11 = vld [vmem:[#allocation3 + $0xb1] sm:$0xff]  ;;  %9022 = vmatpush1.bf16.msra.mxu1 %v9170_v3  ;;  %7035 = vmatpush1.bf16.msra.mxu0 %v9170_v3 }
 0x3d8   : > { %v4752_v29 = vld [vmem:[#allocation3 + $0xb0] sm:$0xff]  ;;  %v8780_v22 = vpack.c.bf16 %v6546_v47, %v6546_v47  ;;  %v8895_v60 = vpop.f32.mrf.mxu1  ;;  %v8593_v52 = vpack.c.bf16 %v5009_v11, %v5009_v11  ;;  %9014 = vmatprep.subr.bf16.mxu1 %v9226_v62  ;;  %7036 = vmatprep.subr.bf16.mxu0 %v9226_v62 }
 0x3d9   : > { %v8561_v7 = vpack.c.bf16 %v4752_v29, %v4752_v29  ;;  %v4559_v26 = vld [vmem:[#allocation3 + $0xaf] sm:$0xff]  ;;  %v8896_v33 = vadd.f32 %v8895_v60, %v8894_v55  ;;  %v4422_v27 = vmax.f32 %v4390_v23, 0.0  ;;  %v9171_v29 = vld [vmem:[%s11853_s6 + $0x18] sm:$0xff]  }
 0x3da   : > { %v8529_v21 = vpack.c.bf16 %v4559_v26, %v4559_v26  ;;  %v5778_v36 = vld [vmem:[#allocation3 + $0xb1] sm:$0xff]  ;;  %5146 = vrot.lane.b32.xlu1 %v8780_v22, %s9228_s20  ;;  %v8897_v17 = vpop.f32.mrf.mxu1  ;;  %6706 = vst.msk [vmem:[#allocation5 + $0x34] sm:$0xf] %vm4708_vm1, %v8780_v22  ;;  %v4254_v18 = vpop.f32.mrf.mxu0 }
 0x3db   : > { %4891 = vrot.lane.b32.xlu0 %v8561_v7, %s9224_s27  ;;  %v10928_v31 = vpack.c.bf16 %v5778_v36, %v5778_v36  ;;  %4527 = vst.msk [vmem:[#allocation3 + $0xd0] sm:$0xff] %vm866_vm2, %v4422_v27  ;;  %v4255_v51 = vadd.f32 %v8896_v33, %v4254_v18  ;;  %9023 = vmatpush1.bf16.msra.mxu1 %v9171_v29 }
 0x3dc   : > { %4720 = vst.msk [vmem:[#allocation5 + $0x58] sm:$0xf] %vm4708_vm1, %v8529_v21  ;;  %v8898_v49 = vpop.f32.mrf.mxu1  ;;  %v4256_v35 = vpop.f32.mrf.mxu0  ;;  %7037 = vmatpush1.bf16.msra.mxu0 %v9171_v29  ;;  %9015 = vmatprep.subr.bf16.mxu1 %v9226_v62 }
 0x3dd   : > { %6707 = vst.msk [vmem:[#allocation5 + $0x3c] sm:$0xf] %vm4708_vm1, %v10928_v31  ;;  %v8899_v56 = vadd.f32 %v8898_v49, %v8897_v17  ;;  %v4352_v30 = vmul.f32 %v10830_v39, %v4255_v51  ;;  %7038 = vmatprep.subr.bf16.mxu0 %v9226_v62 }
 0x3de   : > { %v4257_v12 = vpop.f32.mrf.mxu0  ;;  %v5265_v42 = vld [vmem:[#allocation3 + $0xc7] sm:$0xff] }
 0x3df   : > { %5148 = vrot.lane.b32.xlu0 %v8593_v52, %s9228_s20  ;;  %v4753_v40 = vld [vmem:[#allocation3 + $0xc8] sm:$0xff]  ;;  %v4391_v57 = vadd.f32 %v10835_v43, %v4352_v30  ;;  %v4258_v32 = vadd.f32 %v8899_v56, %v4257_v12  ;;  %v8624_v34 = vpack.c.bf16 %v5265_v42, %v5265_v42  ;;  %9024 = vmatpush1.bf16.msra.mxu1 %v9172_v46 }
 0x3e0   : > { %v8562_v38 = vpack.c.bf16 %v4753_v40, %v4753_v40  ;;  %v4259_v48 = vpop.f32.mrf.mxu0  ;;  %7039 = vmatpush1.bf16.msra.mxu0 %v9172_v46  ;;  %9016 = vmatprep.subr.bf16.mxu1 %v9226_v62 }
 0x3e1   : > { %v4423_v50 = vmax.f32 %v4391_v57, 0.0  ;;  %v4353_v41 = vmul.f32 %v10830_v39, %v4258_v32  ;;  %4721 = vst.msk [vmem:[#allocation5 + $0x60] sm:$0xf] %vm4708_vm1, %v8624_v34  ;;  %7040 = vmatprep.subr.bf16.mxu0 %v9226_v62 }
 0x3e2   : > { %4893 = vrot.lane.b32.xlu1 %v8562_v38, %s9224_s27  ;;  %v8900_v58 = vpop.f32.mrf.mxu1  ;;  %v6548_v53 = vld [vmem:[#allocation3 + $0xc9] sm:$0xff]  ;;  %v6549_v15 = vld [vmem:[#allocation3 + $0xd1] sm:$0xff] }
 0x3e3   : > { %5403 = vrot.lane.b32.xlu0 %v8624_v34, %s9222_s25  ;;  %v5266_v59 = vld [vmem:[#allocation3 + $0xcf] sm:$0xff]  ;;  %v10951_v4 = vpack.c.bf16 %v6548_v53, %v6548_v53  ;;  %4528 = vst.msk [vmem:[#allocation3 + $0xe8] sm:$0xff] %vm866_vm2, %v4423_v50  ;;  %v4392_v28 = vadd.f32 %v10835_v43, %v4353_v41  ;;  %v8783_v19 = vpack.c.bf16 %v6549_v15, %v6549_v15  ;;  %v9174_v53 = vld [vmem:[%s11853_s6] sm:$0xff]  }
 0x3e4   : > { %v8901_v37 = vpop.f32.mrf.mxu1  ;;  %v8625_v9 = vpack.c.bf16 %v5266_v59, %v5266_v59  ;;  %v4754_v45 = vld [vmem:[#allocation3 + $0xd0] sm:$0xff]  ;;  %9025 = vmatpush1.bf16.msra.mxu1 %v9173_v44  ;;  %7041 = vmatpush1.bf16.msra.mxu0 %v9173_v44 }
 0x3e5   : > { %v8902_v54 = vadd.f32 %v8901_v37, %v8900_v58  ;;  %v4424_v24 = vmax.f32 %v4392_v28, 0.0  ;;  %6708 = vst.msk [vmem:[#allocation5 + $0x44] sm:$0xf] %vm4708_vm1, %v10951_v4  ;;  %v8563_v61 = vpack.c.bf16 %v4754_v45, %v4754_v45  ;;  %6709 = vst.msk [vmem:[#allocation5 + $0x4c] sm:$0xf] %vm4708_vm1, %v8783_v19  ;;  %v5011_v13 = vld [vmem:[#allocation3 + $0xd1] sm:$0xff]  ;;  %9017 = vmatprep.subr.bf16.mxu1 %v9226_v62  ;;  %7042 = vmatprep.subr.bf16.mxu0 %v9226_v62 }
 0x3e6   : > { %5150 = vrot.lane.b32.xlu1 %v10951_v4, %s9228_s20  ;;  %v8903_v0 = vpop.f32.mrf.mxu1  ;;  %4722 = vst.msk [vmem:[#allocation5 + $0x68] sm:$0xf] %vm4708_vm1, %v8625_v9  ;;  %v4262_v20 = vpop.f32.mrf.mxu0  ;;  %v8595_v60 = vpack.c.bf16 %v5011_v13, %v5011_v13 }
 0x3e7   : > { %5660 = vrot.lane.b32.xlu0 %v8562_v38, %s9225_s28  ;;  %4529 = vst.msk [vmem:[#allocation3 + $0xf0] sm:$0xff] %vm866_vm2, %v4424_v24  ;;  %v4263_v1 = vadd.f32 %v8902_v54, %v4262_v20 }
 0x3e8   : > { %v8904_v6 = vpop.f32.mrf.mxu1  ;;  %v4264_v2 = vpop.f32.mrf.mxu0  ;;  %9026 = vmatpush1.bf16.msra.mxu1 %v9174_v53  ;;  %7043 = vmatpush1.bf16.msra.mxu0 %v9174_v53 }
 0x3e9   : > { %v8905_v10 = vadd.f32 %v8904_v6, %v8903_v0  ;;  %v4354_v16 = vmul.f32 %v10830_v39, %v4263_v1  ;;  %9018 = vmatprep.subr.bf16.mxu1 %v9226_v62  ;;  %7058 = vmatprep.subr.bf16.mxu0 %v9226_v62 }
 0x3ea   : > { %5405 = vrot.lane.b32.xlu1 %v8625_v9, %s9222_s25  ;;  %v4265_v55 = vpop.f32.mrf.mxu0  ;;  %v6037_v47 = vld [vmem:[#allocation3 + $0xe7] sm:$0xff] }
 0x3eb   : > { %4895 = vrot.lane.b32.xlu0 %v8563_v61, %s9224_s27  ;;  %v4393_v22 = vadd.f32 %v10835_v43, %v4354_v16  ;;  %v4266_v23 = vadd.f32 %v8905_v10, %v4265_v55  ;;  %v10978_v7 = vpack.c.bf16 %v6037_v47, %v6037_v47  ;;  %v4755_v52 = vld [vmem:[#allocation3 + $0xe8] sm:$0xff] }
 0x3ec   : > { %v4267_v26 = vpop.f32.mrf.mxu0  ;;  %v8564_v34 = vpack.c.bf16 %v4755_v52, %v4755_v52 }
 0x3ed   : > { %v4425_v33 = vmax.f32 %v4393_v22, 0.0  ;;  %v4355_v11 = vmul.f32 %v10830_v39, %v4266_v23  ;;  %4723 = vst.msk [vmem:[#allocation5 + $0x70] sm:$0xf] %vm4708_vm1, %v10978_v7 }
 0x3ee   : > { %5662 = vrot.lane.b32.xlu1 %v8563_v61, %s9225_s28  ;;  %v8906_v21 = vpop.f32.mrf.mxu1  ;;  %v6550_v36 = vld [vmem:[#allocation3 + $0xe9] sm:$0xff]  ;;  %v6551_v35 = vld [vmem:[#allocation3 + $0xf1] sm:$0xff]  ;;  %v9175_v61 = vld [vmem:[%s11853_s6 + $0x40] sm:$0xff]  }
 0x3ef   : > { %5152 = vrot.lane.b32.xlu0 %v8595_v60, %s9228_s20  ;;  %v10987_v27 = vpack.c.bf16 %v6550_v36, %v6550_v36  ;;  %4530 = vst.msk [vmem:[#allocation3 + $0x108] sm:$0xff] %vm866_vm2, %v4425_v33  ;;  %v4394_v17 = vadd.f32 %v10835_v43, %v4355_v11  ;;  %v4563_v51 = vld [vmem:[#allocation3 + $0xef] sm:$0xff]  ;;  %v8785_v42 = vpack.c.bf16 %v6551_v35, %v6551_v35 }
 0x3f0   : > { %v8907_v18 = vpop.f32.mrf.mxu1  ;;  %v8533_v56 = vpack.c.bf16 %v4563_v51, %v4563_v51  ;;  %v6038_v9 = vld [vmem:[#allocation3 + $0xef] sm:$0xff]  ;;  %9027 = vmatpush2.bf16.msra.mxu1 %v9175_v61  ;;  %7059 = vmatpush2.bf16.msra.mxu0 %v9175_v61 }
 0x3f1   : > { %v8908_v49 = vadd.f32 %v8907_v18, %v8906_v21  ;;  %v4426_v30 = vmax.f32 %v4394_v17, 0.0  ;;  %6710 = vst.msk [vmem:[#allocation5 + $0x54] sm:$0xf] %vm4708_vm1, %v10987_v27  ;;  %6711 = vst.msk [vmem:[#allocation5 + $0x5c] sm:$0xf] %vm4708_vm1, %v8785_v42  ;;  %v8721_v3 = vpack.c.bf16 %v6038_v9, %v6038_v9  ;;  %v6295_v2 = vld [vmem:[#allocation3 + $0xf0] sm:$0xff] }
 0x3f2   : > { %5919 = vrot.lane.b32.xlu1 %v8595_v60, %s9229_s21  ;;  %v8909_v12 = vpop.f32.mrf.mxu1  ;;  %v4270_v40 = vpop.f32.mrf.mxu0  ;;  %4724 = vst.msk [vmem:[#allocation5 + $0x78] sm:$0xf] %vm4708_vm1, %v8533_v56  ;;  %v8753_v22 = vpack.c.bf16 %v6295_v2, %v6295_v2  ;;  %v5013_v18 = vld [vmem:[#allocation3 + $0xf1] sm:$0xff] }
 0x3f3   : > { %5917 = vrot.lane.b32.xlu0 %v10951_v4, %s9229_s21  ;;  %4531 = vst.msk [vmem:[#allocation3 + $0x110] sm:$0xff] %vm866_vm2, %v4426_v30  ;;  %v4271_v57 = vadd.f32 %v8908_v49, %v4270_v40  ;;  %v8597_v42 = vpack.c.bf16 %v5013_v18, %v5013_v18 }
 0x3f4   : > { %v8910_v32 = vpop.f32.mrf.mxu1  ;;  %v4272_v48 = vpop.f32.mrf.mxu0 }
 0x3f5   : > { %v8911_v38 = vadd.f32 %v8910_v32, %v8909_v12  ;;  %v4356_v50 = vmul.f32 %v10830_v39, %v4271_v57 }
 0x3f6   : > { %4897 = vrot.lane.b32.xlu1 %v8564_v34, %s9224_s27  ;;  %v4273_v41 = vpop.f32.mrf.mxu0  ;;  %v6039_v58 = vld [vmem:[#allocation3 + $0x107] sm:$0xff] }
 0x3f7   : > { %6175 = vrot.lane.b32.xlu0 %v10978_v7, %s9223_s26  ;;  %v4395_v59 = vadd.f32 %v10835_v43, %v4356_v50  ;;  %v4274_v4 = vadd.f32 %v8911_v38, %v4273_v41  ;;  %v11017_v28 = vpack.c.bf16 %v6039_v58, %v6039_v58 }
 0x3f8   : > { %v4275_v37 = vpop.f32.mrf.mxu0 }
 0x3f9   : > { %v4427_v5 = vmax.f32 %v4395_v59, 0.0  ;;  %v4357_v54 = vmul.f32 %v10830_v39, %v4274_v4  ;;  %4725 = vst.msk [vmem:[#allocation5 + $0x80] sm:$0xf] %vm4708_vm1, %v11017_v28  ;;  %v4757_v59 = vld [vmem:[#allocation3 + $0x108] sm:$0xff] }
 0x3fa   : > { %5154 = vrot.lane.b32.xlu1 %v10987_v27, %s9228_s20  ;;  %v8912_v45 = vpop.f32.mrf.mxu1  ;;  %v6552_v15 = vld [vmem:[#allocation3 + $0x109] sm:$0xff]  ;;  %v5015_v6 = vld [vmem:[#allocation3 + $0x111] sm:$0xff] }
 0x3fb   : > { %6432 = vrot.lane.b32.xlu0 %v8564_v34, %s9227_s10  ;;  %v6040_v24 = vld [vmem:[#allocation3 + $0x10f] sm:$0xff]  ;;  %v11027_v0 = vpack.c.bf16 %v6552_v15, %v6552_v15  ;;  %4532 = vst.msk [vmem:[#allocation3 + $0x128] sm:$0xff] %vm866_vm2, %v4427_v5  ;;  %v4396_v19 = vadd.f32 %v10835_v43, %v4357_v54  ;;  %v11037_v13 = vpack.c.bf16 %v5015_v6, %v5015_v6 }
 0x3fc   : > { %v8913_v20 = vpop.f32.mrf.mxu1  ;;  %v11031_v1 = vpack.c.bf16 %v6040_v24, %v6040_v24 }
 0x3fd   : > { %v8914_v10 = vadd.f32 %v8913_v20, %v8912_v45  ;;  %v4428_v16 = vmax.f32 %v4396_v19, 0.0  ;;  %6712 = vst.msk [vmem:[#allocation5 + $0x64] sm:$0xf] %vm4708_vm1, %v11027_v0  ;;  %6713 = vst.msk [vmem:[#allocation5 + $0x6c] sm:$0xf] %vm4708_vm1, %v11037_v13  ;;  %v8566_v45 = vpack.c.bf16 %v4757_v59, %v4757_v59 }
 0x3fe   : > { %6177 = vrot.lane.b32.xlu1 %v8721_v3, %s9223_s26  ;;  %v8915_v55 = vpop.f32.mrf.mxu1  ;;  %4726 = vst.msk [vmem:[#allocation5 + $0x88] sm:$0xf] %vm4708_vm1, %v11031_v1  ;;  %v4278_v47 = vpop.f32.mrf.mxu0 }
 0x3ff   : > { %5407 = vrot.lane.b32.xlu0 %v10978_v7, %s9222_s25  ;;  %4533 = vst.msk [vmem:[#allocation3 + $0x130] sm:$0xff] %vm866_vm2, %v4428_v16  ;;  %v4279_v62 = vadd.f32 %v8914_v10, %v4278_v47 }
 0x400   : > { %v8916_v29 = vpop.f32.mrf.mxu1  ;;  %v4280_v60 = vpop.f32.mrf.mxu0 }
 0x401   : > { %v8917_v23 = vadd.f32 %v8916_v29, %v8915_v55  ;;  %v4358_v7 = vmul.f32 %v10830_v39, %v4279_v62 }
 0x402   : > { %6434 = vrot.lane.b32.xlu1 %v8753_v22, %s9227_s10  ;;  %v4281_v26 = vpop.f32.mrf.mxu0  ;;  %v6041_v33 = vld [vmem:[#allocation3 + $0x127] sm:$0xff] }
 0x403   : > { %5664 = vrot.lane.b32.xlu0 %v8564_v34, %s9225_s28  ;;  %v4397_v11 = vadd.f32 %v10835_v43, %v4358_v7  ;;  %v4282_v21 = vadd.f32 %v8917_v23, %v4281_v26  ;;  %v11054_v36 = vpack.c.bf16 %v6041_v33, %v6041_v33 }
 0x404   : > { %v4283_v17 = vpop.f32.mrf.mxu0 }
 0x405   : > { %v4429_v46 = vmax.f32 %v4397_v11, 0.0  ;;  %v4359_v51 = vmul.f32 %v10830_v39, %v4282_v21  ;;  %4727 = vst.msk [vmem:[#allocation5 + $0x90] sm:$0xf] %vm4708_vm1, %v11054_v36  ;;  %v6297_v21 = vld [vmem:[#allocation3 + $0x110] sm:$0xff] }
 0x406   : > { %5409 = vrot.lane.b32.xlu1 %v8721_v3, %s9222_s25  ;;  %v8918_v49 = vpop.f32.mrf.mxu1  ;;  %v6554_v52 = vld [vmem:[#allocation3 + $0x129] sm:$0xff]  ;;  %v5017_v44 = vld [vmem:[#allocation3 + $0x131] sm:$0xff] }
 0x407   : > { %4899 = vrot.lane.b32.xlu0 %v8753_v22, %s9224_s27  ;;  %v6042_v56 = vld [vmem:[#allocation3 + $0x12f] sm:$0xff]  ;;  %v11061_v35 = vpack.c.bf16 %v6554_v52, %v6554_v52  ;;  %4534 = vst.msk [vmem:[#allocation3 + $0x148] sm:$0xff] %vm866_vm2, %v4429_v46  ;;  %v4398_v30 = vadd.f32 %v10835_v43, %v4359_v51  ;;  %v11067_v32 = vpack.c.bf16 %v5017_v44, %v5017_v44 }
 0x408   : > { %v8919_v12 = vpop.f32.mrf.mxu1  ;;  %v11065_v40 = vpack.c.bf16 %v6042_v56, %v6042_v56 }
 0x409   : > { %v8920_v57 = vadd.f32 %v8919_v12, %v8918_v49  ;;  %v4430_v34 = vmax.f32 %v4398_v30, 0.0  ;;  %6714 = vst.msk [vmem:[#allocation5 + $0x74] sm:$0xf] %vm4708_vm1, %v11061_v35  ;;  %6715 = vst.msk [vmem:[#allocation5 + $0x7c] sm:$0xf] %vm4708_vm1, %v11067_v32  ;;  %v8755_v30 = vpack.c.bf16 %v6297_v21, %v6297_v21 }
 0x40a   : > { %5666 = vrot.lane.b32.xlu1 %v8753_v22, %s9225_s28  ;;  %v8921_v38 = vpop.f32.mrf.mxu1  ;;  %4728 = vst.msk [vmem:[#allocation5 + $0x98] sm:$0xf] %vm4708_vm1, %v11065_v40  ;;  %v4286_v48 = vpop.f32.mrf.mxu0 }
 0x40b   : > { %5156 = vrot.lane.b32.xlu0 %v8597_v42, %s9228_s20  ;;  %4535 = vst.msk [vmem:[#allocation3 + $0x150] sm:$0xff] %vm866_vm2, %v4430_v34  ;;  %v4287_v50 = vadd.f32 %v8920_v57, %v4286_v48 }
 0x40c   : > { %v8922_v41 = vpop.f32.mrf.mxu1  ;;  %v4288_v53 = vpop.f32.mrf.mxu0 }
 0x40d   : > { %v8923_v58 = vadd.f32 %v8922_v41, %v8921_v38  ;;  %v4360_v4 = vmul.f32 %v10830_v39, %v4287_v50  ;;  %v11133_v38 = vld [vmem:[%s11852_s5] ss:$0 sm:$0xff] }
 0x40e   : > { %5923 = vrot.lane.b32.xlu1 %v8597_v42, %s9229_s21  ;;  %v4289_v37 = vpop.f32.mrf.mxu0  ;;  %v6043_v9 = vld [vmem:[#allocation3 + $0x147] sm:$0xff]  ;;  %v11120_v42 = vld [vmem:[%s11851_s4] ss:$0 sm:$0xff] }
 0x40f   : > { %5921 = vrot.lane.b32.xlu0 %v10987_v27, %s9229_s21  ;;  %v4399_v5 = vadd.f32 %v10835_v43, %v4360_v4  ;;  %v4290_v54 = vadd.f32 %v8923_v58, %v4289_v37  ;;  %v11083_v15 = vpack.c.bf16 %v6043_v9, %v6043_v9 }
 0x410   : > { %v4291_v24 = vpop.f32.mrf.mxu0 }
 0x411   : > { %v4431_v19 = vmax.f32 %v4399_v5, 0.0  ;;  %v4361_v20 = vmul.f32 %v10830_v39, %v4290_v54  ;;  %4729 = vst.msk [vmem:[#allocation5 + $0xa0] sm:$0xf] %vm4708_vm1, %v11083_v15 }
 0x412   : > { %4901 = vrot.lane.b32.xlu1 %v8566_v45, %s9224_s27  ;;  %v8924_v27 = vpop.f32.mrf.mxu1  ;;  %v6556_v3 = vld [vmem:[#allocation3 + $0x149] sm:$0xff]  ;;  %v6557_v16 = vld [vmem:[#allocation3 + $0x151] sm:$0xff] }
 0x413   : > { %6179 = vrot.lane.b32.xlu0 %v11017_v28, %s9223_s26  ;;  %v11091_v6 = vpack.c.bf16 %v6556_v3, %v6556_v3  ;;  %4536 = vst.msk [vmem:[#allocation3 + $0x168] sm:$0xff] %vm866_vm2, %v4431_v19  ;;  %v4400_v61 = vadd.f32 %v10835_v43, %v4361_v20  ;;  %v6044_v2 = vld [vmem:[#allocation3 + $0x14f] sm:$0xff]  ;;  %v8791_v62 = vpack.c.bf16 %v6557_v16, %v6557_v16 }
 0x414   : > { %v8925_v10 = vpop.f32.mrf.mxu1  ;;  %v11095_v47 = vpack.c.bf16 %v6044_v2, %v6044_v2 }
 0x415   : > { %v8926_v55 = vadd.f32 %v8925_v10, %v8924_v27  ;;  %v4432_v29 = vmax.f32 %v4400_v61, 0.0  ;;  %6716 = vst.msk [vmem:[#allocation5 + $0x84] sm:$0xf] %vm4708_vm1, %v11091_v6  ;;  %6717 = vst.msk [vmem:[#allocation5 + $0x8c] sm:$0xf] %vm4708_vm1, %v8791_v62 }
 0x416   : > { %5158 = vrot.lane.b32.xlu1 %v11027_v0, %s9228_s20  ;;  %v8927_v22 = vpop.f32.mrf.mxu1  ;;  %v4294_v23 = vpop.f32.mrf.mxu0  ;;  %4730 = vst.msk [vmem:[#allocation5 + $0xa8] sm:$0xf] %vm4708_vm1, %v11095_v47 }
 0x417   : > { %6436 = vrot.lane.b32.xlu0 %v8566_v45, %s9227_s10  ;;  %4537 = vst.msk [vmem:[#allocation3 + $0x170] sm:$0xff] %vm866_vm2, %v4432_v29  ;;  %v4295_v60 = vadd.f32 %v8926_v55, %v4294_v23  ;;  %v4874_v26 = vpop.permute.xlu1 %4873 }
 0x418   : > { %v8928_v7 = vpop.f32.mrf.mxu1  ;;  %4968 = vst.msk [vmem:[#allocation5 + $0x10] sm:$0xf] %vm4965_vm3, %v4874_v26  ;;  %v4296_v11 = vpop.f32.mrf.mxu0 }
 0x419   : > { %v8929_v33 = vadd.f32 %v8928_v7, %v8927_v22  ;;  %v4362_v17 = vmul.f32 %v10830_v39, %v4295_v60  ;;  %v4759_v60 = vld [vmem:[#allocation3 + $0x128] sm:$0xff] }
 0x41a   : > { %6181 = vrot.lane.b32.xlu1 %v11031_v1, %s9223_s26  ;;  %v4297_v18 = vpop.f32.mrf.mxu0  ;;  %v6045_v46 = vld [vmem:[#allocation3 + $0x167] sm:$0xff] }
 0x41b   : > { %5411 = vrot.lane.b32.xlu0 %v11017_v28, %s9222_s25  ;;  %v4401_v51 = vadd.f32 %v10835_v43, %v4362_v17  ;;  %v4298_v49 = vadd.f32 %v8929_v33, %v4297_v18  ;;  %v4876_v52 = vpop.permute.xlu0 %4875  ;;  %v5384_v56 = vpop.permute.xlu1 %5383  ;;  %v11113_v12 = vpack.c.bf16 %v6045_v46, %v6045_v46 }
 0x41c   : > { %4969 = vst.msk [vmem:[#allocation5 + $0x18] sm:$0xf] %vm4965_vm3, %v4876_v52  ;;  %v4299_v39 = vpop.f32.mrf.mxu0 }
 0x41d   : > { %5480 = vst.msk [vmem:[#allocation5] sm:$0xf] %vm5479_vm6, %v5384_v56  ;;  %v4433_v28 = vmax.f32 %v4401_v51, 0.0  ;;  %v4363_v44 = vmul.f32 %v11120_v42, %v4298_v49  ;;  %v11171_v51 = vpack.c.bf16 %v4759_v60, %v4759_v60 }
 0x41e   : > { %6438 = vrot.lane.b32.xlu1 %v8755_v30, %s9227_s10  ;;  %v8930_v43 = vpop.f32.mrf.mxu1  ;;  %4731 = vst.msk [vmem:[#allocation5 + $0xb0] sm:$0xf] %vm4708_vm1, %v11113_v12  ;;  %v6558_v57 = vld [vmem:[#allocation3 + $0x169] sm:$0xff]  ;;  %v6559_v53 = vld [vmem:[#allocation3 + $0x171] sm:$0xff] }
 0x41f   : > { %5668 = vrot.lane.b32.xlu0 %v8566_v45, %s9225_s28  ;;  %v11127_v34 = vpack.c.bf16 %v6558_v57, %v6558_v57  ;;  %4538 = vst.msk [vmem:[#allocation3 + $0x188] sm:$0xff] %vm866_vm2, %v4433_v28  ;;  %v4402_v48 = vadd.f32 %v11133_v38, %v4363_v44  ;;  %v5133_v50 = vpop.permute.xlu0 %5132  ;;  %v6046_v58 = vld [vmem:[#allocation3 + $0x16f] sm:$0xff]  ;;  %v5131_v4 = vpop.permute.xlu1 %5130  ;;  %v8793_v9 = vpack.c.bf16 %v6559_v53, %v6559_v53 }
 0x420   : > { %v8931_v41 = vpop.f32.mrf.mxu1  ;;  %5226 = vst.msk [vmem:[#allocation5 + $0x18] sm:$0xf] %vm5222_vm5, %v5133_v50  ;;  %v11137_v37 = vpack.c.bf16 %v6046_v58, %v6046_v58  ;;  %5225 = vst.msk [vmem:[#allocation5 + $0x10] sm:$0xf] %vm5222_vm5, %v5131_v4 }
 0x421   : > { %v8932_v59 = vadd.f32 %v8931_v41, %v8930_v43  ;;  %6718 = vst.msk [vmem:[#allocation5 + $0x94] sm:$0xf] %vm4708_vm1, %v11127_v34  ;;  %v4434_v5 = vmax.f32 %v4402_v48, 0.0  ;;  %6719 = vst.msk [vmem:[#allocation5 + $0x9c] sm:$0xf] %vm4708_vm1, %v8793_v9 }
 0x422   : > { %5413 = vrot.lane.b32.xlu1 %v11031_v1, %s9222_s25  ;;  %v8933_v54 = vpop.f32.mrf.mxu1  ;;  %v4302_v45 = vpop.f32.mrf.mxu0  ;;  %4732 = vst.msk [vmem:[#allocation5 + $0xb8] sm:$0xf] %vm4708_vm1, %v11137_v37 }
 0x423   : > { %4903 = vrot.lane.b32.xlu0 %v8755_v30, %s9224_s27  ;;  %4539 = vst.msk [vmem:[#allocation3 + $0x190] sm:$0xff] %vm866_vm2, %v4434_v5  ;;  %v4303_v24 = vadd.f32 %v8932_v59, %v4302_v45  ;;  %v5386_v19 = vpop.permute.xlu0 %5385  ;;  %v4878_v3 = vpop.permute.xlu1 %4877 }
 0x424   : > { %v8934_v20 = vpop.f32.mrf.mxu1  ;;  %5481 = vst.msk [vmem:[#allocation5 + $0x8] sm:$0xf] %vm5479_vm6, %v5386_v19  ;;  %v4304_v61 = vpop.f32.mrf.mxu0  ;;  %v4760_v19 = vld [vmem:[#allocation3 + $0x130] sm:$0xff] }
 0x425   : > { %v8935_v27 = vadd.f32 %v8934_v20, %v8933_v54  ;;  %v4364_v10 = vmul.f32 %v11120_v42, %v4303_v24  ;;  %4970 = vst.msk [vmem:[#allocation5 + $0x20] sm:$0xf] %vm4965_vm3, %v4878_v3 }
 0x426   : > { %5670 = vrot.lane.b32.xlu1 %v8755_v30, %s9225_s28  ;;  %v4305_v1 = vpop.f32.mrf.mxu0  ;;  %v6047_v2 = vld [vmem:[#allocation3 + $0x187] sm:$0xff] }
 0x427   : > { %5160 = vrot.lane.b32.xlu0 %v11037_v13, %s9228_s20  ;;  %v4403_v16 = vadd.f32 %v11133_v38, %v4364_v10  ;;  %v4306_v55 = vadd.f32 %v8935_v27, %v4305_v1  ;;  %v11156_v29 = vpack.c.bf16 %v6047_v2, %v6047_v2  ;;  %v5388_v22 = vpop.permute.xlu1 %5387  ;;  %v11209_v2 = vpack.c.bf16 %v4760_v19, %v4760_v19 }
 0x428   : > { %v4880_v62 = vpop.permute.xlu0 %4879  ;;  %v4307_v23 = vpop.f32.mrf.mxu0  ;;  %5482 = vst.msk [vmem:[#allocation5 + $0x10] sm:$0xf] %vm5479_vm6, %v5388_v22 }
 0x429   : > { %4971 = vst.msk [vmem:[#allocation5 + $0x28] sm:$0xf] %vm4965_vm3, %v4880_v62  ;;  %v4435_v7 = vmax.f32 %v4403_v16, 0.0  ;;  %v4365_v26 = vmul.f32 %v11120_v42, %v4306_v55 }
 0x42a   : > { %5927 = vrot.lane.b32.xlu1 %v11037_v13, %s9229_s21  ;;  %v8936_v33 = vpop.f32.mrf.mxu1  ;;  %4733 = vst.msk [vmem:[#allocation5 + $0xc0] sm:$0xf] %vm4708_vm1, %v11156_v29  ;;  %v6560_v11 = vld [vmem:[#allocation3 + $0x189] sm:$0xff] }
 0x42b   : > { %5925 = vrot.lane.b32.xlu0 %v11027_v0, %s9229_s21  ;;  %v11167_v21 = vpack.c.bf16 %v6560_v11, %v6560_v11  ;;  %4540 = vst.msk [vmem:[#allocation3 + $0x1a8] sm:$0xff] %vm866_vm2, %v4435_v7  ;;  %v4404_v17 = vadd.f32 %v11133_v38, %v4365_v26  ;;  %v6048_v49 = vld [vmem:[#allocation3 + $0x18f] sm:$0xff]  ;;  %v5135_v52 = vpop.permute.xlu1 %5134 }
 0x42c   : > { %v5137_v18 = vpop.permute.xlu0 %5136  ;;  %v8937_v46 = vpop.f32.mrf.mxu1  ;;  %v6561_v0 = vld [vmem:[#allocation3 + $0x191] sm:$0xff]  ;;  %v11174_v56 = vpack.c.bf16 %v6048_v49, %v6048_v49  ;;  %5227 = vst.msk [vmem:[#allocation5 + $0x20] sm:$0xf] %vm5222_vm5, %v5135_v52 }
 0x42d   : > { %5228 = vst.msk [vmem:[#allocation5 + $0x28] sm:$0xf] %vm5222_vm5, %v5137_v18  ;;  %v8938_v13 = vadd.f32 %v8937_v46, %v8936_v33  ;;  %v8795_v30 = vpack.c.bf16 %v6561_v0, %v6561_v0  ;;  %v4436_v39 = vmax.f32 %v4404_v17, 0.0  ;;  %v4762_v26 = vld [vmem:[#allocation3 + $0x150] sm:$0xff]  ;;  %v4761_v33 = vld [vmem:[#allocation3 + $0x148] sm:$0xff] }
 0x42e   : > { %6720 = vst.msk [vmem:[#allocation5 + $0xa4] sm:$0xf] %vm4708_vm1, %v11167_v21  ;;  %4905 = vrot.lane.b32.xlu1 %v11171_v51, %s9224_s27  ;;  %v8939_v28 = vpop.f32.mrf.mxu1  ;;  %v4310_v44 = vpop.f32.mrf.mxu0  ;;  %4734 = vst.msk [vmem:[#allocation5 + $0xc8] sm:$0xf] %vm4708_vm1, %v11174_v56  ;;  %v11232_v52 = vpack.c.bf16 %v4762_v26, %v4762_v26 }
 0x42f   : > { %6183 = vrot.lane.b32.xlu0 %v11054_v36, %s9223_s26  ;;  %6721 = vst.msk [vmem:[#allocation5 + $0xac] sm:$0xf] %vm4708_vm1, %v8795_v30  ;;  %v4311_v43 = vadd.f32 %v8938_v13, %v4310_v44  ;;  %v4882_v50 = vpop.permute.xlu1 %4881  ;;  %v11234_v30 = vpack.c.bf16 %v4761_v33, %v4761_v33  ;;  %v5019_v44 = vld [vmem:[#allocation3 + $0x151] sm:$0xff] }
 0x430   : > { %4541 = vst.msk [vmem:[#allocation3 + $0x1b0] sm:$0xff] %vm866_vm2, %v4436_v39  ;;  %v8940_v57 = vpop.f32.mrf.mxu1  ;;  %v4312_v41 = vpop.f32.mrf.mxu0 }
 0x431   : > { %v8941_v48 = vadd.f32 %v8940_v57, %v8939_v28  ;;  %v4366_v58 = vmul.f32 %v11120_v42, %v4311_v43  ;;  %4972 = vst.msk [vmem:[#allocation5 + $0x30] sm:$0xf] %vm4965_vm3, %v4882_v50 }
 0x432   : > { %5162 = vrot.lane.b32.xlu1 %v11061_v35, %s9228_s20  ;;  %v4313_v53 = vpop.f32.mrf.mxu0  ;;  %v4574_v59 = vld [vmem:[#allocation3 + $0x1a7] sm:$0xff] }
 0x433   : > { %6440 = vrot.lane.b32.xlu0 %v11171_v51, %s9227_s10  ;;  %v4405_v4 = vadd.f32 %v11133_v38, %v4366_v58  ;;  %v4314_v9 = vadd.f32 %v8941_v48, %v4313_v53  ;;  %v11194_v54 = vpack.c.bf16 %v4574_v59, %v4574_v59  ;;  %v11250_v59 = vpack.c.bf16 %v5019_v44, %v5019_v44 }
 0x434   : > { %v5139_v45 = vpop.permute.xlu1 %5138  ;;  %v4315_v24 = vpop.f32.mrf.mxu0 }
 0x435   : > { %v4884_v5 = vpop.permute.xlu0 %4883  ;;  %v4437_v20 = vmax.f32 %v4405_v4, 0.0  ;;  %v4367_v27 = vmul.f32 %v11120_v42, %v4314_v9  ;;  %5229 = vst.msk [vmem:[#allocation5 + $0x30] sm:$0xf] %vm5222_vm5, %v5139_v45  ;;  %v4763_v45 = vld [vmem:[#allocation3 + $0x168] sm:$0xff] }
 0x436   : > { %4973 = vst.msk [vmem:[#allocation5 + $0x38] sm:$0xf] %vm4965_vm3, %v4884_v5  ;;  %6185 = vrot.lane.b32.xlu1 %v11065_v40, %s9223_s26  ;;  %v4764_v5 = vld [vmem:[#allocation3 + $0x170] sm:$0xff] }
 0x437   : > { %5415 = vrot.lane.b32.xlu0 %v11054_v36, %s9222_s25  ;;  %4735 = vst.msk [vmem:[#allocation5 + $0xd0] sm:$0xf] %vm4708_vm1, %v11194_v54  ;;  %v6562_v35 = vld [vmem:[#allocation3 + $0x1a9] sm:$0xff]  ;;  %v4406_v61 = vadd.f32 %v11133_v38, %v4367_v27  ;;  %v5794_v55 = vld [vmem:[#allocation3 + $0x1b1] sm:$0xff] }
 0x438   : > { %v11205_v3 = vpack.c.bf16 %v6562_v35, %v6562_v35  ;;  %4542 = vst.msk [vmem:[#allocation3 + $0x1c8] sm:$0xff] %vm866_vm2, %v4437_v20  ;;  %v8942_v1 = vpop.f32.mrf.mxu1  ;;  %v4575_v16 = vld [vmem:[#allocation3 + $0x1af] sm:$0xff]  ;;  %v11220_v23 = vpack.c.bf16 %v5794_v55, %v5794_v55  ;;  %v11270_v55 = vpack.c.bf16 %v4763_v45, %v4763_v45 }
 0x439   : > { %v5141_v10 = vpop.permute.xlu0 %5140  ;;  %v11212_v36 = vpack.c.bf16 %v4575_v16, %v4575_v16  ;;  %v4438_v62 = vmax.f32 %v4406_v61, 0.0  ;;  %v11268_v16 = vpack.c.bf16 %v4764_v5, %v4764_v5 }
 0x43a   : > { %5230 = vst.msk [vmem:[#allocation5 + $0x38] sm:$0xf] %vm5222_vm5, %v5141_v10  ;;  %6442 = vrot.lane.b32.xlu1 %v11209_v2, %s9227_s10  ;;  %v8943_v22 = vpop.f32.mrf.mxu1 }
 0x43b   : > { %6722 = vst.msk [vmem:[#allocation5 + $0xb4] sm:$0xf] %vm4708_vm1, %v11205_v3  ;;  %4907 = vrot.lane.b32.xlu0 %v11209_v2, %s9224_s27  ;;  %4736 = vst.msk [vmem:[#allocation5 + $0xd8] sm:$0xf] %vm4708_vm1, %v11212_v36  ;;  %v4886_v7 = vpop.permute.xlu1 %4885  ;;  %v8944_v11 = vadd.f32 %v8943_v22, %v8942_v1 }
 0x43c   : > { %4543 = vst.msk [vmem:[#allocation3 + $0x1d0] sm:$0xff] %vm866_vm2, %v4438_v62  ;;  %v8945_v60 = vpop.f32.mrf.mxu1 }
 0x43d   : > { %6723 = vst.msk [vmem:[#allocation5 + $0xbc] sm:$0xf] %vm4708_vm1, %v11220_v23 }
 0x43e   : > { %4974 = vst.msk [vmem:[#allocation5 + $0x40] sm:$0xf] %vm4965_vm3, %v4886_v7  ;;  %5417 = vrot.lane.b32.xlu1 %v11065_v40, %s9222_s25  ;;  %v8946_v17 = vpop.f32.mrf.mxu1 }
 0x43f   : > { %5164 = vrot.lane.b32.xlu0 %v11067_v32, %s9228_s20  ;;  %v4576_v46 = vld [vmem:[#allocation3 + $0x1c7] sm:$0xff]  ;;  %v5143_v13 = vpop.permute.xlu1 %5142  ;;  %v8947_v43 = vadd.f32 %v8946_v17, %v8945_v60 }
 0x440   : > { %v4318_v18 = vpop.f32.mrf.mxu0  ;;  %v4888_v0 = vpop.permute.xlu0 %4887  ;;  %v11236_v39 = vpack.c.bf16 %v4576_v46, %v4576_v46  ;;  %5231 = vst.msk [vmem:[#allocation5 + $0x40] sm:$0xf] %vm5222_vm5, %v5143_v13  ;;  %v4765_v17 = vld [vmem:[#allocation3 + $0x188] sm:$0xff] }
 0x441   : > { %v4319_v49 = vadd.f32 %v8944_v11, %v4318_v18  ;;  %4975 = vst.msk [vmem:[#allocation5 + $0x48] sm:$0xf] %vm4965_vm3, %v4888_v0  ;;  %v4766_v11 = vld [vmem:[#allocation3 + $0x190] sm:$0xff] }
 0x442   : > { %v4320_v28 = vpop.f32.mrf.mxu0  ;;  %4909 = vrot.lane.b32.xlu1 %v11234_v30, %s9224_s27  ;;  %4737 = vst.msk [vmem:[#allocation5 + $0xe0] sm:$0xf] %vm4708_vm1, %v11236_v39  ;;  %v11288_v44 = vpack.c.bf16 %v4766_v11, %v4766_v11 }
 0x443   : > { %v4368_v40 = vmul.f32 %v11120_v42, %v4319_v49  ;;  %4911 = vrot.lane.b32.xlu0 %v11232_v52, %s9224_s27  ;;  %v6564_v57 = vld [vmem:[#allocation3 + $0x1c9] sm:$0xff]  ;;  %v5796_v19 = vld [vmem:[#allocation3 + $0x1d1] sm:$0xff] }
 0x444   : > { %v4321_v48 = vpop.f32.mrf.mxu0  ;;  %v11247_v50 = vpack.c.bf16 %v6564_v57, %v6564_v57  ;;  %v5145_v53 = vpop.permute.xlu0 %5144  ;;  %v4577_v4 = vld [vmem:[#allocation3 + $0x1cf] sm:$0xff]  ;;  %v11262_v35 = vpack.c.bf16 %v5796_v19, %v5796_v19 }
 0x445   : > { %v4407_v41 = vadd.f32 %v11133_v38, %v4368_v40  ;;  %v4322_v58 = vadd.f32 %v8947_v43, %v4321_v48  ;;  %5232 = vst.msk [vmem:[#allocation5 + $0x48] sm:$0xf] %vm5222_vm5, %v5145_v53  ;;  %v11253_v24 = vpack.c.bf16 %v4577_v4, %v4577_v4  ;;  %v11290_v43 = vpack.c.bf16 %v4765_v17, %v4765_v17  ;;  %v5023_v48 = vld [vmem:[#allocation3 + $0x191] sm:$0xff] }
 0x446   : > { %v4323_v9 = vpop.f32.mrf.mxu0  ;;  %6724 = vst.msk [vmem:[#allocation5 + $0xc4] sm:$0xf] %vm4708_vm1, %v11247_v50  ;;  %5166 = vrot.lane.b32.xlu1 %v11091_v6, %s9228_s20  ;;  %6725 = vst.msk [vmem:[#allocation5 + $0xcc] sm:$0xf] %vm4708_vm1, %v11262_v35  ;;  %v5021_v6 = vld [vmem:[#allocation3 + $0x171] sm:$0xff] }
 0x447   : > { %v4439_v20 = vmax.f32 %v4407_v41, 0.0  ;;  %v4369_v27 = vmul.f32 %v11120_v42, %v4322_v58  ;;  %5168 = vrot.lane.b32.xlu0 %v11250_v59, %s9228_s20  ;;  %4738 = vst.msk [vmem:[#allocation5 + $0xe8] sm:$0xf] %vm4708_vm1, %v11253_v24  ;;  %v4890_v1 = vpop.permute.xlu1 %4889  ;;  %v11280_v26 = vpack.c.bf16 %v5021_v6, %v5021_v6 }
 0x448   : > { %v8948_v10 = vpop.f32.mrf.mxu1  ;;  %4976 = vst.msk [vmem:[#allocation5 + $0x50] sm:$0xf] %vm4965_vm3, %v4890_v1 }
 0x449   : > { %4544 = vst.msk [vmem:[#allocation3 + $0x1e8] sm:$0xff] %vm866_vm2, %v4439_v20  ;;  %v4408_v61 = vadd.f32 %v11133_v38, %v4369_v27  ;;  %v11305_v20 = vpack.c.bf16 %v5023_v48, %v5023_v48 }
 0x44a   : > { %4913 = vrot.lane.b32.xlu1 %v11270_v55, %s9224_s27  ;;  %v8949_v22 = vpop.f32.mrf.mxu1 }
 0x44b   : > { %v4440_v62 = vmax.f32 %v4408_v61, 0.0  ;;  %4915 = vrot.lane.b32.xlu0 %v11268_v16, %s9224_s27  ;;  %v8950_v18 = vadd.f32 %v8949_v22, %v8948_v10  ;;  %v4768_v61 = vld [vmem:[#allocation3 + $0x1b0] sm:$0xff]  ;;  %v4767_v10 = vld [vmem:[#allocation3 + $0x1a8] sm:$0xff] }
 0x44c   : > { %v8951_v7 = vpop.f32.mrf.mxu1  ;;  %v5147_v33 = vpop.permute.xlu1 %5146 }
 0x44d   : > { %4545 = vst.msk [vmem:[#allocation3 + $0x1f0] sm:$0xff] %vm866_vm2, %v4440_v62  ;;  %v4892_v60 = vpop.permute.xlu0 %4891 }
 0x44e   : > { %4977 = vst.msk [vmem:[#allocation5 + $0x58] sm:$0xf] %vm4965_vm3, %v4892_v60  ;;  %5170 = vrot.lane.b32.xlu1 %v11127_v34, %s9228_s20  ;;  %v8952_v46 = vpop.f32.mrf.mxu1  ;;  %v4326_v49 = vpop.f32.mrf.mxu0 }
 0x44f   : > { %5233 = vst.msk [vmem:[#allocation5 + $0x50] sm:$0xf] %vm5222_vm5, %v5147_v33  ;;  %5172 = vrot.lane.b32.xlu0 %v11280_v26, %s9228_s20  ;;  %v4327_v13 = vadd.f32 %v8950_v18, %v4326_v49  ;;  %v8953_v41 = vadd.f32 %v8952_v46, %v8951_v7  ;;  %v11324_v18 = vpack.c.bf16 %v4768_v61, %v4768_v61 }
 0x450   : > { %v4578_v0 = vld [vmem:[#allocation3 + $0x1e7] sm:$0xff]  ;;  %v4328_v57 = vpop.f32.mrf.mxu0 }
 0x451   : > { %v5149_v28 = vpop.permute.xlu0 %5148  ;;  %v11292_v40 = vpack.c.bf16 %v4578_v0, %v4578_v0  ;;  %v4370_v58 = vmul.f32 %v11120_v42, %v4327_v13  ;;  %v4770_v13 = vld [vmem:[#allocation3 + $0x1d0] sm:$0xff]  ;;  %v4771_v61 = vld [vmem:[#allocation3 + $0x1e8] sm:$0xff] }
 0x452   : > { %5234 = vst.msk [vmem:[#allocation5 + $0x58] sm:$0xf] %vm5222_vm5, %v5149_v28  ;;  %4917 = vrot.lane.b32.xlu1 %v11290_v43, %s9224_s27  ;;  %v4329_v53 = vpop.f32.mrf.mxu0  ;;  %v4769_v28 = vld [vmem:[#allocation3 + $0x1c8] sm:$0xff] }
 0x453   : > { %4919 = vrot.lane.b32.xlu0 %v11288_v44, %s9224_s27  ;;  %4739 = vst.msk [vmem:[#allocation5 + $0xf0] sm:$0xf] %vm4708_vm1, %v11292_v40  ;;  %v4409_v9 = vadd.f32 %v11133_v38, %v4370_v58  ;;  %v4330_v5 = vadd.f32 %v8953_v41, %v4329_v53  ;;  %v8579_v41 = vpack.c.bf16 %v4770_v13, %v4770_v13 }
 0x454   : > { %v6566_v34 = vld [vmem:[#allocation3 + $0x1e9] sm:$0xff]  ;;  %v4894_v19 = vpop.permute.xlu1 %4893  ;;  %v4331_v6 = vpop.f32.mrf.mxu0  ;;  %v5798_v62 = vld [vmem:[#allocation3 + $0x1f1] sm:$0xff]  ;;  %v8578_v58 = vpack.c.bf16 %v4769_v28, %v4769_v28 }
 0x455   : > { %v11302_v4 = vpack.c.bf16 %v6566_v34, %v6566_v34  ;;  %v5404_v45 = vpop.permute.xlu0 %5403  ;;  %v4579_v27 = vld [vmem:[#allocation3 + $0x1ef] sm:$0xff]  ;;  %4978 = vst.msk [vmem:[#allocation5 + $0x60] sm:$0xf] %vm4965_vm3, %v4894_v19  ;;  %v4441_v22 = vmax.f32 %v4409_v9, 0.0  ;;  %v4371_v60 = vmul.f32 %v11120_v42, %v4330_v5  ;;  %v11318_v7 = vpack.c.bf16 %v5798_v62, %v5798_v62 }
 0x456   : > { %5490 = vst.msk [vmem:[#allocation5 + $0x50] sm:$0xf] %vm5479_vm6, %v5404_v45  ;;  %v11309_v1 = vpack.c.bf16 %v4579_v27, %v4579_v27  ;;  %5174 = vrot.lane.b32.xlu1 %v11167_v21, %s9228_s20  ;;  %v11326_v42 = vpack.c.bf16 %v4767_v10, %v4767_v10  ;;  %v5025_v21 = vld [vmem:[#allocation3 + $0x1b1] sm:$0xff] }
 0x457   : > { %6726 = vst.msk [vmem:[#allocation5 + $0xd4] sm:$0xf] %vm4708_vm1, %v11302_v4  ;;  %5176 = vrot.lane.b32.xlu0 %v11305_v20, %s9228_s20  ;;  %v4410_v33 = vadd.f32 %v11133_v38, %v4371_v60  ;;  %6727 = vst.msk [vmem:[#allocation5 + $0xdc] sm:$0xf] %vm4708_vm1, %v11318_v7  ;;  %v8609_v0 = vpack.c.bf16 %v5025_v21, %v5025_v21  ;;  %v5027_v34 = vld [vmem:[#allocation3 + $0x1d1] sm:$0xff]  ;;  %v8580_v60 = vpack.c.bf16 %v4771_v61, %v4771_v61 }
 0x458   : > { %4740 = vst.msk [vmem:[#allocation5 + $0xf8] sm:$0xf] %vm4708_vm1, %v11309_v1  ;;  %v5151_v17 = vpop.permute.xlu1 %5150  ;;  %v8611_v19 = vpack.c.bf16 %v5027_v34, %v5027_v34  ;;  %v4772_v27 = vld [vmem:[#allocation3 + $0x1f0] sm:$0xff] }
 0x459   : > { %4546 = vst.msk [vmem:[#allocation3 + $0x208] sm:$0xff] %vm866_vm2, %v4441_v22  ;;  %v5661_v11 = vpop.permute.xlu0 %5660  ;;  %v4442_v46 = vmax.f32 %v4410_v33, 0.0  ;;  %v8581_v22 = vpack.c.bf16 %v4772_v27, %v4772_v27  ;;  %v5029_v33 = vld [vmem:[#allocation3 + $0x1f1] sm:$0xff] }
 0x45a   : > { %5747 = vst.msk [vmem:[#allocation5 + $0x50] sm:$0xf] %vm5736_vm7, %v5661_v11  ;;  %4921 = vrot.lane.b32.xlu1 %v11326_v42, %s9224_s27 }
 0x45b   : > { %5235 = vst.msk [vmem:[#allocation5 + $0x60] sm:$0xf] %vm5222_vm5, %v5151_v17  ;;  %4923 = vrot.lane.b32.xlu0 %v11324_v18, %s9224_s27 }
 0x45c   : > { %4547 = vst.msk [vmem:[#allocation3 + $0x210] sm:$0xff] %vm866_vm2, %v4442_v46  ;;  %v5406_v49 = vpop.permute.xlu1 %5405 }
 0x45d   : > { %v4896_v38 = vpop.permute.xlu0 %4895  ;;  %5491 = vst.msk [vmem:[#allocation5 + $0x58] sm:$0xf] %vm5479_vm6, %v5406_v49 }
 0x45e   : > { %4979 = vst.msk [vmem:[#allocation5 + $0x68] sm:$0xf] %vm4965_vm3, %v4896_v38  ;;  %5178 = vrot.lane.b32.xlu1 %v11205_v3, %s9228_s20  ;;  %v5785_v38 = vld [vmem:[#allocation3 + $0x129] sm:$0xff] }
 0x45f   : > { %5180 = vrot.lane.b32.xlu0 %v8609_v0, %s9228_s20  ;;  %v8694_v13 = vpack.c.bf16 %v5785_v38, %v5785_v38 }
 0x460   : > { %v5663_v48 = vpop.permute.xlu1 %5662 }
 0x461   : > { %v5153_v57 = vpop.permute.xlu0 %5152  ;;  %5748 = vst.msk [vmem:[#allocation5 + $0x58] sm:$0xf] %vm5736_vm7, %v5663_v48  ;;  %v9178_v48 = vld [vmem:[#allocation5 + $0x54] ss:$8 sps:$4 sm:$0xff]  }
 0x462   : > { %5236 = vst.msk [vmem:[#allocation5 + $0x68] sm:$0xf] %vm5222_vm5, %v5153_v57  ;;  %4925 = vrot.lane.b32.xlu1 %v8578_v58, %s9224_s27  ;;  %8212 = vmatprep.mubr.msk.bf16.mxu1 %vm866_vm2, %v9178_v48 }
 0x463   : > { %4927 = vrot.lane.b32.xlu0 %v8579_v41, %s9224_s27  ;;  %v6568_v53 = vld [vmem:[#allocation3 + $0x209] sm:$0xff]  ;;  %v5800_v3 = vld [vmem:[#allocation3 + $0x211] sm:$0xff] }
 0x464   : > { %v8802_v9 = vpack.c.bf16 %v6568_v53, %v6568_v53  ;;  %v5920_v45 = vpop.permute.xlu1 %5919  ;;  %v11348_v10 = vpack.c.bf16 %v5800_v3, %v5800_v3  ;;  %v5787_v53 = vld [vmem:[#allocation3 + $0x149] sm:$0xff] }
 0x465   : > { %v5918_v5 = vpop.permute.xlu0 %5917  ;;  %6005 = vst.msk [vmem:[#allocation5 + $0x58] sm:$0xf] %vm5993_vm8, %v5920_v45  ;;  %v8696_v45 = vpack.c.bf16 %v5787_v53, %v5787_v53 }
 0x466   : > { %6004 = vst.msk [vmem:[#allocation5 + $0x50] sm:$0xf] %vm5993_vm8, %v5918_v5  ;;  %5182 = vrot.lane.b32.xlu1 %v11247_v50, %s9228_s20  ;;  %v8613_v50 = vpack.c.bf16 %v5029_v33, %v5029_v33 }
 0x467   : > { %6728 = vst.msk [vmem:[#allocation5 + $0xe4] sm:$0xf] %vm4708_vm1, %v8802_v9  ;;  %5184 = vrot.lane.b32.xlu0 %v8611_v19, %s9228_s20  ;;  %6729 = vst.msk [vmem:[#allocation5 + $0xec] sm:$0xf] %vm4708_vm1, %v11348_v10  ;;  %v5512_v19 = vld [vmem:[#allocation3 + $0x28] sm:$0xff] }
 0x468   : > { %v4898_v62 = vpop.permute.xlu1 %4897  ;;  %v8646_v61 = vpack.c.bf16 %v5512_v19, %v5512_v19  ;;  %v9181_v19 = vld [vmem:[#allocation5 + $0x74] ss:$8 sps:$4 sm:$0xff]  }
 0x469   : > { %v6176_v6 = vpop.permute.xlu0 %6175  ;;  %4980 = vst.msk [vmem:[#allocation5 + $0x70] sm:$0xf] %vm4965_vm3, %v4898_v62  ;;  %v5769_v62 = vld [vmem:[#allocation3 + $0x29] sm:$0xff] }
 0x46a   : > { %6262 = vst.msk [vmem:[#allocation5 + $0x50] sm:$0xf] %vm6251_vm9, %v6176_v6  ;;  %4929 = vrot.lane.b32.xlu1 %v8580_v60, %s9224_s27 }
 0x46b   : > { %4931 = vrot.lane.b32.xlu0 %v8581_v22, %s9224_s27  ;;  %v5770_v22 = vld [vmem:[#allocation3 + $0x31] sm:$0xff] }
 0x46c   : > { %v5155_v17 = vpop.permute.xlu1 %5154 }
 0x46d   : > { %v6433_v11 = vpop.permute.xlu0 %6432  ;;  %5237 = vst.msk [vmem:[#allocation5 + $0x70] sm:$0xf] %vm5222_vm5, %v5155_v17  ;;  %v8679_v17 = vpack.c.bf16 %v5770_v22, %v5770_v22  ;;  %v6029_v22 = vld [vmem:[#allocation3 + $0x67] sm:$0xff] }
 0x46e   : > { %6518 = vst.msk [vmem:[#allocation5 + $0x50] sm:$0xf] %vm2637_vm12, %v6433_v11  ;;  %5186 = vrot.lane.b32.xlu1 %v11302_v4, %s9228_s20  ;;  %v8678_v11 = vpack.c.bf16 %v5769_v62, %v5769_v62 }
 0x46f   : > { %5188 = vrot.lane.b32.xlu0 %v8613_v50, %s9228_s20 }
 0x470   : > { %v6178_v46 = vpop.permute.xlu1 %6177 }
 0x471   : > { %v5408_v21 = vpop.permute.xlu0 %5407  ;;  %6263 = vst.msk [vmem:[#allocation5 + $0x58] sm:$0xf] %vm6251_vm9, %v6178_v46  ;;  %v9179_v46 = vld [vmem:[#allocation5 + $0x64] ss:$8 sps:$4 sm:$0xff]  }
 0x472   : > { %5492 = vst.msk [vmem:[#allocation5 + $0x60] sm:$0xf] %vm5479_vm6, %v5408_v21  ;;  %5674 = vrot.lane.b32.xlu1 %v11209_v2, %s9225_s28 }
 0x473   : > { %5672 = vrot.lane.b32.xlu0 %v11171_v51, %s9225_s28 }
 0x474   : > { %v6435_v0 = vpop.permute.xlu1 %6434 }
 0x475   : > { %v5665_v49 = vpop.permute.xlu0 %5664  ;;  %6519 = vst.msk [vmem:[#allocation5 + $0x58] sm:$0xf] %vm2637_vm12, %v6435_v0 }
 0x476   : > { %5749 = vst.msk [vmem:[#allocation5 + $0x60] sm:$0xf] %vm5736_vm7, %v5665_v49  ;;  %5931 = vrot.lane.b32.xlu1 %v11067_v32, %s9229_s21  ;;  %v6027_v49 = vld [vmem:[#allocation3 + $0x47] sm:$0xff] }
 0x477   : > { %5929 = vrot.lane.b32.xlu0 %v8694_v13, %s9229_s21 }
 0x478   : > { %v5410_v28 = vpop.permute.xlu1 %5409 }
 0x479   : > { %v4900_v4 = vpop.permute.xlu0 %4899  ;;  %5493 = vst.msk [vmem:[#allocation5 + $0x68] sm:$0xf] %vm5479_vm6, %v5410_v28 }
 0x47a   : > { %4981 = vst.msk [vmem:[#allocation5 + $0x78] sm:$0xf] %vm4965_vm3, %v4900_v4  ;;  %6189 = vrot.lane.b32.xlu1 %v11095_v47, %s9223_s26  ;;  %v8710_v4 = vpack.c.bf16 %v6027_v49, %v6027_v49 }
 0x47b   : > { %6187 = vrot.lane.b32.xlu0 %v11083_v15, %s9223_s26 }
 0x47c   : > { %v5667_v2 = vpop.permute.xlu1 %5666  ;;  %v9176_v57 = vld [vmem:[#allocation5 + $0x50] ss:$8 sps:$4 sm:$0xff]  }
 0x47d   : > { %v5157_v51 = vpop.permute.xlu0 %5156  ;;  %5750 = vst.msk [vmem:[#allocation5 + $0x68] sm:$0xf] %vm5736_vm7, %v5667_v2  ;;  %7101 = vmatmul.mubr.bf16.vlgmr.msra.gmra.mxu1 %v9176_v57  ;;  %v6284_v2 = vld [vmem:[#allocation3 + $0x48] sm:$0xff]  ;;  %v6285_v57 = vld [vmem:[#allocation3 + $0x50] sm:$0xff] }
 0x47e   : > { %5238 = vst.msk [vmem:[#allocation5 + $0x78] sm:$0xf] %vm5222_vm5, %v5157_v51  ;;  %6446 = vrot.lane.b32.xlu1 %v11232_v52, %s9227_s10  ;;  %8213 = vmatprep.mubr.msk.bf16.mxu1 %vm866_vm2, %v9179_v46 }
 0x47f   : > { %6444 = vrot.lane.b32.xlu0 %v11234_v30, %s9227_s10 }
 0x480   : > { %v5924_v41 = vpop.permute.xlu1 %5923 }
 0x481   : > { %v5922_v32 = vpop.permute.xlu0 %5921  ;;  %6007 = vst.msk [vmem:[#allocation5 + $0x68] sm:$0xf] %vm5993_vm8, %v5924_v41  ;;  %v8742_v41 = vpack.c.bf16 %v6284_v2, %v6284_v2 }
 0x482   : > { %6006 = vst.msk [vmem:[#allocation5 + $0x60] sm:$0xf] %vm5993_vm8, %v5922_v32  ;;  %5421 = vrot.lane.b32.xlu1 %v11095_v47, %s9222_s25 }
 0x483   : > { %5419 = vrot.lane.b32.xlu0 %v11083_v15, %s9222_s25 }
 0x484   : > { %v4902_v34 = vpop.permute.xlu1 %4901 }
 0x485   : > { %v6180_v58 = vpop.permute.xlu0 %6179  ;;  %4982 = vst.msk [vmem:[#allocation5 + $0x80] sm:$0xf] %vm4965_vm3, %v4902_v34 }
 0x486   : > { %6264 = vst.msk [vmem:[#allocation5 + $0x60] sm:$0xf] %vm6251_vm9, %v6180_v58  ;;  %5678 = vrot.lane.b32.xlu1 %v11232_v52, %s9225_s28  ;;  %v8743_v58 = vpack.c.bf16 %v6285_v57, %v6285_v57 }
 0x487   : > { %5676 = vrot.lane.b32.xlu0 %v11234_v30, %s9225_s28 }
 0x488   : > { %v5159_v5 = vpop.permute.xlu1 %5158 }
 0x489   : > { %v6437_v9 = vpop.permute.xlu0 %6436  ;;  %5239 = vst.msk [vmem:[#allocation5 + $0x80] sm:$0xf] %vm5222_vm5, %v5159_v5 }
 0x48a   : > { %6520 = vst.msk [vmem:[#allocation5 + $0x60] sm:$0xf] %vm2637_vm12, %v6437_v9  ;;  %5935 = vrot.lane.b32.xlu1 %v11250_v59, %s9229_s21  ;;  %v5513_v59 = vld [vmem:[#allocation3 + $0x30] sm:$0xff] }
 0x48b   : > { %5933 = vrot.lane.b32.xlu0 %v8696_v45, %s9229_s21  ;;  %v8647_v6 = vpack.c.bf16 %v5513_v59, %v5513_v59 }
 0x48c   : > { %v6182_v47 = vpop.permute.xlu1 %6181 }
 0x48d   : > { %v5412_v15 = vpop.permute.xlu0 %5411  ;;  %6265 = vst.msk [vmem:[#allocation5 + $0x68] sm:$0xf] %vm6251_vm9, %v6182_v47 }
 0x48e   : > { %5494 = vst.msk [vmem:[#allocation5 + $0x70] sm:$0xf] %vm5479_vm6, %v5412_v15  ;;  %6193 = vrot.lane.b32.xlu1 %v11137_v37, %s9223_s26 }
 0x48f   : > { %6191 = vrot.lane.b32.xlu0 %v11113_v12, %s9223_s26 }
 0x490   : > { %v6439_v30 = vpop.permute.xlu1 %6438 }
 0x491   : > { %v5669_v52 = vpop.permute.xlu0 %5668  ;;  %6521 = vst.msk [vmem:[#allocation5 + $0x68] sm:$0xf] %vm2637_vm12, %v6439_v30  ;;  %v6744_v50 = vld [vmem:[#allocation5 + $0x60] sm:$0xff] }
 0x492   : > { %5751 = vst.msk [vmem:[#allocation5 + $0x70] sm:$0xf] %vm5736_vm7, %v5669_v52  ;;  %6450 = vrot.lane.b32.xlu1 %v11268_v16, %s9227_s10 }
 0x493   : > { %6448 = vrot.lane.b32.xlu0 %v11270_v55, %s9227_s10 }
 0x494   : > { %v5414_v27 = vpop.permute.xlu1 %5413 }
 0x495   : > { %v4904_v3 = vpop.permute.xlu0 %4903  ;;  %5495 = vst.msk [vmem:[#allocation5 + $0x78] sm:$0xf] %vm5479_vm6, %v5414_v27  ;;  %v5771_v27 = vld [vmem:[#allocation3 + $0x49] sm:$0xff] }
 0x496   : > { %4983 = vst.msk [vmem:[#allocation5 + $0x88] sm:$0xf] %vm4965_vm3, %v4904_v3  ;;  %5642 = vrot.lane.b32.xlu1 %v8647_v6, %s9225_s28  ;;  %v8680_v62 = vpack.c.bf16 %v5771_v27, %v5771_v27 }
 0x497   : > { %5640 = vrot.lane.b32.xlu0 %v8646_v61, %s9225_s28 }
 0x498   : > { %v5671_v33 = vpop.permute.xlu1 %5670  ;;  %v6745_v21 = vld [vmem:[#allocation5 + $0x68] sm:$0xff] }
 0x499   : > { %v5161_v60 = vpop.permute.xlu0 %5160  ;;  %5752 = vst.msk [vmem:[#allocation5 + $0x78] sm:$0xf] %vm5736_vm7, %v5671_v33  ;;  %v8178_v38 = vcombine.low %v6744_v50, %v6745_v21 }
 0x49a   : > { %5240 = vst.msk [vmem:[#allocation5 + $0x88] sm:$0xf] %vm5222_vm5, %v5161_v60  ;;  %5899 = vrot.lane.b32.xlu1 %v8679_v17, %s9229_s21  ;;  %v6030_v17 = vld [vmem:[#allocation3 + $0x6f] sm:$0xff] }
 0x49b   : > { %5897 = vrot.lane.b32.xlu0 %v8678_v11, %s9229_s21  ;;  %7109 = vmatmul.mubr.bf16.gmra.mxu1 %v8178_v38  ;;  %v8712_v11 = vpack.c.bf16 %v6029_v22, %v6029_v22  ;;  %v8713_v46 = vpack.c.bf16 %v6030_v17, %v6030_v17  ;;  %v6286_v38 = vld [vmem:[#allocation3 + $0x68] sm:$0xff] }
 0x49c   : > { %v5928_v13 = vpop.permute.xlu1 %5927  ;;  %8214 = vmatprep.mubr.msk.bf16.mxu1 %vm866_vm2, %v9181_v19  ;;  %v9183_v17 = vld [vmem:[#allocation5 + $0x84] ss:$8 sps:$4 sm:$0xff]  }
 0x49d   : > { %v5926_v0 = vpop.permute.xlu0 %5925  ;;  %6009 = vst.msk [vmem:[#allocation5 + $0x78] sm:$0xf] %vm5993_vm8, %v5928_v13  ;;  %v8744_v13 = vpack.c.bf16 %v6286_v38, %v6286_v38 }
 0x49e   : > { %6008 = vst.msk [vmem:[#allocation5 + $0x70] sm:$0xf] %vm5993_vm8, %v5926_v0  ;;  %6157 = vrot.lane.b32.xlu1 %v10870_v25, %s9223_s26 }
 0x49f   : > { %6155 = vrot.lane.b32.xlu0 %v8710_v4, %s9223_s26 }
 0x4a0   : > { %v4906_v51 = vpop.permute.xlu1 %4905 }
 0x4a1   : > { %v6184_v28 = vpop.permute.xlu0 %6183  ;;  %4984 = vst.msk [vmem:[#allocation5 + $0x90] sm:$0xf] %vm4965_vm3, %v4906_v51 }
 0x4a2   : > { %6266 = vst.msk [vmem:[#allocation5 + $0x70] sm:$0xf] %vm6251_vm9, %v6184_v28  ;;  %5425 = vrot.lane.b32.xlu1 %v11137_v37, %s9222_s25 }
 0x4a3   : > { %5423 = vrot.lane.b32.xlu0 %v11113_v12, %s9222_s25  ;;  %v5789_v12 = vld [vmem:[#allocation3 + $0x169] sm:$0xff] }
 0x4a4   : > { %v5163_v32 = vpop.permute.xlu1 %5162  ;;  %v8698_v9 = vpack.c.bf16 %v5789_v12, %v5789_v12 }
 0x4a5   : > { %v6441_v48 = vpop.permute.xlu0 %6440  ;;  %5241 = vst.msk [vmem:[#allocation5 + $0x90] sm:$0xf] %vm5222_vm5, %v5163_v32 }
 0x4a6   : > { %6522 = vst.msk [vmem:[#allocation5 + $0x70] sm:$0xf] %vm2637_vm12, %v6441_v48  ;;  %6414 = vrot.lane.b32.xlu1 %v8743_v58, %s9227_s10 }
 0x4a7   : > { %6412 = vrot.lane.b32.xlu0 %v8742_v41, %s9227_s10 }
 0x4a8   : > { %v6186_v34 = vpop.permute.xlu1 %6185 }
 0x4a9   : > { %v5416_v25 = vpop.permute.xlu0 %5415  ;;  %6267 = vst.msk [vmem:[#allocation5 + $0x78] sm:$0xf] %vm6251_vm9, %v6186_v34  ;;  %v5773_v34 = vld [vmem:[#allocation3 + $0x69] sm:$0xff] }
 0x4aa   : > { %5496 = vst.msk [vmem:[#allocation5 + $0x80] sm:$0xf] %vm5479_vm6, %v5416_v25  ;;  %5682 = vrot.lane.b32.xlu1 %v11268_v16, %s9225_s28 }
 0x4ab   : > { %5680 = vrot.lane.b32.xlu0 %v11270_v55, %s9225_s28  ;;  %v5258_v55 = vld [vmem:[#allocation3 + $0x4f] sm:$0xff] }
 0x4ac   : > { %v6443_v53 = vpop.permute.xlu1 %6442  ;;  %v8617_v47 = vpack.c.bf16 %v5258_v55, %v5258_v55 }
 0x4ad   : > { %v4908_v37 = vpop.permute.xlu0 %4907  ;;  %6523 = vst.msk [vmem:[#allocation5 + $0x78] sm:$0xf] %vm2637_vm12, %v6443_v53  ;;  %v6746_v52 = vld [vmem:[#allocation5 + $0x70] sm:$0xff]  ;;  %v8682_v53 = vpack.c.bf16 %v5773_v34, %v5773_v34 }
 0x4ae   : > { %4985 = vst.msk [vmem:[#allocation5 + $0x98] sm:$0xf] %vm4965_vm3, %v4908_v37  ;;  %5939 = vrot.lane.b32.xlu1 %v11280_v26, %s9229_s21 }
 0x4af   : > { %5937 = vrot.lane.b32.xlu0 %v8698_v9, %s9229_s21 }
 0x4b0   : > { %v5418_v45 = vpop.permute.xlu1 %5417 }
 0x4b1   : > { %v5165_v5 = vpop.permute.xlu0 %5164  ;;  %5497 = vst.msk [vmem:[#allocation5 + $0x88] sm:$0xf] %vm5479_vm6, %v5418_v45 }
 0x4b2   : > { %5242 = vst.msk [vmem:[#allocation5 + $0x98] sm:$0xf] %vm5222_vm5, %v5165_v5  ;;  %6197 = vrot.lane.b32.xlu1 %v11174_v56, %s9223_s26 }
 0x4b3   : > { %6195 = vrot.lane.b32.xlu0 %v11156_v29, %s9223_s26 }
 0x4b4   : > { %v4910_v15 = vpop.permute.xlu1 %4909  ;;  %v6747_v30 = vld [vmem:[#allocation5 + $0x78] sm:$0xff] }
 0x4b5   : > { %v4912_v16 = vpop.permute.xlu0 %4911  ;;  %4986 = vst.msk [vmem:[#allocation5 + $0xa0] sm:$0xf] %vm4965_vm3, %v4910_v15  ;;  %v8180_v26 = vcombine.low %v6746_v52, %v6747_v30 }
 0x4b6   : > { %4987 = vst.msk [vmem:[#allocation5 + $0xa8] sm:$0xf] %vm4965_vm3, %v4912_v16  ;;  %6452 = vrot.lane.b32.xlu1 %v11290_v43, %s9227_s10 }
 0x4b7   : > { %5389 = vrot.lane.b32.xlu0 %v8617_v47, %s9222_s25  ;;  %7117 = vmatmul.mubr.bf16.gmra.mxu1 %v8180_v26  ;;  %v6288_v47 = vld [vmem:[#allocation3 + $0x88] sm:$0xff] }
 0x4b8   : > { %v5167_v3 = vpop.permute.xlu1 %5166  ;;  %v8746_v19 = vpack.c.bf16 %v6288_v47, %v6288_v47  ;;  %v5536_v26 = vld [vmem:[#allocation3 + $0x1a8] sm:$0xff]  ;;  %8215 = vmatprep.mubr.msk.bf16.mxu1 %vm866_vm2, %v9183_v17 }
 0x4b9   : > { %v5169_v59 = vpop.permute.xlu0 %5168  ;;  %5243 = vst.msk [vmem:[#allocation5 + $0xa0] sm:$0xf] %vm5222_vm5, %v5167_v3 }
 0x4ba   : > { %5244 = vst.msk [vmem:[#allocation5 + $0xa8] sm:$0xf] %vm5222_vm5, %v5169_v59  ;;  %5644 = vrot.lane.b32.xlu1 %v8742_v41, %s9225_s28 }
 0x4bb   : > { %6454 = vrot.lane.b32.xlu0 %v11288_v44, %s9227_s10 }
 0x4bc   : > { %v4914_v6 = vpop.permute.xlu1 %4913 }
 0x4bd   : > { %v4916_v61 = vpop.permute.xlu0 %4915  ;;  %4988 = vst.msk [vmem:[#allocation5 + $0xb0] sm:$0xf] %vm4965_vm3, %v4914_v6  ;;  %v5793_v6 = vld [vmem:[#allocation3 + $0x1a9] sm:$0xff] }
 0x4be   : > { %4989 = vst.msk [vmem:[#allocation5 + $0xb8] sm:$0xf] %vm4965_vm3, %v4916_v61  ;;  %5901 = vrot.lane.b32.xlu1 %v8680_v62, %s9229_s21  ;;  %v8670_v61 = vpack.c.bf16 %v5536_v26, %v5536_v26 }
 0x4bf   : > { %5646 = vrot.lane.b32.xlu0 %v8743_v58, %s9225_s28 }
 0x4c0   : > { %v5171_v33 = vpop.permute.xlu1 %5170 }
 0x4c1   : > { %v5173_v60 = vpop.permute.xlu0 %5172  ;;  %5245 = vst.msk [vmem:[#allocation5 + $0xb0] sm:$0xf] %vm5222_vm5, %v5171_v33 }
 0x4c2   : > { %5246 = vst.msk [vmem:[#allocation5 + $0xb8] sm:$0xf] %vm5222_vm5, %v5173_v60  ;;  %6159 = vrot.lane.b32.xlu1 %v8712_v11, %s9223_s26 }
 0x4c3   : > { %5903 = vrot.lane.b32.xlu0 %v10875_v63, %s9229_s21  ;;  %v6287_v63 = vld [vmem:[#allocation3 + $0x70] sm:$0xff] }
 0x4c4   : > { %v4918_v21 = vpop.permute.xlu1 %4917  ;;  %v8745_v51 = vpack.c.bf16 %v6287_v63, %v6287_v63 }
 0x4c5   : > { %v4920_v50 = vpop.permute.xlu0 %4919  ;;  %4990 = vst.msk [vmem:[#allocation5 + $0xc0] sm:$0xf] %vm4965_vm3, %v4918_v21 }
 0x4c6   : > { %4991 = vst.msk [vmem:[#allocation5 + $0xc8] sm:$0xf] %vm4965_vm3, %v4920_v50  ;;  %5427 = vrot.lane.b32.xlu1 %v11156_v29, %s9222_s25  ;;  %v5791_v29 = vld [vmem:[#allocation3 + $0x189] sm:$0xff] }
 0x4c7   : > { %6161 = vrot.lane.b32.xlu0 %v8713_v46, %s9223_s26  ;;  %v8700_v48 = vpack.c.bf16 %v5791_v29, %v5791_v29 }
 0x4c8   : > { %v5175_v0 = vpop.permute.xlu1 %5174 }
 0x4c9   : > { %v5177_v49 = vpop.permute.xlu0 %5176  ;;  %5247 = vst.msk [vmem:[#allocation5 + $0xc0] sm:$0xf] %vm5222_vm5, %v5175_v0  ;;  %v6308_v0 = vld [vmem:[#allocation3 + $0x1c8] sm:$0xff] }
 0x4ca   : > { %5248 = vst.msk [vmem:[#allocation5 + $0xc8] sm:$0xf] %vm5222_vm5, %v5177_v49  ;;  %6416 = vrot.lane.b32.xlu1 %v8744_v13, %s9227_s10 }
 0x4cb   : > { %5429 = vrot.lane.b32.xlu0 %v11174_v56, %s9222_s25 }
 0x4cc   : > { %v4922_v28 = vpop.permute.xlu1 %4921 }
 0x4cd   : > { %v4924_v4 = vpop.permute.xlu0 %4923  ;;  %4992 = vst.msk [vmem:[#allocation5 + $0xd0] sm:$0xf] %vm4965_vm3, %v4922_v28 }
 0x4ce   : > { %4993 = vst.msk [vmem:[#allocation5 + $0xd8] sm:$0xf] %vm4965_vm3, %v4924_v4  ;;  %5684 = vrot.lane.b32.xlu1 %v11290_v43, %s9225_s28  ;;  %v8766_v4 = vpack.c.bf16 %v6308_v0, %v6308_v0 }
 0x4cf   : > { %6418 = vrot.lane.b32.xlu0 %v8745_v51, %s9227_s10 }
 0x4d0   : > { %v5179_v57 = vpop.permute.xlu1 %5178 }
 0x4d1   : > { %v5181_v2 = vpop.permute.xlu0 %5180  ;;  %5249 = vst.msk [vmem:[#allocation5 + $0xd0] sm:$0xf] %vm5222_vm5, %v5179_v57 }
 0x4d2   : > { %5250 = vst.msk [vmem:[#allocation5 + $0xd8] sm:$0xf] %vm5222_vm5, %v5181_v2  ;;  %5941 = vrot.lane.b32.xlu1 %v8700_v48, %s9229_s21  ;;  %v5775_v2 = vld [vmem:[#allocation3 + $0x89] sm:$0xff] }
 0x4d3   : > { %5686 = vrot.lane.b32.xlu0 %v11288_v44, %s9225_s28 }
 0x4d4   : > { %v4926_v32 = vpop.permute.xlu1 %4925 }
 0x4d5   : > { %v4928_v56 = vpop.permute.xlu0 %4927  ;;  %4994 = vst.msk [vmem:[#allocation5 + $0xe0] sm:$0xf] %vm4965_vm3, %v4926_v32 }
 0x4d6   : > { %4995 = vst.msk [vmem:[#allocation5 + $0xe8] sm:$0xf] %vm4965_vm3, %v4928_v56  ;;  %6199 = vrot.lane.b32.xlu1 %v11194_v54, %s9223_s26  ;;  %v8684_v56 = vpack.c.bf16 %v5775_v2, %v5775_v2 }
 0x4d7   : > { %5943 = vrot.lane.b32.xlu0 %v11305_v20, %s9229_s21 }
 0x4d8   : > { %v5183_v41 = vpop.permute.xlu1 %5182 }
 0x4d9   : > { %v5185_v43 = vpop.permute.xlu0 %5184  ;;  %5251 = vst.msk [vmem:[#allocation5 + $0xe0] sm:$0xf] %vm5222_vm5, %v5183_v41  ;;  %v9185_v41 = vld [vmem:[#allocation5 + $0x94] ss:$8 sps:$4 sm:$0xff]  }
 0x4da   : > { %5252 = vst.msk [vmem:[#allocation5 + $0xe8] sm:$0xf] %vm5222_vm5, %v5185_v43  ;;  %5391 = vrot.lane.b32.xlu1 %v8712_v11, %s9222_s25 }
 0x4db   : > { %6201 = vrot.lane.b32.xlu0 %v11212_v36, %s9223_s26 }
 0x4dc   : > { %v4930_v58 = vpop.permute.xlu1 %4929 }
 0x4dd   : > { %v4932_v44 = vpop.permute.xlu0 %4931  ;;  %4996 = vst.msk [vmem:[#allocation5 + $0xf0] sm:$0xf] %vm4965_vm3, %v4930_v58  ;;  %v6033_v58 = vld [vmem:[#allocation3 + $0xa7] sm:$0xff] }
 0x4de   : > { %4997 = vst.msk [vmem:[#allocation5 + $0xf8] sm:$0xf] %vm4965_vm3, %v4932_v44  ;;  %6456 = vrot.lane.b32.xlu1 %v11326_v42, %s9227_s10  ;;  %v6031_v42 = vld [vmem:[#allocation3 + $0x87] sm:$0xff]  ;;  %v8716_v34 = vpack.c.bf16 %v6033_v58, %v6033_v58 }
 0x4df   : > { %5393 = vrot.lane.b32.xlu0 %v8713_v46, %s9222_s25  ;;  %v8714_v45 = vpack.c.bf16 %v6031_v42, %v6031_v42  ;;  %v5797_v58 = vld [vmem:[#allocation3 + $0x1e9] sm:$0xff] }
 0x4e0   : > { %v5187_v25 = vpop.permute.xlu1 %5186 }
 0x4e1   : > { %v5189_v20 = vpop.permute.xlu0 %5188  ;;  %5253 = vst.msk [vmem:[#allocation5 + $0xf0] sm:$0xf] %vm5222_vm5, %v5187_v25 }
 0x4e2   : > { %5254 = vst.msk [vmem:[#allocation5 + $0xf8] sm:$0xf] %vm5222_vm5, %v5189_v20  ;;  %5648 = vrot.lane.b32.xlu1 %v8744_v13, %s9225_s28 }
 0x4e3   : > { %6458 = vrot.lane.b32.xlu0 %v11324_v18, %s9227_s10  ;;  %v6032_v18 = vld [vmem:[#allocation3 + $0x8f] sm:$0xff] }
 0x4e4   : > { %v5675_v37 = vpop.permute.xlu1 %5674  ;;  %v8715_v15 = vpack.c.bf16 %v6032_v18, %v6032_v18 }
 0x4e5   : > { %v5673_v12 = vpop.permute.xlu0 %5672  ;;  %5754 = vst.msk [vmem:[#allocation5 + $0x88] sm:$0xf] %vm5736_vm7, %v5675_v37 }
 0x4e6   : > { %5753 = vst.msk [vmem:[#allocation5 + $0x80] sm:$0xf] %vm5736_vm7, %v5673_v12  ;;  %5905 = vrot.lane.b32.xlu1 %v8682_v53, %s9229_s21  ;;  %v6034_v12 = vld [vmem:[#allocation3 + $0xaf] sm:$0xff] }
 0x4e7   : > { %5650 = vrot.lane.b32.xlu0 %v8745_v51, %s9225_s28  ;;  %v8717_v42 = vpack.c.bf16 %v6034_v12, %v6034_v12 }
 0x4e8   : > { %v5932_v5 = vpop.permute.xlu1 %5931 }
 0x4e9   : > { %v5930_v9 = vpop.permute.xlu0 %5929  ;;  %6011 = vst.msk [vmem:[#allocation5 + $0x88] sm:$0xf] %vm5993_vm8, %v5932_v5 }
 0x4ea   : > { %6010 = vst.msk [vmem:[#allocation5 + $0x80] sm:$0xf] %vm5993_vm8, %v5930_v9  ;;  %6163 = vrot.lane.b32.xlu1 %v8714_v45, %s9223_s26  ;;  %v6290_v9 = vld [vmem:[#allocation3 + $0xa8] sm:$0xff] }
 0x4eb   : > { %5907 = vrot.lane.b32.xlu0 %v10894_v14, %s9229_s21  ;;  %v6289_v14 = vld [vmem:[#allocation3 + $0x90] sm:$0xff]  ;;  %v8748_v18 = vpack.c.bf16 %v6290_v9, %v6290_v9  ;;  %v6055_v9 = vld [vmem:[#allocation3 + $0x207] sm:$0xff] }
 0x4ec   : > { %v6190_v16 = vpop.permute.xlu1 %6189  ;;  %v8747_v27 = vpack.c.bf16 %v6289_v14, %v6289_v14 }
 0x4ed   : > { %v6188_v55 = vpop.permute.xlu0 %6187  ;;  %6269 = vst.msk [vmem:[#allocation5 + $0x88] sm:$0xf] %vm6251_vm9, %v6190_v16 }
 0x4ee   : > { %6268 = vst.msk [vmem:[#allocation5 + $0x80] sm:$0xf] %vm6251_vm9, %v6188_v55  ;;  %5431 = vrot.lane.b32.xlu1 %v11194_v54, %s9222_s25  ;;  %v5537_v54 = vld [vmem:[#allocation3 + $0x1b0] sm:$0xff] }
 0x4ef   : > { %6165 = vrot.lane.b32.xlu0 %v8715_v15, %s9223_s26  ;;  %v8671_v60 = vpack.c.bf16 %v5537_v54, %v5537_v54 }
 0x4f0   : > { %v6447_v30 = vpop.permute.xlu1 %6446 }
 0x4f1   : > { %v6445_v52 = vpop.permute.xlu0 %6444  ;;  %6525 = vst.msk [vmem:[#allocation5 + $0x88] sm:$0xf] %vm2637_vm12, %v6447_v30 }
 0x4f2   : > { %6524 = vst.msk [vmem:[#allocation5 + $0x80] sm:$0xf] %vm2637_vm12, %v6445_v52  ;;  %6420 = vrot.lane.b32.xlu1 %v8746_v19, %s9227_s10 }
 0x4f3   : > { %5433 = vrot.lane.b32.xlu0 %v11212_v36, %s9222_s25  ;;  %v8702_v36 = vpack.c.bf16 %v5793_v6, %v5793_v6 }
 0x4f4   : > { %v5422_v3 = vpop.permute.xlu1 %5421 }
 0x4f5   : > { %v5420_v59 = vpop.permute.xlu0 %5419  ;;  %5499 = vst.msk [vmem:[#allocation5 + $0x98] sm:$0xf] %vm5479_vm6, %v5422_v3 }
 0x4f6   : > { %5498 = vst.msk [vmem:[#allocation5 + $0x90] sm:$0xf] %vm5479_vm6, %v5420_v59  ;;  %5688 = vrot.lane.b32.xlu1 %v8670_v61, %s9225_s28 }
 0x4f7   : > { %6422 = vrot.lane.b32.xlu0 %v8747_v27, %s9227_s10 }
 0x4f8   : > { %v5679_v22 = vpop.permute.xlu1 %5678  ;;  %v6749_v11 = vld [vmem:[#allocation5 + $0x88] sm:$0xff] }
 0x4f9   : > { %v5677_v62 = vpop.permute.xlu0 %5676  ;;  %v6748_v33 = vld [vmem:[#allocation5 + $0x80] sm:$0xff]  ;;  %5756 = vst.msk [vmem:[#allocation5 + $0x98] sm:$0xf] %vm5736_vm7, %v5679_v22 }
 0x4fa   : > { %5755 = vst.msk [vmem:[#allocation5 + $0x90] sm:$0xf] %vm5736_vm7, %v5677_v62  ;;  %v8182_v50 = vcombine.low %v6748_v33, %v6749_v11  ;;  %5945 = vrot.lane.b32.xlu1 %v8702_v36, %s9229_s21  ;;  %v5777_v36 = vld [vmem:[#allocation3 + $0xa9] sm:$0xff] }
 0x4fb   : > { %5690 = vrot.lane.b32.xlu0 %v8671_v60, %s9225_s28  ;;  %v8686_v17 = vpack.c.bf16 %v5777_v36, %v5777_v36  ;;  %v6571_v36 = vld [vmem:[#allocation3 + $0x231] sm:$0xff] }
 0x4fc   : > { %7125 = vmatmul.mubr.bf16.gmra.mxu1 %v8182_v50  ;;  %v5936_v46 = vpop.permute.xlu1 %5935 }
 0x4fd   : > { %v5934_v21 = vpop.permute.xlu0 %5933  ;;  %6013 = vst.msk [vmem:[#allocation5 + $0x98] sm:$0xf] %vm5993_vm8, %v5936_v46  ;;  %8216 = vmatprep.mubr.msk.bf16.mxu1 %vm866_vm2, %v9185_v41  ;;  %v9190_v46 = vld [vmem:[#allocation5 + $0xa4] ss:$8 sps:$4 sm:$0xff]  }
 0x4fe   : > { %6012 = vst.msk [vmem:[#allocation5 + $0x90] sm:$0xf] %vm5993_vm8, %v5934_v21  ;;  %6203 = vrot.lane.b32.xlu1 %v11236_v39, %s9223_s26 }
 0x4ff   : > { %5947 = vrot.lane.b32.xlu0 %v11220_v23, %s9229_s21  ;;  %v6309_v23 = vld [vmem:[#allocation3 + $0x1d0] sm:$0xff] }
 0x500   : > { %v6194_v49 = vpop.permute.xlu1 %6193  ;;  %v8767_v29 = vpack.c.bf16 %v6309_v23, %v6309_v23 }
 0x501   : > { %v6192_v38 = vpop.permute.xlu0 %6191  ;;  %6271 = vst.msk [vmem:[#allocation5 + $0x98] sm:$0xf] %vm6251_vm9, %v6194_v49  ;;  %v6035_v49 = vld [vmem:[#allocation3 + $0xc7] sm:$0xff] }
 0x502   : > { %6270 = vst.msk [vmem:[#allocation5 + $0x90] sm:$0xf] %vm6251_vm9, %v6192_v38  ;;  %5395 = vrot.lane.b32.xlu1 %v8714_v45, %s9222_s25 }
 0x503   : > { %6205 = vrot.lane.b32.xlu0 %v11253_v24, %s9223_s26 }
 0x504   : > { %v6451_v63 = vpop.permute.xlu1 %6450 }
 0x505   : > { %v6449_v13 = vpop.permute.xlu0 %6448  ;;  %6527 = vst.msk [vmem:[#allocation5 + $0x98] sm:$0xf] %vm2637_vm12, %v6451_v63  ;;  %v8718_v63 = vpack.c.bf16 %v6035_v49, %v6035_v49 }
 0x506   : > { %6526 = vst.msk [vmem:[#allocation5 + $0x90] sm:$0xf] %vm2637_vm12, %v6449_v13  ;;  %6460 = vrot.lane.b32.xlu1 %v8766_v4, %s9227_s10 }
 0x507   : > { %5397 = vrot.lane.b32.xlu0 %v8715_v15, %s9222_s25 }
 0x508   : > { %v5643_v51 = vpop.permute.xlu1 %5642 }
 0x509   : > { %v5641_v28 = vpop.permute.xlu0 %5640  ;;  %5738 = vst.msk [vmem:[#allocation5 + $0x8] sm:$0xf] %vm5736_vm7, %v5643_v51 }
 0x50a   : > { %5737 = vst.msk [vmem:[#allocation5] sm:$0xf] %vm5736_vm7, %v5641_v28  ;;  %5652 = vrot.lane.b32.xlu1 %v8746_v19, %s9225_s28 }
 0x50b   : > { %6462 = vrot.lane.b32.xlu0 %v8767_v29, %s9227_s10 }
 0x50c   : > { %v5900_v48 = vpop.permute.xlu1 %5899  ;;  %v6751_v43 = vld [vmem:[#allocation5 + $0x98] sm:$0xff] }
 0x50d   : > { %v5898_v57 = vpop.permute.xlu0 %5897  ;;  %v6750_v32 = vld [vmem:[#allocation5 + $0x90] sm:$0xff]  ;;  %5995 = vst.msk [vmem:[#allocation5 + $0x8] sm:$0xf] %vm5993_vm8, %v5900_v48 }
 0x50e   : > { %5994 = vst.msk [vmem:[#allocation5] sm:$0xf] %vm5993_vm8, %v5898_v57  ;;  %v8184_v44 = vcombine.low %v6750_v32, %v6751_v43  ;;  %5909 = vrot.lane.b32.xlu1 %v8684_v56, %s9229_s21  ;;  %v6293_v56 = vld [vmem:[#allocation3 + $0xd0] sm:$0xff] }
 0x50f   : > { %5654 = vrot.lane.b32.xlu0 %v8747_v27, %s9225_s28  ;;  %v6310_v27 = vld [vmem:[#allocation3 + $0x1e8] sm:$0xff] }
 0x510   : > { %7133 = vmatmul.mubr.bf16.gmra.mxu1 %v8184_v44  ;;  %v6158_v25 = vpop.permute.xlu1 %6157  ;;  %v8768_v6 = vpack.c.bf16 %v6310_v27, %v6310_v27 }
 0x511   : > { %v6156_v20 = vpop.permute.xlu0 %6155  ;;  %6253 = vst.msk [vmem:[#allocation5 + $0x8] sm:$0xf] %vm6251_vm9, %v6158_v25  ;;  %8217 = vmatprep.mubr.msk.bf16.mxu1 %vm866_vm2, %v9190_v46  ;;  %v6314_v46 = vld [vmem:[#allocation3 + $0x228] sm:$0xff] }
 0x512   : > { %6252 = vst.msk [vmem:[#allocation5] sm:$0xf] %vm6251_vm9, %v6156_v20  ;;  %6167 = vrot.lane.b32.xlu1 %v8716_v34, %s9223_s26 }
 0x513   : > { %5911 = vrot.lane.b32.xlu0 %v10911_v8, %s9229_s21  ;;  %v6291_v8 = vld [vmem:[#allocation3 + $0xb0] sm:$0xff] }
 0x514   : > { %v5426_v53 = vpop.permute.xlu1 %5425  ;;  %v8749_v15 = vpack.c.bf16 %v6291_v8, %v6291_v8  ;;  %v6056_v8 = vld [vmem:[#allocation3 + $0x20f] sm:$0xff] }
 0x515   : > { %v5424_v37 = vpop.permute.xlu0 %5423  ;;  %5501 = vst.msk [vmem:[#allocation5 + $0xa8] sm:$0xf] %vm5479_vm6, %v5426_v53 }
 0x516   : > { %5500 = vst.msk [vmem:[#allocation5 + $0xa0] sm:$0xf] %vm5479_vm6, %v5424_v37  ;;  %5435 = vrot.lane.b32.xlu1 %v11236_v39, %s9222_s25  ;;  %v5795_v39 = vld [vmem:[#allocation3 + $0x1c9] sm:$0xff]  ;;  %v9192_v37 = vld [vmem:[#allocation5 + $0x14] ss:$8 sps:$4 sm:$0xff]  }
 0x517   : > { %6169 = vrot.lane.b32.xlu0 %v8717_v42, %s9223_s26  ;;  %v8704_v30 = vpack.c.bf16 %v5795_v39, %v5795_v39 }
 0x518   : > { %v6415_v45 = vpop.permute.xlu1 %6414 }
 0x519   : > { %v6413_v5 = vpop.permute.xlu0 %6412  ;;  %6509 = vst.msk [vmem:[#allocation5 + $0x8] sm:$0xf] %vm2637_vm12, %v6415_v45  ;;  %v8738_v45 = vpack.c.bf16 %v6055_v9, %v6055_v9 }
 0x51a   : > { %6508 = vst.msk [vmem:[#allocation5] sm:$0xf] %vm2637_vm12, %v6413_v5  ;;  %6424 = vrot.lane.b32.xlu1 %v8748_v18, %s9227_s10 }
 0x51b   : > { %5437 = vrot.lane.b32.xlu0 %v11253_v24, %s9222_s25  ;;  %v9189_v24 = vld [vmem:[#allocation5 + $0x4] ss:$8 sps:$4 sm:$0xff]  }
 0x51c   : > { %v5683_v16 = vpop.permute.xlu1 %5682  ;;  %8207 = vmatprep.mubr.msk.bf16.mxu0 %vm866_vm2, %v9189_v24 }
 0x51d   : > { %v5681_v55 = vpop.permute.xlu0 %5680  ;;  %5758 = vst.msk [vmem:[#allocation5 + $0xa8] sm:$0xf] %vm5736_vm7, %v5683_v16 }
 0x51e   : > { %5757 = vst.msk [vmem:[#allocation5 + $0xa0] sm:$0xf] %vm5736_vm7, %v5681_v55  ;;  %5692 = vrot.lane.b32.xlu1 %v8766_v4, %s9225_s28  ;;  %v6036_v4 = vld [vmem:[#allocation3 + $0xcf] sm:$0xff] }
 0x51f   : > { %6426 = vrot.lane.b32.xlu0 %v8749_v15, %s9227_s10  ;;  %v8719_v51 = vpack.c.bf16 %v6036_v4, %v6036_v4  ;;  %v6312_v55 = vld [vmem:[#allocation3 + $0x208] sm:$0xff]  ;;  %v8772_v4 = vpack.c.bf16 %v6314_v46, %v6314_v46 }
 0x520   : > { %v5940_v52 = vpop.permute.xlu1 %5939  ;;  %v8770_v39 = vpack.c.bf16 %v6312_v55, %v6312_v55 }
 0x521   : > { %v5938_v47 = vpop.permute.xlu0 %5937  ;;  %v9187_v19 = vld [vmem:[#allocation5] ss:$8 sps:$4 sm:$0xff]   ;;  %6015 = vst.msk [vmem:[#allocation5 + $0xa8] sm:$0xf] %vm5993_vm8, %v5940_v52  ;;  %v6313_v52 = vld [vmem:[#allocation3 + $0x210] sm:$0xff] }
 0x522   : > { %6014 = vst.msk [vmem:[#allocation5 + $0xa0] sm:$0xf] %vm5993_vm8, %v5938_v47  ;;  %5949 = vrot.lane.b32.xlu1 %v8704_v30, %s9229_s21  ;;  %7061 = vmatmul.mubr.bf16.vlgmr.msra.gmra.mxu0 %v9187_v19  ;;  %v8771_v19 = vpack.c.bf16 %v6313_v52, %v6313_v52 }
 0x523   : > { %5694 = vrot.lane.b32.xlu0 %v8767_v29, %s9225_s28  ;;  %v6292_v29 = vld [vmem:[#allocation3 + $0xc8] sm:$0xff]  ;;  %8208 = vmatprep.mubr.msk.bf16.mxu0 %vm866_vm2, %v9192_v37 }
 0x524   : > { %v6198_v26 = vpop.permute.xlu1 %6197  ;;  %v8750_v48 = vpack.c.bf16 %v6292_v29, %v6292_v29 }
 0x525   : > { %v6196_v14 = vpop.permute.xlu0 %6195  ;;  %6273 = vst.msk [vmem:[#allocation5 + $0xa8] sm:$0xf] %vm6251_vm9, %v6198_v26  ;;  %v5799_v26 = vld [vmem:[#allocation3 + $0x209] sm:$0xff] }
 0x526   : > { %6272 = vst.msk [vmem:[#allocation5 + $0xa0] sm:$0xf] %vm6251_vm9, %v6196_v14  ;;  %6207 = vrot.lane.b32.xlu1 %v11292_v40, %s9223_s26 }
 0x527   : > { %5951 = vrot.lane.b32.xlu0 %v11262_v35, %s9229_s21  ;;  %v6311_v35 = vld [vmem:[#allocation3 + $0x1f0] sm:$0xff] }
 0x528   : > { %v6453_v3 = vpop.permute.xlu1 %6452  ;;  %v11611_v60 = vpack.c.bf16 %v6311_v35, %v6311_v35  ;;  %v9194_v35 = vld [vmem:[#allocation5 + $0xb4] ss:$8 sps:$4 sm:$0xff]  }
 0x529   : > { %v5390_v59 = vpop.permute.xlu0 %5389  ;;  %6528 = vst.msk [vmem:[#allocation5 + $0xa0] sm:$0xf] %vm2637_vm12, %v6453_v3  ;;  %v6057_v3 = vld [vmem:[#allocation3 + $0x227] sm:$0xff] }
 0x52a   : > { %5483 = vst.msk [vmem:[#allocation5 + $0x18] sm:$0xf] %vm5479_vm6, %v5390_v59  ;;  %5399 = vrot.lane.b32.xlu1 %v8716_v34, %s9222_s25 }
 0x52b   : > { %6209 = vrot.lane.b32.xlu0 %v11309_v1, %s9223_s26 }
 0x52c   : > { %v5645_v54 = vpop.permute.xlu1 %5644 }
 0x52d   : > { %v6455_v61 = vpop.permute.xlu0 %6454  ;;  %5739 = vst.msk [vmem:[#allocation5 + $0x10] sm:$0xf] %vm5736_vm7, %v5645_v54  ;;  %v8708_v54 = vpack.c.bf16 %v5799_v26, %v5799_v26 }
 0x52e   : > { %6529 = vst.msk [vmem:[#allocation5 + $0xa8] sm:$0xf] %vm2637_vm12, %v6455_v61  ;;  %6464 = vrot.lane.b32.xlu1 %v8768_v6, %s9227_s10 }
 0x52f   : > { %5401 = vrot.lane.b32.xlu0 %v8717_v42, %s9222_s25 }
 0x530   : > { %v5902_v22 = vpop.permute.xlu1 %5901  ;;  %v6752_v50 = vld [vmem:[#allocation5 + $0xa0] sm:$0xff] }
 0x531   : > { %v5647_v62 = vpop.permute.xlu0 %5646  ;;  %5996 = vst.msk [vmem:[#allocation5 + $0x10] sm:$0xf] %vm5993_vm8, %v5902_v22 }
 0x532   : > { %5740 = vst.msk [vmem:[#allocation5 + $0x18] sm:$0xf] %vm5736_vm7, %v5647_v62  ;;  %5656 = vrot.lane.b32.xlu1 %v8748_v18, %s9225_s28  ;;  %v6570_v62 = vld [vmem:[#allocation3 + $0x229] sm:$0xff] }
 0x533   : > { %6466 = vrot.lane.b32.xlu0 %v11611_v60, %s9227_s10 }
 0x534   : > { %v6160_v11 = vpop.permute.xlu1 %6159 }
 0x535   : > { %v5904_v33 = vpop.permute.xlu0 %5903  ;;  %v6753_v21 = vld [vmem:[#allocation5 + $0xa8] sm:$0xff]  ;;  %6254 = vst.msk [vmem:[#allocation5 + $0x10] sm:$0xf] %vm6251_vm9, %v6160_v11 }
 0x536   : > { %5997 = vst.msk [vmem:[#allocation5 + $0x18] sm:$0xf] %vm5993_vm8, %v5904_v33  ;;  %v8186_v38 = vcombine.low %v6752_v50, %v6753_v21  ;;  %5913 = vrot.lane.b32.xlu1 %v8686_v17, %s9229_s21  ;;  %v8804_v33 = vpack.c.bf16 %v6570_v62, %v6570_v62  ;;  %v8740_v17 = vpack.c.bf16 %v6057_v3, %v6057_v3  ;;  %v6058_v21 = vld [vmem:[#allocation3 + $0x22f] sm:$0xff] }
 0x537   : > { %5658 = vrot.lane.b32.xlu0 %v8749_v15, %s9225_s28  ;;  %v8739_v15 = vpack.c.bf16 %v6056_v8, %v6056_v8  ;;  %v8805_v50 = vpack.c.bf16 %v6571_v36, %v6571_v36 }
 0x538   : > { %7141 = vmatmul.mubr.bf16.gmra.mxu1 %v8186_v38  ;;  %v5428_v13 = vpop.permute.xlu1 %5427  ;;  %6730 = vst.msk [vmem:[#allocation5 + $0xf4] sm:$0xf] %vm4708_vm1, %v8804_v33 }
 0x539   : > { %v6162_v0 = vpop.permute.xlu0 %6161  ;;  %5502 = vst.msk [vmem:[#allocation5 + $0xb0] sm:$0xf] %vm5479_vm6, %v5428_v13  ;;  %8218 = vmatprep.mubr.msk.bf16.mxu1 %vm866_vm2, %v9194_v35 }
 0x53a   : > { %6255 = vst.msk [vmem:[#allocation5 + $0x18] sm:$0xf] %vm6251_vm9, %v6162_v0  ;;  %6171 = vrot.lane.b32.xlu1 %v8718_v63, %s9223_s26  ;;  %v8741_v63 = vpack.c.bf16 %v6058_v21, %v6058_v21 }
 0x53b   : > { %5915 = vrot.lane.b32.xlu0 %v10928_v31, %s9229_s21  ;;  %6731 = vst.msk [vmem:[#allocation5 + $0xfc] sm:$0xf] %vm4708_vm1, %v8805_v50 }
 0x53c   : > { %v6417_v28 = vpop.permute.xlu1 %6416 }
 0x53d   : > { %v5430_v23 = vpop.permute.xlu0 %5429  ;;  %6510 = vst.msk [vmem:[#allocation5 + $0x10] sm:$0xf] %vm2637_vm12, %v6417_v28  ;;  %v11633_v57 = vpop.f32.mrf.mxu1 }
 0x53e   : > { %5503 = vst.msk [vmem:[#allocation5 + $0xb8] sm:$0xf] %vm5479_vm6, %v5430_v23  ;;  %5439 = vrot.lane.b32.xlu1 %v11292_v40, %s9222_s25  ;;  %v8751_v40 = vpack.c.bf16 %v6293_v56, %v6293_v56  ;;  %v6315_v23 = vld [vmem:[#allocation3 + $0x230] sm:$0xff] }
 0x53f   : > { %6173 = vrot.lane.b32.xlu0 %v8719_v51, %s9223_s26  ;;  %v7104_v32 = vpop.f32.mrf.mxu1  ;;  %v8773_v29 = vpack.c.bf16 %v6315_v23, %v6315_v23 }
 0x540   : > { %v5685_v31 = vpop.permute.xlu1 %5684 }
 0x541   : > { %v6419_v2 = vpop.permute.xlu0 %6418  ;;  %5759 = vst.msk [vmem:[#allocation5 + $0xb0] sm:$0xf] %vm5736_vm7, %v5685_v31  ;;  %v11640_v41 = vpop.f32.mrf.mxu1 }
 0x542   : > { %6511 = vst.msk [vmem:[#allocation5 + $0x18] sm:$0xf] %vm2637_vm12, %v6419_v2  ;;  %6428 = vrot.lane.b32.xlu1 %v8750_v48, %s9227_s10 }
 0x543   : > { %5441 = vrot.lane.b32.xlu0 %v11309_v1, %s9222_s25  ;;  %v7107_v20 = vpop.f32.mrf.mxu1  ;;  %v8706_v1 = vpack.c.bf16 %v5797_v58, %v5797_v58 }
 0x544   : > { %v5942_v44 = vpop.permute.xlu1 %5941  ;;  %v6734_v34 = vld [vmem:[#allocation5 + $0x10] sm:$0xff] }
 0x545   : > { %v5687_v43 = vpop.permute.xlu0 %5686  ;;  %6016 = vst.msk [vmem:[#allocation5 + $0xb0] sm:$0xf] %vm5993_vm8, %v5942_v44 }
 0x546   : > { %5760 = vst.msk [vmem:[#allocation5 + $0xb8] sm:$0xf] %vm5736_vm7, %v5687_v43  ;;  %5696 = vrot.lane.b32.xlu1 %v8768_v6, %s9225_s28 }
 0x547   : > { %6430 = vrot.lane.b32.xlu0 %v8751_v40, %s9227_s10  ;;  %v9196_v40 = vld [vmem:[#allocation5 + $0x24] ss:$8 sps:$4 sm:$0xff]  }
 0x548   : > { %v6200_v53 = vpop.permute.xlu1 %6199 }
 0x549   : > { %v5944_v25 = vpop.permute.xlu0 %5943  ;;  %v6735_v12 = vld [vmem:[#allocation5 + $0x18] sm:$0xff]  ;;  %6274 = vst.msk [vmem:[#allocation5 + $0xb0] sm:$0xf] %vm6251_vm9, %v6200_v53 }
 0x54a   : > { %6017 = vst.msk [vmem:[#allocation5 + $0xb8] sm:$0xf] %vm5993_vm8, %v5944_v25  ;;  %v8168_v42 = vcombine.low %v6734_v34, %v6735_v12  ;;  %5953 = vrot.lane.b32.xlu1 %v8706_v1, %s9229_s21 }
 0x54b   : > { %5698 = vrot.lane.b32.xlu0 %v11611_v60, %s9225_s28 }
 0x54c   : > { %7069 = vmatmul.mubr.bf16.gmra.mxu0 %v8168_v42  ;;  %v5392_v18 = vpop.permute.xlu1 %5391 }
 0x54d   : > { %v6202_v5 = vpop.permute.xlu0 %6201  ;;  %5484 = vst.msk [vmem:[#allocation5 + $0x20] sm:$0xf] %vm5479_vm6, %v5392_v18  ;;  %8209 = vmatprep.mubr.msk.bf16.mxu0 %vm866_vm2, %v9196_v40  ;;  %v11750_v40 = vld [vmem:[%s11855_s8] ss:$0 sm:$0xff] }
 0x54e   : > { %6275 = vst.msk [vmem:[#allocation5 + $0xb8] sm:$0xf] %vm6251_vm9, %v6202_v5  ;;  %6211 = vrot.lane.b32.xlu1 %v8738_v45, %s9223_s26 }
 0x54f   : > { %5955 = vrot.lane.b32.xlu0 %v11318_v7, %s9229_s21 }
 0x550   : > { %v6457_v47 = vpop.permute.xlu1 %6456 }
 0x551   : > { %v5394_v16 = vpop.permute.xlu0 %5393  ;;  %6530 = vst.msk [vmem:[#allocation5 + $0xb0] sm:$0xf] %vm2637_vm12, %v6457_v47 }
 0x552   : > { %5485 = vst.msk [vmem:[#allocation5 + $0x28] sm:$0xf] %vm5479_vm6, %v5394_v16  ;;  %6468 = vrot.lane.b32.xlu1 %v8770_v39, %s9227_s10 }
 0x553   : > { %6213 = vrot.lane.b32.xlu0 %v8739_v15, %s9223_s26 }
 0x554   : > { %v5649_v7 = vpop.permute.xlu1 %5648 }
 0x555   : > { %v6459_v30 = vpop.permute.xlu0 %6458  ;;  %5741 = vst.msk [vmem:[#allocation5 + $0x20] sm:$0xf] %vm5736_vm7, %v5649_v7 }
 0x556   : > { %6531 = vst.msk [vmem:[#allocation5 + $0xb8] sm:$0xf] %vm2637_vm12, %v6459_v30  ;;  %5443 = vrot.lane.b32.xlu1 %v8738_v45, %s9222_s25 }
 0x557   : > { %6470 = vrot.lane.b32.xlu0 %v8771_v19, %s9227_s10 }
 0x558   : > { %v5906_v14 = vpop.permute.xlu1 %5905  ;;  %v6754_v59 = vld [vmem:[#allocation5 + $0xb0] sm:$0xff] }
 0x559   : > { %v5651_v24 = vpop.permute.xlu0 %5650  ;;  %5998 = vst.msk [vmem:[#allocation5 + $0x20] sm:$0xf] %vm5993_vm8, %v5906_v14 }
 0x55a   : > { %5742 = vst.msk [vmem:[#allocation5 + $0x28] sm:$0xf] %vm5736_vm7, %v5651_v24  ;;  %5700 = vrot.lane.b32.xlu1 %v8770_v39, %s9225_s28 }
 0x55b   : > { %5445 = vrot.lane.b32.xlu0 %v8739_v15, %s9222_s25  ;;  %v11669_v61 = vpop.f32.mrf.mxu1  ;;  %v9198_v15 = vld [vmem:[#allocation5 + $0xc4] ss:$8 sps:$4 sm:$0xff]  }
 0x55c   : > { %v6164_v22 = vpop.permute.xlu1 %6163 }
 0x55d   : > { %v5908_v27 = vpop.permute.xlu0 %5907  ;;  %v6755_v6 = vld [vmem:[#allocation5 + $0xb8] sm:$0xff]  ;;  %6256 = vst.msk [vmem:[#allocation5 + $0x20] sm:$0xf] %vm6251_vm9, %v6164_v22  ;;  %v7112_v11 = vpop.f32.mrf.mxu1 }
 0x55e   : > { %5999 = vst.msk [vmem:[#allocation5 + $0x28] sm:$0xf] %vm5993_vm8, %v5908_v27  ;;  %v8188_v60 = vcombine.low %v6754_v59, %v6755_v6  ;;  %5957 = vrot.lane.b32.xlu1 %v8708_v54, %s9229_s21  ;;  %v9200_v6 = vld [vmem:[#allocation5 + $0x34] ss:$8 sps:$4 sm:$0xff]  }
 0x55f   : > { %5702 = vrot.lane.b32.xlu0 %v8771_v19, %s9225_s28  ;;  %v11677_v49 = vpop.f32.mrf.mxu1 }
 0x560   : > { %7149 = vmatmul.mubr.bf16.gmra.mxu1 %v8188_v60  ;;  %v5432_v0 = vpop.permute.xlu1 %5431 }
 0x561   : > { %v6166_v38 = vpop.permute.xlu0 %6165  ;;  %5504 = vst.msk [vmem:[#allocation5 + $0xc0] sm:$0xf] %vm5479_vm6, %v5432_v0  ;;  %v7115_v13 = vpop.f32.mrf.mxu1  ;;  %8219 = vmatprep.mubr.msk.bf16.mxu1 %vm866_vm2, %v9198_v15 }
 0x562   : > { %6257 = vst.msk [vmem:[#allocation5 + $0x28] sm:$0xf] %vm6251_vm9, %v6166_v38  ;;  %6215 = vrot.lane.b32.xlu1 %v8740_v17, %s9223_s26  ;;  %v9202_v13 = vld [vmem:[#allocation5 + $0xd4] ss:$8 sps:$4 sm:$0xff]  }
 0x563   : > { %5959 = vrot.lane.b32.xlu0 %v11348_v10, %s9229_s21  ;;  %s352_s21 = scalar_lea.vmem %s11856_s9, %s9439_s13 }
 0x564   : > { %v6421_v51 = vpop.permute.xlu1 %6420 }
 0x565   : > { %v5434_v28 = vpop.permute.xlu0 %5433  ;;  %6512 = vst.msk [vmem:[#allocation5 + $0x20] sm:$0xf] %vm2637_vm12, %v6421_v51 }
 0x566   : > { %5505 = vst.msk [vmem:[#allocation5 + $0xc8] sm:$0xf] %vm5479_vm6, %v5434_v28  ;;  %6472 = vrot.lane.b32.xlu1 %v8772_v4, %s9227_s10 }
 0x567   : > { %6217 = vrot.lane.b32.xlu0 %v8741_v63, %s9223_s26 }
 0x568   : > { %v5689_v10 = vpop.permute.xlu1 %5688 }
 0x569   : > { %v6423_v2 = vpop.permute.xlu0 %6422  ;;  %5761 = vst.msk [vmem:[#allocation5 + $0xc0] sm:$0xf] %vm5736_vm7, %v5689_v10 }
 0x56a   : > { %6513 = vst.msk [vmem:[#allocation5 + $0x28] sm:$0xf] %vm2637_vm12, %v6423_v2 }
 0x56b   : > { %6474 = vrot.lane.b32.xlu0 %v8773_v29, %s9227_s10 }
 0x56c   : > { %v5946_v31 = vpop.permute.xlu1 %5945  ;;  %v6736_v32 = vld [vmem:[#allocation5 + $0x20] sm:$0xff] }
 0x56d   : > { %v5691_v48 = vpop.permute.xlu0 %5690  ;;  %6018 = vst.msk [vmem:[#allocation5 + $0xc0] sm:$0xf] %vm5993_vm8, %v5946_v31 }
 0x56e   : > { %5762 = vst.msk [vmem:[#allocation5 + $0xc8] sm:$0xf] %vm5736_vm7, %v5691_v48  ;;  %v11743_v48 = vld [vmem:[%s11854_s7] ss:$0 sm:$0xff] }
 0x570   : > { %v6204_v44 = vpop.permute.xlu1 %6203 }
 0x571   : > { %v5948_v56 = vpop.permute.xlu0 %5947  ;;  %v6737_v43 = vld [vmem:[#allocation5 + $0x28] sm:$0xff]  ;;  %6276 = vst.msk [vmem:[#allocation5 + $0xc0] sm:$0xf] %vm6251_vm9, %v6204_v44 }
 0x572   : > { %6019 = vst.msk [vmem:[#allocation5 + $0xc8] sm:$0xf] %vm5993_vm8, %v5948_v56  ;;  %v8170_v58 = vcombine.low %v6736_v32, %v6737_v43 }
 0x574   : > { %7077 = vmatmul.mubr.bf16.gmra.mxu0 %v8170_v58  ;;  %v5396_v25 = vpop.permute.xlu1 %5395 }
 0x575   : > { %v6206_v20 = vpop.permute.xlu0 %6205  ;;  %5486 = vst.msk [vmem:[#allocation5 + $0x30] sm:$0xf] %vm5479_vm6, %v5396_v25  ;;  %8210 = vmatprep.mubr.msk.bf16.mxu0 %vm866_vm2, %v9200_v6 }
 0x576   : > { %6277 = vst.msk [vmem:[#allocation5 + $0xc8] sm:$0xf] %vm6251_vm9, %v6206_v20 }
 0x577   : > { %v11699_v34 = vpop.f32.mrf.mxu1 }
 0x578   : > { %v6461_v12 = vpop.permute.xlu1 %6460 }
 0x579   : > { %v5398_v1 = vpop.permute.xlu0 %5397  ;;  %6532 = vst.msk [vmem:[#allocation5 + $0xc0] sm:$0xf] %vm2637_vm12, %v6461_v12  ;;  %v7120_v37 = vpop.f32.mrf.mxu1 }
 0x57a   : > { %5487 = vst.msk [vmem:[#allocation5 + $0x38] sm:$0xf] %vm5479_vm6, %v5398_v1  ;;  %v9204_v37 = vld [vmem:[#allocation5 + $0x44] ss:$8 sps:$4 sm:$0xff]  }
 0x57b   : > { %v11703_v42 = vpop.f32.mrf.mxu1 }
 0x57c   : > { %v5653_v9 = vpop.permute.xlu1 %5652 }
 0x57d   : > { %v6463_v53 = vpop.permute.xlu0 %6462  ;;  %5743 = vst.msk [vmem:[#allocation5 + $0x30] sm:$0xf] %vm5736_vm7, %v5653_v9  ;;  %v7123_v5 = vpop.f32.mrf.mxu1 }
 0x57e   : > { %6533 = vst.msk [vmem:[#allocation5 + $0xc8] sm:$0xf] %vm2637_vm12, %v6463_v53 }
 0x580   : > { %v5910_v18 = vpop.permute.xlu1 %5909  ;;  %v6756_v55 = vld [vmem:[#allocation5 + $0xc0] sm:$0xff] }
 0x581   : > { %v5655_v45 = vpop.permute.xlu0 %5654  ;;  %6000 = vst.msk [vmem:[#allocation5 + $0x30] sm:$0xf] %vm5993_vm8, %v5910_v18 }
 0x582   : > { %5744 = vst.msk [vmem:[#allocation5 + $0x38] sm:$0xf] %vm5736_vm7, %v5655_v45 }
 0x584   : > { %v6168_v39 = vpop.permute.xlu1 %6167 }
 0x585   : > { %v5912_v8 = vpop.permute.xlu0 %5911  ;;  %v6757_v16 = vld [vmem:[#allocation5 + $0xc8] sm:$0xff]  ;;  %6258 = vst.msk [vmem:[#allocation5 + $0x30] sm:$0xf] %vm6251_vm9, %v6168_v39 }
 0x586   : > { %6001 = vst.msk [vmem:[#allocation5 + $0x38] sm:$0xf] %vm5993_vm8, %v5912_v8  ;;  %v8190_v47 = vcombine.low %v6756_v55, %v6757_v16 }
 0x588   : > { %7157 = vmatmul.mubr.bf16.gmra.mxu1 %v8190_v47  ;;  %v5436_v30 = vpop.permute.xlu1 %5435 }
 0x589   : > { %v6170_v52 = vpop.permute.xlu0 %6169  ;;  %5506 = vst.msk [vmem:[#allocation5 + $0xd0] sm:$0xf] %vm5479_vm6, %v5436_v30  ;;  %8220 = vmatprep.mubr.msk.bf16.mxu1 %vm866_vm2, %v9202_v13 }
 0x58a   : > { %6259 = vst.msk [vmem:[#allocation5 + $0x38] sm:$0xf] %vm6251_vm9, %v6170_v52 }
 0x58c   : > { %v6425_v7 = vpop.permute.xlu1 %6424 }
 0x58d   : > { %v5438_v19 = vpop.permute.xlu0 %5437  ;;  %6514 = vst.msk [vmem:[#allocation5 + $0x30] sm:$0xf] %vm2637_vm12, %v6425_v7 }
 0x58e   : > { %5507 = vst.msk [vmem:[#allocation5 + $0xd8] sm:$0xf] %vm5479_vm6, %v5438_v19 }
 0x590   : > { %v5693_v14 = vpop.permute.xlu1 %5692 }
 0x591   : > { %v6427_v24 = vpop.permute.xlu0 %6426  ;;  %5763 = vst.msk [vmem:[#allocation5 + $0xd0] sm:$0xf] %vm5736_vm7, %v5693_v14 }
 0x592   : > { %6515 = vst.msk [vmem:[#allocation5 + $0x38] sm:$0xf] %vm2637_vm12, %v6427_v24 }
 0x594   : > { %v5950_v59 = vpop.permute.xlu1 %5949  ;;  %v6738_v27 = vld [vmem:[#allocation5 + $0x30] sm:$0xff] }
 0x595   : > { %v5695_v26 = vpop.permute.xlu0 %5694  ;;  %6020 = vst.msk [vmem:[#allocation5 + $0xd0] sm:$0xf] %vm5993_vm8, %v5950_v59 }
 0x596   : > { %5764 = vst.msk [vmem:[#allocation5 + $0xd8] sm:$0xf] %vm5736_vm7, %v5695_v26  ;;  %v9206_v26 = vld [vmem:[#allocation5 + $0xe4] ss:$8 sps:$4 sm:$0xff]  }
 0x598   : > { %v6208_v35 = vpop.permute.xlu1 %6207 }
 0x599   : > { %v5952_v3 = vpop.permute.xlu0 %5951  ;;  %v6739_v54 = vld [vmem:[#allocation5 + $0x38] sm:$0xff]  ;;  %6278 = vst.msk [vmem:[#allocation5 + $0xd0] sm:$0xf] %vm6251_vm9, %v6208_v35 }
 0x59a   : > { %6021 = vst.msk [vmem:[#allocation5 + $0xd8] sm:$0xf] %vm5993_vm8, %v5952_v3  ;;  %v8172_v62 = vcombine.low %v6738_v27, %v6739_v54 }
 0x59c   : > { %7085 = vmatmul.mubr.bf16.gmra.mxu0 %v8172_v62  ;;  %v5400_v60 = vpop.permute.xlu1 %5399 }
 0x59d   : > { %v6210_v22 = vpop.permute.xlu0 %6209  ;;  %5488 = vst.msk [vmem:[#allocation5 + $0x40] sm:$0xf] %vm5479_vm6, %v5400_v60  ;;  %8211 = vmatprep.mubr.msk.bf16.mxu0 %vm866_vm2, %v9204_v37 }
 0x59e   : > { %6279 = vst.msk [vmem:[#allocation5 + $0xd8] sm:$0xf] %vm6251_vm9, %v6210_v22 }
 0x5a0   : > { %v6465_v33 = vpop.permute.xlu1 %6464 }
 0x5a1   : > { %v5402_v36 = vpop.permute.xlu0 %5401  ;;  %6534 = vst.msk [vmem:[#allocation5 + $0xd0] sm:$0xf] %vm2637_vm12, %v6465_v33 }
 0x5a2   : > { %5489 = vst.msk [vmem:[#allocation5 + $0x48] sm:$0xf] %vm5479_vm6, %v5402_v36 }
 0x5a4   : > { %v5657_v17 = vpop.permute.xlu1 %5656 }
 0x5a5   : > { %v6467_v11 = vpop.permute.xlu0 %6466  ;;  %5745 = vst.msk [vmem:[#allocation5 + $0x40] sm:$0xf] %vm5736_vm7, %v5657_v17 }
 0x5a6   : > { %6535 = vst.msk [vmem:[#allocation5 + $0xd8] sm:$0xf] %vm2637_vm12, %v6467_v11 }
 0x5a8   : > { %v5914_v21 = vpop.permute.xlu1 %5913  ;;  %v6758_v38 = vld [vmem:[#allocation5 + $0xd0] sm:$0xff] }
 0x5a9   : > { %v5659_v50 = vpop.permute.xlu0 %5658  ;;  %6002 = vst.msk [vmem:[#allocation5 + $0x40] sm:$0xf] %vm5993_vm8, %v5914_v21 }
 0x5aa   : > { %5746 = vst.msk [vmem:[#allocation5 + $0x48] sm:$0xf] %vm5736_vm7, %v5659_v50 }
 0x5ac   : > { %v6172_v63 = vpop.permute.xlu1 %6171 }
 0x5ad   : > { %v5916_v46 = vpop.permute.xlu0 %5915  ;;  %v6759_v0 = vld [vmem:[#allocation5 + $0xd8] sm:$0xff]  ;;  %6260 = vst.msk [vmem:[#allocation5 + $0x40] sm:$0xf] %vm6251_vm9, %v6172_v63 }
 0x5ae   : > { %6003 = vst.msk [vmem:[#allocation5 + $0x48] sm:$0xf] %vm5993_vm8, %v5916_v46  ;;  %v8192_v4 = vcombine.low %v6758_v38, %v6759_v0  ;;  %v9208_v0 = vld [vmem:[#allocation5 + $0xf4] ss:$8 sps:$4 sm:$0xff]  }
 0x5b0   : > { %7165 = vmatmul.mubr.bf16.gmra.mxu1 %v8192_v4  ;;  %v5440_v28 = vpop.permute.xlu1 %5439 }
 0x5b1   : > { %v6174_v23 = vpop.permute.xlu0 %6173  ;;  %5508 = vst.msk [vmem:[#allocation5 + $0xe0] sm:$0xf] %vm5479_vm6, %v5440_v28  ;;  %8221 = vmatprep.mubr.msk.bf16.mxu1 %vm866_vm2, %v9206_v26 }
 0x5b2   : > { %6261 = vst.msk [vmem:[#allocation5 + $0x48] sm:$0xf] %vm6251_vm9, %v6174_v23 }
 0x5b4   : > { %v6429_v29 = vpop.permute.xlu1 %6428 }
 0x5b5   : > { %v5442_v51 = vpop.permute.xlu0 %5441  ;;  %6516 = vst.msk [vmem:[#allocation5 + $0x40] sm:$0xf] %vm2637_vm12, %v6429_v29 }
 0x5b6   : > { %5509 = vst.msk [vmem:[#allocation5 + $0xe8] sm:$0xf] %vm5479_vm6, %v5442_v51 }
 0x5b8   : > { %v5697_v10 = vpop.permute.xlu1 %5696 }
 0x5b9   : > { %v6431_v2 = vpop.permute.xlu0 %6430  ;;  %5765 = vst.msk [vmem:[#allocation5 + $0xe0] sm:$0xf] %vm5736_vm7, %v5697_v10 }
 0x5ba   : > { %6517 = vst.msk [vmem:[#allocation5 + $0x48] sm:$0xf] %vm2637_vm12, %v6431_v2 }
 0x5bc   : > { %v7126_v56 = vpop.f32.mrf.mxu1  ;;  %v5954_v43 = vpop.permute.xlu1 %5953  ;;  %v6740_v1 = vld [vmem:[#allocation5 + $0x40] sm:$0xff] }
 0x5bd   : > { %v5699_v31 = vpop.permute.xlu0 %5698  ;;  %v7212_v32 = vmul.f32 %v11743_v48, %v7126_v56  ;;  %6022 = vst.msk [vmem:[#allocation5 + $0xe0] sm:$0xf] %vm5993_vm8, %v5954_v43 }
 0x5be   : > { %5766 = vst.msk [vmem:[#allocation5 + $0xe8] sm:$0xf] %vm5736_vm7, %v5699_v31  ;;  %v7128_v44 = vpop.f32.mrf.mxu1 }
 0x5bf   : > { %v7251_v58 = vadd.f32 %v11750_v40, %v7212_v32 }
 0x5c0   : > { %v7129_v25 = vpop.f32.mrf.mxu1  ;;  %v6212_v5 = vpop.permute.xlu1 %6211 }
 0x5c1   : > { %v5956_v20 = vpop.permute.xlu0 %5955  ;;  %v6741_v12 = vld [vmem:[#allocation5 + $0x48] sm:$0xff]  ;;  %v7283_v53 = vmax.f32 %v7251_v58, 0.0  ;;  %v7213_v9 = vmul.f32 %v11743_v48, %v7129_v25  ;;  %6280 = vst.msk [vmem:[#allocation5 + $0xe0] sm:$0xf] %vm6251_vm9, %v6212_v5 }
 0x5c2   : > { %6023 = vst.msk [vmem:[#allocation5 + $0xe8] sm:$0xf] %vm5993_vm8, %v5956_v20  ;;  %v8174_v45 = vcombine.low %v6740_v1, %v6741_v12  ;;  %v7131_v18 = vpop.f32.mrf.mxu1 }
 0x5c3   : > { %v7252_v8 = vadd.f32 %v11750_v40, %v7213_v9  ;;  %7331 = vxpose.xlu0.b32.start [1/16] (narrow) %v7283_v53, 16 }
 0x5c4   : > { %7093 = vmatmul.mubr.bf16.gmra.mxu0 %v8174_v45  ;;  %v6469_v15 = vpop.permute.xlu1 %6468 }
 0x5c5   : > { %v6214_v55 = vpop.permute.xlu0 %6213  ;;  %v7284_v16 = vmax.f32 %v7252_v8, 0.0  ;;  %6536 = vst.msk [vmem:[#allocation5 + $0xe0] sm:$0xf] %vm2637_vm12, %v6469_v15 }
 0x5c6   : > { %6281 = vst.msk [vmem:[#allocation5 + $0xe8] sm:$0xf] %vm6251_vm9, %v6214_v55 }
 0x5c7   : > { %7332 = vxpose.xlu0.b32.cont [2/16] (narrow) %v7284_v16, 16 }
 0x5c8   : > { %v5444_v47 = vpop.permute.xlu1 %5443 }
 0x5c9   : > { %v6471_v39 = vpop.permute.xlu0 %6470  ;;  %5510 = vst.msk [vmem:[#allocation5 + $0xf0] sm:$0xf] %vm5479_vm6, %v5444_v47 }
 0x5ca   : > { %6537 = vst.msk [vmem:[#allocation5 + $0xe8] sm:$0xf] %vm2637_vm12, %v6471_v39 }
 0x5cc   : > { %v5701_v30 = vpop.permute.xlu1 %5700  ;;  %v6760_v24 = vld [vmem:[#allocation5 + $0xe0] sm:$0xff] }
 0x5cd   : > { %v5446_v52 = vpop.permute.xlu0 %5445  ;;  %5767 = vst.msk [vmem:[#allocation5 + $0xf0] sm:$0xf] %vm5736_vm7, %v5701_v30 }
 0x5ce   : > { %5511 = vst.msk [vmem:[#allocation5 + $0xf8] sm:$0xf] %vm5479_vm6, %v5446_v52 }
 0x5d0   : > { %v7134_v7 = vpop.f32.mrf.mxu1  ;;  %v5958_v3 = vpop.permute.xlu1 %5957 }
 0x5d1   : > { %v5703_v19 = vpop.permute.xlu0 %5702  ;;  %v6761_v14 = vld [vmem:[#allocation5 + $0xe8] sm:$0xff]  ;;  %v7214_v59 = vmul.f32 %v11743_v48, %v7134_v7  ;;  %6024 = vst.msk [vmem:[#allocation5 + $0xf0] sm:$0xf] %vm5993_vm8, %v5958_v3 }
 0x5d2   : > { %5768 = vst.msk [vmem:[#allocation5 + $0xf8] sm:$0xf] %vm5736_vm7, %v5703_v19  ;;  %v8194_v27 = vcombine.low %v6760_v24, %v6761_v14  ;;  %v7136_v54 = vpop.f32.mrf.mxu1 }
 0x5d3   : > { %v7253_v6 = vadd.f32 %v11750_v40, %v7214_v59 }
 0x5d4   : > { %7173 = vmatmul.mubr.bf16.gmra.mxu1 %v8194_v27  ;;  %v7137_v62 = vpop.f32.mrf.mxu1  ;;  %v6216_v36 = vpop.permute.xlu1 %6215 }
 0x5d5   : > { %v5960_v35 = vpop.permute.xlu0 %5959  ;;  %v7285_v22 = vmax.f32 %v7253_v6, 0.0  ;;  %v7215_v60 = vmul.f32 %v11743_v48, %v7137_v62  ;;  %6282 = vst.msk [vmem:[#allocation5 + $0xf0] sm:$0xf] %vm6251_vm9, %v6216_v36  ;;  %8222 = vmatprep.mubr.msk.bf16.mxu1 %vm866_vm2, %v9208_v0 }
 0x5d6   : > { %6025 = vst.msk [vmem:[#allocation5 + $0xf8] sm:$0xf] %vm5993_vm8, %v5960_v35  ;;  %v7139_v33 = vpop.f32.mrf.mxu1 }
 0x5d7   : > { %v7254_v11 = vadd.f32 %v11750_v40, %v7215_v60  ;;  %7333 = vxpose.xlu0.b32.cont [3/16] (narrow) %v7285_v22, 16 }
 0x5d8   : > { %v6473_v21 = vpop.permute.xlu1 %6472 }
 0x5d9   : > { %v6218_v17 = vpop.permute.xlu0 %6217  ;;  %v7286_v50 = vmax.f32 %v7254_v11, 0.0  ;;  %6538 = vst.msk [vmem:[#allocation5 + $0xf0] sm:$0xf] %vm2637_vm12, %v6473_v21 }
 0x5da   : > { %6283 = vst.msk [vmem:[#allocation5 + $0xf8] sm:$0xf] %vm6251_vm9, %v6218_v17 }
 0x5db   : > { %7334 = vxpose.xlu0.b32.cont [4/16] (narrow) %v7286_v50, 16 }
 0x5dd   : > { %v6475_v46 = vpop.permute.xlu0 %6474 }
 0x5de   : > { %6539 = vst.msk [vmem:[#allocation5 + $0xf8] sm:$0xf] %vm2637_vm12, %v6475_v46 }
 0x5e2   : > { %v7062_v38 = vpop.f32.mrf.mxu0 }
 0x5e3   : > { %v7196_v63 = vmul.f32 %v11743_v48, %v7062_v38 }
 0x5e4   : > { %v7064_v4 = vpop.f32.mrf.mxu0 }
 0x5e5   : > { %v9210_v13 = vld [vmem:[#allocation5 + $0xf0] ss:$8 sps:$4 sm:$0xff]   ;;  %v7235_v23 = vadd.f32 %v11750_v40, %v7196_v63 }
 0x5e6   : > { %7181 = vmatmul.mubr.bf16.gmra.mxu1 %v9210_v13  ;;  %v7065_v28 = vpop.f32.mrf.mxu0 }
 0x5e7   : > { %v7267_v51 = vmax.f32 %v7235_v23, 0.0  ;;  %v7197_v29 = vmul.f32 %v11743_v48, %v7065_v28 }
 0x5e8   : > { %v7067_v2 = vpop.f32.mrf.mxu0 }
 0x5e9   : > { %v7236_v10 = vadd.f32 %v11750_v40, %v7197_v29  ;;  %7299 = vxpose.xlu1.b32.start [1/16] (narrow) %v7267_v51, 16 }
 0x5eb   : > { %v7268_v31 = vmax.f32 %v7236_v10, 0.0 }
 0x5ed   : > { %7300 = vxpose.xlu1.b32.cont [2/16] (narrow) %v7268_v31, 16 }
 0x5f8   : > { %v7142_v56 = vpop.f32.mrf.mxu1 }
 0x5f9   : > { %v7216_v32 = vmul.f32 %v11743_v48, %v7142_v56 }
 0x5fa   : > { %v7144_v43 = vpop.f32.mrf.mxu1 }
 0x5fb   : > { %v7255_v44 = vadd.f32 %v11750_v40, %v7216_v32 }
 0x5fc   : > { %v7145_v58 = vpop.f32.mrf.mxu1 }
 0x5fd   : > { %v7287_v20 = vmax.f32 %v7255_v44, 0.0  ;;  %v7217_v25 = vmul.f32 %v11743_v48, %v7145_v58 }
 0x5fe   : > { %v7147_v1 = vpop.f32.mrf.mxu1 }
 0x5ff   : > { %v7256_v12 = vadd.f32 %v11750_v40, %v7217_v25  ;;  %7335 = vxpose.xlu0.b32.cont [5/16] (narrow) %v7287_v20, 16 }
 0x601   : > { %v7288_v37 = vmax.f32 %v7256_v12, 0.0 }
 0x603   : > { %7336 = vxpose.xlu0.b32.cont [6/16] (narrow) %v7288_v37, 16 }
 0x60c   : > { %v7070_v53 = vpop.f32.mrf.mxu0 }
 0x60d   : > { %v7198_v9 = vmul.f32 %v11743_v48, %v7070_v53 }
 0x60e   : > { %v7072_v5 = vpop.f32.mrf.mxu0 }
 0x60f   : > { %v7237_v45 = vadd.f32 %v11750_v40, %v7198_v9 }
 0x610   : > { %v7073_v18 = vpop.f32.mrf.mxu0 }
 0x611   : > { %v7269_v8 = vmax.f32 %v7237_v45, 0.0  ;;  %v7199_v55 = vmul.f32 %v11743_v48, %v7073_v18 }
 0x612   : > { %v7075_v16 = vpop.f32.mrf.mxu0 }
 0x613   : > { %v7238_v15 = vadd.f32 %v11750_v40, %v7199_v55  ;;  %7301 = vxpose.xlu1.b32.cont [3/16] (narrow) %v7269_v8, 16 }
 0x615   : > { %v7270_v39 = vmax.f32 %v7238_v15, 0.0 }
 0x617   : > { %7302 = vxpose.xlu1.b32.cont [4/16] (narrow) %v7270_v39, 16  ;;  %v7206_v39 = vmul.f32 %v11743_v48, %v11633_v57 }
 0x620   : > { %v7150_v47 = vpop.f32.mrf.mxu1 }
 0x621   : > { %v7218_v52 = vmul.f32 %v11743_v48, %v7150_v47 }
 0x622   : > { %v7152_v30 = vpop.f32.mrf.mxu1 }
 0x623   : > { %v7257_v19 = vadd.f32 %v11750_v40, %v7218_v52 }
 0x624   : > { %v7153_v7 = vpop.f32.mrf.mxu1 }
 0x625   : > { %v7289_v24 = vmax.f32 %v7257_v19, 0.0  ;;  %v7219_v14 = vmul.f32 %v11743_v48, %v7153_v7  ;;  %v7245_v7 = vadd.f32 %v11750_v40, %v7206_v39 }
 0x626   : > { %v7155_v26 = vpop.f32.mrf.mxu1 }
 0x627   : > { %v7258_v59 = vadd.f32 %v11750_v40, %v7219_v14  ;;  %7337 = vxpose.xlu0.b32.cont [7/16] (narrow) %v7289_v24, 16  ;;  %v7207_v24 = vmul.f32 %v11743_v48, %v11640_v41  ;;  %v7208_v26 = vmul.f32 %v11743_v48, %v11669_v61 }
 0x629   : > { %v7290_v3 = vmax.f32 %v7258_v59, 0.0  ;;  %v7277_v59 = vmax.f32 %v7245_v7, 0.0  ;;  %v7246_v57 = vadd.f32 %v11750_v40, %v7207_v24 }
 0x62b   : > { %7338 = vxpose.xlu0.b32.cont [8/16] (narrow) %v7290_v3, 16  ;;  %v7247_v3 = vadd.f32 %v11750_v40, %v7208_v26 }
 0x634   : > { %v7078_v27 = vpop.f32.mrf.mxu0 }
 0x635   : > { %v7200_v54 = vmul.f32 %v11743_v48, %v7078_v27 }
 0x636   : > { %v7080_v6 = vpop.f32.mrf.mxu0 }
 0x637   : > { %v7239_v35 = vadd.f32 %v11750_v40, %v7200_v54  ;;  %v7278_v54 = vmax.f32 %v7246_v57, 0.0  ;;  %v7209_v6 = vmul.f32 %v11743_v48, %v11677_v49 }
 0x638   : > { %v7081_v62 = vpop.f32.mrf.mxu0 }
 0x639   : > { %v7271_v22 = vmax.f32 %v7239_v35, 0.0  ;;  %v7201_v60 = vmul.f32 %v11743_v48, %v7081_v62  ;;  %v7248_v61 = vadd.f32 %v11750_v40, %v7209_v6 }
 0x63a   : > { %v7083_v36 = vpop.f32.mrf.mxu0 }
 0x63b   : > { %v7240_v33 = vadd.f32 %v11750_v40, %v7201_v60  ;;  %7303 = vxpose.xlu1.b32.cont [5/16] (narrow) %v7271_v22, 16  ;;  %v7279_v22 = vmax.f32 %v7247_v3, 0.0  ;;  %v7210_v36 = vmul.f32 %v11743_v48, %v11699_v34  ;;  %v7280_v49 = vmax.f32 %v7248_v61, 0.0 }
 0x63d   : > { %v7272_v11 = vmax.f32 %v7240_v33, 0.0 }
 0x63f   : > { %7304 = vxpose.xlu1.b32.cont [6/16] (narrow) %v7272_v11, 16 }
 0x648   : > { %v7158_v17 = vpop.f32.mrf.mxu1 }
 0x649   : > { %v7220_v50 = vmul.f32 %v11743_v48, %v7158_v17 }
 0x64a   : > { %v7160_v21 = vpop.f32.mrf.mxu1 }
 0x64b   : > { %v7259_v46 = vadd.f32 %v11750_v40, %v7220_v50  ;;  %v7249_v21 = vadd.f32 %v11750_v40, %v7210_v36 }
 0x64c   : > { %v7161_v38 = vpop.f32.mrf.mxu1 }
 0x64d   : > { %v7291_v0 = vmax.f32 %v7259_v46, 0.0  ;;  %v7221_v13 = vmul.f32 %v11743_v48, %v7161_v38  ;;  %v7211_v46 = vmul.f32 %v11743_v48, %v11703_v42 }
 0x64e   : > { %v7163_v63 = vpop.f32.mrf.mxu1 }
 0x64f   : > { %v7260_v4 = vadd.f32 %v11750_v40, %v7221_v13  ;;  %7339 = vxpose.xlu0.b32.cont [9/16] (narrow) %v7291_v0, 16  ;;  %v7281_v0 = vmax.f32 %v7249_v21, 0.0  ;;  %v7250_v34 = vadd.f32 %v11750_v40, %v7211_v46 }
 0x651   : > { %v7292_v23 = vmax.f32 %v7260_v4, 0.0  ;;  %v7282_v13 = vmax.f32 %v7250_v34, 0.0 }
 0x653   : > { %7340 = vxpose.xlu0.b32.cont [10/16] (narrow) %v7292_v23, 16 }
 0x65c   : > { %v7086_v28 = vpop.f32.mrf.mxu0 }
 0x65d   : > { %v7202_v51 = vmul.f32 %v11743_v48, %v7086_v28 }
 0x65e   : > { %v7088_v29 = vpop.f32.mrf.mxu0 }
 0x65f   : > { %v7241_v2 = vadd.f32 %v11750_v40, %v7202_v51 }
 0x660   : > { %v7089_v10 = vpop.f32.mrf.mxu0 }
 0x661   : > { %v7273_v31 = vmax.f32 %v7241_v2, 0.0  ;;  %v7203_v56 = vmul.f32 %v11743_v48, %v7089_v10 }
 0x662   : > { %v7091_v32 = vpop.f32.mrf.mxu0 }
 0x663   : > { %v7242_v43 = vadd.f32 %v11750_v40, %v7203_v56  ;;  %7305 = vxpose.xlu1.b32.cont [7/16] (narrow) %v7273_v31, 16 }
 0x665   : > { %v7274_v44 = vmax.f32 %v7242_v43, 0.0 }
 0x667   : > { %7306 = vxpose.xlu1.b32.cont [8/16] (narrow) %v7274_v44, 16 }
 0x670   : > { %v7166_v58 = vpop.f32.mrf.mxu1 }
 0x671   : > { %v7222_v20 = vmul.f32 %v11743_v48, %v7166_v58 }
 0x672   : > { %v7168_v25 = vpop.f32.mrf.mxu1 }
 0x673   : > { %v7261_v1 = vadd.f32 %v11750_v40, %v7222_v20 }
 0x674   : > { %v7169_v12 = vpop.f32.mrf.mxu1 }
 0x675   : > { %v7293_v37 = vmax.f32 %v7261_v1, 0.0  ;;  %v7223_v53 = vmul.f32 %v11743_v48, %v7169_v12 }
 0x676   : > { %v7171_v9 = vpop.f32.mrf.mxu1 }
 0x677   : > { %v7262_v5 = vadd.f32 %v11750_v40, %v7223_v53  ;;  %7341 = vxpose.xlu0.b32.cont [11/16] (narrow) %v7293_v37, 16 }
 0x679   : > { %v7294_v45 = vmax.f32 %v7262_v5, 0.0 }
 0x67b   : > { %7342 = vxpose.xlu0.b32.cont [12/16] (narrow) %v7294_v45, 16 }
 0x684   : > { %v7094_v18 = vpop.f32.mrf.mxu0 }
 0x685   : > { %v7204_v8 = vmul.f32 %v11743_v48, %v7094_v18 }
 0x686   : > { %v7096_v55 = vpop.f32.mrf.mxu0 }
 0x687   : > { %v7243_v16 = vadd.f32 %v11750_v40, %v7204_v8 }
 0x688   : > { %v7097_v15 = vpop.f32.mrf.mxu0 }
 0x689   : > { %v7275_v47 = vmax.f32 %v7243_v16, 0.0  ;;  %v7205_v52 = vmul.f32 %v11743_v48, %v7097_v15 }
 0x68a   : > { %v7099_v30 = vpop.f32.mrf.mxu0 }
 0x68b   : > { %v7244_v19 = vadd.f32 %v11750_v40, %v7205_v52  ;;  %7307 = vxpose.xlu1.b32.cont [9/16] (narrow) %v7275_v47, 16 }
 0x68d   : > { %v7276_v14 = vmax.f32 %v7244_v19, 0.0 }
 0x68f   : > { %7308 = vxpose.xlu1.b32.cont [10/16] (narrow) %v7276_v14, 16 }
 0x693   : > { %7309 = vxpose.xlu1.b32.cont [11/16] (narrow) %v7277_v59, 16 }
 0x694   : > { %v7174_v27 = vpop.f32.mrf.mxu1 }
 0x695   : > { %v7224_v35 = vmul.f32 %v11743_v48, %v7174_v27 }
 0x696   : > { %v7176_v62 = vpop.f32.mrf.mxu1 }
 0x697   : > { %v7263_v41 = vadd.f32 %v11750_v40, %v7224_v35  ;;  %7310 = vxpose.xlu1.b32.cont [12/16] (narrow) %v7278_v54, 16 }
 0x698   : > { %v7177_v60 = vpop.f32.mrf.mxu1 }
 0x699   : > { %v7295_v33 = vmax.f32 %v7263_v41, 0.0  ;;  %v7225_v11 = vmul.f32 %v11743_v48, %v7177_v60 }
 0x69a   : > { %v7179_v17 = vpop.f32.mrf.mxu1 }
 0x69b   : > { %v7264_v50 = vadd.f32 %v11750_v40, %v7225_v11  ;;  %7311 = vxpose.xlu1.b32.cont [13/16] (narrow) %v7279_v22, 16  ;;  %7343 = vxpose.xlu0.b32.cont [13/16] (narrow) %v7295_v33, 16 }
 0x69d   : > { %v7296_v38 = vmax.f32 %v7264_v50, 0.0 }
 0x69f   : > { %7312 = vxpose.xlu1.b32.cont [14/16] (narrow) %v7280_v49, 16  ;;  %7344 = vxpose.xlu0.b32.cont [14/16] (narrow) %v7296_v38, 16 }
 0x6a3   : > { %7313 = vxpose.xlu1.b32.cont [15/16] (narrow) %v7281_v0, 16 }
 0x6a6   : > { %v7182_v63 = vpop.f32.mrf.mxu1 }
 0x6a7   : > { %7314 = vxpose.xlu1.b32.end [16/16] (narrow) %v7282_v13, 16  ;;  %v7226_v4 = vmul.f32 %v11743_v48, %v7182_v63 }
 0x6a8   : > { %v7184_v23 = vpop.f32.mrf.mxu1 }
 0x6a9   : > { %v7265_v28 = vadd.f32 %v11750_v40, %v7226_v4 }
 0x6aa   : > { %v7185_v51 = vpop.f32.mrf.mxu1 }
 0x6ab   : > { %v7297_v29 = vmax.f32 %v7265_v28, 0.0  ;;  %v7227_v42 = vmul.f32 %v11743_v48, %v7185_v51 }
 0x6ac   : > { %v7187_v2 = vpop.f32.mrf.mxu1 }
 0x6ad   : > { %v7266_v10 = vadd.f32 %v11750_v40, %v7227_v42  ;;  %7345 = vxpose.xlu0.b32.cont [15/16] (narrow) %v7297_v29, 16 }
 0x6af   : > { %v7298_v31 = vmax.f32 %v7266_v10, 0.0 }
 0x6b1   : > { %7346 = vxpose.xlu0.b32.end [16/16] (narrow) %v7298_v31, 16 }
 0x6e7   : > { %v7315_v56 = vpop.trf.xlu1 }
 0x6e8   : > { %7363 = vst [vmem:[%s352_s21] sm:$0xff] %v7315_v56 }
 0x6eb   : > { %v7316_v32 = vpop.trf.xlu1 }
 0x6ec   : > { %7365 = vst [vmem:[%s352_s21 + $0x10] sm:$0xff] %v7316_v32 }
 0x6f1   : > { %v7347_v43 = vpop.trf.xlu0 }
 0x6f2   : > { %7364 = vst [vmem:[%s352_s21 + $0x8] sm:$0xff] %v7347_v43 }
 0x6f5   : > { %v7348_v44 = vpop.trf.xlu0 }
 0x6f6   : > { %7366 = vst [vmem:[%s352_s21 + $0x18] sm:$0xff] %v7348_v44 }
 0x6f7 PF: > { %s19_s30 = sadd.s32 1, %s9219_s30  }
 0x6f8   : > { %p16_p4 = scmp.ge.s32.totalorder %s19_s30, 4  }
 0x6fa   :  { %18 = sbr.rel (!%p16_p4) target bundleno = 1 (0x1), region = 93 }

</bundles_post_ra>
